<compile_context>
chip_gen: v5e
topology: v5e:2x2
jax: 0.10.0
libtpu: 0.0.40
codegen_flags: <defaults>
</compile_context>

<pallas_src>
import functools

import jax
import jax.numpy as jnp
from jax.experimental import pallas as pl
from jax.experimental.pallas import tpu as pltpu

BN_EPS = 1e-5
_DEF_TM = 512                       # M-tile for the pointwise matmuls
_VMEM_LIMIT = 64 * 1024 * 1024      # explicit scoped-VMEM limit (fits v7x too)


# ----------------------------------------------------------------------------
# Pallas kernels
# ----------------------------------------------------------------------------
def _activate(y, act):
    if act == "relu6":
        return jnp.clip(y, 0.0, 6.0)
    if act == "relu":
        return jnp.maximum(y, 0.0)
    return y


def _mm_bias_kernel(x_ref, w_ref, b_ref, o_ref, *, act):
    """y = act(x @ w_scaled + bias)   (BN scale already folded into w)."""
    y = jnp.dot(x_ref[...].astype(jnp.bfloat16), w_ref[...],
                preferred_element_type=jnp.float32)
    y = y + b_ref[...]
    o_ref[...] = _activate(y, act).astype(o_ref.dtype)


def _mm_bias_res_kernel(x_ref, w_ref, b_ref, r_ref, o_ref, *, act):
    """y = act(x @ w_scaled + bias + residual)."""
    y = jnp.dot(x_ref[...].astype(jnp.bfloat16), w_ref[...],
                preferred_element_type=jnp.float32)
    y = y + b_ref[...] + r_ref[...]
    o_ref[...] = _activate(y, act).astype(o_ref.dtype)


def _dw3x3_s1_kernel(r0_ref, r1_ref, r2_ref, w_ref, b_ref, out_ref, *, Wo):
    """Depthwise 3x3, stride 1: one output row per grid step (3-row halo)."""
    w = w_ref[...]                                  # (9, C), BN scale folded
    rows = (r0_ref[0, 0], r1_ref[0, 0], r2_ref[0, 0])   # each (W+2, C)
    acc = jnp.zeros((Wo, w.shape[1]), jnp.float32)
    for kh in range(3):
        r = rows[kh]
        for kw in range(3):
            acc = acc + r[kw:kw + Wo, :] * w[3 * kh + kw:3 * kh + kw + 1, :]
    y = acc + b_ref[...]
    out_ref[0, 0] = jnp.clip(y, 0.0, 6.0).astype(out_ref.dtype)


def _dw3x3_s2_kernel(e0_ref, e1_ref, e2_ref, o0_ref, o1_ref, o2_ref,
                     w_ref, b_ref, out_ref, *, Wo):
    """Depthwise 3x3, stride 2: stride-2 output computed directly from the
    even/odd column phases of the padded input (no wasted stride-1 work)."""
    w = w_ref[...]                                  # (9, C)
    ev = (e0_ref[0, 0], e1_ref[0, 0], e2_ref[0, 0])     # even cols, (We, C)
    od = (o0_ref[0, 0], o1_ref[0, 0], o2_ref[0, 0])     # odd  cols, (Wod, C)
    acc = jnp.zeros((Wo, w.shape[1]), jnp.float32)
    for kh in range(3):
        acc = acc + ev[kh][0:Wo, :]     * w[3 * kh + 0:3 * kh + 1, :]   # kw=0
        acc = acc + od[kh][0:Wo, :]     * w[3 * kh + 1:3 * kh + 2, :]   # kw=1
        acc = acc + ev[kh][1:Wo + 1, :] * w[3 * kh + 2:3 * kh + 3, :]   # kw=2
    y = acc + b_ref[...]
    out_ref[0, 0] = jnp.clip(y, 0.0, 6.0).astype(out_ref.dtype)


def _deconv_phase_kernel(xc_ref, xn_ref, w_ref, b_ref,
                         ee_ref, eo_ref, oe_ref, oo_ref, *, W):
    """ConvTranspose2d(k=3, s=2, p=1) sub-pixel decomposition for one input
    row `a` (xc) and its successor `a+1` (xn, zero-padded at the bottom):
        out[2a  , 2b  ] = x[a,b]   @ W[1,1]
        out[2a  , 2b+1] = x[a,b]   @ W[1,2] + x[a,b+1] @ W[1,0]
        out[2a+1, 2b  ] = x[a,b]   @ W[2,1] + x[a+1,b] @ W[0,1]
        out[2a+1, 2b+1] = x[a,b]@W[2,2] + x[a,b+1]@W[2,0]
                          + x[a+1,b]@W[0,2] + x[a+1,b+1]@W[0,0]
    (W[kh,kw] = torch_weight[:, :, kh, kw], BN scale folded in.)"""
    xc = xc_ref[0, 0]                               # (W+1, Cin) f32
    xn = xn_ref[0, 0]
    bf = jnp.bfloat16
    xc0 = xc[0:W, :].astype(bf)
    xc1 = xc[1:W + 1, :].astype(bf)
    xn0 = xn[0:W, :].astype(bf)
    xn1 = xn[1:W + 1, :].astype(bf)
    b = b_ref[...]                                  # (1, Cout) f32

    def mm(a, kh, kw):
        return jnp.dot(a, w_ref[kh, kw], preferred_element_type=jnp.float32)

    ee_ref[0, 0] = (mm(xc0, 1, 1) + b).astype(ee_ref.dtype)
    eo_ref[0, 0] = (mm(xc0, 1, 2) + mm(xc1, 1, 0) + b).astype(eo_ref.dtype)
    oe_ref[0, 0] = (mm(xc0, 2, 1) + mm(xn0, 0, 1) + b).astype(oe_ref.dtype)
    oo_ref[0, 0] = (mm(xc0, 2, 2) + mm(xc1, 2, 0) +
                    mm(xn0, 0, 2) + mm(xn1, 0, 0) + b).astype(oo_ref.dtype)


# ----------------------------------------------------------------------------
# Kernel wrappers
# ----------------------------------------------------------------------------
def matmul_bias(x, w_bf16, bias, residual=None, act="none", tm=_DEF_TM):
    """Row-tiled fused (x @ w) + bias [+ residual] + activation."""
    M, K = x.shape
    Nc = w_bf16.shape[1]
    TM = M if M <= tm else tm
    grid = (pl.cdiv(M, TM),)
    b2 = bias.reshape(1, Nc).astype(jnp.float32)

    in_specs = [
        pl.BlockSpec((TM, K), lambda i: (i, 0)),
        pl.BlockSpec((K, Nc), lambda i: (0, 0)),
        pl.BlockSpec((1, Nc), lambda i: (0, 0)),
    ]
    args = [x, w_bf16, b2]
    if residual is not None:
        in_specs.append(pl.BlockSpec((TM, Nc), lambda i: (i, 0)))
        args.append(residual)
        kern = functools.partial(_mm_bias_res_kernel, act=act)
    else:
        kern = functools.partial(_mm_bias_kernel, act=act)

    return pl.pallas_call(
        kern,
        out_shape=jax.ShapeDtypeStruct((M, Nc), jnp.float32),
        grid=grid,
        in_specs=in_specs,
        out_specs=pl.BlockSpec((TM, Nc), lambda i: (i, 0)),
        compiler_params=pltpu.CompilerParams(
            dimension_semantics=("parallel",),
            vmem_limit_bytes=_VMEM_LIMIT),
    )(*args)


def dwconv3x3_bn_relu6(x_nhwc, w, scale, bias, stride):
    """Depthwise 3x3, padding=1, stride in {1,2}, + folded BN + ReLU6."""
    N, H, W, C = x_nhwc.shape
    ws = (w * scale.reshape(1, 1, C)).reshape(9, C).astype(jnp.float32)
    b2 = bias.reshape(1, C).astype(jnp.float32)
    xp = jnp.pad(x_nhwc, ((0, 0), (1, 1), (1, 1), (0, 0)))  # spatial pad glue

    w_spec = pl.BlockSpec((9, C), lambda n, h: (0, 0))
    b_spec = pl.BlockSpec((1, C), lambda n, h: (0, 0))
    cp = pltpu.CompilerParams(dimension_semantics=("parallel", "parallel"),
                              vmem_limit_bytes=_VMEM_LIMIT)

    if stride == 1:
        Ho, Wo, Wp = H, W, W + 2

        def row_spec(dh):
            return pl.BlockSpec((1, 1, Wp, C), lambda n, h: (n, h + dh, 0, 0))

        return pl.pallas_call(
            functools.partial(_dw3x3_s1_kernel, Wo=Wo),
            out_shape=jax.ShapeDtypeStruct((N, Ho, Wo, C), jnp.float32),
            grid=(N, Ho),
            in_specs=[row_spec(0), row_spec(1), row_spec(2), w_spec, b_spec],
            out_specs=pl.BlockSpec((1, 1, Wo, C), lambda n, h: (n, h, 0, 0)),
            compiler_params=cp,
        )(xp, xp, xp, ws, b2)

    # stride == 2: split padded input into even/odd column phases (glue is a
    # pure re-layout: total bytes == input bytes), compute stride-2 rows only.
    Ho = (H - 1) // 2 + 1
    Wo = (W - 1) // 2 + 1
    xpe = xp[:, :, 0::2, :]
    xpo = xp[:, :, 1::2, :]
    We, Wod = xpe.shape[2], xpo.shape[2]

    def espec(dh):
        return pl.BlockSpec((1, 1, We, C), lambda n, h: (n, 2 * h + dh, 0, 0))

    def ospec(dh):
        return pl.BlockSpec((1, 1, Wod, C), lambda n, h: (n, 2 * h + dh, 0, 0))

    return pl.pallas_call(
        functools.partial(_dw3x3_s2_kernel, Wo=Wo),
        out_shape=jax.ShapeDtypeStruct((N, Ho, Wo, C), jnp.float32),
        grid=(N, Ho),
        in_specs=[espec(0), espec(1), espec(2),
                  ospec(0), ospec(1), ospec(2), w_spec, b_spec],
        out_specs=pl.BlockSpec((1, 1, Wo, C), lambda n, h: (n, h, 0, 0)),
        compiler_params=cp,
    )(xpe, xpe, xpe, xpo, xpo, xpo, ws, b2)


def convtranspose3x3_s2_bn_relu(x_nhwc, w_t, scale, bias, out_pad_hw,
                                residual_nhwc):
    """ConvTranspose2d(k=3, stride=2, padding=1, output_padding=out_pad_hw,
    bias=False) + BN, then `relu(. + residual)`.  Sub-pixel phase kernel."""
    N, H, W, Cin = x_nhwc.shape
    Cout = w_t.shape[1]
    oph, opw = out_pad_hw
    Ho = (H - 1) * 2 - 2 + 3 + oph
    Wo = (W - 1) * 2 - 2 + 3 + opw

    # (Cin, Cout, 3, 3) -> (3, 3, Cin, Cout); fold BN scale; bf16 for the MXU.
    w_conv = jnp.transpose(w_t, (2, 3, 0, 1)) * scale.reshape(1, 1, 1, Cout)
    w_bf = w_conv.astype(jnp.bfloat16)
    b2 = bias.reshape(1, Cout).astype(jnp.float32)

    # One zero row (bottom) / col (right) so the "+1" taps are always in range.
    xpb = jnp.pad(x_nhwc, ((0, 0), (0, 1), (0, 1), (0, 0)))
    Wp = W + 1

    def row_spec(dh):
        return pl.BlockSpec((1, 1, Wp, Cin), lambda n, h: (n, h + dh, 0, 0))

    phase = jax.ShapeDtypeStruct((N, H, W, Cout), jnp.float32)
    out_spec = pl.BlockSpec((1, 1, W, Cout), lambda n, h: (n, h, 0, 0))

    ee, eo, oe, oo = pl.pallas_call(
        functools.partial(_deconv_phase_kernel, W=W),
        out_shape=(phase, phase, phase, phase),
        grid=(N, H),
        in_specs=[row_spec(0), row_spec(1),
                  pl.BlockSpec((3, 3, Cin, Cout), lambda n, h: (0, 0, 0, 0)),
                  pl.BlockSpec((1, Cout), lambda n, h: (0, 0))],
        out_specs=(out_spec, out_spec, out_spec, out_spec),
        compiler_params=pltpu.CompilerParams(
            dimension_semantics=("parallel", "parallel"),
            vmem_limit_bytes=_VMEM_LIMIT),
    )(xpb, xpb, w_bf, b2)

    # Interleave phases: out[2a+p, 2b+q] = phase[p][q][a, b]; crop to the
    # output_padding-determined size; residual add + ReLU (fused XLA glue).
    y = jnp.stack([jnp.stack([ee, eo], axis=3),
                   jnp.stack([oe, oo], axis=3)], axis=2)   # (N,H,2,W,2,Cout)
    y = y.reshape(N, 2 * H, 2 * W, Cout)[:, :Ho, :Wo, :]
    return jnp.maximum(y + residual_nhwc, 0.0)


# ----------------------------------------------------------------------------
# Module building blocks
# ----------------------------------------------------------------------------
def mobilev2_residual(x_nhwc, p, stride):
    """MobileV2_Residual with expanse_ratio=2 (pw -> dw -> pw-linear)."""
    N, H, W, Cin = x_nhwc.shape
    hidden = p["w1"].shape[1]
    Cout = p["w3"].shape[1]

    # fold BN scales into the pointwise weights at trace time, cast to bf16
    w1 = (p["w1"] * p["s1"][None, :]).astype(jnp.bfloat16)
    w3 = (p["w3"] * p["s3"][None, :]).astype(jnp.bfloat16)

    # pw (1x1) + BN + ReLU6
    y = matmul_bias(x_nhwc.reshape(-1, Cin), w1, p["b1"], act="relu6")
    y = y.reshape(N, H, W, hidden)

    # dw 3x3 + BN + ReLU6
    y = dwconv3x3_bn_relu6(y, p["wd"], p["sd"], p["bd"], stride)
    N2, H2, W2, _ = y.shape

    # pw-linear (1x1) + BN (+ residual when stride==1 and Cin==Cout)
    res = x_nhwc.reshape(-1, Cin) if (stride == 1 and Cin == Cout) else None
    y = matmul_bias(y.reshape(-1, hidden), w3, p["b3"], residual=res, act="none")
    return y.reshape(N2, H2, W2, Cout)


def hourglass2d_forward(x_nchw, params):
    x = jnp.transpose(x_nchw, (0, 2, 3, 1)).astype(jnp.float32)  # -> NHWC
    c1 = mobilev2_residual(x, params["conv1"], stride=2)
    c2 = mobilev2_residual(c1, params["conv2"], stride=1)
    c3 = mobilev2_residual(c2, params["conv3"], stride=2)
    c4 = mobilev2_residual(c3, params["conv4"], stride=1)
    r2 = mobilev2_residual(c2, params["redir2"], stride=1)
    c5 = convtranspose3x3_s2_bn_relu(c4, params["conv5"]["w"],
                                     params["conv5"]["s"], params["conv5"]["b"],
                                     (1, 0), r2)
    r1 = mobilev2_residual(x, params["redir1"], stride=1)
    c6 = convtranspose3x3_s2_bn_relu(c5, params["conv6"]["w"],
                                     params["conv6"]["s"], params["conv6"]["b"],
                                     (1, 0), r1)
    return jnp.transpose(c6, (0, 3, 1, 2))  # -> NCHW


# ----------------------------------------------------------------------------
# Deterministic parameter initialization (synthetic weights, BN in eval mode)
# ----------------------------------------------------------------------------
def init_bn(key, c):
    k1, k2, k3, k4 = jax.random.split(key, 4)
    gamma = 1.0 + 0.1 * jax.random.normal(k1, (c,), jnp.float32)
    beta = 0.1 * jax.random.normal(k2, (c,), jnp.float32)
    mean = 0.1 * jax.random.normal(k3, (c,), jnp.float32)
    var = jax.random.uniform(k4, (c,), jnp.float32, 0.5, 1.5)
    scale = gamma / jnp.sqrt(var + BN_EPS)
    bias = beta - mean * scale
    return scale, bias


def init_mv2_params(key, inp, oup):
    hidden = inp * 2  # expanse_ratio = 2
    ks = jax.random.split(key, 6)
    s1, b1 = init_bn(ks[3], hidden)
    sd, bd = init_bn(ks[4], hidden)
    s3, b3 = init_bn(ks[5], oup)
    return dict(
        w1=0.2 * jax.random.normal(ks[0], (inp, hidden), jnp.float32),
        wd=0.2 * jax.random.normal(ks[1], (3, 3, hidden), jnp.float32),
        w3=0.2 * jax.random.normal(ks[2], (hidden, oup), jnp.float32),
        s1=s1, b1=b1, sd=sd, bd=bd, s3=s3, b3=b3,
    )


def init_convt_params(key, cin, cout):
    k1, k2 = jax.random.split(key)
    s, b = init_bn(k2, cout)
    return dict(w=0.2 * jax.random.normal(k1, (cin, cout, 3, 3), jnp.float32),
                s=s, b=b)


def init_hourglass_params(key, C):
    ks = jax.random.split(key, 8)
    return dict(
        conv1=init_mv2_params(ks[0], C, 2 * C),
        conv2=init_mv2_params(ks[1], 2 * C, 2 * C),
        conv3=init_mv2_params(ks[2], 2 * C, 4 * C),
        conv4=init_mv2_params(ks[3], 4 * C, 4 * C),
        conv5=init_convt_params(ks[4], 4 * C, 2 * C),
        conv6=init_convt_params(ks[5], 2 * C, C),
        redir1=init_mv2_params(ks[6], C, C),
        redir2=init_mv2_params(ks[7], 2 * C, 2 * C),
    )


# ----------------------------------------------------------------------------
if __name__ == "__main__":
    # output_padding=(1,0) in conv5/conv6 requires H ≡ 0 (mod 4), W ≡ 1 (mod 4)
    # for the skip-connection shapes to line up (as in the original network).
    N, C, H, W = 2, 4, 16, 17
    key = jax.random.PRNGKey(0)
    kx, kp = jax.random.split(key)
    x = jax.random.normal(kx, (N, C, H, W), jnp.float32)
    params = init_hourglass_params(kp, C)

    fwd = jax.jit(hourglass2d_forward)
    out = jax.block_until_ready(fwd(x, params))

    assert out.shape == (N, C, H, W), out.shape
    assert out.dtype == jnp.float32
    assert bool(jnp.all(jnp.isfinite(out)))
    print("KERNEL_OK")
</pallas_src>

<mosaic_0001>
module attributes {stable_mosaic.version = 11 : i64} {
  func.func @_mm_bias_kernel(%arg0: i32, %arg1: memref<512x4xf32, #tpu.memory_space<vmem>>, %arg2: memref<4x8xbf16, #tpu.memory_space<vmem>>, %arg3: memref<1x8xf32, #tpu.memory_space<vmem>>, %arg4: memref<512x8xf32, #tpu.memory_space<vmem>>) attributes {dimension_semantics = [#tpu.dimension_semantics<parallel>], iteration_bounds = array<i64: 2>, scalar_prefetch = 0 : i64, scratch_operands = 0 : i64, tpu.core_type = #tpu.core_type<tc>, window_params = [{transform_indices = @transform_0, window_bounds = array<i64: 512, 4>}, {pipeline_mode = #tpu.pipeline_mode<synchronous>, transform_indices = @transform_1, window_bounds = array<i64: 4, 8>}, {pipeline_mode = #tpu.pipeline_mode<synchronous>, transform_indices = @transform_2, window_bounds = array<i64: 1, 8>}, {transform_indices = @transform_3, window_bounds = array<i64: 512, 8>}]} {
    %c0 = arith.constant 0 : index
    %c0_0 = arith.constant 0 : index
    %0 = vector.load %arg1[%c0, %c0_0] : memref<512x4xf32, #tpu.memory_space<vmem>>, vector<512x4xf32>
    %1 = arith.truncf %0 : vector<512x4xf32> to vector<512x4xbf16>
    %c0_1 = arith.constant 0 : index
    %c0_2 = arith.constant 0 : index
    %2 = vector.load %arg2[%c0_1, %c0_2] : memref<4x8xbf16, #tpu.memory_space<vmem>>, vector<4x8xbf16>
    %cst = arith.constant dense<0.000000e+00> : vector<512x8xf32>
    %3 = tpu.matmul %1, %2, %cst {dimension_numbers = #tpu.dot_dimension_numbers<[1], [0], [0], [1], [0, 0, 1, 1], [], []>} : vector<512x4xbf16>, vector<4x8xbf16>, vector<512x8xf32> -> vector<512x8xf32>
    %c0_3 = arith.constant 0 : index
    %c0_4 = arith.constant 0 : index
    %4 = vector.load %arg3[%c0_3, %c0_4] : memref<1x8xf32, #tpu.memory_space<vmem>>, vector<1x8xf32>
    %5 = vector.broadcast %4 : vector<1x8xf32> to vector<512x8xf32>
    %6 = arith.addf %3, %5 : vector<512x8xf32>
    %cst_5 = arith.constant 0.000000e+00 : f32
    %cst_6 = arith.constant 6.000000e+00 : f32
    %7 = vector.broadcast %cst_5 : f32 to vector<512x8xf32>
    %8 = arith.maximumf %7, %6 : vector<512x8xf32>
    %9 = vector.broadcast %cst_6 : f32 to vector<512x8xf32>
    %10 = arith.minimumf %9, %8 : vector<512x8xf32>
    %c0_7 = arith.constant 0 : index
    %c0_8 = arith.constant 0 : index
    %11 = vector.load %arg4[%c0_7, %c0_8] : memref<512x8xf32, #tpu.memory_space<vmem>>, vector<512x8xf32>
    tpu.vector_store %arg4[%c0_7, %c0_8], %10 {strides = array<i32>} : memref<512x8xf32, #tpu.memory_space<vmem>>, vector<512x8xf32>,
    return
  }
  func.func @transform_0(%arg0: i32) -> (i32, i32) {
    %c0_i32 = arith.constant 0 : i32
    %c0_i32_0 = arith.constant 0 : i32
    return %arg0, %c0_i32 : i32, i32
  }
  func.func @transform_1(%arg0: i32) -> (i32, i32) {
    %c0_i32 = arith.constant 0 : i32
    %c0_i32_0 = arith.constant 0 : i32
    %c0_i32_1 = arith.constant 0 : i32
    return %c0_i32, %c0_i32_0 : i32, i32
  }
  func.func @transform_2(%arg0: i32) -> (i32, i32) {
    %c0_i32 = arith.constant 0 : i32
    %c0_i32_0 = arith.constant 0 : i32
    %c0_i32_1 = arith.constant 0 : i32
    return %c0_i32, %c0_i32_0 : i32, i32
  }
  func.func @transform_3(%arg0: i32) -> (i32, i32) {
    %c0_i32 = arith.constant 0 : i32
    %c0_i32_0 = arith.constant 0 : i32
    return %arg0, %c0_i32 : i32, i32
  }
}

module attributes {stable_mosaic.version = 11 : i64} {
  func.func @_dw3x3_s1_kernel(%arg0: i32, %arg1: i32, %arg2: memref<1x1x19x8xf32, #tpu.memory_space<vmem>>, %arg3: memref<1x1x19x8xf32, #tpu.memory_space<vmem>>, %arg4: memref<1x1x19x8xf32, #tpu.memory_space<vmem>>, %arg5: memref<9x8xf32, #tpu.memory_space<vmem>>, %arg6: memref<1x8xf32, #tpu.memory_space<vmem>>, %arg7: memref<1x1x17x8xf32, #tpu.memory_space<vmem>>) attributes {dimension_semantics = [#tpu.dimension_semantics<parallel>, #tpu.dimension_semantics<parallel>], iteration_bounds = array<i64: 2, 16>, scalar_prefetch = 0 : i64, scratch_operands = 0 : i64, tpu.core_type = #tpu.core_type<tc>, window_params = [{transform_indices = @transform_0, window_bounds = array<i64: 1, 1, 19, 8>}, {transform_indices = @transform_1, window_bounds = array<i64: 1, 1, 19, 8>}, {transform_indices = @transform_2, window_bounds = array<i64: 1, 1, 19, 8>}, {pipeline_mode = #tpu.pipeline_mode<synchronous>, transform_indices = @transform_3, window_bounds = array<i64: 9, 8>}, {pipeline_mode = #tpu.pipeline_mode<synchronous>, transform_indices = @transform_4, window_bounds = array<i64: 1, 8>}, {transform_indices = @transform_5, window_bounds = array<i64: 1, 1, 17, 8>}]} {
    %c0 = arith.constant 0 : index
    %c0_0 = arith.constant 0 : index
    %0 = vector.load %arg5[%c0, %c0_0] : memref<9x8xf32, #tpu.memory_space<vmem>>, vector<9x8xf32>
    %c0_1 = arith.constant 0 : index
    %c0_2 = arith.constant 0 : index
    %c0_3 = arith.constant 0 : index
    %c0_4 = arith.constant 0 : index
    %1 = vector.load %arg2[%c0_1, %c0_2, %c0_3, %c0_4] : memref<1x1x19x8xf32, #tpu.memory_space<vmem>>, vector<1x1x19x8xf32>
    %2 = vector.shape_cast %1 : vector<1x1x19x8xf32> to vector<19x8xf32>
    %c0_5 = arith.constant 0 : index
    %c0_6 = arith.constant 0 : index
    %c0_7 = arith.constant 0 : index
    %c0_8 = arith.constant 0 : index
    %3 = vector.load %arg3[%c0_5, %c0_6, %c0_7, %c0_8] : memref<1x1x19x8xf32, #tpu.memory_space<vmem>>, vector<1x1x19x8xf32>
    %4 = vector.shape_cast %3 : vector<1x1x19x8xf32> to vector<19x8xf32>
    %c0_9 = arith.constant 0 : index
    %c0_10 = arith.constant 0 : index
    %c0_11 = arith.constant 0 : index
    %c0_12 = arith.constant 0 : index
    %5 = vector.load %arg4[%c0_9, %c0_10, %c0_11, %c0_12] : memref<1x1x19x8xf32, #tpu.memory_space<vmem>>, vector<1x1x19x8xf32>
    %6 = vector.shape_cast %5 : vector<1x1x19x8xf32> to vector<19x8xf32>
    %cst = arith.constant 0.000000e+00 : f32
    %7 = vector.broadcast %cst : f32 to vector<17x8xf32>
    %8 = vector.extract_strided_slice %2 {offsets = [0, 0], sizes = [17, 8], strides = [1, 1]} : vector<19x8xf32> to vector<17x8xf32>
    %9 = vector.extract_strided_slice %0 {offsets = [0, 0], sizes = [1, 8], strides = [1, 1]} : vector<9x8xf32> to vector<1x8xf32>
    %10 = vector.broadcast %9 : vector<1x8xf32> to vector<17x8xf32>
    %11 = arith.mulf %8, %10 : vector<17x8xf32>
    %12 = arith.addf %7, %11 : vector<17x8xf32>
    %13 = vector.extract_strided_slice %2 {offsets = [1, 0], sizes = [17, 8], strides = [1, 1]} : vector<19x8xf32> to vector<17x8xf32>
    %14 = vector.extract_strided_slice %0 {offsets = [1, 0], sizes = [1, 8], strides = [1, 1]} : vector<9x8xf32> to vector<1x8xf32>
    %15 = vector.broadcast %14 : vector<1x8xf32> to vector<17x8xf32>
    %16 = arith.mulf %13, %15 : vector<17x8xf32>
    %17 = arith.addf %12, %16 : vector<17x8xf32>
    %18 = vector.extract_strided_slice %2 {offsets = [2, 0], sizes = [17, 8], strides = [1, 1]} : vector<19x8xf32> to vector<17x8xf32>
    %19 = vector.extract_strided_slice %0 {offsets = [2, 0], sizes = [1, 8], strides = [1, 1]} : vector<9x8xf32> to vector<1x8xf32>
    %20 = vector.broadcast %19 : vector<1x8xf32> to vector<17x8xf32>
    %21 = arith.mulf %18, %20 : vector<17x8xf32>
    %22 = arith.addf %17, %21 : vector<17x8xf32>
    %23 = vector.extract_strided_slice %4 {offsets = [0, 0], sizes = [17, 8], strides = [1, 1]} : vector<19x8xf32> to vector<17x8xf32>
    %24 = vector.extract_strided_slice %0 {offsets = [3, 0], sizes = [1, 8], strides = [1, 1]} : vector<9x8xf32> to vector<1x8xf32>
    %25 = vector.broadcast %24 : vector<1x8xf32> to vector<17x8xf32>
    %26 = arith.mulf %23, %25 : vector<17x8xf32>
    %27 = arith.addf %22, %26 : vector<17x8xf32>
    %28 = vector.extract_strided_slice %4 {offsets = [1, 0], sizes = [17, 8], strides = [1, 1]} : vector<19x8xf32> to vector<17x8xf32>
    %29 = vector.extract_strided_slice %0 {offsets = [4, 0], sizes = [1, 8], strides = [1, 1]} : vector<9x8xf32> to vector<1x8xf32>
    %30 = vector.broadcast %29 : vector<1x8xf32> to vector<17x8xf32>
    %31 = arith.mulf %28, %30 : vector<17x8xf32>
    %32 = arith.addf %27, %31 : vector<17x8xf32>
    %33 = vector.extract_strided_slice %4 {offsets = [2, 0], sizes = [17, 8], strides = [1, 1]} : vector<19x8xf32> to vector<17x8xf32>
    %34 = vector.extract_strided_slice %0 {offsets = [5, 0], sizes = [1, 8], strides = [1, 1]} : vector<9x8xf32> to vector<1x8xf32>
    %35 = vector.broadcast %34 : vector<1x8xf32> to vector<17x8xf32>
    %36 = arith.mulf %33, %35 : vector<17x8xf32>
    %37 = arith.addf %32, %36 : vector<17x8xf32>
    %38 = vector.extract_strided_slice %6 {offsets = [0, 0], sizes = [17, 8], strides = [1, 1]} : vector<19x8xf32> to vector<17x8xf32>
    %39 = vector.extract_strided_slice %0 {offsets = [6, 0], sizes = [1, 8], strides = [1, 1]} : vector<9x8xf32> to vector<1x8xf32>
    %40 = vector.broadcast %39 : vector<1x8xf32> to vector<17x8xf32>
    %41 = arith.mulf %38, %40 : vector<17x8xf32>
    %42 = arith.addf %37, %41 : vector<17x8xf32>
    %43 = vector.extract_strided_slice %6 {offsets = [1, 0], sizes = [17, 8], strides = [1, 1]} : vector<19x8xf32> to vector<17x8xf32>
    %44 = vector.extract_strided_slice %0 {offsets = [7, 0], sizes = [1, 8], strides = [1, 1]} : vector<9x8xf32> to vector<1x8xf32>
    %45 = vector.broadcast %44 : vector<1x8xf32> to vector<17x8xf32>
    %46 = arith.mulf %43, %45 : vector<17x8xf32>
    %47 = arith.addf %42, %46 : vector<17x8xf32>
    %48 = vector.extract_strided_slice %6 {offsets = [2, 0], sizes = [17, 8], strides = [1, 1]} : vector<19x8xf32> to vector<17x8xf32>
    %49 = vector.extract_strided_slice %0 {offsets = [8, 0], sizes = [1, 8], strides = [1, 1]} : vector<9x8xf32> to vector<1x8xf32>
    %50 = vector.broadcast %49 : vector<1x8xf32> to vector<17x8xf32>
    %51 = arith.mulf %48, %50 : vector<17x8xf32>
    %52 = arith.addf %47, %51 : vector<17x8xf32>
    %c0_13 = arith.constant 0 : index
    %c0_14 = arith.constant 0 : index
    %53 = vector.load %arg6[%c0_13, %c0_14] : memref<1x8xf32, #tpu.memory_space<vmem>>, vector<1x8xf32>
    %54 = vector.broadcast %53 : vector<1x8xf32> to vector<17x8xf32>
    %55 = arith.addf %52, %54 : vector<17x8xf32>
    %cst_15 = arith.constant 0.000000e+00 : f32
    %cst_16 = arith.constant 6.000000e+00 : f32
    %56 = vector.broadcast %cst_15 : f32 to vector<17x8xf32>
    %57 = arith.maximumf %56, %55 : vector<17x8xf32>
    %58 = vector.broadcast %cst_16 : f32 to vector<17x8xf32>
    %59 = arith.minimumf %58, %57 : vector<17x8xf32>
    %c0_17 = arith.constant 0 : index
    %c0_18 = arith.constant 0 : index
    %c0_19 = arith.constant 0 : index
    %c0_20 = arith.constant 0 : index
    %60 = vector.load %arg7[%c0_17, %c0_18, %c0_19, %c0_20] : memref<1x1x17x8xf32, #tpu.memory_space<vmem>>, vector<1x1x17x8xf32>
    %61 = vector.shape_cast %60 : vector<1x1x17x8xf32> to vector<17x8xf32>
    %62 = vector.shape_cast %59 : vector<17x8xf32> to vector<1x1x17x8xf32>
    tpu.vector_store %arg7[%c0_17, %c0_18, %c0_19, %c0_20], %62 {strides = array<i32>} : memref<1x1x17x8xf32, #tpu.memory_space<vmem>>, vector<1x1x17x8xf32>,
    return
  }
  func.func @transform_0(%arg0: i32, %arg1: i32) -> (i32, i32, i32, i32) {
    %c0_i32 = arith.constant 0 : i32
    %0 = arith.addi %arg1, %c0_i32 : i32
    %c0_i32_0 = arith.constant 0 : i32
    %c0_i32_1 = arith.constant 0 : i32
    %c0_i32_2 = arith.constant 0 : i32
    return %arg0, %0, %c0_i32_0, %c0_i32_1 : i32, i32, i32, i32
  }
  func.func @transform_1(%arg0: i32, %arg1: i32) -> (i32, i32, i32, i32) {
    %c1_i32 = arith.constant 1 : i32
    %0 = arith.addi %arg1, %c1_i32 : i32
    %c0_i32 = arith.constant 0 : i32
    %c0_i32_0 = arith.constant 0 : i32
    %c0_i32_1 = arith.constant 0 : i32
    return %arg0, %0, %c0_i32, %c0_i32_0 : i32, i32, i32, i32
  }
  func.func @transform_2(%arg0: i32, %arg1: i32) -> (i32, i32, i32, i32) {
    %c2_i32 = arith.constant 2 : i32
    %0 = arith.addi %arg1, %c2_i32 : i32
    %c0_i32 = arith.constant 0 : i32
    %c0_i32_0 = arith.constant 0 : i32
    %c0_i32_1 = arith.constant 0 : i32
    return %arg0, %0, %c0_i32, %c0_i32_0 : i32, i32, i32, i32
  }
  func.func @transform_3(%arg0: i32, %arg1: i32) -> (i32, i32) {
    %c0_i32 = arith.constant 0 : i32
    %c0_i32_0 = arith.constant 0 : i32
    %c0_i32_1 = arith.constant 0 : i32
    return %c0_i32, %c0_i32_0 : i32, i32
  }
  func.func @transform_4(%arg0: i32, %arg1: i32) -> (i32, i32) {
    %c0_i32 = arith.constant 0 : i32
    %c0_i32_0 = arith.constant 0 : i32
    %c0_i32_1 = arith.constant 0 : i32
    return %c0_i32, %c0_i32_0 : i32, i32
  }
  func.func @transform_5(%arg0: i32, %arg1: i32) -> (i32, i32, i32, i32) {
    %c0_i32 = arith.constant 0 : i32
    %c0_i32_0 = arith.constant 0 : i32
    %c0_i32_1 = arith.constant 0 : i32
    return %arg0, %arg1, %c0_i32, %c0_i32_0 : i32, i32, i32, i32
  }
}

module attributes {stable_mosaic.version = 11 : i64} {
  func.func @_mm_bias_res_kernel(%arg0: i32, %arg1: memref<512x8xf32, #tpu.memory_space<vmem>>, %arg2: memref<8x4xbf16, #tpu.memory_space<vmem>>, %arg3: memref<1x4xf32, #tpu.memory_space<vmem>>, %arg4: memref<512x4xf32, #tpu.memory_space<vmem>>, %arg5: memref<512x4xf32, #tpu.memory_space<vmem>>) attributes {dimension_semantics = [#tpu.dimension_semantics<parallel>], iteration_bounds = array<i64: 2>, scalar_prefetch = 0 : i64, scratch_operands = 0 : i64, tpu.core_type = #tpu.core_type<tc>, window_params = [{transform_indices = @transform_0, window_bounds = array<i64: 512, 8>}, {pipeline_mode = #tpu.pipeline_mode<synchronous>, transform_indices = @transform_1, window_bounds = array<i64: 8, 4>}, {pipeline_mode = #tpu.pipeline_mode<synchronous>, transform_indices = @transform_2, window_bounds = array<i64: 1, 4>}, {transform_indices = @transform_3, window_bounds = array<i64: 512, 4>}, {transform_indices = @transform_4, window_bounds = array<i64: 512, 4>}]} {
    %c0 = arith.constant 0 : index
    %c0_0 = arith.constant 0 : index
    %0 = vector.load %arg1[%c0, %c0_0] : memref<512x8xf32, #tpu.memory_space<vmem>>, vector<512x8xf32>
    %1 = arith.truncf %0 : vector<512x8xf32> to vector<512x8xbf16>
    %c0_1 = arith.constant 0 : index
    %c0_2 = arith.constant 0 : index
    %2 = vector.load %arg2[%c0_1, %c0_2] : memref<8x4xbf16, #tpu.memory_space<vmem>>, vector<8x4xbf16>
    %cst = arith.constant dense<0.000000e+00> : vector<512x4xf32>
    %3 = tpu.matmul %1, %2, %cst {dimension_numbers = #tpu.dot_dimension_numbers<[1], [0], [0], [1], [0, 0, 1, 1], [], []>} : vector<512x8xbf16>, vector<8x4xbf16>, vector<512x4xf32> -> vector<512x4xf32>
    %c0_3 = arith.constant 0 : index
    %c0_4 = arith.constant 0 : index
    %4 = vector.load %arg3[%c0_3, %c0_4] : memref<1x4xf32, #tpu.memory_space<vmem>>, vector<1x4xf32>
    %5 = vector.broadcast %4 : vector<1x4xf32> to vector<512x4xf32>
    %6 = arith.addf %3, %5 : vector<512x4xf32>
    %c0_5 = arith.constant 0 : index
    %c0_6 = arith.constant 0 : index
    %7 = vector.load %arg4[%c0_5, %c0_6] : memref<512x4xf32, #tpu.memory_space<vmem>>, vector<512x4xf32>
    %8 = arith.addf %6, %7 : vector<512x4xf32>
    %c0_7 = arith.constant 0 : index
    %c0_8 = arith.constant 0 : index
    %9 = vector.load %arg5[%c0_7, %c0_8] : memref<512x4xf32, #tpu.memory_space<vmem>>, vector<512x4xf32>
    tpu.vector_store %arg5[%c0_7, %c0_8], %8 {strides = array<i32>} : memref<512x4xf32, #tpu.memory_space<vmem>>, vector<512x4xf32>,
    return
  }
  func.func @transform_0(%arg0: i32) -> (i32, i32) {
    %c0_i32 = arith.constant 0 : i32
    %c0_i32_0 = arith.constant 0 : i32
    return %arg0, %c0_i32 : i32, i32
  }
  func.func @transform_1(%arg0: i32) -> (i32, i32) {
    %c0_i32 = arith.constant 0 : i32
    %c0_i32_0 = arith.constant 0 : i32
    %c0_i32_1 = arith.constant 0 : i32
    return %c0_i32, %c0_i32_0 : i32, i32
  }
  func.func @transform_2(%arg0: i32) -> (i32, i32) {
    %c0_i32 = arith.constant 0 : i32
    %c0_i32_0 = arith.constant 0 : i32
    %c0_i32_1 = arith.constant 0 : i32
    return %c0_i32, %c0_i32_0 : i32, i32
  }
  func.func @transform_3(%arg0: i32) -> (i32, i32) {
    %c0_i32 = arith.constant 0 : i32
    %c0_i32_0 = arith.constant 0 : i32
    return %arg0, %c0_i32 : i32, i32
  }
  func.func @transform_4(%arg0: i32) -> (i32, i32) {
    %c0_i32 = arith.constant 0 : i32
    %c0_i32_0 = arith.constant 0 : i32
    return %arg0, %c0_i32 : i32, i32
  }
}

module attributes {stable_mosaic.version = 11 : i64} {
  func.func @_dw3x3_s2_kernel(%arg0: i32, %arg1: i32, %arg2: memref<1x1x10x8xf32, #tpu.memory_space<vmem>>, %arg3: memref<1x1x10x8xf32, #tpu.memory_space<vmem>>, %arg4: memref<1x1x10x8xf32, #tpu.memory_space<vmem>>, %arg5: memref<1x1x9x8xf32, #tpu.memory_space<vmem>>, %arg6: memref<1x1x9x8xf32, #tpu.memory_space<vmem>>, %arg7: memref<1x1x9x8xf32, #tpu.memory_space<vmem>>, %arg8: memref<9x8xf32, #tpu.memory_space<vmem>>, %arg9: memref<1x8xf32, #tpu.memory_space<vmem>>, %arg10: memref<1x1x9x8xf32, #tpu.memory_space<vmem>>) attributes {dimension_semantics = [#tpu.dimension_semantics<parallel>, #tpu.dimension_semantics<parallel>], iteration_bounds = array<i64: 2, 8>, scalar_prefetch = 0 : i64, scratch_operands = 0 : i64, tpu.core_type = #tpu.core_type<tc>, window_params = [{transform_indices = @transform_0, window_bounds = array<i64: 1, 1, 10, 8>}, {transform_indices = @transform_1, window_bounds = array<i64: 1, 1, 10, 8>}, {transform_indices = @transform_2, window_bounds = array<i64: 1, 1, 10, 8>}, {transform_indices = @transform_3, window_bounds = array<i64: 1, 1, 9, 8>}, {transform_indices = @transform_4, window_bounds = array<i64: 1, 1, 9, 8>}, {transform_indices = @transform_5, window_bounds = array<i64: 1, 1, 9, 8>}, {pipeline_mode = #tpu.pipeline_mode<synchronous>, transform_indices = @transform_6, window_bounds = array<i64: 9, 8>}, {pipeline_mode = #tpu.pipeline_mode<synchronous>, transform_indices = @transform_7, window_bounds = array<i64: 1, 8>}, {transform_indices = @transform_8, window_bounds = array<i64: 1, 1, 9, 8>}]} {
    %c0 = arith.constant 0 : index
    %c0_0 = arith.constant 0 : index
    %0 = vector.load %arg8[%c0, %c0_0] : memref<9x8xf32, #tpu.memory_space<vmem>>, vector<9x8xf32>
    %c0_1 = arith.constant 0 : index
    %c0_2 = arith.constant 0 : index
    %c0_3 = arith.constant 0 : index
    %c0_4 = arith.constant 0 : index
    %1 = vector.load %arg2[%c0_1, %c0_2, %c0_3, %c0_4] : memref<1x1x10x8xf32, #tpu.memory_space<vmem>>, vector<1x1x10x8xf32>
    %2 = vector.shape_cast %1 : vector<1x1x10x8xf32> to vector<10x8xf32>
    %c0_5 = arith.constant 0 : index
    %c0_6 = arith.constant 0 : index
    %c0_7 = arith.constant 0 : index
    %c0_8 = arith.constant 0 : index
    %3 = vector.load %arg3[%c0_5, %c0_6, %c0_7, %c0_8] : memref<1x1x10x8xf32, #tpu.memory_space<vmem>>, vector<1x1x10x8xf32>
    %4 = vector.shape_cast %3 : vector<1x1x10x8xf32> to vector<10x8xf32>
    %c0_9 = arith.constant 0 : index
    %c0_10 = arith.constant 0 : index
    %c0_11 = arith.constant 0 : index
    %c0_12 = arith.constant 0 : index
    %5 = vector.load %arg4[%c0_9, %c0_10, %c0_11, %c0_12] : memref<1x1x10x8xf32, #tpu.memory_space<vmem>>, vector<1x1x10x8xf32>
    %6 = vector.shape_cast %5 : vector<1x1x10x8xf32> to vector<10x8xf32>
    %c0_13 = arith.constant 0 : index
    %c0_14 = arith.constant 0 : index
    %c0_15 = arith.constant 0 : index
    %c0_16 = arith.constant 0 : index
    %7 = vector.load %arg5[%c0_13, %c0_14, %c0_15, %c0_16] : memref<1x1x9x8xf32, #tpu.memory_space<vmem>>, vector<1x1x9x8xf32>
    %8 = vector.shape_cast %7 : vector<1x1x9x8xf32> to vector<9x8xf32>
    %c0_17 = arith.constant 0 : index
    %c0_18 = arith.constant 0 : index
    %c0_19 = arith.constant 0 : index
    %c0_20 = arith.constant 0 : index
    %9 = vector.load %arg6[%c0_17, %c0_18, %c0_19, %c0_20] : memref<1x1x9x8xf32, #tpu.memory_space<vmem>>, vector<1x1x9x8xf32>
    %10 = vector.shape_cast %9 : vector<1x1x9x8xf32> to vector<9x8xf32>
    %c0_21 = arith.constant 0 : index
    %c0_22 = arith.constant 0 : index
    %c0_23 = arith.constant 0 : index
    %c0_24 = arith.constant 0 : index
    %11 = vector.load %arg7[%c0_21, %c0_22, %c0_23, %c0_24] : memref<1x1x9x8xf32, #tpu.memory_space<vmem>>, vector<1x1x9x8xf32>
    %12 = vector.shape_cast %11 : vector<1x1x9x8xf32> to vector<9x8xf32>
    %cst = arith.constant 0.000000e+00 : f32
    %13 = vector.broadcast %cst : f32 to vector<9x8xf32>
    %14 = vector.extract_strided_slice %2 {offsets = [0, 0], sizes = [9, 8], strides = [1, 1]} : vector<10x8xf32> to vector<9x8xf32>
    %15 = vector.extract_strided_slice %0 {offsets = [0, 0], sizes = [1, 8], strides = [1, 1]} : vector<9x8xf32> to vector<1x8xf32>
    %16 = vector.broadcast %15 : vector<1x8xf32> to vector<9x8xf32>
    %17 = arith.mulf %14, %16 : vector<9x8xf32>
    %18 = arith.addf %13, %17 : vector<9x8xf32>
    %19 = vector.extract_strided_slice %0 {offsets = [1, 0], sizes = [1, 8], strides = [1, 1]} : vector<9x8xf32> to vector<1x8xf32>
    %20 = vector.broadcast %19 : vector<1x8xf32> to vector<9x8xf32>
    %21 = arith.mulf %8, %20 : vector<9x8xf32>
    %22 = arith.addf %18, %21 : vector<9x8xf32>
    %23 = vector.extract_strided_slice %2 {offsets = [1, 0], sizes = [9, 8], strides = [1, 1]} : vector<10x8xf32> to vector<9x8xf32>
    %24 = vector.extract_strided_slice %0 {offsets = [2, 0], sizes = [1, 8], strides = [1, 1]} : vector<9x8xf32> to vector<1x8xf32>
    %25 = vector.broadcast %24 : vector<1x8xf32> to vector<9x8xf32>
    %26 = arith.mulf %23, %25 : vector<9x8xf32>
    %27 = arith.addf %22, %26 : vector<9x8xf32>
    %28 = vector.extract_strided_slice %4 {offsets = [0, 0], sizes = [9, 8], strides = [1, 1]} : vector<10x8xf32> to vector<9x8xf32>
    %29 = vector.extract_strided_slice %0 {offsets = [3, 0], sizes = [1, 8], strides = [1, 1]} : vector<9x8xf32> to vector<1x8xf32>
    %30 = vector.broadcast %29 : vector<1x8xf32> to vector<9x8xf32>
    %31 = arith.mulf %28, %30 : vector<9x8xf32>
    %32 = arith.addf %27, %31 : vector<9x8xf32>
    %33 = vector.extract_strided_slice %0 {offsets = [4, 0], sizes = [1, 8], strides = [1, 1]} : vector<9x8xf32> to vector<1x8xf32>
    %34 = vector.broadcast %33 : vector<1x8xf32> to vector<9x8xf32>
    %35 = arith.mulf %10, %34 : vector<9x8xf32>
    %36 = arith.addf %32, %35 : vector<9x8xf32>
    %37 = vector.extract_strided_slice %4 {offsets = [1, 0], sizes = [9, 8], strides = [1, 1]} : vector<10x8xf32> to vector<9x8xf32>
    %38 = vector.extract_strided_slice %0 {offsets = [5, 0], sizes = [1, 8], strides = [1, 1]} : vector<9x8xf32> to vector<1x8xf32>
    %39 = vector.broadcast %38 : vector<1x8xf32> to vector<9x8xf32>
    %40 = arith.mulf %37, %39 : vector<9x8xf32>
    %41 = arith.addf %36, %40 : vector<9x8xf32>
    %42 = vector.extract_strided_slice %6 {offsets = [0, 0], sizes = [9, 8], strides = [1, 1]} : vector<10x8xf32> to vector<9x8xf32>
    %43 = vector.extract_strided_slice %0 {offsets = [6, 0], sizes = [1, 8], strides = [1, 1]} : vector<9x8xf32> to vector<1x8xf32>
    %44 = vector.broadcast %43 : vector<1x8xf32> to vector<9x8xf32>
    %45 = arith.mulf %42, %44 : vector<9x8xf32>
    %46 = arith.addf %41, %45 : vector<9x8xf32>
    %47 = vector.extract_strided_slice %0 {offsets = [7, 0], sizes = [1, 8], strides = [1, 1]} : vector<9x8xf32> to vector<1x8xf32>
    %48 = vector.broadcast %47 : vector<1x8xf32> to vector<9x8xf32>
    %49 = arith.mulf %12, %48 : vector<9x8xf32>
    %50 = arith.addf %46, %49 : vector<9x8xf32>
    %51 = vector.extract_strided_slice %6 {offsets = [1, 0], sizes = [9, 8], strides = [1, 1]} : vector<10x8xf32> to vector<9x8xf32>
    %52 = vector.extract_strided_slice %0 {offsets = [8, 0], sizes = [1, 8], strides = [1, 1]} : vector<9x8xf32> to vector<1x8xf32>
    %53 = vector.broadcast %52 : vector<1x8xf32> to vector<9x8xf32>
    %54 = arith.mulf %51, %53 : vector<9x8xf32>
    %55 = arith.addf %50, %54 : vector<9x8xf32>
    %c0_25 = arith.constant 0 : index
    %c0_26 = arith.constant 0 : index
    %56 = vector.load %arg9[%c0_25, %c0_26] : memref<1x8xf32, #tpu.memory_space<vmem>>, vector<1x8xf32>
    %57 = vector.broadcast %56 : vector<1x8xf32> to vector<9x8xf32>
    %58 = arith.addf %55, %57 : vector<9x8xf32>
    %cst_27 = arith.constant 0.000000e+00 : f32
    %cst_28 = arith.constant 6.000000e+00 : f32
    %59 = vector.broadcast %cst_27 : f32 to vector<9x8xf32>
    %60 = arith.maximumf %59, %58 : vector<9x8xf32>
    %61 = vector.broadcast %cst_28 : f32 to vector<9x8xf32>
    %62 = arith.minimumf %61, %60 : vector<9x8xf32>
    %c0_29 = arith.constant 0 : index
    %c0_30 = arith.constant 0 : index
    %c0_31 = arith.constant 0 : index
    %c0_32 = arith.constant 0 : index
    %63 = vector.load %arg10[%c0_29, %c0_30, %c0_31, %c0_32] : memref<1x1x9x8xf32, #tpu.memory_space<vmem>>, vector<1x1x9x8xf32>
    %64 = vector.shape_cast %63 : vector<1x1x9x8xf32> to vector<9x8xf32>
    %65 = vector.shape_cast %62 : vector<9x8xf32> to vector<1x1x9x8xf32>
    tpu.vector_store %arg10[%c0_29, %c0_30, %c0_31, %c0_32], %65 {strides = array<i32>} : memref<1x1x9x8xf32, #tpu.memory_space<vmem>>, vector<1x1x9x8xf32>,
    return
  }
  func.func @transform_0(%arg0: i32, %arg1: i32) -> (i32, i32, i32, i32) {
    %c2_i32 = arith.constant 2 : i32
    %0 = arith.muli %c2_i32, %arg1 : i32
    %c0_i32 = arith.constant 0 : i32
    %1 = arith.addi %0, %c0_i32 : i32
    %c0_i32_0 = arith.constant 0 : i32
    %c0_i32_1 = arith.constant 0 : i32
    %c0_i32_2 = arith.constant 0 : i32
    return %arg0, %1, %c0_i32_0, %c0_i32_1 : i32, i32, i32, i32
  }
  func.func @transform_1(%arg0: i32, %arg1: i32) -> (i32, i32, i32, i32) {
    %c2_i32 = arith.constant 2 : i32
    %0 = arith.muli %c2_i32, %arg1 : i32
    %c1_i32 = arith.constant 1 : i32
    %1 = arith.addi %0, %c1_i32 : i32
    %c0_i32 = arith.constant 0 : i32
    %c0_i32_0 = arith.constant 0 : i32
    %c0_i32_1 = arith.constant 0 : i32
    return %arg0, %1, %c0_i32, %c0_i32_0 : i32, i32, i32, i32
  }
  func.func @transform_2(%arg0: i32, %arg1: i32) -> (i32, i32, i32, i32) {
    %c2_i32 = arith.constant 2 : i32
    %0 = arith.muli %c2_i32, %arg1 : i32
    %c2_i32_0 = arith.constant 2 : i32
    %1 = arith.addi %0, %c2_i32_0 : i32
    %c0_i32 = arith.constant 0 : i32
    %c0_i32_1 = arith.constant 0 : i32
    %c0_i32_2 = arith.constant 0 : i32
    return %arg0, %1, %c0_i32, %c0_i32_1 : i32, i32, i32, i32
  }
  func.func @transform_3(%arg0: i32, %arg1: i32) -> (i32, i32, i32, i32) {
    %c2_i32 = arith.constant 2 : i32
    %0 = arith.muli %c2_i32, %arg1 : i32
    %c0_i32 = arith.constant 0 : i32
    %1 = arith.addi %0, %c0_i32 : i32
    %c0_i32_0 = arith.constant 0 : i32
    %c0_i32_1 = arith.constant 0 : i32
    %c0_i32_2 = arith.constant 0 : i32
    return %arg0, %1, %c0_i32_0, %c0_i32_1 : i32, i32, i32, i32
  }
  func.func @transform_4(%arg0: i32, %arg1: i32) -> (i32, i32, i32, i32) {
    %c2_i32 = arith.constant 2 : i32
    %0 = arith.muli %c2_i32, %arg1 : i32
    %c1_i32 = arith.constant 1 : i32
    %1 = arith.addi %0, %c1_i32 : i32
    %c0_i32 = arith.constant 0 : i32
    %c0_i32_0 = arith.constant 0 : i32
    %c0_i32_1 = arith.constant 0 : i32
    return %arg0, %1, %c0_i32, %c0_i32_0 : i32, i32, i32, i32
  }
  func.func @transform_5(%arg0: i32, %arg1: i32) -> (i32, i32, i32, i32) {
    %c2_i32 = arith.constant 2 : i32
    %0 = arith.muli %c2_i32, %arg1 : i32
    %c2_i32_0 = arith.constant 2 : i32
    %1 = arith.addi %0, %c2_i32_0 : i32
    %c0_i32 = arith.constant 0 : i32
    %c0_i32_1 = arith.constant 0 : i32
    %c0_i32_2 = arith.constant 0 : i32
    return %arg0, %1, %c0_i32, %c0_i32_1 : i32, i32, i32, i32
  }
  func.func @transform_6(%arg0: i32, %arg1: i32) -> (i32, i32) {
    %c0_i32 = arith.constant 0 : i32
    %c0_i32_0 = arith.constant 0 : i32
    %c0_i32_1 = arith.constant 0 : i32
    return %c0_i32, %c0_i32_0 : i32, i32
  }
  func.func @transform_7(%arg0: i32, %arg1: i32) -> (i32, i32) {
    %c0_i32 = arith.constant 0 : i32
    %c0_i32_0 = arith.constant 0 : i32
    %c0_i32_1 = arith.constant 0 : i32
    return %c0_i32, %c0_i32_0 : i32, i32
  }
  func.func @transform_8(%arg0: i32, %arg1: i32) -> (i32, i32, i32, i32) {
    %c0_i32 = arith.constant 0 : i32
    %c0_i32_0 = arith.constant 0 : i32
    %c0_i32_1 = arith.constant 0 : i32
    return %arg0, %arg1, %c0_i32, %c0_i32_0 : i32, i32, i32, i32
  }
}

module attributes {stable_mosaic.version = 11 : i64} {
  func.func @_mm_bias_kernel(%arg0: i32, %arg1: memref<144x8xf32, #tpu.memory_space<vmem>>, %arg2: memref<8x8xbf16, #tpu.memory_space<vmem>>, %arg3: memref<1x8xf32, #tpu.memory_space<vmem>>, %arg4: memref<144x8xf32, #tpu.memory_space<vmem>>) attributes {dimension_semantics = [#tpu.dimension_semantics<parallel>], iteration_bounds = array<i64: 1>, scalar_prefetch = 0 : i64, scratch_operands = 0 : i64, tpu.core_type = #tpu.core_type<tc>, window_params = [{transform_indices = @transform_0, window_bounds = array<i64: 144, 8>}, {pipeline_mode = #tpu.pipeline_mode<synchronous>, transform_indices = @transform_1, window_bounds = array<i64: 8, 8>}, {pipeline_mode = #tpu.pipeline_mode<synchronous>, transform_indices = @transform_2, window_bounds = array<i64: 1, 8>}, {transform_indices = @transform_3, window_bounds = array<i64: 144, 8>}]} {
    %c0 = arith.constant 0 : index
    %c0_0 = arith.constant 0 : index
    %0 = vector.load %arg1[%c0, %c0_0] : memref<144x8xf32, #tpu.memory_space<vmem>>, vector<144x8xf32>
    %1 = arith.truncf %0 : vector<144x8xf32> to vector<144x8xbf16>
    %c0_1 = arith.constant 0 : index
    %c0_2 = arith.constant 0 : index
    %2 = vector.load %arg2[%c0_1, %c0_2] : memref<8x8xbf16, #tpu.memory_space<vmem>>, vector<8x8xbf16>
    %cst = arith.constant dense<0.000000e+00> : vector<144x8xf32>
    %3 = tpu.matmul %1, %2, %cst {dimension_numbers = #tpu.dot_dimension_numbers<[1], [0], [0], [1], [0, 0, 1, 1], [], []>} : vector<144x8xbf16>, vector<8x8xbf16>, vector<144x8xf32> -> vector<144x8xf32>
    %c0_3 = arith.constant 0 : index
    %c0_4 = arith.constant 0 : index
    %4 = vector.load %arg3[%c0_3, %c0_4] : memref<1x8xf32, #tpu.memory_space<vmem>>, vector<1x8xf32>
    %5 = vector.broadcast %4 : vector<1x8xf32> to vector<144x8xf32>
    %6 = arith.addf %3, %5 : vector<144x8xf32>
    %c0_5 = arith.constant 0 : index
    %c0_6 = arith.constant 0 : index
    %7 = vector.load %arg4[%c0_5, %c0_6] : memref<144x8xf32, #tpu.memory_space<vmem>>, vector<144x8xf32>
    tpu.vector_store %arg4[%c0_5, %c0_6], %6 {strides = array<i32>} : memref<144x8xf32, #tpu.memory_space<vmem>>, vector<144x8xf32>,
    return
  }
  func.func @transform_0(%arg0: i32) -> (i32, i32) {
    %c0_i32 = arith.constant 0 : i32
    %c0_i32_0 = arith.constant 0 : i32
    return %arg0, %c0_i32 : i32, i32
  }
  func.func @transform_1(%arg0: i32) -> (i32, i32) {
    %c0_i32 = arith.constant 0 : i32
    %c0_i32_0 = arith.constant 0 : i32
    %c0_i32_1 = arith.constant 0 : i32
    return %c0_i32, %c0_i32_0 : i32, i32
  }
  func.func @transform_2(%arg0: i32) -> (i32, i32) {
    %c0_i32 = arith.constant 0 : i32
    %c0_i32_0 = arith.constant 0 : i32
    %c0_i32_1 = arith.constant 0 : i32
    return %c0_i32, %c0_i32_0 : i32, i32
  }
  func.func @transform_3(%arg0: i32) -> (i32, i32) {
    %c0_i32 = arith.constant 0 : i32
    %c0_i32_0 = arith.constant 0 : i32
    return %arg0, %c0_i32 : i32, i32
  }
}

module attributes {stable_mosaic.version = 11 : i64} {
  func.func @_mm_bias_kernel(%arg0: i32, %arg1: memref<144x8xf32, #tpu.memory_space<vmem>>, %arg2: memref<8x16xbf16, #tpu.memory_space<vmem>>, %arg3: memref<1x16xf32, #tpu.memory_space<vmem>>, %arg4: memref<144x16xf32, #tpu.memory_space<vmem>>) attributes {dimension_semantics = [#tpu.dimension_semantics<parallel>], iteration_bounds = array<i64: 1>, scalar_prefetch = 0 : i64, scratch_operands = 0 : i64, tpu.core_type = #tpu.core_type<tc>, window_params = [{transform_indices = @transform_0, window_bounds = array<i64: 144, 8>}, {pipeline_mode = #tpu.pipeline_mode<synchronous>, transform_indices = @transform_1, window_bounds = array<i64: 8, 16>}, {pipeline_mode = #tpu.pipeline_mode<synchronous>, transform_indices = @transform_2, window_bounds = array<i64: 1, 16>}, {transform_indices = @transform_3, window_bounds = array<i64: 144, 16>}]} {
    %c0 = arith.constant 0 : index
    %c0_0 = arith.constant 0 : index
    %0 = vector.load %arg1[%c0, %c0_0] : memref<144x8xf32, #tpu.memory_space<vmem>>, vector<144x8xf32>
    %1 = arith.truncf %0 : vector<144x8xf32> to vector<144x8xbf16>
    %c0_1 = arith.constant 0 : index
    %c0_2 = arith.constant 0 : index
    %2 = vector.load %arg2[%c0_1, %c0_2] : memref<8x16xbf16, #tpu.memory_space<vmem>>, vector<8x16xbf16>
    %cst = arith.constant dense<0.000000e+00> : vector<144x16xf32>
    %3 = tpu.matmul %1, %2, %cst {dimension_numbers = #tpu.dot_dimension_numbers<[1], [0], [0], [1], [0, 0, 1, 1], [], []>} : vector<144x8xbf16>, vector<8x16xbf16>, vector<144x16xf32> -> vector<144x16xf32>
    %c0_3 = arith.constant 0 : index
    %c0_4 = arith.constant 0 : index
    %4 = vector.load %arg3[%c0_3, %c0_4] : memref<1x16xf32, #tpu.memory_space<vmem>>, vector<1x16xf32>
    %5 = vector.broadcast %4 : vector<1x16xf32> to vector<144x16xf32>
    %6 = arith.addf %3, %5 : vector<144x16xf32>
    %cst_5 = arith.constant 0.000000e+00 : f32
    %cst_6 = arith.constant 6.000000e+00 : f32
    %7 = vector.broadcast %cst_5 : f32 to vector<144x16xf32>
    %8 = arith.maximumf %7, %6 : vector<144x16xf32>
    %9 = vector.broadcast %cst_6 : f32 to vector<144x16xf32>
    %10 = arith.minimumf %9, %8 : vector<144x16xf32>
    %c0_7 = arith.constant 0 : index
    %c0_8 = arith.constant 0 : index
    %11 = vector.load %arg4[%c0_7, %c0_8] : memref<144x16xf32, #tpu.memory_space<vmem>>, vector<144x16xf32>
    tpu.vector_store %arg4[%c0_7, %c0_8], %10 {strides = array<i32>} : memref<144x16xf32, #tpu.memory_space<vmem>>, vector<144x16xf32>,
    return
  }
  func.func @transform_0(%arg0: i32) -> (i32, i32) {
    %c0_i32 = arith.constant 0 : i32
    %c0_i32_0 = arith.constant 0 : i32
    return %arg0, %c0_i32 : i32, i32
  }
  func.func @transform_1(%arg0: i32) -> (i32, i32) {
    %c0_i32 = arith.constant 0 : i32
    %c0_i32_0 = arith.constant 0 : i32
    %c0_i32_1 = arith.constant 0 : i32
    return %c0_i32, %c0_i32_0 : i32, i32
  }
  func.func @transform_2(%arg0: i32) -> (i32, i32) {
    %c0_i32 = arith.constant 0 : i32
    %c0_i32_0 = arith.constant 0 : i32
    %c0_i32_1 = arith.constant 0 : i32
    return %c0_i32, %c0_i32_0 : i32, i32
  }
  func.func @transform_3(%arg0: i32) -> (i32, i32) {
    %c0_i32 = arith.constant 0 : i32
    %c0_i32_0 = arith.constant 0 : i32
    return %arg0, %c0_i32 : i32, i32
  }
}

module attributes {stable_mosaic.version = 11 : i64} {
  func.func @_dw3x3_s1_kernel(%arg0: i32, %arg1: i32, %arg2: memref<1x1x11x16xf32, #tpu.memory_space<vmem>>, %arg3: memref<1x1x11x16xf32, #tpu.memory_space<vmem>>, %arg4: memref<1x1x11x16xf32, #tpu.memory_space<vmem>>, %arg5: memref<9x16xf32, #tpu.memory_space<vmem>>, %arg6: memref<1x16xf32, #tpu.memory_space<vmem>>, %arg7: memref<1x1x9x16xf32, #tpu.memory_space<vmem>>) attributes {dimension_semantics = [#tpu.dimension_semantics<parallel>, #tpu.dimension_semantics<parallel>], iteration_bounds = array<i64: 2, 8>, scalar_prefetch = 0 : i64, scratch_operands = 0 : i64, tpu.core_type = #tpu.core_type<tc>, window_params = [{transform_indices = @transform_0, window_bounds = array<i64: 1, 1, 11, 16>}, {transform_indices = @transform_1, window_bounds = array<i64: 1, 1, 11, 16>}, {transform_indices = @transform_2, window_bounds = array<i64: 1, 1, 11, 16>}, {pipeline_mode = #tpu.pipeline_mode<synchronous>, transform_indices = @transform_3, window_bounds = array<i64: 9, 16>}, {pipeline_mode = #tpu.pipeline_mode<synchronous>, transform_indices = @transform_4, window_bounds = array<i64: 1, 16>}, {transform_indices = @transform_5, window_bounds = array<i64: 1, 1, 9, 16>}]} {
    %c0 = arith.constant 0 : index
    %c0_0 = arith.constant 0 : index
    %0 = vector.load %arg5[%c0, %c0_0] : memref<9x16xf32, #tpu.memory_space<vmem>>, vector<9x16xf32>
    %c0_1 = arith.constant 0 : index
    %c0_2 = arith.constant 0 : index
    %c0_3 = arith.constant 0 : index
    %c0_4 = arith.constant 0 : index
    %1 = vector.load %arg2[%c0_1, %c0_2, %c0_3, %c0_4] : memref<1x1x11x16xf32, #tpu.memory_space<vmem>>, vector<1x1x11x16xf32>
    %2 = vector.shape_cast %1 : vector<1x1x11x16xf32> to vector<11x16xf32>
    %c0_5 = arith.constant 0 : index
    %c0_6 = arith.constant 0 : index
    %c0_7 = arith.constant 0 : index
    %c0_8 = arith.constant 0 : index
    %3 = vector.load %arg3[%c0_5, %c0_6, %c0_7, %c0_8] : memref<1x1x11x16xf32, #tpu.memory_space<vmem>>, vector<1x1x11x16xf32>
    %4 = vector.shape_cast %3 : vector<1x1x11x16xf32> to vector<11x16xf32>
    %c0_9 = arith.constant 0 : index
    %c0_10 = arith.constant 0 : index
    %c0_11 = arith.constant 0 : index
    %c0_12 = arith.constant 0 : index
    %5 = vector.load %arg4[%c0_9, %c0_10, %c0_11, %c0_12] : memref<1x1x11x16xf32, #tpu.memory_space<vmem>>, vector<1x1x11x16xf32>
    %6 = vector.shape_cast %5 : vector<1x1x11x16xf32> to vector<11x16xf32>
    %cst = arith.constant 0.000000e+00 : f32
    %7 = vector.broadcast %cst : f32 to vector<9x16xf32>
    %8 = vector.extract_strided_slice %2 {offsets = [0, 0], sizes = [9, 16], strides = [1, 1]} : vector<11x16xf32> to vector<9x16xf32>
    %9 = vector.extract_strided_slice %0 {offsets = [0, 0], sizes = [1, 16], strides = [1, 1]} : vector<9x16xf32> to vector<1x16xf32>
    %10 = vector.broadcast %9 : vector<1x16xf32> to vector<9x16xf32>
    %11 = arith.mulf %8, %10 : vector<9x16xf32>
    %12 = arith.addf %7, %11 : vector<9x16xf32>
    %13 = vector.extract_strided_slice %2 {offsets = [1, 0], sizes = [9, 16], strides = [1, 1]} : vector<11x16xf32> to vector<9x16xf32>
    %14 = vector.extract_strided_slice %0 {offsets = [1, 0], sizes = [1, 16], strides = [1, 1]} : vector<9x16xf32> to vector<1x16xf32>
    %15 = vector.broadcast %14 : vector<1x16xf32> to vector<9x16xf32>
    %16 = arith.mulf %13, %15 : vector<9x16xf32>
    %17 = arith.addf %12, %16 : vector<9x16xf32>
    %18 = vector.extract_strided_slice %2 {offsets = [2, 0], sizes = [9, 16], strides = [1, 1]} : vector<11x16xf32> to vector<9x16xf32>
    %19 = vector.extract_strided_slice %0 {offsets = [2, 0], sizes = [1, 16], strides = [1, 1]} : vector<9x16xf32> to vector<1x16xf32>
    %20 = vector.broadcast %19 : vector<1x16xf32> to vector<9x16xf32>
    %21 = arith.mulf %18, %20 : vector<9x16xf32>
    %22 = arith.addf %17, %21 : vector<9x16xf32>
    %23 = vector.extract_strided_slice %4 {offsets = [0, 0], sizes = [9, 16], strides = [1, 1]} : vector<11x16xf32> to vector<9x16xf32>
    %24 = vector.extract_strided_slice %0 {offsets = [3, 0], sizes = [1, 16], strides = [1, 1]} : vector<9x16xf32> to vector<1x16xf32>
    %25 = vector.broadcast %24 : vector<1x16xf32> to vector<9x16xf32>
    %26 = arith.mulf %23, %25 : vector<9x16xf32>
    %27 = arith.addf %22, %26 : vector<9x16xf32>
    %28 = vector.extract_strided_slice %4 {offsets = [1, 0], sizes = [9, 16], strides = [1, 1]} : vector<11x16xf32> to vector<9x16xf32>
    %29 = vector.extract_strided_slice %0 {offsets = [4, 0], sizes = [1, 16], strides = [1, 1]} : vector<9x16xf32> to vector<1x16xf32>
    %30 = vector.broadcast %29 : vector<1x16xf32> to vector<9x16xf32>
    %31 = arith.mulf %28, %30 : vector<9x16xf32>
    %32 = arith.addf %27, %31 : vector<9x16xf32>
    %33 = vector.extract_strided_slice %4 {offsets = [2, 0], sizes = [9, 16], strides = [1, 1]} : vector<11x16xf32> to vector<9x16xf32>
    %34 = vector.extract_strided_slice %0 {offsets = [5, 0], sizes = [1, 16], strides = [1, 1]} : vector<9x16xf32> to vector<1x16xf32>
    %35 = vector.broadcast %34 : vector<1x16xf32> to vector<9x16xf32>
    %36 = arith.mulf %33, %35 : vector<9x16xf32>
    %37 = arith.addf %32, %36 : vector<9x16xf32>
    %38 = vector.extract_strided_slice %6 {offsets = [0, 0], sizes = [9, 16], strides = [1, 1]} : vector<11x16xf32> to vector<9x16xf32>
    %39 = vector.extract_strided_slice %0 {offsets = [6, 0], sizes = [1, 16], strides = [1, 1]} : vector<9x16xf32> to vector<1x16xf32>
    %40 = vector.broadcast %39 : vector<1x16xf32> to vector<9x16xf32>
    %41 = arith.mulf %38, %40 : vector<9x16xf32>
    %42 = arith.addf %37, %41 : vector<9x16xf32>
    %43 = vector.extract_strided_slice %6 {offsets = [1, 0], sizes = [9, 16], strides = [1, 1]} : vector<11x16xf32> to vector<9x16xf32>
    %44 = vector.extract_strided_slice %0 {offsets = [7, 0], sizes = [1, 16], strides = [1, 1]} : vector<9x16xf32> to vector<1x16xf32>
    %45 = vector.broadcast %44 : vector<1x16xf32> to vector<9x16xf32>
    %46 = arith.mulf %43, %45 : vector<9x16xf32>
    %47 = arith.addf %42, %46 : vector<9x16xf32>
    %48 = vector.extract_strided_slice %6 {offsets = [2, 0], sizes = [9, 16], strides = [1, 1]} : vector<11x16xf32> to vector<9x16xf32>
    %49 = vector.extract_strided_slice %0 {offsets = [8, 0], sizes = [1, 16], strides = [1, 1]} : vector<9x16xf32> to vector<1x16xf32>
    %50 = vector.broadcast %49 : vector<1x16xf32> to vector<9x16xf32>
    %51 = arith.mulf %48, %50 : vector<9x16xf32>
    %52 = arith.addf %47, %51 : vector<9x16xf32>
    %c0_13 = arith.constant 0 : index
    %c0_14 = arith.constant 0 : index
    %53 = vector.load %arg6[%c0_13, %c0_14] : memref<1x16xf32, #tpu.memory_space<vmem>>, vector<1x16xf32>
    %54 = vector.broadcast %53 : vector<1x16xf32> to vector<9x16xf32>
    %55 = arith.addf %52, %54 : vector<9x16xf32>
    %cst_15 = arith.constant 0.000000e+00 : f32
    %cst_16 = arith.constant 6.000000e+00 : f32
    %56 = vector.broadcast %cst_15 : f32 to vector<9x16xf32>
    %57 = arith.maximumf %56, %55 : vector<9x16xf32>
    %58 = vector.broadcast %cst_16 : f32 to vector<9x16xf32>
    %59 = arith.minimumf %58, %57 : vector<9x16xf32>
    %c0_17 = arith.constant 0 : index
    %c0_18 = arith.constant 0 : index
    %c0_19 = arith.constant 0 : index
    %c0_20 = arith.constant 0 : index
    %60 = vector.load %arg7[%c0_17, %c0_18, %c0_19, %c0_20] : memref<1x1x9x16xf32, #tpu.memory_space<vmem>>, vector<1x1x9x16xf32>
    %61 = vector.shape_cast %60 : vector<1x1x9x16xf32> to vector<9x16xf32>
    %62 = vector.shape_cast %59 : vector<9x16xf32> to vector<1x1x9x16xf32>
    tpu.vector_store %arg7[%c0_17, %c0_18, %c0_19, %c0_20], %62 {strides = array<i32>} : memref<1x1x9x16xf32, #tpu.memory_space<vmem>>, vector<1x1x9x16xf32>,
    return
  }
  func.func @transform_0(%arg0: i32, %arg1: i32) -> (i32, i32, i32, i32) {
    %c0_i32 = arith.constant 0 : i32
    %0 = arith.addi %arg1, %c0_i32 : i32
    %c0_i32_0 = arith.constant 0 : i32
    %c0_i32_1 = arith.constant 0 : i32
    %c0_i32_2 = arith.constant 0 : i32
    return %arg0, %0, %c0_i32_0, %c0_i32_1 : i32, i32, i32, i32
  }
  func.func @transform_1(%arg0: i32, %arg1: i32) -> (i32, i32, i32, i32) {
    %c1_i32 = arith.constant 1 : i32
    %0 = arith.addi %arg1, %c1_i32 : i32
    %c0_i32 = arith.constant 0 : i32
    %c0_i32_0 = arith.constant 0 : i32
    %c0_i32_1 = arith.constant 0 : i32
    return %arg0, %0, %c0_i32, %c0_i32_0 : i32, i32, i32, i32
  }
  func.func @transform_2(%arg0: i32, %arg1: i32) -> (i32, i32, i32, i32) {
    %c2_i32 = arith.constant 2 : i32
    %0 = arith.addi %arg1, %c2_i32 : i32
    %c0_i32 = arith.constant 0 : i32
    %c0_i32_0 = arith.constant 0 : i32
    %c0_i32_1 = arith.constant 0 : i32
    return %arg0, %0, %c0_i32, %c0_i32_0 : i32, i32, i32, i32
  }
  func.func @transform_3(%arg0: i32, %arg1: i32) -> (i32, i32) {
    %c0_i32 = arith.constant 0 : i32
    %c0_i32_0 = arith.constant 0 : i32
    %c0_i32_1 = arith.constant 0 : i32
    return %c0_i32, %c0_i32_0 : i32, i32
  }
  func.func @transform_4(%arg0: i32, %arg1: i32) -> (i32, i32) {
    %c0_i32 = arith.constant 0 : i32
    %c0_i32_0 = arith.constant 0 : i32
    %c0_i32_1 = arith.constant 0 : i32
    return %c0_i32, %c0_i32_0 : i32, i32
  }
  func.func @transform_5(%arg0: i32, %arg1: i32) -> (i32, i32, i32, i32) {
    %c0_i32 = arith.constant 0 : i32
    %c0_i32_0 = arith.constant 0 : i32
    %c0_i32_1 = arith.constant 0 : i32
    return %arg0, %arg1, %c0_i32, %c0_i32_0 : i32, i32, i32, i32
  }
}

module attributes {stable_mosaic.version = 11 : i64} {
  func.func @_mm_bias_res_kernel(%arg0: i32, %arg1: memref<144x16xf32, #tpu.memory_space<vmem>>, %arg2: memref<16x8xbf16, #tpu.memory_space<vmem>>, %arg3: memref<1x8xf32, #tpu.memory_space<vmem>>, %arg4: memref<144x8xf32, #tpu.memory_space<vmem>>, %arg5: memref<144x8xf32, #tpu.memory_space<vmem>>) attributes {dimension_semantics = [#tpu.dimension_semantics<parallel>], iteration_bounds = array<i64: 1>, scalar_prefetch = 0 : i64, scratch_operands = 0 : i64, tpu.core_type = #tpu.core_type<tc>, window_params = [{transform_indices = @transform_0, window_bounds = array<i64: 144, 16>}, {pipeline_mode = #tpu.pipeline_mode<synchronous>, transform_indices = @transform_1, window_bounds = array<i64: 16, 8>}, {pipeline_mode = #tpu.pipeline_mode<synchronous>, transform_indices = @transform_2, window_bounds = array<i64: 1, 8>}, {transform_indices = @transform_3, window_bounds = array<i64: 144, 8>}, {transform_indices = @transform_4, window_bounds = array<i64: 144, 8>}]} {
    %c0 = arith.constant 0 : index
    %c0_0 = arith.constant 0 : index
    %0 = vector.load %arg1[%c0, %c0_0] : memref<144x16xf32, #tpu.memory_space<vmem>>, vector<144x16xf32>
    %1 = arith.truncf %0 : vector<144x16xf32> to vector<144x16xbf16>
    %c0_1 = arith.constant 0 : index
    %c0_2 = arith.constant 0 : index
    %2 = vector.load %arg2[%c0_1, %c0_2] : memref<16x8xbf16, #tpu.memory_space<vmem>>, vector<16x8xbf16>
    %cst = arith.constant dense<0.000000e+00> : vector<144x8xf32>
    %3 = tpu.matmul %1, %2, %cst {dimension_numbers = #tpu.dot_dimension_numbers<[1], [0], [0], [1], [0, 0, 1, 1], [], []>} : vector<144x16xbf16>, vector<16x8xbf16>, vector<144x8xf32> -> vector<144x8xf32>
    %c0_3 = arith.constant 0 : index
    %c0_4 = arith.constant 0 : index
    %4 = vector.load %arg3[%c0_3, %c0_4] : memref<1x8xf32, #tpu.memory_space<vmem>>, vector<1x8xf32>
    %5 = vector.broadcast %4 : vector<1x8xf32> to vector<144x8xf32>
    %6 = arith.addf %3, %5 : vector<144x8xf32>
    %c0_5 = arith.constant 0 : index
    %c0_6 = arith.constant 0 : index
    %7 = vector.load %arg4[%c0_5, %c0_6] : memref<144x8xf32, #tpu.memory_space<vmem>>, vector<144x8xf32>
    %8 = arith.addf %6, %7 : vector<144x8xf32>
    %c0_7 = arith.constant 0 : index
    %c0_8 = arith.constant 0 : index
    %9 = vector.load %arg5[%c0_7, %c0_8] : memref<144x8xf32, #tpu.memory_space<vmem>>, vector<144x8xf32>
    tpu.vector_store %arg5[%c0_7, %c0_8], %8 {strides = array<i32>} : memref<144x8xf32, #tpu.memory_space<vmem>>, vector<144x8xf32>,
    return
  }
  func.func @transform_0(%arg0: i32) -> (i32, i32) {
    %c0_i32 = arith.constant 0 : i32
    %c0_i32_0 = arith.constant 0 : i32
    return %arg0, %c0_i32 : i32, i32
  }
  func.func @transform_1(%arg0: i32) -> (i32, i32) {
    %c0_i32 = arith.constant 0 : i32
    %c0_i32_0 = arith.constant 0 : i32
    %c0_i32_1 = arith.constant 0 : i32
    return %c0_i32, %c0_i32_0 : i32, i32
  }
  func.func @transform_2(%arg0: i32) -> (i32, i32) {
    %c0_i32 = arith.constant 0 : i32
    %c0_i32_0 = arith.constant 0 : i32
    %c0_i32_1 = arith.constant 0 : i32
    return %c0_i32, %c0_i32_0 : i32, i32
  }
  func.func @transform_3(%arg0: i32) -> (i32, i32) {
    %c0_i32 = arith.constant 0 : i32
    %c0_i32_0 = arith.constant 0 : i32
    return %arg0, %c0_i32 : i32, i32
  }
  func.func @transform_4(%arg0: i32) -> (i32, i32) {
    %c0_i32 = arith.constant 0 : i32
    %c0_i32_0 = arith.constant 0 : i32
    return %arg0, %c0_i32 : i32, i32
  }
}

module attributes {stable_mosaic.version = 11 : i64} {
  func.func @_dw3x3_s2_kernel(%arg0: i32, %arg1: i32, %arg2: memref<1x1x6x16xf32, #tpu.memory_space<vmem>>, %arg3: memref<1x1x6x16xf32, #tpu.memory_space<vmem>>, %arg4: memref<1x1x6x16xf32, #tpu.memory_space<vmem>>, %arg5: memref<1x1x5x16xf32, #tpu.memory_space<vmem>>, %arg6: memref<1x1x5x16xf32, #tpu.memory_space<vmem>>, %arg7: memref<1x1x5x16xf32, #tpu.memory_space<vmem>>, %arg8: memref<9x16xf32, #tpu.memory_space<vmem>>, %arg9: memref<1x16xf32, #tpu.memory_space<vmem>>, %arg10: memref<1x1x5x16xf32, #tpu.memory_space<vmem>>) attributes {dimension_semantics = [#tpu.dimension_semantics<parallel>, #tpu.dimension_semantics<parallel>], iteration_bounds = array<i64: 2, 4>, scalar_prefetch = 0 : i64, scratch_operands = 0 : i64, tpu.core_type = #tpu.core_type<tc>, window_params = [{transform_indices = @transform_0, window_bounds = array<i64: 1, 1, 6, 16>}, {transform_indices = @transform_1, window_bounds = array<i64: 1, 1, 6, 16>}, {transform_indices = @transform_2, window_bounds = array<i64: 1, 1, 6, 16>}, {transform_indices = @transform_3, window_bounds = array<i64: 1, 1, 5, 16>}, {transform_indices = @transform_4, window_bounds = array<i64: 1, 1, 5, 16>}, {transform_indices = @transform_5, window_bounds = array<i64: 1, 1, 5, 16>}, {pipeline_mode = #tpu.pipeline_mode<synchronous>, transform_indices = @transform_6, window_bounds = array<i64: 9, 16>}, {pipeline_mode = #tpu.pipeline_mode<synchronous>, transform_indices = @transform_7, window_bounds = array<i64: 1, 16>}, {transform_indices = @transform_8, window_bounds = array<i64: 1, 1, 5, 16>}]} {
    %c0 = arith.constant 0 : index
    %c0_0 = arith.constant 0 : index
    %0 = vector.load %arg8[%c0, %c0_0] : memref<9x16xf32, #tpu.memory_space<vmem>>, vector<9x16xf32>
    %c0_1 = arith.constant 0 : index
    %c0_2 = arith.constant 0 : index
    %c0_3 = arith.constant 0 : index
    %c0_4 = arith.constant 0 : index
    %1 = vector.load %arg2[%c0_1, %c0_2, %c0_3, %c0_4] : memref<1x1x6x16xf32, #tpu.memory_space<vmem>>, vector<1x1x6x16xf32>
    %2 = vector.shape_cast %1 : vector<1x1x6x16xf32> to vector<6x16xf32>
    %c0_5 = arith.constant 0 : index
    %c0_6 = arith.constant 0 : index
    %c0_7 = arith.constant 0 : index
    %c0_8 = arith.constant 0 : index
    %3 = vector.load %arg3[%c0_5, %c0_6, %c0_7, %c0_8] : memref<1x1x6x16xf32, #tpu.memory_space<vmem>>, vector<1x1x6x16xf32>
    %4 = vector.shape_cast %3 : vector<1x1x6x16xf32> to vector<6x16xf32>
    %c0_9 = arith.constant 0 : index
    %c0_10 = arith.constant 0 : index
    %c0_11 = arith.constant 0 : index
    %c0_12 = arith.constant 0 : index
    %5 = vector.load %arg4[%c0_9, %c0_10, %c0_11, %c0_12] : memref<1x1x6x16xf32, #tpu.memory_space<vmem>>, vector<1x1x6x16xf32>
    %6 = vector.shape_cast %5 : vector<1x1x6x16xf32> to vector<6x16xf32>
    %c0_13 = arith.constant 0 : index
    %c0_14 = arith.constant 0 : index
    %c0_15 = arith.constant 0 : index
    %c0_16 = arith.constant 0 : index
    %7 = vector.load %arg5[%c0_13, %c0_14, %c0_15, %c0_16] : memref<1x1x5x16xf32, #tpu.memory_space<vmem>>, vector<1x1x5x16xf32>
    %8 = vector.shape_cast %7 : vector<1x1x5x16xf32> to vector<5x16xf32>
    %c0_17 = arith.constant 0 : index
    %c0_18 = arith.constant 0 : index
    %c0_19 = arith.constant 0 : index
    %c0_20 = arith.constant 0 : index
    %9 = vector.load %arg6[%c0_17, %c0_18, %c0_19, %c0_20] : memref<1x1x5x16xf32, #tpu.memory_space<vmem>>, vector<1x1x5x16xf32>
    %10 = vector.shape_cast %9 : vector<1x1x5x16xf32> to vector<5x16xf32>
    %c0_21 = arith.constant 0 : index
    %c0_22 = arith.constant 0 : index
    %c0_23 = arith.constant 0 : index
    %c0_24 = arith.constant 0 : index
    %11 = vector.load %arg7[%c0_21, %c0_22, %c0_23, %c0_24] : memref<1x1x5x16xf32, #tpu.memory_space<vmem>>, vector<1x1x5x16xf32>
    %12 = vector.shape_cast %11 : vector<1x1x5x16xf32> to vector<5x16xf32>
    %cst = arith.constant 0.000000e+00 : f32
    %13 = vector.broadcast %cst : f32 to vector<5x16xf32>
    %14 = vector.extract_strided_slice %2 {offsets = [0, 0], sizes = [5, 16], strides = [1, 1]} : vector<6x16xf32> to vector<5x16xf32>
    %15 = vector.extract_strided_slice %0 {offsets = [0, 0], sizes = [1, 16], strides = [1, 1]} : vector<9x16xf32> to vector<1x16xf32>
    %16 = vector.broadcast %15 : vector<1x16xf32> to vector<5x16xf32>
    %17 = arith.mulf %14, %16 : vector<5x16xf32>
    %18 = arith.addf %13, %17 : vector<5x16xf32>
    %19 = vector.extract_strided_slice %0 {offsets = [1, 0], sizes = [1, 16], strides = [1, 1]} : vector<9x16xf32> to vector<1x16xf32>
    %20 = vector.broadcast %19 : vector<1x16xf32> to vector<5x16xf32>
    %21 = arith.mulf %8, %20 : vector<5x16xf32>
    %22 = arith.addf %18, %21 : vector<5x16xf32>
    %23 = vector.extract_strided_slice %2 {offsets = [1, 0], sizes = [5, 16], strides = [1, 1]} : vector<6x16xf32> to vector<5x16xf32>
    %24 = vector.extract_strided_slice %0 {offsets = [2, 0], sizes = [1, 16], strides = [1, 1]} : vector<9x16xf32> to vector<1x16xf32>
    %25 = vector.broadcast %24 : vector<1x16xf32> to vector<5x16xf32>
    %26 = arith.mulf %23, %25 : vector<5x16xf32>
    %27 = arith.addf %22, %26 : vector<5x16xf32>
    %28 = vector.extract_strided_slice %4 {offsets = [0, 0], sizes = [5, 16], strides = [1, 1]} : vector<6x16xf32> to vector<5x16xf32>
    %29 = vector.extract_strided_slice %0 {offsets = [3, 0], sizes = [1, 16], strides = [1, 1]} : vector<9x16xf32> to vector<1x16xf32>
    %30 = vector.broadcast %29 : vector<1x16xf32> to vector<5x16xf32>
    %31 = arith.mulf %28, %30 : vector<5x16xf32>
    %32 = arith.addf %27, %31 : vector<5x16xf32>
    %33 = vector.extract_strided_slice %0 {offsets = [4, 0], sizes = [1, 16], strides = [1, 1]} : vector<9x16xf32> to vector<1x16xf32>
    %34 = vector.broadcast %33 : vector<1x16xf32> to vector<5x16xf32>
    %35 = arith.mulf %10, %34 : vector<5x16xf32>
    %36 = arith.addf %32, %35 : vector<5x16xf32>
    %37 = vector.extract_strided_slice %4 {offsets = [1, 0], sizes = [5, 16], strides = [1, 1]} : vector<6x16xf32> to vector<5x16xf32>
    %38 = vector.extract_strided_slice %0 {offsets = [5, 0], sizes = [1, 16], strides = [1, 1]} : vector<9x16xf32> to vector<1x16xf32>
    %39 = vector.broadcast %38 : vector<1x16xf32> to vector<5x16xf32>
    %40 = arith.mulf %37, %39 : vector<5x16xf32>
    %41 = arith.addf %36, %40 : vector<5x16xf32>
    %42 = vector.extract_strided_slice %6 {offsets = [0, 0], sizes = [5, 16], strides = [1, 1]} : vector<6x16xf32> to vector<5x16xf32>
    %43 = vector.extract_strided_slice %0 {offsets = [6, 0], sizes = [1, 16], strides = [1, 1]} : vector<9x16xf32> to vector<1x16xf32>
    %44 = vector.broadcast %43 : vector<1x16xf32> to vector<5x16xf32>
    %45 = arith.mulf %42, %44 : vector<5x16xf32>
    %46 = arith.addf %41, %45 : vector<5x16xf32>
    %47 = vector.extract_strided_slice %0 {offsets = [7, 0], sizes = [1, 16], strides = [1, 1]} : vector<9x16xf32> to vector<1x16xf32>
    %48 = vector.broadcast %47 : vector<1x16xf32> to vector<5x16xf32>
    %49 = arith.mulf %12, %48 : vector<5x16xf32>
    %50 = arith.addf %46, %49 : vector<5x16xf32>
    %51 = vector.extract_strided_slice %6 {offsets = [1, 0], sizes = [5, 16], strides = [1, 1]} : vector<6x16xf32> to vector<5x16xf32>
    %52 = vector.extract_strided_slice %0 {offsets = [8, 0], sizes = [1, 16], strides = [1, 1]} : vector<9x16xf32> to vector<1x16xf32>
    %53 = vector.broadcast %52 : vector<1x16xf32> to vector<5x16xf32>
    %54 = arith.mulf %51, %53 : vector<5x16xf32>
    %55 = arith.addf %50, %54 : vector<5x16xf32>
    %c0_25 = arith.constant 0 : index
    %c0_26 = arith.constant 0 : index
    %56 = vector.load %arg9[%c0_25, %c0_26] : memref<1x16xf32, #tpu.memory_space<vmem>>, vector<1x16xf32>
    %57 = vector.broadcast %56 : vector<1x16xf32> to vector<5x16xf32>
    %58 = arith.addf %55, %57 : vector<5x16xf32>
    %cst_27 = arith.constant 0.000000e+00 : f32
    %cst_28 = arith.constant 6.000000e+00 : f32
    %59 = vector.broadcast %cst_27 : f32 to vector<5x16xf32>
    %60 = arith.maximumf %59, %58 : vector<5x16xf32>
    %61 = vector.broadcast %cst_28 : f32 to vector<5x16xf32>
    %62 = arith.minimumf %61, %60 : vector<5x16xf32>
    %c0_29 = arith.constant 0 : index
    %c0_30 = arith.constant 0 : index
    %c0_31 = arith.constant 0 : index
    %c0_32 = arith.constant 0 : index
    %63 = vector.load %arg10[%c0_29, %c0_30, %c0_31, %c0_32] : memref<1x1x5x16xf32, #tpu.memory_space<vmem>>, vector<1x1x5x16xf32>
    %64 = vector.shape_cast %63 : vector<1x1x5x16xf32> to vector<5x16xf32>
    %65 = vector.shape_cast %62 : vector<5x16xf32> to vector<1x1x5x16xf32>
    tpu.vector_store %arg10[%c0_29, %c0_30, %c0_31, %c0_32], %65 {strides = array<i32>} : memref<1x1x5x16xf32, #tpu.memory_space<vmem>>, vector<1x1x5x16xf32>,
    return
  }
  func.func @transform_0(%arg0: i32, %arg1: i32) -> (i32, i32, i32, i32) {
    %c2_i32 = arith.constant 2 : i32
    %0 = arith.muli %c2_i32, %arg1 : i32
    %c0_i32 = arith.constant 0 : i32
    %1 = arith.addi %0, %c0_i32 : i32
    %c0_i32_0 = arith.constant 0 : i32
    %c0_i32_1 = arith.constant 0 : i32
    %c0_i32_2 = arith.constant 0 : i32
    return %arg0, %1, %c0_i32_0, %c0_i32_1 : i32, i32, i32, i32
  }
  func.func @transform_1(%arg0: i32, %arg1: i32) -> (i32, i32, i32, i32) {
    %c2_i32 = arith.constant 2 : i32
    %0 = arith.muli %c2_i32, %arg1 : i32
    %c1_i32 = arith.constant 1 : i32
    %1 = arith.addi %0, %c1_i32 : i32
    %c0_i32 = arith.constant 0 : i32
    %c0_i32_0 = arith.constant 0 : i32
    %c0_i32_1 = arith.constant 0 : i32
    return %arg0, %1, %c0_i32, %c0_i32_0 : i32, i32, i32, i32
  }
  func.func @transform_2(%arg0: i32, %arg1: i32) -> (i32, i32, i32, i32) {
    %c2_i32 = arith.constant 2 : i32
    %0 = arith.muli %c2_i32, %arg1 : i32
    %c2_i32_0 = arith.constant 2 : i32
    %1 = arith.addi %0, %c2_i32_0 : i32
    %c0_i32 = arith.constant 0 : i32
    %c0_i32_1 = arith.constant 0 : i32
    %c0_i32_2 = arith.constant 0 : i32
    return %arg0, %1, %c0_i32, %c0_i32_1 : i32, i32, i32, i32
  }
  func.func @transform_3(%arg0: i32, %arg1: i32) -> (i32, i32, i32, i32) {
    %c2_i32 = arith.constant 2 : i32
    %0 = arith.muli %c2_i32, %arg1 : i32
    %c0_i32 = arith.constant 0 : i32
    %1 = arith.addi %0, %c0_i32 : i32
    %c0_i32_0 = arith.constant 0 : i32
    %c0_i32_1 = arith.constant 0 : i32
    %c0_i32_2 = arith.constant 0 : i32
    return %arg0, %1, %c0_i32_0, %c0_i32_1 : i32, i32, i32, i32
  }
  func.func @transform_4(%arg0: i32, %arg1: i32) -> (i32, i32, i32, i32) {
    %c2_i32 = arith.constant 2 : i32
    %0 = arith.muli %c2_i32, %arg1 : i32
    %c1_i32 = arith.constant 1 : i32
    %1 = arith.addi %0, %c1_i32 : i32
    %c0_i32 = arith.constant 0 : i32
    %c0_i32_0 = arith.constant 0 : i32
    %c0_i32_1 = arith.constant 0 : i32
    return %arg0, %1, %c0_i32, %c0_i32_0 : i32, i32, i32, i32
  }
  func.func @transform_5(%arg0: i32, %arg1: i32) -> (i32, i32, i32, i32) {
    %c2_i32 = arith.constant 2 : i32
    %0 = arith.muli %c2_i32, %arg1 : i32
    %c2_i32_0 = arith.constant 2 : i32
    %1 = arith.addi %0, %c2_i32_0 : i32
    %c0_i32 = arith.constant 0 : i32
    %c0_i32_1 = arith.constant 0 : i32
    %c0_i32_2 = arith.constant 0 : i32
    return %arg0, %1, %c0_i32, %c0_i32_1 : i32, i32, i32, i32
  }
  func.func @transform_6(%arg0: i32, %arg1: i32) -> (i32, i32) {
    %c0_i32 = arith.constant 0 : i32
    %c0_i32_0 = arith.constant 0 : i32
    %c0_i32_1 = arith.constant 0 : i32
    return %c0_i32, %c0_i32_0 : i32, i32
  }
  func.func @transform_7(%arg0: i32, %arg1: i32) -> (i32, i32) {
    %c0_i32 = arith.constant 0 : i32
    %c0_i32_0 = arith.constant 0 : i32
    %c0_i32_1 = arith.constant 0 : i32
    return %c0_i32, %c0_i32_0 : i32, i32
  }
  func.func @transform_8(%arg0: i32, %arg1: i32) -> (i32, i32, i32, i32) {
    %c0_i32 = arith.constant 0 : i32
    %c0_i32_0 = arith.constant 0 : i32
    %c0_i32_1 = arith.constant 0 : i32
    return %arg0, %arg1, %c0_i32, %c0_i32_0 : i32, i32, i32, i32
  }
}

module attributes {stable_mosaic.version = 11 : i64} {
  func.func @_mm_bias_kernel(%arg0: i32, %arg1: memref<40x16xf32, #tpu.memory_space<vmem>>, %arg2: memref<16x16xbf16, #tpu.memory_space<vmem>>, %arg3: memref<1x16xf32, #tpu.memory_space<vmem>>, %arg4: memref<40x16xf32, #tpu.memory_space<vmem>>) attributes {dimension_semantics = [#tpu.dimension_semantics<parallel>], iteration_bounds = array<i64: 1>, scalar_prefetch = 0 : i64, scratch_operands = 0 : i64, tpu.core_type = #tpu.core_type<tc>, window_params = [{transform_indices = @transform_0, window_bounds = array<i64: 40, 16>}, {pipeline_mode = #tpu.pipeline_mode<synchronous>, transform_indices = @transform_1, window_bounds = array<i64: 16, 16>}, {pipeline_mode = #tpu.pipeline_mode<synchronous>, transform_indices = @transform_2, window_bounds = array<i64: 1, 16>}, {transform_indices = @transform_3, window_bounds = array<i64: 40, 16>}]} {
    %c0 = arith.constant 0 : index
    %c0_0 = arith.constant 0 : index
    %0 = vector.load %arg1[%c0, %c0_0] : memref<40x16xf32, #tpu.memory_space<vmem>>, vector<40x16xf32>
    %1 = arith.truncf %0 : vector<40x16xf32> to vector<40x16xbf16>
    %c0_1 = arith.constant 0 : index
    %c0_2 = arith.constant 0 : index
    %2 = vector.load %arg2[%c0_1, %c0_2] : memref<16x16xbf16, #tpu.memory_space<vmem>>, vector<16x16xbf16>
    %cst = arith.constant dense<0.000000e+00> : vector<40x16xf32>
    %3 = tpu.matmul %1, %2, %cst {dimension_numbers = #tpu.dot_dimension_numbers<[1], [0], [0], [1], [0, 0, 1, 1], [], []>} : vector<40x16xbf16>, vector<16x16xbf16>, vector<40x16xf32> -> vector<40x16xf32>
    %c0_3 = arith.constant 0 : index
    %c0_4 = arith.constant 0 : index
    %4 = vector.load %arg3[%c0_3, %c0_4] : memref<1x16xf32, #tpu.memory_space<vmem>>, vector<1x16xf32>
    %5 = vector.broadcast %4 : vector<1x16xf32> to vector<40x16xf32>
    %6 = arith.addf %3, %5 : vector<40x16xf32>
    %c0_5 = arith.constant 0 : index
    %c0_6 = arith.constant 0 : index
    %7 = vector.load %arg4[%c0_5, %c0_6] : memref<40x16xf32, #tpu.memory_space<vmem>>, vector<40x16xf32>
    tpu.vector_store %arg4[%c0_5, %c0_6], %6 {strides = array<i32>} : memref<40x16xf32, #tpu.memory_space<vmem>>, vector<40x16xf32>,
    return
  }
  func.func @transform_0(%arg0: i32) -> (i32, i32) {
    %c0_i32 = arith.constant 0 : i32
    %c0_i32_0 = arith.constant 0 : i32
    return %arg0, %c0_i32 : i32, i32
  }
  func.func @transform_1(%arg0: i32) -> (i32, i32) {
    %c0_i32 = arith.constant 0 : i32
    %c0_i32_0 = arith.constant 0 : i32
    %c0_i32_1 = arith.constant 0 : i32
    return %c0_i32, %c0_i32_0 : i32, i32
  }
  func.func @transform_2(%arg0: i32) -> (i32, i32) {
    %c0_i32 = arith.constant 0 : i32
    %c0_i32_0 = arith.constant 0 : i32
    %c0_i32_1 = arith.constant 0 : i32
    return %c0_i32, %c0_i32_0 : i32, i32
  }
  func.func @transform_3(%arg0: i32) -> (i32, i32) {
    %c0_i32 = arith.constant 0 : i32
    %c0_i32_0 = arith.constant 0 : i32
    return %arg0, %c0_i32 : i32, i32
  }
}

module attributes {stable_mosaic.version = 11 : i64} {
  func.func @_mm_bias_kernel(%arg0: i32, %arg1: memref<40x16xf32, #tpu.memory_space<vmem>>, %arg2: memref<16x32xbf16, #tpu.memory_space<vmem>>, %arg3: memref<1x32xf32, #tpu.memory_space<vmem>>, %arg4: memref<40x32xf32, #tpu.memory_space<vmem>>) attributes {dimension_semantics = [#tpu.dimension_semantics<parallel>], iteration_bounds = array<i64: 1>, scalar_prefetch = 0 : i64, scratch_operands = 0 : i64, tpu.core_type = #tpu.core_type<tc>, window_params = [{transform_indices = @transform_0, window_bounds = array<i64: 40, 16>}, {pipeline_mode = #tpu.pipeline_mode<synchronous>, transform_indices = @transform_1, window_bounds = array<i64: 16, 32>}, {pipeline_mode = #tpu.pipeline_mode<synchronous>, transform_indices = @transform_2, window_bounds = array<i64: 1, 32>}, {transform_indices = @transform_3, window_bounds = array<i64: 40, 32>}]} {
    %c0 = arith.constant 0 : index
    %c0_0 = arith.constant 0 : index
    %0 = vector.load %arg1[%c0, %c0_0] : memref<40x16xf32, #tpu.memory_space<vmem>>, vector<40x16xf32>
    %1 = arith.truncf %0 : vector<40x16xf32> to vector<40x16xbf16>
    %c0_1 = arith.constant 0 : index
    %c0_2 = arith.constant 0 : index
    %2 = vector.load %arg2[%c0_1, %c0_2] : memref<16x32xbf16, #tpu.memory_space<vmem>>, vector<16x32xbf16>
    %cst = arith.constant dense<0.000000e+00> : vector<40x32xf32>
    %3 = tpu.matmul %1, %2, %cst {dimension_numbers = #tpu.dot_dimension_numbers<[1], [0], [0], [1], [0, 0, 1, 1], [], []>} : vector<40x16xbf16>, vector<16x32xbf16>, vector<40x32xf32> -> vector<40x32xf32>
    %c0_3 = arith.constant 0 : index
    %c0_4 = arith.constant 0 : index
    %4 = vector.load %arg3[%c0_3, %c0_4] : memref<1x32xf32, #tpu.memory_space<vmem>>, vector<1x32xf32>
    %5 = vector.broadcast %4 : vector<1x32xf32> to vector<40x32xf32>
    %6 = arith.addf %3, %5 : vector<40x32xf32>
    %cst_5 = arith.constant 0.000000e+00 : f32
    %cst_6 = arith.constant 6.000000e+00 : f32
    %7 = vector.broadcast %cst_5 : f32 to vector<40x32xf32>
    %8 = arith.maximumf %7, %6 : vector<40x32xf32>
    %9 = vector.broadcast %cst_6 : f32 to vector<40x32xf32>
    %10 = arith.minimumf %9, %8 : vector<40x32xf32>
    %c0_7 = arith.constant 0 : index
    %c0_8 = arith.constant 0 : index
    %11 = vector.load %arg4[%c0_7, %c0_8] : memref<40x32xf32, #tpu.memory_space<vmem>>, vector<40x32xf32>
    tpu.vector_store %arg4[%c0_7, %c0_8], %10 {strides = array<i32>} : memref<40x32xf32, #tpu.memory_space<vmem>>, vector<40x32xf32>,
    return
  }
  func.func @transform_0(%arg0: i32) -> (i32, i32) {
    %c0_i32 = arith.constant 0 : i32
    %c0_i32_0 = arith.constant 0 : i32
    return %arg0, %c0_i32 : i32, i32
  }
  func.func @transform_1(%arg0: i32) -> (i32, i32) {
    %c0_i32 = arith.constant 0 : i32
    %c0_i32_0 = arith.constant 0 : i32
    %c0_i32_1 = arith.constant 0 : i32
    return %c0_i32, %c0_i32_0 : i32, i32
  }
  func.func @transform_2(%arg0: i32) -> (i32, i32) {
    %c0_i32 = arith.constant 0 : i32
    %c0_i32_0 = arith.constant 0 : i32
    %c0_i32_1 = arith.constant 0 : i32
    return %c0_i32, %c0_i32_0 : i32, i32
  }
  func.func @transform_3(%arg0: i32) -> (i32, i32) {
    %c0_i32 = arith.constant 0 : i32
    %c0_i32_0 = arith.constant 0 : i32
    return %arg0, %c0_i32 : i32, i32
  }
}

module attributes {stable_mosaic.version = 11 : i64} {
  func.func @_mm_bias_res_kernel(%arg0: i32, %arg1: memref<40x32xf32, #tpu.memory_space<vmem>>, %arg2: memref<32x16xbf16, #tpu.memory_space<vmem>>, %arg3: memref<1x16xf32, #tpu.memory_space<vmem>>, %arg4: memref<40x16xf32, #tpu.memory_space<vmem>>, %arg5: memref<40x16xf32, #tpu.memory_space<vmem>>) attributes {dimension_semantics = [#tpu.dimension_semantics<parallel>], iteration_bounds = array<i64: 1>, scalar_prefetch = 0 : i64, scratch_operands = 0 : i64, tpu.core_type = #tpu.core_type<tc>, window_params = [{transform_indices = @transform_0, window_bounds = array<i64: 40, 32>}, {pipeline_mode = #tpu.pipeline_mode<synchronous>, transform_indices = @transform_1, window_bounds = array<i64: 32, 16>}, {pipeline_mode = #tpu.pipeline_mode<synchronous>, transform_indices = @transform_2, window_bounds = array<i64: 1, 16>}, {transform_indices = @transform_3, window_bounds = array<i64: 40, 16>}, {transform_indices = @transform_4, window_bounds = array<i64: 40, 16>}]} {
    %c0 = arith.constant 0 : index
    %c0_0 = arith.constant 0 : index
    %0 = vector.load %arg1[%c0, %c0_0] : memref<40x32xf32, #tpu.memory_space<vmem>>, vector<40x32xf32>
    %1 = arith.truncf %0 : vector<40x32xf32> to vector<40x32xbf16>
    %c0_1 = arith.constant 0 : index
    %c0_2 = arith.constant 0 : index
    %2 = vector.load %arg2[%c0_1, %c0_2] : memref<32x16xbf16, #tpu.memory_space<vmem>>, vector<32x16xbf16>
    %cst = arith.constant dense<0.000000e+00> : vector<40x16xf32>
    %3 = tpu.matmul %1, %2, %cst {dimension_numbers = #tpu.dot_dimension_numbers<[1], [0], [0], [1], [0, 0, 1, 1], [], []>} : vector<40x32xbf16>, vector<32x16xbf16>, vector<40x16xf32> -> vector<40x16xf32>
    %c0_3 = arith.constant 0 : index
    %c0_4 = arith.constant 0 : index
    %4 = vector.load %arg3[%c0_3, %c0_4] : memref<1x16xf32, #tpu.memory_space<vmem>>, vector<1x16xf32>
    %5 = vector.broadcast %4 : vector<1x16xf32> to vector<40x16xf32>
    %6 = arith.addf %3, %5 : vector<40x16xf32>
    %c0_5 = arith.constant 0 : index
    %c0_6 = arith.constant 0 : index
    %7 = vector.load %arg4[%c0_5, %c0_6] : memref<40x16xf32, #tpu.memory_space<vmem>>, vector<40x16xf32>
    %8 = arith.addf %6, %7 : vector<40x16xf32>
    %c0_7 = arith.constant 0 : index
    %c0_8 = arith.constant 0 : index
    %9 = vector.load %arg5[%c0_7, %c0_8] : memref<40x16xf32, #tpu.memory_space<vmem>>, vector<40x16xf32>
    tpu.vector_store %arg5[%c0_7, %c0_8], %8 {strides = array<i32>} : memref<40x16xf32, #tpu.memory_space<vmem>>, vector<40x16xf32>,
    return
  }
  func.func @transform_0(%arg0: i32) -> (i32, i32) {
    %c0_i32 = arith.constant 0 : i32
    %c0_i32_0 = arith.constant 0 : i32
    return %arg0, %c0_i32 : i32, i32
  }
  func.func @transform_1(%arg0: i32) -> (i32, i32) {
    %c0_i32 = arith.constant 0 : i32
    %c0_i32_0 = arith.constant 0 : i32
    %c0_i32_1 = arith.constant 0 : i32
    return %c0_i32, %c0_i32_0 : i32, i32
  }
  func.func @transform_2(%arg0: i32) -> (i32, i32) {
    %c0_i32 = arith.constant 0 : i32
    %c0_i32_0 = arith.constant 0 : i32
    %c0_i32_1 = arith.constant 0 : i32
    return %c0_i32, %c0_i32_0 : i32, i32
  }
  func.func @transform_3(%arg0: i32) -> (i32, i32) {
    %c0_i32 = arith.constant 0 : i32
    %c0_i32_0 = arith.constant 0 : i32
    return %arg0, %c0_i32 : i32, i32
  }
  func.func @transform_4(%arg0: i32) -> (i32, i32) {
    %c0_i32 = arith.constant 0 : i32
    %c0_i32_0 = arith.constant 0 : i32
    return %arg0, %c0_i32 : i32, i32
  }
}

module attributes {stable_mosaic.version = 11 : i64} {
  func.func @_dw3x3_s1_kernel(%arg0: i32, %arg1: i32, %arg2: memref<1x1x7x32xf32, #tpu.memory_space<vmem>>, %arg3: memref<1x1x7x32xf32, #tpu.memory_space<vmem>>, %arg4: memref<1x1x7x32xf32, #tpu.memory_space<vmem>>, %arg5: memref<9x32xf32, #tpu.memory_space<vmem>>, %arg6: memref<1x32xf32, #tpu.memory_space<vmem>>, %arg7: memref<1x1x5x32xf32, #tpu.memory_space<vmem>>) attributes {dimension_semantics = [#tpu.dimension_semantics<parallel>, #tpu.dimension_semantics<parallel>], iteration_bounds = array<i64: 2, 4>, scalar_prefetch = 0 : i64, scratch_operands = 0 : i64, tpu.core_type = #tpu.core_type<tc>, window_params = [{transform_indices = @transform_0, window_bounds = array<i64: 1, 1, 7, 32>}, {transform_indices = @transform_1, window_bounds = array<i64: 1, 1, 7, 32>}, {transform_indices = @transform_2, window_bounds = array<i64: 1, 1, 7, 32>}, {pipeline_mode = #tpu.pipeline_mode<synchronous>, transform_indices = @transform_3, window_bounds = array<i64: 9, 32>}, {pipeline_mode = #tpu.pipeline_mode<synchronous>, transform_indices = @transform_4, window_bounds = array<i64: 1, 32>}, {transform_indices = @transform_5, window_bounds = array<i64: 1, 1, 5, 32>}]} {
    %c0 = arith.constant 0 : index
    %c0_0 = arith.constant 0 : index
    %0 = vector.load %arg5[%c0, %c0_0] : memref<9x32xf32, #tpu.memory_space<vmem>>, vector<9x32xf32>
    %c0_1 = arith.constant 0 : index
    %c0_2 = arith.constant 0 : index
    %c0_3 = arith.constant 0 : index
    %c0_4 = arith.constant 0 : index
    %1 = vector.load %arg2[%c0_1, %c0_2, %c0_3, %c0_4] : memref<1x1x7x32xf32, #tpu.memory_space<vmem>>, vector<1x1x7x32xf32>
    %2 = vector.shape_cast %1 : vector<1x1x7x32xf32> to vector<7x32xf32>
    %c0_5 = arith.constant 0 : index
    %c0_6 = arith.constant 0 : index
    %c0_7 = arith.constant 0 : index
    %c0_8 = arith.constant 0 : index
    %3 = vector.load %arg3[%c0_5, %c0_6, %c0_7, %c0_8] : memref<1x1x7x32xf32, #tpu.memory_space<vmem>>, vector<1x1x7x32xf32>
    %4 = vector.shape_cast %3 : vector<1x1x7x32xf32> to vector<7x32xf32>
    %c0_9 = arith.constant 0 : index
    %c0_10 = arith.constant 0 : index
    %c0_11 = arith.constant 0 : index
    %c0_12 = arith.constant 0 : index
    %5 = vector.load %arg4[%c0_9, %c0_10, %c0_11, %c0_12] : memref<1x1x7x32xf32, #tpu.memory_space<vmem>>, vector<1x1x7x32xf32>
    %6 = vector.shape_cast %5 : vector<1x1x7x32xf32> to vector<7x32xf32>
    %cst = arith.constant 0.000000e+00 : f32
    %7 = vector.broadcast %cst : f32 to vector<5x32xf32>
    %8 = vector.extract_strided_slice %2 {offsets = [0, 0], sizes = [5, 32], strides = [1, 1]} : vector<7x32xf32> to vector<5x32xf32>
    %9 = vector.extract_strided_slice %0 {offsets = [0, 0], sizes = [1, 32], strides = [1, 1]} : vector<9x32xf32> to vector<1x32xf32>
    %10 = vector.broadcast %9 : vector<1x32xf32> to vector<5x32xf32>
    %11 = arith.mulf %8, %10 : vector<5x32xf32>
    %12 = arith.addf %7, %11 : vector<5x32xf32>
    %13 = vector.extract_strided_slice %2 {offsets = [1, 0], sizes = [5, 32], strides = [1, 1]} : vector<7x32xf32> to vector<5x32xf32>
    %14 = vector.extract_strided_slice %0 {offsets = [1, 0], sizes = [1, 32], strides = [1, 1]} : vector<9x32xf32> to vector<1x32xf32>
    %15 = vector.broadcast %14 : vector<1x32xf32> to vector<5x32xf32>
    %16 = arith.mulf %13, %15 : vector<5x32xf32>
    %17 = arith.addf %12, %16 : vector<5x32xf32>
    %18 = vector.extract_strided_slice %2 {offsets = [2, 0], sizes = [5, 32], strides = [1, 1]} : vector<7x32xf32> to vector<5x32xf32>
    %19 = vector.extract_strided_slice %0 {offsets = [2, 0], sizes = [1, 32], strides = [1, 1]} : vector<9x32xf32> to vector<1x32xf32>
    %20 = vector.broadcast %19 : vector<1x32xf32> to vector<5x32xf32>
    %21 = arith.mulf %18, %20 : vector<5x32xf32>
    %22 = arith.addf %17, %21 : vector<5x32xf32>
    %23 = vector.extract_strided_slice %4 {offsets = [0, 0], sizes = [5, 32], strides = [1, 1]} : vector<7x32xf32> to vector<5x32xf32>
    %24 = vector.extract_strided_slice %0 {offsets = [3, 0], sizes = [1, 32], strides = [1, 1]} : vector<9x32xf32> to vector<1x32xf32>
    %25 = vector.broadcast %24 : vector<1x32xf32> to vector<5x32xf32>
    %26 = arith.mulf %23, %25 : vector<5x32xf32>
    %27 = arith.addf %22, %26 : vector<5x32xf32>
    %28 = vector.extract_strided_slice %4 {offsets = [1, 0], sizes = [5, 32], strides = [1, 1]} : vector<7x32xf32> to vector<5x32xf32>
    %29 = vector.extract_strided_slice %0 {offsets = [4, 0], sizes = [1, 32], strides = [1, 1]} : vector<9x32xf32> to vector<1x32xf32>
    %30 = vector.broadcast %29 : vector<1x32xf32> to vector<5x32xf32>
    %31 = arith.mulf %28, %30 : vector<5x32xf32>
    %32 = arith.addf %27, %31 : vector<5x32xf32>
    %33 = vector.extract_strided_slice %4 {offsets = [2, 0], sizes = [5, 32], strides = [1, 1]} : vector<7x32xf32> to vector<5x32xf32>
    %34 = vector.extract_strided_slice %0 {offsets = [5, 0], sizes = [1, 32], strides = [1, 1]} : vector<9x32xf32> to vector<1x32xf32>
    %35 = vector.broadcast %34 : vector<1x32xf32> to vector<5x32xf32>
    %36 = arith.mulf %33, %35 : vector<5x32xf32>
    %37 = arith.addf %32, %36 : vector<5x32xf32>
    %38 = vector.extract_strided_slice %6 {offsets = [0, 0], sizes = [5, 32], strides = [1, 1]} : vector<7x32xf32> to vector<5x32xf32>
    %39 = vector.extract_strided_slice %0 {offsets = [6, 0], sizes = [1, 32], strides = [1, 1]} : vector<9x32xf32> to vector<1x32xf32>
    %40 = vector.broadcast %39 : vector<1x32xf32> to vector<5x32xf32>
    %41 = arith.mulf %38, %40 : vector<5x32xf32>
    %42 = arith.addf %37, %41 : vector<5x32xf32>
    %43 = vector.extract_strided_slice %6 {offsets = [1, 0], sizes = [5, 32], strides = [1, 1]} : vector<7x32xf32> to vector<5x32xf32>
    %44 = vector.extract_strided_slice %0 {offsets = [7, 0], sizes = [1, 32], strides = [1, 1]} : vector<9x32xf32> to vector<1x32xf32>
    %45 = vector.broadcast %44 : vector<1x32xf32> to vector<5x32xf32>
    %46 = arith.mulf %43, %45 : vector<5x32xf32>
    %47 = arith.addf %42, %46 : vector<5x32xf32>
    %48 = vector.extract_strided_slice %6 {offsets = [2, 0], sizes = [5, 32], strides = [1, 1]} : vector<7x32xf32> to vector<5x32xf32>
    %49 = vector.extract_strided_slice %0 {offsets = [8, 0], sizes = [1, 32], strides = [1, 1]} : vector<9x32xf32> to vector<1x32xf32>
    %50 = vector.broadcast %49 : vector<1x32xf32> to vector<5x32xf32>
    %51 = arith.mulf %48, %50 : vector<5x32xf32>
    %52 = arith.addf %47, %51 : vector<5x32xf32>
    %c0_13 = arith.constant 0 : index
    %c0_14 = arith.constant 0 : index
    %53 = vector.load %arg6[%c0_13, %c0_14] : memref<1x32xf32, #tpu.memory_space<vmem>>, vector<1x32xf32>
    %54 = vector.broadcast %53 : vector<1x32xf32> to vector<5x32xf32>
    %55 = arith.addf %52, %54 : vector<5x32xf32>
    %cst_15 = arith.constant 0.000000e+00 : f32
    %cst_16 = arith.constant 6.000000e+00 : f32
    %56 = vector.broadcast %cst_15 : f32 to vector<5x32xf32>
    %57 = arith.maximumf %56, %55 : vector<5x32xf32>
    %58 = vector.broadcast %cst_16 : f32 to vector<5x32xf32>
    %59 = arith.minimumf %58, %57 : vector<5x32xf32>
    %c0_17 = arith.constant 0 : index
    %c0_18 = arith.constant 0 : index
    %c0_19 = arith.constant 0 : index
    %c0_20 = arith.constant 0 : index
    %60 = vector.load %arg7[%c0_17, %c0_18, %c0_19, %c0_20] : memref<1x1x5x32xf32, #tpu.memory_space<vmem>>, vector<1x1x5x32xf32>
    %61 = vector.shape_cast %60 : vector<1x1x5x32xf32> to vector<5x32xf32>
    %62 = vector.shape_cast %59 : vector<5x32xf32> to vector<1x1x5x32xf32>
    tpu.vector_store %arg7[%c0_17, %c0_18, %c0_19, %c0_20], %62 {strides = array<i32>} : memref<1x1x5x32xf32, #tpu.memory_space<vmem>>, vector<1x1x5x32xf32>,
    return
  }
  func.func @transform_0(%arg0: i32, %arg1: i32) -> (i32, i32, i32, i32) {
    %c0_i32 = arith.constant 0 : i32
    %0 = arith.addi %arg1, %c0_i32 : i32
    %c0_i32_0 = arith.constant 0 : i32
    %c0_i32_1 = arith.constant 0 : i32
    %c0_i32_2 = arith.constant 0 : i32
    return %arg0, %0, %c0_i32_0, %c0_i32_1 : i32, i32, i32, i32
  }
  func.func @transform_1(%arg0: i32, %arg1: i32) -> (i32, i32, i32, i32) {
    %c1_i32 = arith.constant 1 : i32
    %0 = arith.addi %arg1, %c1_i32 : i32
    %c0_i32 = arith.constant 0 : i32
    %c0_i32_0 = arith.constant 0 : i32
    %c0_i32_1 = arith.constant 0 : i32
    return %arg0, %0, %c0_i32, %c0_i32_0 : i32, i32, i32, i32
  }
  func.func @transform_2(%arg0: i32, %arg1: i32) -> (i32, i32, i32, i32) {
    %c2_i32 = arith.constant 2 : i32
    %0 = arith.addi %arg1, %c2_i32 : i32
    %c0_i32 = arith.constant 0 : i32
    %c0_i32_0 = arith.constant 0 : i32
    %c0_i32_1 = arith.constant 0 : i32
    return %arg0, %0, %c0_i32, %c0_i32_0 : i32, i32, i32, i32
  }
  func.func @transform_3(%arg0: i32, %arg1: i32) -> (i32, i32) {
    %c0_i32 = arith.constant 0 : i32
    %c0_i32_0 = arith.constant 0 : i32
    %c0_i32_1 = arith.constant 0 : i32
    return %c0_i32, %c0_i32_0 : i32, i32
  }
  func.func @transform_4(%arg0: i32, %arg1: i32) -> (i32, i32) {
    %c0_i32 = arith.constant 0 : i32
    %c0_i32_0 = arith.constant 0 : i32
    %c0_i32_1 = arith.constant 0 : i32
    return %c0_i32, %c0_i32_0 : i32, i32
  }
  func.func @transform_5(%arg0: i32, %arg1: i32) -> (i32, i32, i32, i32) {
    %c0_i32 = arith.constant 0 : i32
    %c0_i32_0 = arith.constant 0 : i32
    %c0_i32_1 = arith.constant 0 : i32
    return %arg0, %arg1, %c0_i32, %c0_i32_0 : i32, i32, i32, i32
  }
}

module attributes {stable_mosaic.version = 11 : i64} {
  func.func @_deconv_phase_kernel(%arg0: i32, %arg1: i32, %arg2: memref<1x1x6x16xf32, #tpu.memory_space<vmem>>, %arg3: memref<1x1x6x16xf32, #tpu.memory_space<vmem>>, %arg4: memref<3x3x16x8xbf16, #tpu.memory_space<vmem>>, %arg5: memref<1x8xf32, #tpu.memory_space<vmem>>, %arg6: memref<1x1x5x8xf32, #tpu.memory_space<vmem>>, %arg7: memref<1x1x5x8xf32, #tpu.memory_space<vmem>>, %arg8: memref<1x1x5x8xf32, #tpu.memory_space<vmem>>, %arg9: memref<1x1x5x8xf32, #tpu.memory_space<vmem>>) attributes {dimension_semantics = [#tpu.dimension_semantics<parallel>, #tpu.dimension_semantics<parallel>], iteration_bounds = array<i64: 2, 4>, scalar_prefetch = 0 : i64, scratch_operands = 0 : i64, tpu.core_type = #tpu.core_type<tc>, window_params = [{transform_indices = @transform_0, window_bounds = array<i64: 1, 1, 6, 16>}, {transform_indices = @transform_1, window_bounds = array<i64: 1, 1, 6, 16>}, {pipeline_mode = #tpu.pipeline_mode<synchronous>, transform_indices = @transform_2, window_bounds = array<i64: 3, 3, 16, 8>}, {pipeline_mode = #tpu.pipeline_mode<synchronous>, transform_indices = @transform_3, window_bounds = array<i64: 1, 8>}, {transform_indices = @transform_4, window_bounds = array<i64: 1, 1, 5, 8>}, {transform_indices = @transform_5, window_bounds = array<i64: 1, 1, 5, 8>}, {transform_indices = @transform_6, window_bounds = array<i64: 1, 1, 5, 8>}, {transform_indices = @transform_7, window_bounds = array<i64: 1, 1, 5, 8>}]} {
    %c0 = arith.constant 0 : index
    %c0_0 = arith.constant 0 : index
    %c0_1 = arith.constant 0 : index
    %c0_2 = arith.constant 0 : index
    %0 = vector.load %arg2[%c0, %c0_0, %c0_1, %c0_2] : memref<1x1x6x16xf32, #tpu.memory_space<vmem>>, vector<1x1x6x16xf32>
    %1 = vector.shape_cast %0 : vector<1x1x6x16xf32> to vector<6x16xf32>
    %c0_3 = arith.constant 0 : index
    %c0_4 = arith.constant 0 : index
    %c0_5 = arith.constant 0 : index
    %c0_6 = arith.constant 0 : index
    %2 = vector.load %arg3[%c0_3, %c0_4, %c0_5, %c0_6] : memref<1x1x6x16xf32, #tpu.memory_space<vmem>>, vector<1x1x6x16xf32>
    %3 = vector.shape_cast %2 : vector<1x1x6x16xf32> to vector<6x16xf32>
    %4 = vector.extract_strided_slice %1 {offsets = [0, 0], sizes = [5, 16], strides = [1, 1]} : vector<6x16xf32> to vector<5x16xf32>
    %5 = arith.truncf %4 : vector<5x16xf32> to vector<5x16xbf16>
    %6 = vector.extract_strided_slice %1 {offsets = [1, 0], sizes = [5, 16], strides = [1, 1]} : vector<6x16xf32> to vector<5x16xf32>
    %7 = arith.truncf %6 : vector<5x16xf32> to vector<5x16xbf16>
    %8 = vector.extract_strided_slice %3 {offsets = [0, 0], sizes = [5, 16], strides = [1, 1]} : vector<6x16xf32> to vector<5x16xf32>
    %9 = arith.truncf %8 : vector<5x16xf32> to vector<5x16xbf16>
    %10 = vector.extract_strided_slice %3 {offsets = [1, 0], sizes = [5, 16], strides = [1, 1]} : vector<6x16xf32> to vector<5x16xf32>
    %11 = arith.truncf %10 : vector<5x16xf32> to vector<5x16xbf16>
    %c0_7 = arith.constant 0 : index
    %c0_8 = arith.constant 0 : index
    %12 = vector.load %arg5[%c0_7, %c0_8] : memref<1x8xf32, #tpu.memory_space<vmem>>, vector<1x8xf32>
    %c1 = arith.constant 1 : index
    %c1_9 = arith.constant 1 : index
    %c0_10 = arith.constant 0 : index
    %c0_11 = arith.constant 0 : index
    %13 = vector.load %arg4[%c1, %c1_9, %c0_10, %c0_11] : memref<3x3x16x8xbf16, #tpu.memory_space<vmem>>, vector<1x1x16x8xbf16>
    %14 = vector.shape_cast %13 : vector<1x1x16x8xbf16> to vector<16x8xbf16>
    %cst = arith.constant dense<0.000000e+00> : vector<5x8xf32>
    %15 = tpu.matmul %5, %14, %cst {dimension_numbers = #tpu.dot_dimension_numbers<[1], [0], [0], [1], [0, 0, 1, 1], [], []>} : vector<5x16xbf16>, vector<16x8xbf16>, vector<5x8xf32> -> vector<5x8xf32>
    %16 = vector.broadcast %12 : vector<1x8xf32> to vector<5x8xf32>
    %17 = arith.addf %15, %16 : vector<5x8xf32>
    %c0_12 = arith.constant 0 : index
    %c0_13 = arith.constant 0 : index
    %c0_14 = arith.constant 0 : index
    %c0_15 = arith.constant 0 : index
    %18 = vector.load %arg6[%c0_12, %c0_13, %c0_14, %c0_15] : memref<1x1x5x8xf32, #tpu.memory_space<vmem>>, vector<1x1x5x8xf32>
    %19 = vector.shape_cast %18 : vector<1x1x5x8xf32> to vector<5x8xf32>
    %20 = vector.shape_cast %17 : vector<5x8xf32> to vector<1x1x5x8xf32>
    tpu.vector_store %arg6[%c0_12, %c0_13, %c0_14, %c0_15], %20 {strides = array<i32>} : memref<1x1x5x8xf32, #tpu.memory_space<vmem>>, vector<1x1x5x8xf32>,
    %c1_16 = arith.constant 1 : index
    %c2 = arith.constant 2 : index
    %c0_17 = arith.constant 0 : index
    %c0_18 = arith.constant 0 : index
    %21 = vector.load %arg4[%c1_16, %c2, %c0_17, %c0_18] : memref<3x3x16x8xbf16, #tpu.memory_space<vmem>>, vector<1x1x16x8xbf16>
    %22 = vector.shape_cast %21 : vector<1x1x16x8xbf16> to vector<16x8xbf16>
    %cst_19 = arith.constant dense<0.000000e+00> : vector<5x8xf32>
    %23 = tpu.matmul %5, %22, %cst_19 {dimension_numbers = #tpu.dot_dimension_numbers<[1], [0], [0], [1], [0, 0, 1, 1], [], []>} : vector<5x16xbf16>, vector<16x8xbf16>, vector<5x8xf32> -> vector<5x8xf32>
    %c1_20 = arith.constant 1 : index
    %c0_21 = arith.constant 0 : index
    %c0_22 = arith.constant 0 : index
    %c0_23 = arith.constant 0 : index
    %24 = vector.load %arg4[%c1_20, %c0_21, %c0_22, %c0_23] : memref<3x3x16x8xbf16, #tpu.memory_space<vmem>>, vector<1x1x16x8xbf16>
    %25 = vector.shape_cast %24 : vector<1x1x16x8xbf16> to vector<16x8xbf16>
    %cst_24 = arith.constant dense<0.000000e+00> : vector<5x8xf32>
    %26 = tpu.matmul %7, %25, %cst_24 {dimension_numbers = #tpu.dot_dimension_numbers<[1], [0], [0], [1], [0, 0, 1, 1], [], []>} : vector<5x16xbf16>, vector<16x8xbf16>, vector<5x8xf32> -> vector<5x8xf32>
    %27 = arith.addf %23, %26 : vector<5x8xf32>
    %28 = vector.broadcast %12 : vector<1x8xf32> to vector<5x8xf32>
    %29 = arith.addf %27, %28 : vector<5x8xf32>
    %c0_25 = arith.constant 0 : index
    %c0_26 = arith.constant 0 : index
    %c0_27 = arith.constant 0 : index
    %c0_28 = arith.constant 0 : index
    %30 = vector.load %arg7[%c0_25, %c0_26, %c0_27, %c0_28] : memref<1x1x5x8xf32, #tpu.memory_space<vmem>>, vector<1x1x5x8xf32>
    %31 = vector.shape_cast %30 : vector<1x1x5x8xf32> to vector<5x8xf32>
    %32 = vector.shape_cast %29 : vector<5x8xf32> to vector<1x1x5x8xf32>
    tpu.vector_store %arg7[%c0_25, %c0_26, %c0_27, %c0_28], %32 {strides = array<i32>} : memref<1x1x5x8xf32, #tpu.memory_space<vmem>>, vector<1x1x5x8xf32>,
    %c2_29 = arith.constant 2 : index
    %c1_30 = arith.constant 1 : index
    %c0_31 = arith.constant 0 : index
    %c0_32 = arith.constant 0 : index
    %33 = vector.load %arg4[%c2_29, %c1_30, %c0_31, %c0_32] : memref<3x3x16x8xbf16, #tpu.memory_space<vmem>>, vector<1x1x16x8xbf16>
    %34 = vector.shape_cast %33 : vector<1x1x16x8xbf16> to vector<16x8xbf16>
    %cst_33 = arith.constant dense<0.000000e+00> : vector<5x8xf32>
    %35 = tpu.matmul %5, %34, %cst_33 {dimension_numbers = #tpu.dot_dimension_numbers<[1], [0], [0], [1], [0, 0, 1, 1], [], []>} : vector<5x16xbf16>, vector<16x8xbf16>, vector<5x8xf32> -> vector<5x8xf32>
    %c0_34 = arith.constant 0 : index
    %c1_35 = arith.constant 1 : index
    %c0_36 = arith.constant 0 : index
    %c0_37 = arith.constant 0 : index
    %36 = vector.load %arg4[%c0_34, %c1_35, %c0_36, %c0_37] : memref<3x3x16x8xbf16, #tpu.memory_space<vmem>>, vector<1x1x16x8xbf16>
    %37 = vector.shape_cast %36 : vector<1x1x16x8xbf16> to vector<16x8xbf16>
    %cst_38 = arith.constant dense<0.000000e+00> : vector<5x8xf32>
    %38 = tpu.matmul %9, %37, %cst_38 {dimension_numbers = #tpu.dot_dimension_numbers<[1], [0], [0], [1], [0, 0, 1, 1], [], []>} : vector<5x16xbf16>, vector<16x8xbf16>, vector<5x8xf32> -> vector<5x8xf32>
    %39 = arith.addf %35, %38 : vector<5x8xf32>
    %40 = vector.broadcast %12 : vector<1x8xf32> to vector<5x8xf32>
    %41 = arith.addf %39, %40 : vector<5x8xf32>
    %c0_39 = arith.constant 0 : index
    %c0_40 = arith.constant 0 : index
    %c0_41 = arith.constant 0 : index
    %c0_42 = arith.constant 0 : index
    %42 = vector.load %arg8[%c0_39, %c0_40, %c0_41, %c0_42] : memref<1x1x5x8xf32, #tpu.memory_space<vmem>>, vector<1x1x5x8xf32>
    %43 = vector.shape_cast %42 : vector<1x1x5x8xf32> to vector<5x8xf32>
    %44 = vector.shape_cast %41 : vector<5x8xf32> to vector<1x1x5x8xf32>
    tpu.vector_store %arg8[%c0_39, %c0_40, %c0_41, %c0_42], %44 {strides = array<i32>} : memref<1x1x5x8xf32, #tpu.memory_space<vmem>>, vector<1x1x5x8xf32>,
    %c2_43 = arith.constant 2 : index
    %c2_44 = arith.constant 2 : index
    %c0_45 = arith.constant 0 : index
    %c0_46 = arith.constant 0 : index
    %45 = vector.load %arg4[%c2_43, %c2_44, %c0_45, %c0_46] : memref<3x3x16x8xbf16, #tpu.memory_space<vmem>>, vector<1x1x16x8xbf16>
    %46 = vector.shape_cast %45 : vector<1x1x16x8xbf16> to vector<16x8xbf16>
    %cst_47 = arith.constant dense<0.000000e+00> : vector<5x8xf32>
    %47 = tpu.matmul %5, %46, %cst_47 {dimension_numbers = #tpu.dot_dimension_numbers<[1], [0], [0], [1], [0, 0, 1, 1], [], []>} : vector<5x16xbf16>, vector<16x8xbf16>, vector<5x8xf32> -> vector<5x8xf32>
    %c2_48 = arith.constant 2 : index
    %c0_49 = arith.constant 0 : index
    %c0_50 = arith.constant 0 : index
    %c0_51 = arith.constant 0 : index
    %48 = vector.load %arg4[%c2_48, %c0_49, %c0_50, %c0_51] : memref<3x3x16x8xbf16, #tpu.memory_space<vmem>>, vector<1x1x16x8xbf16>
    %49 = vector.shape_cast %48 : vector<1x1x16x8xbf16> to vector<16x8xbf16>
    %cst_52 = arith.constant dense<0.000000e+00> : vector<5x8xf32>
    %50 = tpu.matmul %7, %49, %cst_52 {dimension_numbers = #tpu.dot_dimension_numbers<[1], [0], [0], [1], [0, 0, 1, 1], [], []>} : vector<5x16xbf16>, vector<16x8xbf16>, vector<5x8xf32> -> vector<5x8xf32>
    %51 = arith.addf %47, %50 : vector<5x8xf32>
    %c0_53 = arith.constant 0 : index
    %c2_54 = arith.constant 2 : index
    %c0_55 = arith.constant 0 : index
    %c0_56 = arith.constant 0 : index
    %52 = vector.load %arg4[%c0_53, %c2_54, %c0_55, %c0_56] : memref<3x3x16x8xbf16, #tpu.memory_space<vmem>>, vector<1x1x16x8xbf16>
    %53 = vector.shape_cast %52 : vector<1x1x16x8xbf16> to vector<16x8xbf16>
    %cst_57 = arith.constant dense<0.000000e+00> : vector<5x8xf32>
    %54 = tpu.matmul %9, %53, %cst_57 {dimension_numbers = #tpu.dot_dimension_numbers<[1], [0], [0], [1], [0, 0, 1, 1], [], []>} : vector<5x16xbf16>, vector<16x8xbf16>, vector<5x8xf32> -> vector<5x8xf32>
    %55 = arith.addf %51, %54 : vector<5x8xf32>
    %c0_58 = arith.constant 0 : index
    %c0_59 = arith.constant 0 : index
    %c0_60 = arith.constant 0 : index
    %c0_61 = arith.constant 0 : index
    %56 = vector.load %arg4[%c0_58, %c0_59, %c0_60, %c0_61] : memref<3x3x16x8xbf16, #tpu.memory_space<vmem>>, vector<1x1x16x8xbf16>
    %57 = vector.shape_cast %56 : vector<1x1x16x8xbf16> to vector<16x8xbf16>
    %cst_62 = arith.constant dense<0.000000e+00> : vector<5x8xf32>
    %58 = tpu.matmul %11, %57, %cst_62 {dimension_numbers = #tpu.dot_dimension_numbers<[1], [0], [0], [1], [0, 0, 1, 1], [], []>} : vector<5x16xbf16>, vector<16x8xbf16>, vector<5x8xf32> -> vector<5x8xf32>
    %59 = arith.addf %55, %58 : vector<5x8xf32>
    %60 = vector.broadcast %12 : vector<1x8xf32> to vector<5x8xf32>
    %61 = arith.addf %59, %60 : vector<5x8xf32>
    %c0_63 = arith.constant 0 : index
    %c0_64 = arith.constant 0 : index
    %c0_65 = arith.constant 0 : index
    %c0_66 = arith.constant 0 : index
    %62 = vector.load %arg9[%c0_63, %c0_64, %c0_65, %c0_66] : memref<1x1x5x8xf32, #tpu.memory_space<vmem>>, vector<1x1x5x8xf32>
    %63 = vector.shape_cast %62 : vector<1x1x5x8xf32> to vector<5x8xf32>
    %64 = vector.shape_cast %61 : vector<5x8xf32> to vector<1x1x5x8xf32>
    tpu.vector_store %arg9[%c0_63, %c0_64, %c0_65, %c0_66], %64 {strides = array<i32>} : memref<1x1x5x8xf32, #tpu.memory_space<vmem>>, vector<1x1x5x8xf32>,
    return
  }
  func.func @transform_0(%arg0: i32, %arg1: i32) -> (i32, i32, i32, i32) {
    %c0_i32 = arith.constant 0 : i32
    %0 = arith.addi %arg1, %c0_i32 : i32
    %c0_i32_0 = arith.constant 0 : i32
    %c0_i32_1 = arith.constant 0 : i32
    %c0_i32_2 = arith.constant 0 : i32
    return %arg0, %0, %c0_i32_0, %c0_i32_1 : i32, i32, i32, i32
  }
  func.func @transform_1(%arg0: i32, %arg1: i32) -> (i32, i32, i32, i32) {
    %c1_i32 = arith.constant 1 : i32
    %0 = arith.addi %arg1, %c1_i32 : i32
    %c0_i32 = arith.constant 0 : i32
    %c0_i32_0 = arith.constant 0 : i32
    %c0_i32_1 = arith.constant 0 : i32
    return %arg0, %0, %c0_i32, %c0_i32_0 : i32, i32, i32, i32
  }
  func.func @transform_2(%arg0: i32, %arg1: i32) -> (i32, i32, i32, i32) {
    %c0_i32 = arith.constant 0 : i32
    %c0_i32_0 = arith.constant 0 : i32
    %c0_i32_1 = arith.constant 0 : i32
    %c0_i32_2 = arith.constant 0 : i32
    %c0_i32_3 = arith.constant 0 : i32
    return %c0_i32, %c0_i32_0, %c0_i32_1, %c0_i32_2 : i32, i32, i32, i32
  }
  func.func @transform_3(%arg0: i32, %arg1: i32) -> (i32, i32) {
    %c0_i32 = arith.constant 0 : i32
    %c0_i32_0 = arith.constant 0 : i32
    %c0_i32_1 = arith.constant 0 : i32
    return %c0_i32, %c0_i32_0 : i32, i32
  }
  func.func @transform_4(%arg0: i32, %arg1: i32) -> (i32, i32, i32, i32) {
    %c0_i32 = arith.constant 0 : i32
    %c0_i32_0 = arith.constant 0 : i32
    %c0_i32_1 = arith.constant 0 : i32
    return %arg0, %arg1, %c0_i32, %c0_i32_0 : i32, i32, i32, i32
  }
  func.func @transform_5(%arg0: i32, %arg1: i32) -> (i32, i32, i32, i32) {
    %c0_i32 = arith.constant 0 : i32
    %c0_i32_0 = arith.constant 0 : i32
    %c0_i32_1 = arith.constant 0 : i32
    return %arg0, %arg1, %c0_i32, %c0_i32_0 : i32, i32, i32, i32
  }
  func.func @transform_6(%arg0: i32, %arg1: i32) -> (i32, i32, i32, i32) {
    %c0_i32 = arith.constant 0 : i32
    %c0_i32_0 = arith.constant 0 : i32
    %c0_i32_1 = arith.constant 0 : i32
    return %arg0, %arg1, %c0_i32, %c0_i32_0 : i32, i32, i32, i32
  }
  func.func @transform_7(%arg0: i32, %arg1: i32) -> (i32, i32, i32, i32) {
    %c0_i32 = arith.constant 0 : i32
    %c0_i32_0 = arith.constant 0 : i32
    %c0_i32_1 = arith.constant 0 : i32
    return %arg0, %arg1, %c0_i32, %c0_i32_0 : i32, i32, i32, i32
  }
}

module attributes {stable_mosaic.version = 11 : i64} {
  func.func @_deconv_phase_kernel(%arg0: i32, %arg1: i32, %arg2: memref<1x1x10x8xf32, #tpu.memory_space<vmem>>, %arg3: memref<1x1x10x8xf32, #tpu.memory_space<vmem>>, %arg4: memref<3x3x8x4xbf16, #tpu.memory_space<vmem>>, %arg5: memref<1x4xf32, #tpu.memory_space<vmem>>, %arg6: memref<1x1x9x4xf32, #tpu.memory_space<vmem>>, %arg7: memref<1x1x9x4xf32, #tpu.memory_space<vmem>>, %arg8: memref<1x1x9x4xf32, #tpu.memory_space<vmem>>, %arg9: memref<1x1x9x4xf32, #tpu.memory_space<vmem>>) attributes {dimension_semantics = [#tpu.dimension_semantics<parallel>, #tpu.dimension_semantics<parallel>], iteration_bounds = array<i64: 2, 8>, scalar_prefetch = 0 : i64, scratch_operands = 0 : i64, tpu.core_type = #tpu.core_type<tc>, window_params = [{transform_indices = @transform_0, window_bounds = array<i64: 1, 1, 10, 8>}, {transform_indices = @transform_1, window_bounds = array<i64: 1, 1, 10, 8>}, {pipeline_mode = #tpu.pipeline_mode<synchronous>, transform_indices = @transform_2, window_bounds = array<i64: 3, 3, 8, 4>}, {pipeline_mode = #tpu.pipeline_mode<synchronous>, transform_indices = @transform_3, window_bounds = array<i64: 1, 4>}, {transform_indices = @transform_4, window_bounds = array<i64: 1, 1, 9, 4>}, {transform_indices = @transform_5, window_bounds = array<i64: 1, 1, 9, 4>}, {transform_indices = @transform_6, window_bounds = array<i64: 1, 1, 9, 4>}, {transform_indices = @transform_7, window_bounds = array<i64: 1, 1, 9, 4>}]} {
    %c0 = arith.constant 0 : index
    %c0_0 = arith.constant 0 : index
    %c0_1 = arith.constant 0 : index
    %c0_2 = arith.constant 0 : index
    %0 = vector.load %arg2[%c0, %c0_0, %c0_1, %c0_2] : memref<1x1x10x8xf32, #tpu.memory_space<vmem>>, vector<1x1x10x8xf32>
    %1 = vector.shape_cast %0 : vector<1x1x10x8xf32> to vector<10x8xf32>
    %c0_3 = arith.constant 0 : index
    %c0_4 = arith.constant 0 : index
    %c0_5 = arith.constant 0 : index
    %c0_6 = arith.constant 0 : index
    %2 = vector.load %arg3[%c0_3, %c0_4, %c0_5, %c0_6] : memref<1x1x10x8xf32, #tpu.memory_space<vmem>>, vector<1x1x10x8xf32>
    %3 = vector.shape_cast %2 : vector<1x1x10x8xf32> to vector<10x8xf32>
    %4 = vector.extract_strided_slice %1 {offsets = [0, 0], sizes = [9, 8], strides = [1, 1]} : vector<10x8xf32> to vector<9x8xf32>
    %5 = arith.truncf %4 : vector<9x8xf32> to vector<9x8xbf16>
    %6 = vector.extract_strided_slice %1 {offsets = [1, 0], sizes = [9, 8], strides = [1, 1]} : vector<10x8xf32> to vector<9x8xf32>
    %7 = arith.truncf %6 : vector<9x8xf32> to vector<9x8xbf16>
    %8 = vector.extract_strided_slice %3 {offsets = [0, 0], sizes = [9, 8], strides = [1, 1]} : vector<10x8xf32> to vector<9x8xf32>
    %9 = arith.truncf %8 : vector<9x8xf32> to vector<9x8xbf16>
    %10 = vector.extract_strided_slice %3 {offsets = [1, 0], sizes = [9, 8], strides = [1, 1]} : vector<10x8xf32> to vector<9x8xf32>
    %11 = arith.truncf %10 : vector<9x8xf32> to vector<9x8xbf16>
    %c0_7 = arith.constant 0 : index
    %c0_8 = arith.constant 0 : index
    %12 = vector.load %arg5[%c0_7, %c0_8] : memref<1x4xf32, #tpu.memory_space<vmem>>, vector<1x4xf32>
    %c1 = arith.constant 1 : index
    %c1_9 = arith.constant 1 : index
    %c0_10 = arith.constant 0 : index
    %c0_11 = arith.constant 0 : index
    %13 = vector.load %arg4[%c1, %c1_9, %c0_10, %c0_11] : memref<3x3x8x4xbf16, #tpu.memory_space<vmem>>, vector<1x1x8x4xbf16>
    %14 = vector.shape_cast %13 : vector<1x1x8x4xbf16> to vector<8x4xbf16>
    %cst = arith.constant dense<0.000000e+00> : vector<9x4xf32>
    %15 = tpu.matmul %5, %14, %cst {dimension_numbers = #tpu.dot_dimension_numbers<[1], [0], [0], [1], [0, 0, 1, 1], [], []>} : vector<9x8xbf16>, vector<8x4xbf16>, vector<9x4xf32> -> vector<9x4xf32>
    %16 = vector.broadcast %12 : vector<1x4xf32> to vector<9x4xf32>
    %17 = arith.addf %15, %16 : vector<9x4xf32>
    %c0_12 = arith.constant 0 : index
    %c0_13 = arith.constant 0 : index
    %c0_14 = arith.constant 0 : index
    %c0_15 = arith.constant 0 : index
    %18 = vector.load %arg6[%c0_12, %c0_13, %c0_14, %c0_15] : memref<1x1x9x4xf32, #tpu.memory_space<vmem>>, vector<1x1x9x4xf32>
    %19 = vector.shape_cast %18 : vector<1x1x9x4xf32> to vector<9x4xf32>
    %20 = vector.shape_cast %17 : vector<9x4xf32> to vector<1x1x9x4xf32>
    tpu.vector_store %arg6[%c0_12, %c0_13, %c0_14, %c0_15], %20 {strides = array<i32>} : memref<1x1x9x4xf32, #tpu.memory_space<vmem>>, vector<1x1x9x4xf32>,
    %c1_16 = arith.constant 1 : index
    %c2 = arith.constant 2 : index
    %c0_17 = arith.constant 0 : index
    %c0_18 = arith.constant 0 : index
    %21 = vector.load %arg4[%c1_16, %c2, %c0_17, %c0_18] : memref<3x3x8x4xbf16, #tpu.memory_space<vmem>>, vector<1x1x8x4xbf16>
    %22 = vector.shape_cast %21 : vector<1x1x8x4xbf16> to vector<8x4xbf16>
    %cst_19 = arith.constant dense<0.000000e+00> : vector<9x4xf32>
    %23 = tpu.matmul %5, %22, %cst_19 {dimension_numbers = #tpu.dot_dimension_numbers<[1], [0], [0], [1], [0, 0, 1, 1], [], []>} : vector<9x8xbf16>, vector<8x4xbf16>, vector<9x4xf32> -> vector<9x4xf32>
    %c1_20 = arith.constant 1 : index
    %c0_21 = arith.constant 0 : index
    %c0_22 = arith.constant 0 : index
    %c0_23 = arith.constant 0 : index
    %24 = vector.load %arg4[%c1_20, %c0_21, %c0_22, %c0_23] : memref<3x3x8x4xbf16, #tpu.memory_space<vmem>>, vector<1x1x8x4xbf16>
    %25 = vector.shape_cast %24 : vector<1x1x8x4xbf16> to vector<8x4xbf16>
    %cst_24 = arith.constant dense<0.000000e+00> : vector<9x4xf32>
    %26 = tpu.matmul %7, %25, %cst_24 {dimension_numbers = #tpu.dot_dimension_numbers<[1], [0], [0], [1], [0, 0, 1, 1], [], []>} : vector<9x8xbf16>, vector<8x4xbf16>, vector<9x4xf32> -> vector<9x4xf32>
    %27 = arith.addf %23, %26 : vector<9x4xf32>
    %28 = vector.broadcast %12 : vector<1x4xf32> to vector<9x4xf32>
    %29 = arith.addf %27, %28 : vector<9x4xf32>
    %c0_25 = arith.constant 0 : index
    %c0_26 = arith.constant 0 : index
    %c0_27 = arith.constant 0 : index
    %c0_28 = arith.constant 0 : index
    %30 = vector.load %arg7[%c0_25, %c0_26, %c0_27, %c0_28] : memref<1x1x9x4xf32, #tpu.memory_space<vmem>>, vector<1x1x9x4xf32>
    %31 = vector.shape_cast %30 : vector<1x1x9x4xf32> to vector<9x4xf32>
    %32 = vector.shape_cast %29 : vector<9x4xf32> to vector<1x1x9x4xf32>
    tpu.vector_store %arg7[%c0_25, %c0_26, %c0_27, %c0_28], %32 {strides = array<i32>} : memref<1x1x9x4xf32, #tpu.memory_space<vmem>>, vector<1x1x9x4xf32>,
    %c2_29 = arith.constant 2 : index
    %c1_30 = arith.constant 1 : index
    %c0_31 = arith.constant 0 : index
    %c0_32 = arith.constant 0 : index
    %33 = vector.load %arg4[%c2_29, %c1_30, %c0_31, %c0_32] : memref<3x3x8x4xbf16, #tpu.memory_space<vmem>>, vector<1x1x8x4xbf16>
    %34 = vector.shape_cast %33 : vector<1x1x8x4xbf16> to vector<8x4xbf16>
    %cst_33 = arith.constant dense<0.000000e+00> : vector<9x4xf32>
    %35 = tpu.matmul %5, %34, %cst_33 {dimension_numbers = #tpu.dot_dimension_numbers<[1], [0], [0], [1], [0, 0, 1, 1], [], []>} : vector<9x8xbf16>, vector<8x4xbf16>, vector<9x4xf32> -> vector<9x4xf32>
    %c0_34 = arith.constant 0 : index
    %c1_35 = arith.constant 1 : index
    %c0_36 = arith.constant 0 : index
    %c0_37 = arith.constant 0 : index
    %36 = vector.load %arg4[%c0_34, %c1_35, %c0_36, %c0_37] : memref<3x3x8x4xbf16, #tpu.memory_space<vmem>>, vector<1x1x8x4xbf16>
    %37 = vector.shape_cast %36 : vector<1x1x8x4xbf16> to vector<8x4xbf16>
    %cst_38 = arith.constant dense<0.000000e+00> : vector<9x4xf32>
    %38 = tpu.matmul %9, %37, %cst_38 {dimension_numbers = #tpu.dot_dimension_numbers<[1], [0], [0], [1], [0, 0, 1, 1], [], []>} : vector<9x8xbf16>, vector<8x4xbf16>, vector<9x4xf32> -> vector<9x4xf32>
    %39 = arith.addf %35, %38 : vector<9x4xf32>
    %40 = vector.broadcast %12 : vector<1x4xf32> to vector<9x4xf32>
    %41 = arith.addf %39, %40 : vector<9x4xf32>
    %c0_39 = arith.constant 0 : index
    %c0_40 = arith.constant 0 : index
    %c0_41 = arith.constant 0 : index
    %c0_42 = arith.constant 0 : index
    %42 = vector.load %arg8[%c0_39, %c0_40, %c0_41, %c0_42] : memref<1x1x9x4xf32, #tpu.memory_space<vmem>>, vector<1x1x9x4xf32>
    %43 = vector.shape_cast %42 : vector<1x1x9x4xf32> to vector<9x4xf32>
    %44 = vector.shape_cast %41 : vector<9x4xf32> to vector<1x1x9x4xf32>
    tpu.vector_store %arg8[%c0_39, %c0_40, %c0_41, %c0_42], %44 {strides = array<i32>} : memref<1x1x9x4xf32, #tpu.memory_space<vmem>>, vector<1x1x9x4xf32>,
    %c2_43 = arith.constant 2 : index
    %c2_44 = arith.constant 2 : index
    %c0_45 = arith.constant 0 : index
    %c0_46 = arith.constant 0 : index
    %45 = vector.load %arg4[%c2_43, %c2_44, %c0_45, %c0_46] : memref<3x3x8x4xbf16, #tpu.memory_space<vmem>>, vector<1x1x8x4xbf16>
    %46 = vector.shape_cast %45 : vector<1x1x8x4xbf16> to vector<8x4xbf16>
    %cst_47 = arith.constant dense<0.000000e+00> : vector<9x4xf32>
    %47 = tpu.matmul %5, %46, %cst_47 {dimension_numbers = #tpu.dot_dimension_numbers<[1], [0], [0], [1], [0, 0, 1, 1], [], []>} : vector<9x8xbf16>, vector<8x4xbf16>, vector<9x4xf32> -> vector<9x4xf32>
    %c2_48 = arith.constant 2 : index
    %c0_49 = arith.constant 0 : index
    %c0_50 = arith.constant 0 : index
    %c0_51 = arith.constant 0 : index
    %48 = vector.load %arg4[%c2_48, %c0_49, %c0_50, %c0_51] : memref<3x3x8x4xbf16, #tpu.memory_space<vmem>>, vector<1x1x8x4xbf16>
    %49 = vector.shape_cast %48 : vector<1x1x8x4xbf16> to vector<8x4xbf16>
    %cst_52 = arith.constant dense<0.000000e+00> : vector<9x4xf32>
    %50 = tpu.matmul %7, %49, %cst_52 {dimension_numbers = #tpu.dot_dimension_numbers<[1], [0], [0], [1], [0, 0, 1, 1], [], []>} : vector<9x8xbf16>, vector<8x4xbf16>, vector<9x4xf32> -> vector<9x4xf32>
    %51 = arith.addf %47, %50 : vector<9x4xf32>
    %c0_53 = arith.constant 0 : index
    %c2_54 = arith.constant 2 : index
    %c0_55 = arith.constant 0 : index
    %c0_56 = arith.constant 0 : index
    %52 = vector.load %arg4[%c0_53, %c2_54, %c0_55, %c0_56] : memref<3x3x8x4xbf16, #tpu.memory_space<vmem>>, vector<1x1x8x4xbf16>
    %53 = vector.shape_cast %52 : vector<1x1x8x4xbf16> to vector<8x4xbf16>
    %cst_57 = arith.constant dense<0.000000e+00> : vector<9x4xf32>
    %54 = tpu.matmul %9, %53, %cst_57 {dimension_numbers = #tpu.dot_dimension_numbers<[1], [0], [0], [1], [0, 0, 1, 1], [], []>} : vector<9x8xbf16>, vector<8x4xbf16>, vector<9x4xf32> -> vector<9x4xf32>
    %55 = arith.addf %51, %54 : vector<9x4xf32>
    %c0_58 = arith.constant 0 : index
    %c0_59 = arith.constant 0 : index
    %c0_60 = arith.constant 0 : index
    %c0_61 = arith.constant 0 : index
    %56 = vector.load %arg4[%c0_58, %c0_59, %c0_60, %c0_61] : memref<3x3x8x4xbf16, #tpu.memory_space<vmem>>, vector<1x1x8x4xbf16>
    %57 = vector.shape_cast %56 : vector<1x1x8x4xbf16> to vector<8x4xbf16>
    %cst_62 = arith.constant dense<0.000000e+00> : vector<9x4xf32>
    %58 = tpu.matmul %11, %57, %cst_62 {dimension_numbers = #tpu.dot_dimension_numbers<[1], [0], [0], [1], [0, 0, 1, 1], [], []>} : vector<9x8xbf16>, vector<8x4xbf16>, vector<9x4xf32> -> vector<9x4xf32>
    %59 = arith.addf %55, %58 : vector<9x4xf32>
    %60 = vector.broadcast %12 : vector<1x4xf32> to vector<9x4xf32>
    %61 = arith.addf %59, %60 : vector<9x4xf32>
    %c0_63 = arith.constant 0 : index
    %c0_64 = arith.constant 0 : index
    %c0_65 = arith.constant 0 : index
    %c0_66 = arith.constant 0 : index
    %62 = vector.load %arg9[%c0_63, %c0_64, %c0_65, %c0_66] : memref<1x1x9x4xf32, #tpu.memory_space<vmem>>, vector<1x1x9x4xf32>
    %63 = vector.shape_cast %62 : vector<1x1x9x4xf32> to vector<9x4xf32>
    %64 = vector.shape_cast %61 : vector<9x4xf32> to vector<1x1x9x4xf32>
    tpu.vector_store %arg9[%c0_63, %c0_64, %c0_65, %c0_66], %64 {strides = array<i32>} : memref<1x1x9x4xf32, #tpu.memory_space<vmem>>, vector<1x1x9x4xf32>,
    return
  }
  func.func @transform_0(%arg0: i32, %arg1: i32) -> (i32, i32, i32, i32) {
    %c0_i32 = arith.constant 0 : i32
    %0 = arith.addi %arg1, %c0_i32 : i32
    %c0_i32_0 = arith.constant 0 : i32
    %c0_i32_1 = arith.constant 0 : i32
    %c0_i32_2 = arith.constant 0 : i32
    return %arg0, %0, %c0_i32_0, %c0_i32_1 : i32, i32, i32, i32
  }
  func.func @transform_1(%arg0: i32, %arg1: i32) -> (i32, i32, i32, i32) {
    %c1_i32 = arith.constant 1 : i32
    %0 = arith.addi %arg1, %c1_i32 : i32
    %c0_i32 = arith.constant 0 : i32
    %c0_i32_0 = arith.constant 0 : i32
    %c0_i32_1 = arith.constant 0 : i32
    return %arg0, %0, %c0_i32, %c0_i32_0 : i32, i32, i32, i32
  }
  func.func @transform_2(%arg0: i32, %arg1: i32) -> (i32, i32, i32, i32) {
    %c0_i32 = arith.constant 0 : i32
    %c0_i32_0 = arith.constant 0 : i32
    %c0_i32_1 = arith.constant 0 : i32
    %c0_i32_2 = arith.constant 0 : i32
    %c0_i32_3 = arith.constant 0 : i32
    return %c0_i32, %c0_i32_0, %c0_i32_1, %c0_i32_2 : i32, i32, i32, i32
  }
  func.func @transform_3(%arg0: i32, %arg1: i32) -> (i32, i32) {
    %c0_i32 = arith.constant 0 : i32
    %c0_i32_0 = arith.constant 0 : i32
    %c0_i32_1 = arith.constant 0 : i32
    return %c0_i32, %c0_i32_0 : i32, i32
  }
  func.func @transform_4(%arg0: i32, %arg1: i32) -> (i32, i32, i32, i32) {
    %c0_i32 = arith.constant 0 : i32
    %c0_i32_0 = arith.constant 0 : i32
    %c0_i32_1 = arith.constant 0 : i32
    return %arg0, %arg1, %c0_i32, %c0_i32_0 : i32, i32, i32, i32
  }
  func.func @transform_5(%arg0: i32, %arg1: i32) -> (i32, i32, i32, i32) {
    %c0_i32 = arith.constant 0 : i32
    %c0_i32_0 = arith.constant 0 : i32
    %c0_i32_1 = arith.constant 0 : i32
    return %arg0, %arg1, %c0_i32, %c0_i32_0 : i32, i32, i32, i32
  }
  func.func @transform_6(%arg0: i32, %arg1: i32) -> (i32, i32, i32, i32) {
    %c0_i32 = arith.constant 0 : i32
    %c0_i32_0 = arith.constant 0 : i32
    %c0_i32_1 = arith.constant 0 : i32
    return %arg0, %arg1, %c0_i32, %c0_i32_0 : i32, i32, i32, i32
  }
  func.func @transform_7(%arg0: i32, %arg1: i32) -> (i32, i32, i32, i32) {
    %c0_i32 = arith.constant 0 : i32
    %c0_i32_0 = arith.constant 0 : i32
    %c0_i32_1 = arith.constant 0 : i32
    return %arg0, %arg1, %c0_i32, %c0_i32_0 : i32, i32, i32, i32
  }
}

</mosaic_0001>

<bundles_post_ra>
// kernel: hourglass2d_forward.37
= control target key start
LH: loop header
LB: loop body
LE: loop exit
PB: predicated region body
PF: predicated region fallthrough
CT: control target
= control target key end

     0   :  { %s769_s18 = smov 0   ;;  %s771_s19 = smov 0   ;;  %s888_s0 = inlined_call_operand.vmem [shape: f32[2,18,19,8], index: 0, kind: input, shape index: {}, may-alias: {0,1,2}]   ;;  %s889_s1 = inlined_call_operand.vmem [shape: f32[2,18,19,8], index: 1, kind: input, shape index: {}, may-alias: {0,1,2}]   ;;  %s890_s2 = inlined_call_operand.vmem [shape: f32[2,18,19,8], index: 2, kind: input, shape index: {}, may-alias: {0,1,2}]   ;;  %s891_s3 = inlined_call_operand.vmem [shape: f32[9,8], index: 3, kind: input, shape index: {}]   ;;  %s892_s4 = inlined_call_operand.vmem [shape: f32[1,8], index: 4, kind: input, shape index: {}]   ;;  %s893_s5 = inlined_call_operand.vmem [shape: f32[2,16,17,8], index: 5, kind: output, shape index: {}]  }
   0x1   :  { %s773_s20 = smov 0   ;;  %s775_s21 = smov 0  }
   0x2   :  { %s777_s22 = smov 0  }
   0x3 LB: > { %s24_s23 = sadd.s32 1, %s729_s20  ;;  %s27_s24 = sadd.s32 1, %s733_s21  ;;  %s737_s22 = sphi %s777_s22, %s15_s22   ;;  %s733_s21 = sphi %s775_s21, %s898_s21   ;;  %s729_s20 = sphi %s773_s20, %s897_s20   ;;  %s725_s19 = sphi %s771_s19, %s896_s19   ;;  %s721_s18 = sphi %s769_s18, %s895_s18  }
   0x4   : > { %p25_p0 = scmp.ge.s32.totalorder %s24_s23, 16  ;;  %p644_p1 = scmp.ge.s32.totalorder %s737_s22, 1 }
   0x5   : > { %p247_p2 = scmp.lt.s32.totalorder %s737_s22, 33 }
   0x6   : > { %s900_s23 = smov (%p25_p0, %s24_s23), 0  ;;  %s902_s24 = smov (!%p25_p0, %s27_s24), %s733_s21 }
   0x7   : > { %p248_p3 = pnand %p644_p1, %p247_p2  ;;  %p29_p4 = scmp.ge.s32.totalorder %s902_s24, 2 }
   0x8   : > { %p303_p5 = scmp.lt.s32.totalorder (!%p248_p3), %s725_s19, 1  ;;  %p305_p6 = scmp.lt.s32.totalorder (!%p248_p3), %s721_s18, 17 }
   0x9   : > { %s904_s24 = smov (%p29_p4, %s902_s24), 0  ;;  %251 = sbr.rel (%p248_p3) target bundleno = 58 (0x3a), region = 40 }
   0xa   : > { %s312_s25 = sadd.s32 (!%p248_p3), 1, %s721_s18  ;;  %s323_s6 = sadd.s32 (!%p248_p3), 2, %s721_s18 }
   0xb   : > { %p315_p7 = scmp.lt.s32.totalorder (!%p248_p3), %s312_s25, 17  ;;  %p817_p8 = scmp.lt.s32.totalorder (!%p248_p3), %s323_s6, 17 }
   0xc   : > { %p336_p9 = scmp.lt.s32.totalorder (!%p248_p3), %s721_s18, 15 }
   0xe   : > { %s906_s19 = smov (!%p303_p5, %s725_s19), 1  ;;  %v343_v0 = vld [vmem:[%s891_s3] sm:$0xff]  ;;  %s908_s25 = smov (!%p315_p7, %s312_s25), 17  ;;  %vm368_vm0 = vcmask 1046528   ;;  %vm387_vm1 = vcmask 1045504   ;;  %vm498_vm2 = vcmask 64512  }
   0xf   : > { %s306_s26 = scalar_select %p305_p6, %s721_s18, 17  ;;  %v361_v1 = vperm.slane %v343_v0, 1  ;;  %v380_v2 = vperm.slane %v343_v0, 2  ;;  %v354_v3 = vperm.slane %v343_v0, 0  ;;  %v399_v7 = vperm.slane %v343_v0, 3 }
  0x10   : > { %s807_s27 = smul.u32 54, %s906_s19  ;;  %v406_v8 = vperm.slane %v343_v0, 4  ;;  %v424_v10 = vperm.slane %v343_v0, 5  ;;  %v822_v11 = vperm.slane %v343_v0, 6  ;;  %v824_v12 = vperm.slane %v343_v0, 7  ;;  %s910_s6 = smov (!%p817_p8, %s323_s6), 17 }
  0x11   : > { %s651_s30 = smul.u32 3, %s306_s26  ;;  %v697_v44 = vld [vmem:[%s891_s3 + $0x8] ss:$0 sm:$0xff]  ;;  %s912_s18 = smov (!%p336_p9, %s721_s18), 15  ;;  %vm501_vm3 = vcmask 57344  }
  0x12   : > { %s653_s9 = smul.u32 3, %s908_s25 }
  0x13   : > { %s309_s7 = sadd.s32 %s807_s27, %s651_s30  ;;  %s654_s26 = smul.u32 3, %s910_s6 }
  0x14   : > { %s645_s8 = sshll.u32 %s309_s7, 3  ;;  %s319_s14 = sadd.s32 %s653_s9, %s807_s27 }
  0x15   : > { %s311_s12 = scalar_lea.vmem %s888_s0, %s645_s8  ;;  %s646_s15 = sshll.u32 %s319_s14, 3 }
  0x16   : > { %v345_v4 = vld [vmem:[%s311_s12] sm:$0xff]  ;;  %v346_v5 = vld [vmem:[%s311_s12 + $0x8] sm:$0xff]  ;;  %v347_v6 = vld [vmem:[%s311_s12 + $0x10] sm:$0x7]  ;;  %s321_s25 = scalar_lea.vmem %s889_s1, %s646_s15  ;;  %s330_s28 = sadd.s32 %s654_s26, %s807_s27 }
  0x17   : > { %v362_v9 = vmul.f32 %v361_v1, %v345_v4  ;;  %v363_v13 = vmul.f32 %v361_v1, %v346_v5  ;;  %v364_v14 = vmul.f32 %v361_v1, %v347_v6  ;;  %v381_v15 = vmul.f32 %v380_v2, %v345_v4  ;;  %v348_v17 = vld [vmem:[%s321_s25] sm:$0xff]  ;;  %v349_v18 = vld [vmem:[%s321_s25 + $0x8] sm:$0xff]  ;;  %v350_v19 = vld [vmem:[%s321_s25 + $0x10] sm:$0x7]  ;;  %s647_s29 = sshll.u32 %s330_s28, 3  ;;  %s656_s9 = smul.u32 48, %s906_s19 }
  0x18   : > { %v382_v16 = vmul.f32 %v380_v2, %v346_v5  ;;  %v355_v20 = vmul.f32 %v354_v3, %v345_v4  ;;  %v357_v21 = vmul.f32 %v354_v3, %v347_v6  ;;  %v831_v23 = vmul.f32 %v380_v2, %v347_v6  ;;  %s332_s27 = scalar_lea.vmem %s890_s2, %s647_s29  ;;  %s655_s10 = smul.u32 3, %s912_s18 }
  0x19   : > { %v369_v22 = vrot.slane %v362_v9, 1  ;;  %v370_v24 = vrot.slane %v363_v13, 1  ;;  %v372_v25 = vrot.slane %v364_v14, 1  ;;  %v388_v26 = vrot.slane %v381_v15, 2  ;;  %v351_v49 = vld [vmem:[%s332_s27] sm:$0xff]  ;;  %v352_v50 = vld [vmem:[%s332_s27 + $0x8] sm:$0xff] }
  0x1a   : > { %v389_v27 = vrot.slane %v382_v16, 2  ;;  %v356_v28 = vmul.f32 %v354_v3, %v346_v5  ;;  %v391_v29 = vrot.slane %v831_v23, 2  ;;  %v400_v30 = vmul.f32 %v399_v7, %v348_v17  ;;  %v353_v63 = vld [vmem:[%s332_s27 + $0x10] sm:$0x7]  ;;  %s340_s18 = sadd.s32 %s656_s9, %s655_s10 }
  0x1b   : > { %v401_v31 = vmul.f32 %v399_v7, %v349_v18  ;;  %v371_v32 = vsel %vm368_vm0, %v369_v22, %v370_v24  ;;  %v373_v33 = vsel %vm368_vm0, %v370_v24, %v372_v25  ;;  %v402_v35 = vmul.f32 %v399_v7, %v350_v19  ;;  %s648_s12 = sshll.u32 %s340_s18, 3 }
  0x1c   : > { %v390_v34 = vsel %vm387_vm1, %v388_v26, %v389_v27  ;;  %v377_v36 = vadd.f32 %v371_v32, %v355_v20  ;;  %v379_v37 = vadd.f32 %v372_v25, %v357_v21  ;;  %v407_v38 = vmul.f32 %v406_v8, %v348_v17  ;;  %s342_s15 = scalar_lea.vmem %s893_s5, %s648_s12 }
  0x1d   : > { %v408_v39 = vmul.f32 %v406_v8, %v349_v18  ;;  %v409_v40 = vmul.f32 %v406_v8, %v350_v19  ;;  %v425_v41 = vmul.f32 %v424_v10, %v348_v17  ;;  %v426_v42 = vmul.f32 %v424_v10, %v349_v18 }
  0x1e   : > { %v427_v43 = vmul.f32 %v424_v10, %v350_v19  ;;  %v378_v45 = vadd.f32 %v373_v33, %v356_v28  ;;  %v396_v46 = vadd.f32 %v390_v34, %v377_v36  ;;  %v413_v47 = vrot.slane %v407_v38, 1 }
  0x1f   : > { %v414_v48 = vrot.slane %v408_v39, 1  ;;  %v416_v51 = vrot.slane %v409_v40, 1  ;;  %v431_v52 = vrot.slane %v425_v41, 2  ;;  %v432_v53 = vrot.slane %v426_v42, 2 }
  0x20   : > { %v392_v54 = vsel %vm387_vm1, %v389_v27, %v391_v29  ;;  %v403_v55 = vadd.f32 %v400_v30, %v396_v46  ;;  %v434_v57 = vrot.slane %v427_v43, 2  ;;  %v450_v58 = vmul.f32 %v824_v12, %v351_v49 }
  0x21   : > { %v415_v56 = vsel %vm368_vm0, %v413_v47, %v414_v48  ;;  %v433_v59 = vsel %vm387_vm1, %v431_v52, %v432_v53  ;;  %v451_v60 = vmul.f32 %v824_v12, %v352_v50  ;;  %v468_v61 = vmul.f32 %v697_v44, %v351_v49 }
  0x22   : > { %v469_v62 = vmul.f32 %v697_v44, %v352_v50  ;;  %v421_v0 = vadd.f32 %v415_v56, %v403_v55  ;;  %v443_v1 = vmul.f32 %v822_v11, %v351_v49  ;;  %v456_v2 = vrot.slane %v450_v58, 1 }
  0x23   : > { %v397_v3 = vadd.f32 %v392_v54, %v378_v45  ;;  %v457_v4 = vrot.slane %v451_v60, 1  ;;  %v474_v5 = vrot.slane %v468_v61, 2  ;;  %v417_v7 = vsel %vm368_vm0, %v414_v48, %v416_v51 }
  0x24   : > { %v475_v6 = vrot.slane %v469_v62, 2  ;;  %v439_v8 = vadd.f32 %v433_v59, %v421_v0  ;;  %v452_v10 = vmul.f32 %v824_v12, %v353_v63  ;;  %v435_v14 = vsel %vm387_vm1, %v432_v53, %v434_v57  ;;  %v698_v12 = vld [vmem:[%s892_s4] ss:$0 sm:$0xff] }
  0x25   : > { %v404_v9 = vadd.f32 %v401_v31, %v397_v3  ;;  %v458_v13 = vsel %vm368_vm0, %v456_v2, %v457_v4  ;;  %v470_v15 = vmul.f32 %v697_v44, %v353_v63  ;;  %v398_v16 = vadd.f32 %v391_v29, %v379_v37 }
  0x26   : > { %v446_v17 = vadd.f32 %v443_v1, %v439_v8  ;;  %v444_v19 = vmul.f32 %v822_v11, %v352_v50  ;;  %v459_v20 = vrot.slane %v452_v10, 1  ;;  %v476_v21 = vsel %vm387_vm1, %v474_v5, %v475_v6 }
  0x27   : > { %v422_v18 = vadd.f32 %v417_v7, %v404_v9  ;;  %v477_v22 = vrot.slane %v470_v15, 2  ;;  %v405_v23 = vadd.f32 %v402_v35, %v398_v16  ;;  %v445_v28 = vmul.f32 %v822_v11, %v353_v63 }
  0x28   : > { %v464_v24 = vadd.f32 %v458_v13, %v446_v17  ;;  %v460_v26 = vsel %vm368_vm0, %v457_v4, %v459_v20 }
  0x29   : > { %v440_v25 = vadd.f32 %v435_v14, %v422_v18  ;;  %v423_v27 = vadd.f32 %v416_v51, %v405_v23  ;;  %v478_v31 = vsel %vm387_vm1, %v475_v6, %v477_v22 }
  0x2a   : > { %v482_v29 = vadd.f32 %v476_v21, %v464_v24 }
  0x2b   : > { %v447_v30 = vadd.f32 %v444_v19, %v440_v25  ;;  %v441_v32 = vadd.f32 %v434_v57, %v423_v27 }
  0x2c   : > { %v489_v33 = vadd.f32 %v698_v12, %v482_v29 }
  0x2d   : > { %v465_v34 = vadd.f32 %v460_v26, %v447_v30  ;;  %v448_v35 = vadd.f32 %v445_v28, %v441_v32 }
  0x2e   : > { %v492_v36 = vmax.f32 %v489_v33, 0.0 }
  0x2f   : > { %v483_v37 = vadd.f32 %v478_v31, %v465_v34  ;;  %v466_v38 = vadd.f32 %v459_v20, %v448_v35 }
  0x30   : > { %v495_v39 = vmin.f32 %v492_v36, 6.0 }
  0x31   : > { %v490_v40 = vadd.f32 %v698_v12, %v483_v37  ;;  %v484_v11 = vadd.f32 %v477_v22, %v466_v38 }
  0x32   : > { %499 = vst.msk [vmem:[%s342_s15] sm:$0xff] %vm498_vm2, %v495_v39 }
  0x33   : > { %v493_v41 = vmax.f32 %v490_v40, 0.0  ;;  %v491_v42 = vadd.f32 %v698_v12, %v484_v11 }
  0x35   : > { %v496_v43 = vmin.f32 %v493_v41, 6.0  ;;  %v494_v44 = vmax.f32 %v491_v42, 0.0 }
  0x37   : > { %500 = vst.msk [vmem:[%s342_s15 + $0x8] sm:$0xff] %vm498_vm2, %v496_v43  ;;  %v497_v45 = vmin.f32 %v494_v44, 6.0 }
  0x39   : > { %502 = vst.msk [vmem:[%s342_s15 + $0x10] sm:$0x1] %vm501_vm3, %v497_v45 }
  0x3a PF: > { %s15_s22 = sadd.s32 1, %s737_s22   ;;  %s895_s18 = smov %s729_s20 }
  0x3b   : > { %p12_p10 = scmp.ge.s32.totalorder %s15_s22, 34   ;;  %s896_s19 = smov %s733_s21 }
  0x3c   : > { %s897_s20 = smov %s900_s23  ;;  %s898_s21 = smov %s904_s24 }
  0x3d   :  { %14 = sbr.rel (!%p12_p10) target bundleno = 3 (0x3), region = 76 }

// kernel: hourglass2d_forward.36
= control target key start
LH: loop header
LB: loop body
LE: loop exit
PB: predicated region body
PF: predicated region fallthrough
CT: control target
= control target key end

     0   :  { %s1356_s12 = smov 0   ;;  %s1358_s13 = smov 0   ;;  %s1836_s0 = inlined_call_operand.vmem [shape: f32[544,4], index: 0, kind: input, shape index: {}]   ;;  %s1837_s1 = inlined_call_operand.vmem [shape: bf16[4,8], index: 1, kind: input, shape index: {}]   ;;  %s1838_s2 = inlined_call_operand.vmem [shape: f32[1,8], index: 2, kind: input, shape index: {}]   ;;  %s1839_s3 = inlined_call_operand.vmem [shape: f32[544,8], index: 3, kind: output, shape index: {}]  }
   0x1   :  { %s1360_s14 = smov 0  }
   0x2 LB: > { %s1369_s15 = sadd.s32 4294967295, %s1302_s14   ;;  %s1371_s16 = sadd.s32 1, %s1302_s14   ;;  %s1302_s14 = sphi %s1360_s14, %s1848_s14   ;;  %s1298_s13 = sphi %s1358_s13, %s1847_s13   ;;  %s1294_s12 = sphi %s1356_s12, %s1846_s12  }
   0x3   : > { %s85_s17 = ssub.s32 %s1302_s14, %s1371_s16  ;;  %s88_s18 = sadd.s32 1, %s1298_s13 }
   0x4   : > { %p86_p0 = scmp.eq.s32.totalorder %s85_s17, 0  ;;  %p98_p1 = scmp.ne.s32.totalorder %s1298_s13, %s1294_s12 }
   0x5   : > { %p99_p2 = scmp.eq.s32.totalorder %s1369_s15, 1  ;;  %p1100_p3 = scmp.ge.s32.totalorder %s1302_s14, 1 }
   0x6   : > { %s1379_s19 = scalar_select %p86_p0, %s1298_s13, %s88_s18  }
   0x7   : > { %p1381_p4 = por %p99_p2, %p98_p1  ;;  %p146_p5 = scmp.lt.s32.totalorder %s1302_s14, 3 }
   0x9   : > { %p147_p6 = pnand %p1100_p3, %p146_p5 }
   0xa   : > { %s1389_s23 = sshll.u32 (!%p147_p6), %s1369_s15, 6  ;;  %s170_s4 = sand.u32 (!%p147_p6), 1, %s1294_s12  }
   0xb   : > { %150 = sbr.rel (%p147_p6) target bundleno = 349 (0x15d), region = 32  ;;  %p178_p7 = scmp.lt.s32.totalorder (!%p147_p6), %s1389_s23, 67 }
   0xc   : > { %s1101_s5 = sshll.u32 (!%p147_p6), %s170_s4, 9 }
   0xd   : > { %s1502_s6 = scalar_lea.vmem (!%p147_p6), [#allocation2], %s1101_s5  }
  0x10   : > { %v289_v0 = vld [vmem:[%s1837_s1] sm:$0x3]  ;;  %vm391_vm0 = vcmask 1041408   ;;  %s179_s24 = scalar_select %p178_p7, %s1389_s23, 67  ;;  %vm294_vm1 = vcmask 31744   ;;  %vm692_vm2 = vcmask 64512  }
  0x11   : > { %v393_v1 = vsel %vm391_vm0, %v289_v0, 0  ;;  %s765_s7 = ssub.s32 (%p1381_p4), 68, %s1389_s23  ;;  %s1153_s8 = sshll.u32 (%p1381_p4), %s1369_s15, 9 }
  0x12   : > { %402 = vmatpush.bf16.msra.mxu0 %v393_v1  ;;  %1156 = vmatpush.bf16.msra.mxu1 %v393_v1  ;;  %s1103_s25 = sshll.u32 %s179_s24, 3  ;;  %p766_p8 = scmp.lt.s32.totalorder (%p1381_p4), %s765_s7, 64 }
  0x13   : > { %1157 = vmatpush.bf16.msra.mxu2 %v393_v1  ;;  %1158 = vmatpush.bf16.msra.mxu3 %v393_v1  ;;  %s1396_s28 = scalar_lea.vmem %s1836_s0, %s1103_s25  ;;  %s1701_s11 = scalar_lea.vmem (%p1381_p4), %s1839_s3, %s1153_s8  }
  0x14   : > { %v193_v2 = vld [vmem:[%s1396_s28] sm:$0xff]  ;;  %v194_v3 = vld [vmem:[%s1396_s28 + $0x8] sm:$0xff]  ;;  %v195_v14 = vld [vmem:[%s1396_s28 + $0x10] sm:$0xff] }
  0x15   : > { %v209_v4 = vld [vmem:[%s1396_s28 + $0x80] sm:$0xff]  ;;  %v257_v5 = vpack.c.bf16 %v194_v3, %v193_v2  ;;  %v210_v6 = vld [vmem:[%s1396_s28 + $0x88] sm:$0xff]  ;;  %v196_v15 = vld [vmem:[%s1396_s28 + $0x18] sm:$0xff] }
  0x16   : > { %v225_v7 = vld [vmem:[%s1396_s28 + $0x100] sm:$0xff]  ;;  %v226_v8 = vld [vmem:[%s1396_s28 + $0x108] sm:$0xff]  ;;  %v265_v9 = vpack.c.bf16 %v210_v6, %v209_v4  ;;  %v211_v16 = vld [vmem:[%s1396_s28 + $0x90] sm:$0xff]  ;;  %v258_v22 = vpack.c.bf16 %v196_v15, %v195_v14 }
  0x17   : > { %v273_v10 = vpack.c.bf16 %v226_v8, %v225_v7  ;;  %v241_v11 = vld [vmem:[%s1396_s28 + $0x180] sm:$0xff]  ;;  %v242_v12 = vld [vmem:[%s1396_s28 + $0x188] sm:$0xff]  ;;  %1104 = vmatmul.msk.bf16.vlgmr.msra.gmra.mxu0 %vm294_vm1, %v257_v5  ;;  %v212_v17 = vld [vmem:[%s1396_s28 + $0x98] sm:$0xff] }
  0x18   : > { %v281_v13 = vpack.c.bf16 %v242_v12, %v241_v11  ;;  %1112 = vmatmul.msk.bf16.vlgmr.msra.gmra.mxu1 %vm294_vm1, %v265_v9  ;;  %v227_v18 = vld [vmem:[%s1396_s28 + $0x110] sm:$0xff]  ;;  %v228_v19 = vld [vmem:[%s1396_s28 + $0x118] sm:$0xff]  ;;  %v266_v23 = vpack.c.bf16 %v212_v17, %v211_v16  ;;  %v197_v26 = vld [vmem:[%s1396_s28 + $0x20] sm:$0xff] }
  0x19   : > { %1120 = vmatmul.msk.bf16.vlgmr.msra.gmra.mxu2 %vm294_vm1, %v273_v10  ;;  %v243_v20 = vld [vmem:[%s1396_s28 + $0x190] sm:$0xff]  ;;  %v244_v21 = vld [vmem:[%s1396_s28 + $0x198] sm:$0xff]  ;;  %v274_v24 = vpack.c.bf16 %v228_v19, %v227_v18  ;;  %v198_v27 = vld [vmem:[%s1396_s28 + $0x28] sm:$0xff] }
  0x1a   : > { %1128 = vmatmul.msk.bf16.vlgmr.msra.gmra.mxu3 %vm294_vm1, %v281_v13  ;;  %v282_v25 = vpack.c.bf16 %v244_v21, %v243_v20  ;;  %v213_v28 = vld [vmem:[%s1396_s28 + $0xa0] sm:$0xff]  ;;  %v214_v29 = vld [vmem:[%s1396_s28 + $0xa8] sm:$0xff]  ;;  %v259_v34 = vpack.c.bf16 %v198_v27, %v197_v26  ;;  %v199_v38 = vld [vmem:[%s1396_s28 + $0x30] sm:$0xff] }
  0x1b   : > { %v229_v30 = vld [vmem:[%s1396_s28 + $0x120] sm:$0xff]  ;;  %v230_v31 = vld [vmem:[%s1396_s28 + $0x128] sm:$0xff]  ;;  %v267_v35 = vpack.c.bf16 %v214_v29, %v213_v28  ;;  %v200_v39 = vld [vmem:[%s1396_s28 + $0x38] sm:$0xff] }
  0x1c   : > { %v245_v32 = vld [vmem:[%s1396_s28 + $0x1a0] sm:$0xff]  ;;  %v246_v33 = vld [vmem:[%s1396_s28 + $0x1a8] sm:$0xff]  ;;  %v275_v36 = vpack.c.bf16 %v230_v31, %v229_v30  ;;  %v215_v40 = vld [vmem:[%s1396_s28 + $0xb0] sm:$0xff]  ;;  %v260_v46 = vpack.c.bf16 %v200_v39, %v199_v38 }
  0x1d   : > { %v283_v37 = vpack.c.bf16 %v246_v33, %v245_v32  ;;  %v216_v41 = vld [vmem:[%s1396_s28 + $0xb8] sm:$0xff]  ;;  %v231_v42 = vld [vmem:[%s1396_s28 + $0x130] sm:$0xff]  ;;  %v201_v50 = vld [vmem:[%s1396_s28 + $0x40] sm:$0xff] }
  0x1e   : > { %v232_v43 = vld [vmem:[%s1396_s28 + $0x138] sm:$0xff]  ;;  %v247_v44 = vld [vmem:[%s1396_s28 + $0x1b0] sm:$0xff]  ;;  %v268_v47 = vpack.c.bf16 %v216_v41, %v215_v40  ;;  %v202_v51 = vld [vmem:[%s1396_s28 + $0x48] sm:$0xff] }
  0x1f   : > { %v248_v45 = vld [vmem:[%s1396_s28 + $0x1b8] sm:$0xff]  ;;  %v276_v48 = vpack.c.bf16 %v232_v43, %v231_v42  ;;  %v217_v52 = vld [vmem:[%s1396_s28 + $0xc0] sm:$0xff]  ;;  %v218_v53 = vld [vmem:[%s1396_s28 + $0xc8] sm:$0xff]  ;;  %v261_v58 = vpack.c.bf16 %v202_v51, %v201_v50 }
  0x20   : > { %v284_v49 = vpack.c.bf16 %v248_v45, %v247_v44  ;;  %v233_v54 = vld [vmem:[%s1396_s28 + $0x140] sm:$0xff]  ;;  %v234_v55 = vld [vmem:[%s1396_s28 + $0x148] sm:$0xff]  ;;  %v269_v59 = vpack.c.bf16 %v218_v53, %v217_v52  ;;  %v203_v62 = vld [vmem:[%s1396_s28 + $0x50] sm:$0xff] }
  0x21   : > { %v249_v56 = vld [vmem:[%s1396_s28 + $0x1c0] sm:$0xff]  ;;  %v250_v57 = vld [vmem:[%s1396_s28 + $0x1c8] sm:$0xff]  ;;  %v277_v60 = vpack.c.bf16 %v234_v55, %v233_v54  ;;  %v204_v63 = vld [vmem:[%s1396_s28 + $0x58] sm:$0xff] }
  0x22   : > { %v285_v61 = vpack.c.bf16 %v250_v57, %v249_v56  ;;  %v219_v0 = vld [vmem:[%s1396_s28 + $0xd0] sm:$0xff]  ;;  %v220_v1 = vld [vmem:[%s1396_s28 + $0xd8] sm:$0xff]  ;;  %v262_v6 = vpack.c.bf16 %v204_v63, %v203_v62  ;;  %v205_v10 = vld [vmem:[%s1396_s28 + $0x60] sm:$0xff] }
  0x23   : > { %v235_v2 = vld [vmem:[%s1396_s28 + $0x150] sm:$0xff]  ;;  %v236_v3 = vld [vmem:[%s1396_s28 + $0x158] sm:$0xff]  ;;  %v270_v7 = vpack.c.bf16 %v220_v1, %v219_v0  ;;  %v206_v11 = vld [vmem:[%s1396_s28 + $0x68] sm:$0xff] }
  0x24   : > { %v251_v4 = vld [vmem:[%s1396_s28 + $0x1d0] sm:$0xff]  ;;  %v252_v5 = vld [vmem:[%s1396_s28 + $0x1d8] sm:$0xff]  ;;  %v278_v8 = vpack.c.bf16 %v236_v3, %v235_v2  ;;  %v221_v12 = vld [vmem:[%s1396_s28 + $0xe0] sm:$0xff]  ;;  %v263_v18 = vpack.c.bf16 %v206_v11, %v205_v10 }
  0x25   : > { %v286_v9 = vpack.c.bf16 %v252_v5, %v251_v4  ;;  %v222_v13 = vld [vmem:[%s1396_s28 + $0xe8] sm:$0xff]  ;;  %v237_v14 = vld [vmem:[%s1396_s28 + $0x160] sm:$0xff]  ;;  %v239_v26 = vld [vmem:[%s1396_s28 + $0x170] sm:$0xff] }
  0x26   : > { %v238_v15 = vld [vmem:[%s1396_s28 + $0x168] sm:$0xff]  ;;  %v253_v16 = vld [vmem:[%s1396_s28 + $0x1e0] sm:$0xff]  ;;  %v271_v19 = vpack.c.bf16 %v222_v13, %v221_v12  ;;  %v240_v27 = vld [vmem:[%s1396_s28 + $0x178] sm:$0xff] }
  0x27   : > { %1105 = vmatmul.msk.bf16.gmra.mxu0 %vm294_vm1, %v258_v22  ;;  %v254_v17 = vld [vmem:[%s1396_s28 + $0x1e8] sm:$0xff]  ;;  %v279_v20 = vpack.c.bf16 %v238_v15, %v237_v14  ;;  %v207_v22 = vld [vmem:[%s1396_s28 + $0x70] sm:$0xff]  ;;  %v256_v29 = vld [vmem:[%s1396_s28 + $0x1f8] sm:$0xff]  ;;  %v280_v32 = vpack.c.bf16 %v240_v27, %v239_v26 }
  0x28   : > { %1113 = vmatmul.msk.bf16.gmra.mxu1 %vm294_vm1, %v266_v23  ;;  %v287_v21 = vpack.c.bf16 %v254_v17, %v253_v16  ;;  %v208_v23 = vld [vmem:[%s1396_s28 + $0x78] sm:$0xff]  ;;  %v255_v28 = vld [vmem:[%s1396_s28 + $0x1f0] sm:$0xff] }
  0x29   : > { %1121 = vmatmul.msk.bf16.gmra.mxu2 %vm294_vm1, %v274_v24  ;;  %v223_v24 = vld [vmem:[%s1396_s28 + $0xf0] sm:$0xff]  ;;  %v264_v30 = vpack.c.bf16 %v208_v23, %v207_v22  ;;  %v288_v33 = vpack.c.bf16 %v256_v29, %v255_v28 }
  0x2a   : > { %1129 = vmatmul.msk.bf16.gmra.mxu3 %vm294_vm1, %v282_v25  ;;  %v224_v25 = vld [vmem:[%s1396_s28 + $0xf8] sm:$0xff] }
  0x2b   : > { %v272_v31 = vpack.c.bf16 %v224_v25, %v223_v24 }
  0x37   : > { %1106 = vmatmul.msk.bf16.gmra.mxu0 %vm294_vm1, %v259_v34  ;;  %v1497_v34 = vld [vmem:[%s1838_s2] ss:$0 sm:$0xff] }
  0x38   : > { %1114 = vmatmul.msk.bf16.gmra.mxu1 %vm294_vm1, %v267_v35 }
  0x39   : > { %1122 = vmatmul.msk.bf16.gmra.mxu2 %vm294_vm1, %v275_v36 }
  0x3a   : > { %1130 = vmatmul.msk.bf16.gmra.mxu3 %vm294_vm1, %v283_v37 }
  0x47   : > { %1107 = vmatmul.msk.bf16.gmra.mxu0 %vm294_vm1, %v260_v46 }
  0x48   : > { %1115 = vmatmul.msk.bf16.gmra.mxu1 %vm294_vm1, %v268_v47 }
  0x49   : > { %1123 = vmatmul.msk.bf16.gmra.mxu2 %vm294_vm1, %v276_v48 }
  0x4a   : > { %1131 = vmatmul.msk.bf16.gmra.mxu3 %vm294_vm1, %v284_v49 }
  0x57   : > { %1108 = vmatmul.msk.bf16.gmra.mxu0 %vm294_vm1, %v261_v58 }
  0x58   : > { %1116 = vmatmul.msk.bf16.gmra.mxu1 %vm294_vm1, %v269_v59 }
  0x59   : > { %1124 = vmatmul.msk.bf16.gmra.mxu2 %vm294_vm1, %v277_v60 }
  0x5a   : > { %1132 = vmatmul.msk.bf16.gmra.mxu3 %vm294_vm1, %v285_v61 }
  0x67   : > { %1109 = vmatmul.msk.bf16.gmra.mxu0 %vm294_vm1, %v262_v6 }
  0x68   : > { %1117 = vmatmul.msk.bf16.gmra.mxu1 %vm294_vm1, %v270_v7 }
  0x69   : > { %1125 = vmatmul.msk.bf16.gmra.mxu2 %vm294_vm1, %v278_v8 }
  0x6a   : > { %1133 = vmatmul.msk.bf16.gmra.mxu3 %vm294_vm1, %v286_v9 }
  0x77   : > { %1110 = vmatmul.msk.bf16.gmra.mxu0 %vm294_vm1, %v263_v18 }
  0x78   : > { %1118 = vmatmul.msk.bf16.gmra.mxu1 %vm294_vm1, %v271_v19 }
  0x79   : > { %1126 = vmatmul.msk.bf16.gmra.mxu2 %vm294_vm1, %v279_v20 }
  0x7a   : > { %1134 = vmatmul.msk.bf16.gmra.mxu3 %vm294_vm1, %v287_v21 }
  0x87   : > { %1111 = vmatmul.msk.bf16.gmra.mxu0 %vm294_vm1, %v264_v30 }
  0x88   : > { %1119 = vmatmul.msk.bf16.gmra.mxu1 %vm294_vm1, %v272_v31 }
  0x89   : > { %1127 = vmatmul.msk.bf16.gmra.mxu2 %vm294_vm1, %v280_v32 }
  0x8a   : > { %1135 = vmatmul.msk.bf16.gmra.mxu3 %vm294_vm1, %v288_v33 }
  0x94   : > { %v404_v35 = vpop.f32.mrf.mxu0 }
  0x95   : > { %v405_v36 = vadd.f32 %v1497_v34, %v404_v35  ;;  %v444_v37 = vpop.f32.mrf.mxu1 }
  0x96   : > { %v445_v38 = vadd.f32 %v1497_v34, %v444_v37 }
  0x97   : > { %v564_v39 = vmax.f32 %v405_v36, 0.0 }
  0x98   : > { %v580_v40 = vmax.f32 %v445_v38, 0.0 }
  0x99   : > { %v628_v41 = vmin.f32 %v564_v39, 6.0 }
  0x9a   : > { %v644_v42 = vmin.f32 %v580_v40, 6.0 }
  0x9b   : > { %693 = vst.msk [vmem:[%s1502_s6] sm:$0xff] %vm692_vm2, %v628_v41 }
  0x9c   : > { %v484_v43 = vpop.f32.mrf.mxu2  ;;  %709 = vst.msk [vmem:[%s1502_s6 + $0x80] sm:$0xff] %vm692_vm2, %v644_v42  ;;  %v406_v46 = vpop.f32.mrf.mxu0 }
  0x9d   : > { %v485_v44 = vadd.f32 %v1497_v34, %v484_v43  ;;  %v524_v45 = vpop.f32.mrf.mxu3  ;;  %v407_v48 = vadd.f32 %v1497_v34, %v406_v46  ;;  %v446_v49 = vpop.f32.mrf.mxu1 }
  0x9e   : > { %v525_v47 = vadd.f32 %v1497_v34, %v524_v45  ;;  %v447_v51 = vadd.f32 %v1497_v34, %v446_v49 }
  0x9f   : > { %v596_v50 = vmax.f32 %v485_v44, 0.0  ;;  %v565_v53 = vmax.f32 %v407_v48, 0.0 }
  0xa0   : > { %v612_v52 = vmax.f32 %v525_v47, 0.0  ;;  %v581_v55 = vmax.f32 %v447_v51, 0.0 }
  0xa1   : > { %v660_v54 = vmin.f32 %v596_v50, 6.0  ;;  %v629_v57 = vmin.f32 %v565_v53, 6.0 }
  0xa2   : > { %v676_v56 = vmin.f32 %v612_v52, 6.0  ;;  %v645_v58 = vmin.f32 %v581_v55, 6.0 }
  0xa3   : > { %725 = vst.msk [vmem:[%s1502_s6 + $0x100] sm:$0xff] %vm692_vm2, %v660_v54 }
  0xa4   : > { %741 = vst.msk [vmem:[%s1502_s6 + $0x180] sm:$0xff] %vm692_vm2, %v676_v56  ;;  %v486_v59 = vpop.f32.mrf.mxu2  ;;  %v409_v62 = vpop.f32.mrf.mxu0 }
  0xa5   : > { %694 = vst.msk [vmem:[%s1502_s6 + $0x8] sm:$0xff] %vm692_vm2, %v629_v57  ;;  %v487_v60 = vadd.f32 %v1497_v34, %v486_v59  ;;  %v526_v61 = vpop.f32.mrf.mxu3  ;;  %v410_v0 = vadd.f32 %v1497_v34, %v409_v62  ;;  %v449_v1 = vpop.f32.mrf.mxu1 }
  0xa6   : > { %710 = vst.msk [vmem:[%s1502_s6 + $0x88] sm:$0xff] %vm692_vm2, %v645_v58  ;;  %v527_v63 = vadd.f32 %v1497_v34, %v526_v61  ;;  %v450_v3 = vadd.f32 %v1497_v34, %v449_v1 }
  0xa7   : > { %v597_v2 = vmax.f32 %v487_v60, 0.0  ;;  %v566_v5 = vmax.f32 %v410_v0, 0.0 }
  0xa8   : > { %v613_v4 = vmax.f32 %v527_v63, 0.0  ;;  %v582_v7 = vmax.f32 %v450_v3, 0.0 }
  0xa9   : > { %v661_v6 = vmin.f32 %v597_v2, 6.0  ;;  %v630_v9 = vmin.f32 %v566_v5, 6.0 }
  0xaa   : > { %v677_v8 = vmin.f32 %v613_v4, 6.0  ;;  %v646_v10 = vmin.f32 %v582_v7, 6.0 }
  0xab   : > { %726 = vst.msk [vmem:[%s1502_s6 + $0x108] sm:$0xff] %vm692_vm2, %v661_v6 }
  0xac   : > { %742 = vst.msk [vmem:[%s1502_s6 + $0x188] sm:$0xff] %vm692_vm2, %v677_v8  ;;  %v489_v11 = vpop.f32.mrf.mxu2  ;;  %v411_v14 = vpop.f32.mrf.mxu0 }
  0xad   : > { %695 = vst.msk [vmem:[%s1502_s6 + $0x10] sm:$0xff] %vm692_vm2, %v630_v9  ;;  %v490_v12 = vadd.f32 %v1497_v34, %v489_v11  ;;  %v529_v13 = vpop.f32.mrf.mxu3  ;;  %v412_v16 = vadd.f32 %v1497_v34, %v411_v14  ;;  %v451_v17 = vpop.f32.mrf.mxu1 }
  0xae   : > { %711 = vst.msk [vmem:[%s1502_s6 + $0x90] sm:$0xff] %vm692_vm2, %v646_v10  ;;  %v530_v15 = vadd.f32 %v1497_v34, %v529_v13  ;;  %v452_v19 = vadd.f32 %v1497_v34, %v451_v17 }
  0xaf   : > { %v598_v18 = vmax.f32 %v490_v12, 0.0  ;;  %v567_v21 = vmax.f32 %v412_v16, 0.0 }
  0xb0   : > { %v614_v20 = vmax.f32 %v530_v15, 0.0  ;;  %v583_v23 = vmax.f32 %v452_v19, 0.0 }
  0xb1   : > { %v662_v22 = vmin.f32 %v598_v18, 6.0  ;;  %v631_v25 = vmin.f32 %v567_v21, 6.0 }
  0xb2   : > { %v678_v24 = vmin.f32 %v614_v20, 6.0  ;;  %v647_v26 = vmin.f32 %v583_v23, 6.0 }
  0xb3   : > { %727 = vst.msk [vmem:[%s1502_s6 + $0x110] sm:$0xff] %vm692_vm2, %v662_v22 }
  0xb4   : > { %743 = vst.msk [vmem:[%s1502_s6 + $0x190] sm:$0xff] %vm692_vm2, %v678_v24  ;;  %v491_v27 = vpop.f32.mrf.mxu2  ;;  %v414_v30 = vpop.f32.mrf.mxu0 }
  0xb5   : > { %696 = vst.msk [vmem:[%s1502_s6 + $0x18] sm:$0xff] %vm692_vm2, %v631_v25  ;;  %v492_v28 = vadd.f32 %v1497_v34, %v491_v27  ;;  %v531_v29 = vpop.f32.mrf.mxu3  ;;  %v415_v32 = vadd.f32 %v1497_v34, %v414_v30  ;;  %v454_v33 = vpop.f32.mrf.mxu1 }
  0xb6   : > { %712 = vst.msk [vmem:[%s1502_s6 + $0x98] sm:$0xff] %vm692_vm2, %v647_v26  ;;  %v532_v31 = vadd.f32 %v1497_v34, %v531_v29  ;;  %v455_v36 = vadd.f32 %v1497_v34, %v454_v33 }
  0xb7   : > { %v599_v35 = vmax.f32 %v492_v28, 0.0  ;;  %v568_v38 = vmax.f32 %v415_v32, 0.0 }
  0xb8   : > { %v615_v37 = vmax.f32 %v532_v31, 0.0  ;;  %v584_v40 = vmax.f32 %v455_v36, 0.0 }
  0xb9   : > { %v663_v39 = vmin.f32 %v599_v35, 6.0  ;;  %v632_v42 = vmin.f32 %v568_v38, 6.0 }
  0xba   : > { %v679_v41 = vmin.f32 %v615_v37, 6.0  ;;  %v648_v43 = vmin.f32 %v584_v40, 6.0 }
  0xbb   : > { %728 = vst.msk [vmem:[%s1502_s6 + $0x118] sm:$0xff] %vm692_vm2, %v663_v39 }
  0xbc   : > { %744 = vst.msk [vmem:[%s1502_s6 + $0x198] sm:$0xff] %vm692_vm2, %v679_v41  ;;  %v494_v44 = vpop.f32.mrf.mxu2  ;;  %v416_v47 = vpop.f32.mrf.mxu0 }
  0xbd   : > { %697 = vst.msk [vmem:[%s1502_s6 + $0x20] sm:$0xff] %vm692_vm2, %v632_v42  ;;  %v495_v45 = vadd.f32 %v1497_v34, %v494_v44  ;;  %v534_v46 = vpop.f32.mrf.mxu3  ;;  %v417_v49 = vadd.f32 %v1497_v34, %v416_v47  ;;  %v456_v50 = vpop.f32.mrf.mxu1 }
  0xbe   : > { %713 = vst.msk [vmem:[%s1502_s6 + $0xa0] sm:$0xff] %vm692_vm2, %v648_v43  ;;  %v535_v48 = vadd.f32 %v1497_v34, %v534_v46  ;;  %v457_v52 = vadd.f32 %v1497_v34, %v456_v50 }
  0xbf   : > { %v600_v51 = vmax.f32 %v495_v45, 0.0  ;;  %v569_v54 = vmax.f32 %v417_v49, 0.0 }
  0xc0   : > { %v616_v53 = vmax.f32 %v535_v48, 0.0  ;;  %v585_v56 = vmax.f32 %v457_v52, 0.0 }
  0xc1   : > { %v664_v55 = vmin.f32 %v600_v51, 6.0  ;;  %v633_v58 = vmin.f32 %v569_v54, 6.0 }
  0xc2   : > { %v680_v57 = vmin.f32 %v616_v53, 6.0  ;;  %v649_v59 = vmin.f32 %v585_v56, 6.0 }
  0xc3   : > { %729 = vst.msk [vmem:[%s1502_s6 + $0x120] sm:$0xff] %vm692_vm2, %v664_v55 }
  0xc4   : > { %745 = vst.msk [vmem:[%s1502_s6 + $0x1a0] sm:$0xff] %vm692_vm2, %v680_v57  ;;  %v496_v60 = vpop.f32.mrf.mxu2  ;;  %v419_v63 = vpop.f32.mrf.mxu0 }
  0xc5   : > { %698 = vst.msk [vmem:[%s1502_s6 + $0x28] sm:$0xff] %vm692_vm2, %v633_v58  ;;  %v497_v61 = vadd.f32 %v1497_v34, %v496_v60  ;;  %v536_v62 = vpop.f32.mrf.mxu3  ;;  %v420_v1 = vadd.f32 %v1497_v34, %v419_v63  ;;  %v459_v2 = vpop.f32.mrf.mxu1 }
  0xc6   : > { %714 = vst.msk [vmem:[%s1502_s6 + $0xa8] sm:$0xff] %vm692_vm2, %v649_v59  ;;  %v537_v0 = vadd.f32 %v1497_v34, %v536_v62  ;;  %v460_v4 = vadd.f32 %v1497_v34, %v459_v2 }
  0xc7   : > { %v601_v3 = vmax.f32 %v497_v61, 0.0  ;;  %v570_v6 = vmax.f32 %v420_v1, 0.0 }
  0xc8   : > { %v617_v5 = vmax.f32 %v537_v0, 0.0  ;;  %v586_v8 = vmax.f32 %v460_v4, 0.0 }
  0xc9   : > { %v665_v7 = vmin.f32 %v601_v3, 6.0  ;;  %v634_v10 = vmin.f32 %v570_v6, 6.0 }
  0xca   : > { %v681_v9 = vmin.f32 %v617_v5, 6.0  ;;  %v650_v11 = vmin.f32 %v586_v8, 6.0 }
  0xcb   : > { %730 = vst.msk [vmem:[%s1502_s6 + $0x128] sm:$0xff] %vm692_vm2, %v665_v7 }
  0xcc   : > { %746 = vst.msk [vmem:[%s1502_s6 + $0x1a8] sm:$0xff] %vm692_vm2, %v681_v9  ;;  %v499_v12 = vpop.f32.mrf.mxu2  ;;  %v421_v15 = vpop.f32.mrf.mxu0 }
  0xcd   : > { %699 = vst.msk [vmem:[%s1502_s6 + $0x30] sm:$0xff] %vm692_vm2, %v634_v10  ;;  %v500_v13 = vadd.f32 %v1497_v34, %v499_v12  ;;  %v539_v14 = vpop.f32.mrf.mxu3  ;;  %v422_v17 = vadd.f32 %v1497_v34, %v421_v15  ;;  %v461_v18 = vpop.f32.mrf.mxu1 }
  0xce   : > { %715 = vst.msk [vmem:[%s1502_s6 + $0xb0] sm:$0xff] %vm692_vm2, %v650_v11  ;;  %v540_v16 = vadd.f32 %v1497_v34, %v539_v14  ;;  %v462_v20 = vadd.f32 %v1497_v34, %v461_v18 }
  0xcf   : > { %v602_v19 = vmax.f32 %v500_v13, 0.0  ;;  %v571_v22 = vmax.f32 %v422_v17, 0.0 }
  0xd0   : > { %v618_v21 = vmax.f32 %v540_v16, 0.0  ;;  %v587_v24 = vmax.f32 %v462_v20, 0.0 }
  0xd1   : > { %v666_v23 = vmin.f32 %v602_v19, 6.0  ;;  %v635_v26 = vmin.f32 %v571_v22, 6.0 }
  0xd2   : > { %v682_v25 = vmin.f32 %v618_v21, 6.0  ;;  %v651_v27 = vmin.f32 %v587_v24, 6.0 }
  0xd3   : > { %731 = vst.msk [vmem:[%s1502_s6 + $0x130] sm:$0xff] %vm692_vm2, %v666_v23 }
  0xd4   : > { %747 = vst.msk [vmem:[%s1502_s6 + $0x1b0] sm:$0xff] %vm692_vm2, %v682_v25  ;;  %v501_v28 = vpop.f32.mrf.mxu2  ;;  %v424_v31 = vpop.f32.mrf.mxu0 }
  0xd5   : > { %700 = vst.msk [vmem:[%s1502_s6 + $0x38] sm:$0xff] %vm692_vm2, %v635_v26  ;;  %v502_v29 = vadd.f32 %v1497_v34, %v501_v28  ;;  %v541_v30 = vpop.f32.mrf.mxu3  ;;  %v425_v33 = vadd.f32 %v1497_v34, %v424_v31  ;;  %v464_v35 = vpop.f32.mrf.mxu1 }
  0xd6   : > { %716 = vst.msk [vmem:[%s1502_s6 + $0xb8] sm:$0xff] %vm692_vm2, %v651_v27  ;;  %v542_v32 = vadd.f32 %v1497_v34, %v541_v30  ;;  %v465_v37 = vadd.f32 %v1497_v34, %v464_v35 }
  0xd7   : > { %v603_v36 = vmax.f32 %v502_v29, 0.0  ;;  %v572_v39 = vmax.f32 %v425_v33, 0.0 }
  0xd8   : > { %v619_v38 = vmax.f32 %v542_v32, 0.0  ;;  %v588_v41 = vmax.f32 %v465_v37, 0.0 }
  0xd9   : > { %v667_v40 = vmin.f32 %v603_v36, 6.0  ;;  %v636_v43 = vmin.f32 %v572_v39, 6.0 }
  0xda   : > { %v683_v42 = vmin.f32 %v619_v38, 6.0  ;;  %v652_v44 = vmin.f32 %v588_v41, 6.0 }
  0xdb   : > { %732 = vst.msk [vmem:[%s1502_s6 + $0x138] sm:$0xff] %vm692_vm2, %v667_v40 }
  0xdc   : > { %748 = vst.msk [vmem:[%s1502_s6 + $0x1b8] sm:$0xff] %vm692_vm2, %v683_v42  ;;  %v504_v45 = vpop.f32.mrf.mxu2  ;;  %v426_v48 = vpop.f32.mrf.mxu0 }
  0xdd   : > { %701 = vst.msk [vmem:[%s1502_s6 + $0x40] sm:$0xff] %vm692_vm2, %v636_v43  ;;  %v505_v46 = vadd.f32 %v1497_v34, %v504_v45  ;;  %v544_v47 = vpop.f32.mrf.mxu3  ;;  %v427_v50 = vadd.f32 %v1497_v34, %v426_v48  ;;  %v466_v51 = vpop.f32.mrf.mxu1 }
  0xde   : > { %717 = vst.msk [vmem:[%s1502_s6 + $0xc0] sm:$0xff] %vm692_vm2, %v652_v44  ;;  %v545_v49 = vadd.f32 %v1497_v34, %v544_v47  ;;  %v467_v53 = vadd.f32 %v1497_v34, %v466_v51 }
  0xdf   : > { %v604_v52 = vmax.f32 %v505_v46, 0.0  ;;  %v573_v55 = vmax.f32 %v427_v50, 0.0 }
  0xe0   : > { %v620_v54 = vmax.f32 %v545_v49, 0.0  ;;  %v589_v57 = vmax.f32 %v467_v53, 0.0 }
  0xe1   : > { %v668_v56 = vmin.f32 %v604_v52, 6.0  ;;  %v637_v59 = vmin.f32 %v573_v55, 6.0 }
  0xe2   : > { %v684_v58 = vmin.f32 %v620_v54, 6.0  ;;  %v653_v60 = vmin.f32 %v589_v57, 6.0 }
  0xe3   : > { %733 = vst.msk [vmem:[%s1502_s6 + $0x140] sm:$0xff] %vm692_vm2, %v668_v56 }
  0xe4   : > { %749 = vst.msk [vmem:[%s1502_s6 + $0x1c0] sm:$0xff] %vm692_vm2, %v684_v58  ;;  %v506_v61 = vpop.f32.mrf.mxu2  ;;  %v429_v0 = vpop.f32.mrf.mxu0 }
  0xe5   : > { %702 = vst.msk [vmem:[%s1502_s6 + $0x48] sm:$0xff] %vm692_vm2, %v637_v59  ;;  %v507_v62 = vadd.f32 %v1497_v34, %v506_v61  ;;  %v546_v63 = vpop.f32.mrf.mxu3  ;;  %v430_v2 = vadd.f32 %v1497_v34, %v429_v0  ;;  %v469_v3 = vpop.f32.mrf.mxu1 }
  0xe6   : > { %718 = vst.msk [vmem:[%s1502_s6 + $0xc8] sm:$0xff] %vm692_vm2, %v653_v60  ;;  %v547_v1 = vadd.f32 %v1497_v34, %v546_v63  ;;  %v470_v5 = vadd.f32 %v1497_v34, %v469_v3 }
  0xe7   : > { %v605_v4 = vmax.f32 %v507_v62, 0.0  ;;  %v574_v7 = vmax.f32 %v430_v2, 0.0 }
  0xe8   : > { %v621_v6 = vmax.f32 %v547_v1, 0.0  ;;  %v590_v9 = vmax.f32 %v470_v5, 0.0 }
  0xe9   : > { %v669_v8 = vmin.f32 %v605_v4, 6.0  ;;  %v638_v11 = vmin.f32 %v574_v7, 6.0 }
  0xea   : > { %v685_v10 = vmin.f32 %v621_v6, 6.0  ;;  %v654_v12 = vmin.f32 %v590_v9, 6.0 }
  0xeb   : > { %734 = vst.msk [vmem:[%s1502_s6 + $0x148] sm:$0xff] %vm692_vm2, %v669_v8 }
  0xec   : > { %750 = vst.msk [vmem:[%s1502_s6 + $0x1c8] sm:$0xff] %vm692_vm2, %v685_v10  ;;  %v509_v13 = vpop.f32.mrf.mxu2  ;;  %v431_v16 = vpop.f32.mrf.mxu0 }
  0xed   : > { %703 = vst.msk [vmem:[%s1502_s6 + $0x50] sm:$0xff] %vm692_vm2, %v638_v11  ;;  %v510_v14 = vadd.f32 %v1497_v34, %v509_v13  ;;  %v549_v15 = vpop.f32.mrf.mxu3  ;;  %v432_v18 = vadd.f32 %v1497_v34, %v431_v16  ;;  %v471_v19 = vpop.f32.mrf.mxu1 }
  0xee   : > { %719 = vst.msk [vmem:[%s1502_s6 + $0xd0] sm:$0xff] %vm692_vm2, %v654_v12  ;;  %v550_v17 = vadd.f32 %v1497_v34, %v549_v15  ;;  %v472_v21 = vadd.f32 %v1497_v34, %v471_v19 }
  0xef   : > { %v606_v20 = vmax.f32 %v510_v14, 0.0  ;;  %v575_v23 = vmax.f32 %v432_v18, 0.0 }
  0xf0   : > { %v622_v22 = vmax.f32 %v550_v17, 0.0  ;;  %v591_v25 = vmax.f32 %v472_v21, 0.0 }
  0xf1   : > { %v670_v24 = vmin.f32 %v606_v20, 6.0  ;;  %v639_v27 = vmin.f32 %v575_v23, 6.0 }
  0xf2   : > { %v686_v26 = vmin.f32 %v622_v22, 6.0  ;;  %v655_v28 = vmin.f32 %v591_v25, 6.0 }
  0xf3   : > { %735 = vst.msk [vmem:[%s1502_s6 + $0x150] sm:$0xff] %vm692_vm2, %v670_v24 }
  0xf4   : > { %751 = vst.msk [vmem:[%s1502_s6 + $0x1d0] sm:$0xff] %vm692_vm2, %v686_v26  ;;  %v511_v29 = vpop.f32.mrf.mxu2  ;;  %v434_v32 = vpop.f32.mrf.mxu0 }
  0xf5   : > { %704 = vst.msk [vmem:[%s1502_s6 + $0x58] sm:$0xff] %vm692_vm2, %v639_v27  ;;  %v512_v30 = vadd.f32 %v1497_v34, %v511_v29  ;;  %v551_v31 = vpop.f32.mrf.mxu3  ;;  %v435_v35 = vadd.f32 %v1497_v34, %v434_v32  ;;  %v474_v36 = vpop.f32.mrf.mxu1 }
  0xf6   : > { %720 = vst.msk [vmem:[%s1502_s6 + $0xd8] sm:$0xff] %vm692_vm2, %v655_v28  ;;  %v552_v33 = vadd.f32 %v1497_v34, %v551_v31  ;;  %v475_v38 = vadd.f32 %v1497_v34, %v474_v36 }
  0xf7   : > { %v607_v37 = vmax.f32 %v512_v30, 0.0  ;;  %v576_v40 = vmax.f32 %v435_v35, 0.0 }
  0xf8   : > { %v623_v39 = vmax.f32 %v552_v33, 0.0  ;;  %v592_v42 = vmax.f32 %v475_v38, 0.0 }
  0xf9   : > { %v671_v41 = vmin.f32 %v607_v37, 6.0  ;;  %v640_v44 = vmin.f32 %v576_v40, 6.0 }
  0xfa   : > { %v687_v43 = vmin.f32 %v623_v39, 6.0  ;;  %v656_v45 = vmin.f32 %v592_v42, 6.0 }
  0xfb   : > { %736 = vst.msk [vmem:[%s1502_s6 + $0x158] sm:$0xff] %vm692_vm2, %v671_v41 }
  0xfc   : > { %752 = vst.msk [vmem:[%s1502_s6 + $0x1d8] sm:$0xff] %vm692_vm2, %v687_v43  ;;  %v514_v46 = vpop.f32.mrf.mxu2  ;;  %v436_v49 = vpop.f32.mrf.mxu0 }
  0xfd   : > { %705 = vst.msk [vmem:[%s1502_s6 + $0x60] sm:$0xff] %vm692_vm2, %v640_v44  ;;  %v515_v47 = vadd.f32 %v1497_v34, %v514_v46  ;;  %v554_v48 = vpop.f32.mrf.mxu3  ;;  %v437_v51 = vadd.f32 %v1497_v34, %v436_v49  ;;  %v476_v52 = vpop.f32.mrf.mxu1 }
  0xfe   : > { %721 = vst.msk [vmem:[%s1502_s6 + $0xe0] sm:$0xff] %vm692_vm2, %v656_v45  ;;  %v555_v50 = vadd.f32 %v1497_v34, %v554_v48  ;;  %v477_v54 = vadd.f32 %v1497_v34, %v476_v52 }
  0xff   : > { %v608_v53 = vmax.f32 %v515_v47, 0.0  ;;  %v577_v56 = vmax.f32 %v437_v51, 0.0 }
 0x100   : > { %v624_v55 = vmax.f32 %v555_v50, 0.0  ;;  %v593_v58 = vmax.f32 %v477_v54, 0.0 }
 0x101   : > { %v672_v57 = vmin.f32 %v608_v53, 6.0  ;;  %v641_v60 = vmin.f32 %v577_v56, 6.0 }
 0x102   : > { %v688_v59 = vmin.f32 %v624_v55, 6.0  ;;  %v657_v61 = vmin.f32 %v593_v58, 6.0 }
 0x103   : > { %737 = vst.msk [vmem:[%s1502_s6 + $0x160] sm:$0xff] %vm692_vm2, %v672_v57 }
 0x104   : > { %753 = vst.msk [vmem:[%s1502_s6 + $0x1e0] sm:$0xff] %vm692_vm2, %v688_v59  ;;  %v516_v62 = vpop.f32.mrf.mxu2  ;;  %v439_v1 = vpop.f32.mrf.mxu0 }
 0x105   : > { %706 = vst.msk [vmem:[%s1502_s6 + $0x68] sm:$0xff] %vm692_vm2, %v641_v60  ;;  %v517_v63 = vadd.f32 %v1497_v34, %v516_v62  ;;  %v556_v0 = vpop.f32.mrf.mxu3  ;;  %v440_v3 = vadd.f32 %v1497_v34, %v439_v1  ;;  %v479_v4 = vpop.f32.mrf.mxu1 }
 0x106   : > { %722 = vst.msk [vmem:[%s1502_s6 + $0xe8] sm:$0xff] %vm692_vm2, %v657_v61  ;;  %v557_v2 = vadd.f32 %v1497_v34, %v556_v0  ;;  %v480_v6 = vadd.f32 %v1497_v34, %v479_v4 }
 0x107   : > { %v609_v5 = vmax.f32 %v517_v63, 0.0  ;;  %v578_v8 = vmax.f32 %v440_v3, 0.0 }
 0x108   : > { %v625_v7 = vmax.f32 %v557_v2, 0.0  ;;  %v594_v10 = vmax.f32 %v480_v6, 0.0 }
 0x109   : > { %v673_v9 = vmin.f32 %v609_v5, 6.0  ;;  %v642_v12 = vmin.f32 %v578_v8, 6.0 }
 0x10a   : > { %v689_v11 = vmin.f32 %v625_v7, 6.0  ;;  %v658_v13 = vmin.f32 %v594_v10, 6.0 }
 0x10b   : > { %738 = vst.msk [vmem:[%s1502_s6 + $0x168] sm:$0xff] %vm692_vm2, %v673_v9 }
 0x10c   : > { %754 = vst.msk [vmem:[%s1502_s6 + $0x1e8] sm:$0xff] %vm692_vm2, %v689_v11  ;;  %v519_v14 = vpop.f32.mrf.mxu2  ;;  %v441_v17 = vpop.f32.mrf.mxu0 }
 0x10d   : > { %707 = vst.msk [vmem:[%s1502_s6 + $0x70] sm:$0xff] %vm692_vm2, %v642_v12  ;;  %v520_v15 = vadd.f32 %v1497_v34, %v519_v14  ;;  %v559_v16 = vpop.f32.mrf.mxu3  ;;  %v442_v19 = vadd.f32 %v1497_v34, %v441_v17  ;;  %v481_v20 = vpop.f32.mrf.mxu1 }
 0x10e   : > { %723 = vst.msk [vmem:[%s1502_s6 + $0xf0] sm:$0xff] %vm692_vm2, %v658_v13  ;;  %v560_v18 = vadd.f32 %v1497_v34, %v559_v16  ;;  %v482_v22 = vadd.f32 %v1497_v34, %v481_v20 }
 0x10f   : > { %v610_v21 = vmax.f32 %v520_v15, 0.0  ;;  %v579_v24 = vmax.f32 %v442_v19, 0.0 }
 0x110   : > { %v626_v23 = vmax.f32 %v560_v18, 0.0  ;;  %v595_v26 = vmax.f32 %v482_v22, 0.0 }
 0x111   : > { %v674_v25 = vmin.f32 %v610_v21, 6.0  ;;  %v643_v28 = vmin.f32 %v579_v24, 6.0 }
 0x112   : > { %v690_v27 = vmin.f32 %v626_v23, 6.0  ;;  %v659_v29 = vmin.f32 %v595_v26, 6.0 }
 0x113   : > { %739 = vst.msk [vmem:[%s1502_s6 + $0x170] sm:$0xff] %vm692_vm2, %v674_v25 }
 0x114   : > { %755 = vst.msk [vmem:[%s1502_s6 + $0x1f0] sm:$0xff] %vm692_vm2, %v690_v27  ;;  %v521_v30 = vpop.f32.mrf.mxu2 }
 0x115   : > { %708 = vst.msk [vmem:[%s1502_s6 + $0x78] sm:$0xff] %vm692_vm2, %v643_v28  ;;  %v522_v31 = vadd.f32 %v1497_v34, %v521_v30  ;;  %v561_v32 = vpop.f32.mrf.mxu3 }
 0x116   : > { %724 = vst.msk [vmem:[%s1502_s6 + $0xf8] sm:$0xff] %vm692_vm2, %v659_v29  ;;  %v562_v33 = vadd.f32 %v1497_v34, %v561_v32 }
 0x117   : > { %v611_v35 = vmax.f32 %v522_v31, 0.0 }
 0x118   : > { %v627_v36 = vmax.f32 %v562_v33, 0.0  ;;  %763 = sbr.rel (!%p1381_p4) target bundleno = 349 (0x15d), region = 36 }
 0x119   : > { %v675_v37 = vmin.f32 %v611_v35, 6.0 }
 0x11a   : > { %v691_v38 = vmin.f32 %v627_v36, 6.0 }
 0x11b   : > { %740 = vst.msk [vmem:[%s1502_s6 + $0x178] sm:$0xff] %vm692_vm2, %v675_v37 }
 0x11c   : > { %756 = vst.msk [vmem:[%s1502_s6 + $0x1f8] sm:$0xff] %vm692_vm2, %v691_v38 }
 0x11d   : > { %s1850_s7 = smov (!%p766_p8, %s765_s7), 64 }
 0x11e   : > { %s1138_s12 = sshll.u32 %s1850_s7, 3 }
 0x11f   : > { %p1141_p9 = scmp.eq.s32.totalorder %s1138_s12, 0 }
 0x120   : > { %s1707_s14 = sshrl.u32 (!%p1141_p9), %s1850_s7, 5 }
 0x121   : > { %774 = sbr.rel (%p1141_p9) target bundleno = 349 (0x15d), region = 40  ;;  %p1142_p10 = scmp.le.s32.totalorder (!%p1141_p9), %s1707_s14, 0 }
 0x126   : > { %1053 = sbr.rel (%p1142_p10) target bundleno = 332 (0x14c), region = 116  ;;  %s1841_s15 = smov (!%p1142_p10), %s1701_s11 }
 0x127   : > { %s1842_s17 = smov (!%p1142_p10), %s1502_s6  ;;  %s1716_s18 = smov (!%p1142_p10), 0  }
 0x128   : > { %s1718_s20 = smov (!%p1142_p10), 0  }
 0x12b LB: >> { %v899_v34 = vld [vmem:[%s1310_s17] sm:$0xff]  ;;  %v901_v39 = vld [vmem:[%s1310_s17 + $0x8] sm:$0xff]  ;;  %v903_v40 = vld [vmem:[%s1310_s17 + $0x10] sm:$0xff]  ;;  %s963_s21 = sadd.s32 1, %s1314_s18  ;;  %s893_s20 = sadd.s32 1, %s1318_s20   ;;  %s1318_s20 = sphi %s1718_s20, %s893_s20   ;;  %s1314_s18 = sphi %s1716_s18, %s1845_s18   ;;  %s1310_s17 = sphi %s1842_s17, %s1844_s17   ;;  %s1306_s15 = sphi %s1841_s15, %s1843_s15  }
 0x12c   : >> { %900 = vst [vmem:[%s1306_s15] sm:$0xff] %v899_v34  ;;  %v905_v41 = vld [vmem:[%s1310_s17 + $0x18] sm:$0xff]  ;;  %p964_p11 = scmp.ge.s32.totalorder %s963_s21, %s1707_s14  ;;  %v907_v42 = vld [vmem:[%s1310_s17 + $0x20] sm:$0xff]  ;;  %v909_v43 = vld [vmem:[%s1310_s17 + $0x28] sm:$0xff]  ;;  %p892_p12 = scmp.ge.s32.totalorder %s893_s20, %s1707_s14 }
 0x12d   : >> { %902 = vst [vmem:[%s1306_s15 + $0x8] sm:$0xff] %v901_v39  ;;  %v911_v44 = vld [vmem:[%s1310_s17 + $0x30] sm:$0xff]  ;;  %v913_v45 = vld [vmem:[%s1310_s17 + $0x38] sm:$0xff]  ;;  %v915_v46 = vld [vmem:[%s1310_s17 + $0x40] sm:$0xff] }
 0x12e   : >> { %904 = vst [vmem:[%s1306_s15 + $0x10] sm:$0xff] %v903_v40  ;;  %s1852_s21 = smov (%p964_p11, %s963_s21), 0  ;;  %v917_v47 = vld [vmem:[%s1310_s17 + $0x48] sm:$0xff]  ;;  %v919_v48 = vld [vmem:[%s1310_s17 + $0x50] sm:$0xff]  ;;  %v921_v49 = vld [vmem:[%s1310_s17 + $0x58] sm:$0xff] }
 0x12f   : >> { %906 = vst [vmem:[%s1306_s15 + $0x18] sm:$0xff] %v905_v41  ;;  %s1143_s22 = sshll.u32 %s1852_s21, 8  ;;  %v923_v50 = vld [vmem:[%s1310_s17 + $0x60] sm:$0xff]  ;;  %v925_v51 = vld [vmem:[%s1310_s17 + $0x68] sm:$0xff]  ;;  %v927_v52 = vld [vmem:[%s1310_s17 + $0x70] sm:$0xff]  ;;  %s1845_s18 = smov %s1852_s21 }
 0x130   : >> { %908 = vst [vmem:[%s1306_s15 + $0x20] sm:$0xff] %v907_v42  ;;  %s1750_s23 = scalar_lea.vmem %s1502_s6, %s1143_s22 [#allocation2]   ;;  %s1753_s24 = scalar_lea.vmem %s1701_s11, %s1143_s22   ;;  %v929_v53 = vld [vmem:[%s1310_s17 + $0x78] sm:$0xff]  ;;  %v931_v54 = vld [vmem:[%s1310_s17 + $0x80] sm:$0xff]  ;;  %v933_v55 = vld [vmem:[%s1310_s17 + $0x88] sm:$0xff] }
 0x131   : >> { %910 = vst [vmem:[%s1306_s15 + $0x28] sm:$0xff] %v909_v43  ;;  %v935_v56 = vld [vmem:[%s1310_s17 + $0x90] sm:$0xff]  ;;  %v937_v57 = vld [vmem:[%s1310_s17 + $0x98] sm:$0xff]  ;;  %v939_v58 = vld [vmem:[%s1310_s17 + $0xa0] sm:$0xff] }
 0x132   : >> { %912 = vst [vmem:[%s1306_s15 + $0x30] sm:$0xff] %v911_v44  ;;  %v941_v59 = vld [vmem:[%s1310_s17 + $0xa8] sm:$0xff]  ;;  %v943_v60 = vld [vmem:[%s1310_s17 + $0xb0] sm:$0xff]  ;;  %v945_v61 = vld [vmem:[%s1310_s17 + $0xb8] sm:$0xff] }
 0x133   : >> { %914 = vst [vmem:[%s1306_s15 + $0x38] sm:$0xff] %v913_v45  ;;  %v947_v62 = vld [vmem:[%s1310_s17 + $0xc0] sm:$0xff]  ;;  %v949_v63 = vld [vmem:[%s1310_s17 + $0xc8] sm:$0xff]  ;;  %v951_v0 = vld [vmem:[%s1310_s17 + $0xd0] sm:$0xff] }
 0x134   : >> { %916 = vst [vmem:[%s1306_s15 + $0x40] sm:$0xff] %v915_v46  ;;  %v953_v1 = vld [vmem:[%s1310_s17 + $0xd8] sm:$0xff]  ;;  %v955_v2 = vld [vmem:[%s1310_s17 + $0xe0] sm:$0xff]  ;;  %v957_v3 = vld [vmem:[%s1310_s17 + $0xe8] sm:$0xff] }
 0x135   : >> { %918 = vst [vmem:[%s1306_s15 + $0x48] sm:$0xff] %v917_v47  ;;  %v959_v4 = vld [vmem:[%s1310_s17 + $0xf0] sm:$0xff]  ;;  %v961_v5 = vld [vmem:[%s1310_s17 + $0xf8] sm:$0xff]  ;;  %s1844_s17 = smov %s1750_s23 }
 0x136   : >> { %920 = vst [vmem:[%s1306_s15 + $0x50] sm:$0xff] %v919_v48 }
 0x137   : >> { %922 = vst [vmem:[%s1306_s15 + $0x58] sm:$0xff] %v921_v49 }
 0x138   : >> { %924 = vst [vmem:[%s1306_s15 + $0x60] sm:$0xff] %v923_v50 }
 0x139   : >> { %926 = vst [vmem:[%s1306_s15 + $0x68] sm:$0xff] %v925_v51 }
 0x13a   : >> { %928 = vst [vmem:[%s1306_s15 + $0x70] sm:$0xff] %v927_v52 }
 0x13b   : >> { %930 = vst [vmem:[%s1306_s15 + $0x78] sm:$0xff] %v929_v53 }
 0x13c   : >> { %932 = vst [vmem:[%s1306_s15 + $0x80] sm:$0xff] %v931_v54 }
 0x13d   : >> { %934 = vst [vmem:[%s1306_s15 + $0x88] sm:$0xff] %v933_v55 }
 0x13e   : >> { %936 = vst [vmem:[%s1306_s15 + $0x90] sm:$0xff] %v935_v56 }
 0x13f   : >> { %938 = vst [vmem:[%s1306_s15 + $0x98] sm:$0xff] %v937_v57 }
 0x140   : >> { %940 = vst [vmem:[%s1306_s15 + $0xa0] sm:$0xff] %v939_v58 }
 0x141   : >> { %942 = vst [vmem:[%s1306_s15 + $0xa8] sm:$0xff] %v941_v59 }
 0x142   : >> { %944 = vst [vmem:[%s1306_s15 + $0xb0] sm:$0xff] %v943_v60 }
 0x143   : >> { %946 = vst [vmem:[%s1306_s15 + $0xb8] sm:$0xff] %v945_v61 }
 0x144   : >> { %948 = vst [vmem:[%s1306_s15 + $0xc0] sm:$0xff] %v947_v62 }
 0x145   : >> { %950 = vst [vmem:[%s1306_s15 + $0xc8] sm:$0xff] %v949_v63 }
 0x146   : >> { %952 = vst [vmem:[%s1306_s15 + $0xd0] sm:$0xff] %v951_v0 }
 0x147   : >> { %954 = vst [vmem:[%s1306_s15 + $0xd8] sm:$0xff] %v953_v1  ;;  %895 = sbr.rel (!%p892_p12) target bundleno = 299 (0x12b), region = 122 }
 0x148   : >> { %956 = vst [vmem:[%s1306_s15 + $0xe0] sm:$0xff] %v955_v2 }
 0x149   : >> { %958 = vst [vmem:[%s1306_s15 + $0xe8] sm:$0xff] %v957_v3 }
 0x14a   : >> { %960 = vst [vmem:[%s1306_s15 + $0xf0] sm:$0xff] %v959_v4 }
 0x14b   : >> { %962 = vst [vmem:[%s1306_s15 + $0xf8] sm:$0xff] %v961_v5  ;;  %s1843_s15 = smov %s1753_s24 }
 0x14c PF: > { %s1818_s25 = sand.u32 31, %s1850_s7   ;;  %s1154_s26 = sshll.u32 %s1707_s14, 8 }
 0x14d   : > { %s974_s27 = scalar_lea.vmem %s1502_s6, %s1154_s26 [#allocation2]   ;;  %s976_s28 = scalar_lea.vmem %s1701_s11, %s1154_s26  }
 0x14e   : > { %p1148_p13 = scmp.le.s32.totalorder %s1818_s25, 0 }
 0x14f   : > { %s1320_s29 = smov (!%p1148_p13), %s976_s28   ;;  %s1324_s30 = smov (!%p1148_p13), %s974_s27  }
 0x150   : > { %1067 = sbr.rel (%p1148_p13) target bundleno = 349 (0x15d), region = 127  ;;  %s1328_s4 = smov (!%p1148_p13), 0  }
 0x151   : > { %s1332_s5 = smov (!%p1148_p13), 0  }
 0x155 LB: >> { %v986_v6 = vld [vmem:[%s1326_s30] sm:$0xff]  ;;  %s988_s7 = sadd.s32 1, %s1330_s4  ;;  %s980_s5 = sadd.s32 1, %s1334_s5   ;;  %s1334_s5 = sphi %s1332_s5, %s980_s5   ;;  %s1330_s4 = sphi %s1328_s4, %s1329_s4   ;;  %s1326_s30 = sphi %s1324_s30, %s993_s30   ;;  %s1322_s29 = sphi %s1320_s29, %s994_s29  }
 0x156   : >> { %987 = vst [vmem:[%s1322_s29] sm:$0xff] %v986_v6  ;;  %p989_p0 = scmp.ge.s32.totalorder %s988_s7, %s1818_s25  ;;  %p979_p1 = scmp.ge.s32.totalorder %s980_s5, %s1818_s25 }
 0x158   : >> { %s1854_s7 = smov (%p989_p0, %s988_s7), 0  ;;  %982 = sbr.rel (!%p979_p1) target bundleno = 341 (0x155), region = 133 }
 0x159   : >> { %s1149_s6 = sshll.u32 %s1854_s7, 3  ;;  %s1329_s4 = smov %s1854_s7  }
 0x15a   : >> { %s993_s30 = scalar_lea.vmem %s974_s27, %s1149_s6 [#allocation2]   ;;  %s994_s29 = scalar_lea.vmem %s976_s28, %s1149_s6  }
 0x15d PF: > { %p10_p2 = scmp.ge.s32.totalorder %s1371_s16, 4   ;;  %s1846_s12 = smov %s1298_s13 }
 0x15e   : > { %s1847_s13 = smov %s1379_s19  ;;  %s1848_s14 = smov %s1371_s16 }
 0x15f   :  { %12 = sbr.rel (!%p10_p2) target bundleno = 2 (0x2), region = 144 }

// kernel: hourglass2d_forward.38
= control target key start
LH: loop header
LB: loop body
LE: loop exit
PB: predicated region body
PF: predicated region fallthrough
CT: control target
= control target key end

     0   :  { %s1444_s15 = smov 0   ;;  %s1446_s16 = smov 0   ;;  %s2000_s0 = inlined_call_operand.vmem [shape: f32[544,8], index: 0, kind: input, shape index: {}]   ;;  %s2001_s1 = inlined_call_operand.vmem [shape: bf16[8,4], index: 1, kind: input, shape index: {}]   ;;  %s2002_s2 = inlined_call_operand.vmem [shape: f32[1,4], index: 2, kind: input, shape index: {}]   ;;  %s2003_s3 = inlined_call_operand.vmem [shape: f32[544,4], index: 3, kind: input, shape index: {}]   ;;  %s2004_s4 = inlined_call_operand.vmem [shape: f32[544,4], index: 4, kind: output, shape index: {}]  }
   0x1   :  { %s1448_s17 = smov 0  }
   0x2 LB: > { %s1457_s18 = sadd.s32 4294967295, %s1385_s17   ;;  %s1459_s19 = sadd.s32 1, %s1385_s17   ;;  %s1385_s17 = sphi %s1448_s17, %s2013_s17   ;;  %s1381_s16 = sphi %s1446_s16, %s2012_s16   ;;  %s1377_s15 = sphi %s1444_s15, %s2011_s15  }
   0x3   : > { %s112_s20 = ssub.s32 %s1385_s17, %s1459_s19  ;;  %s115_s21 = sadd.s32 1, %s1381_s16 }
   0x4   : > { %p113_p0 = scmp.eq.s32.totalorder %s112_s20, 0  ;;  %p125_p1 = scmp.ne.s32.totalorder %s1381_s16, %s1377_s15 }
   0x5   : > { %p126_p2 = scmp.eq.s32.totalorder %s1457_s18, 1  ;;  %p1181_p3 = scmp.ge.s32.totalorder %s1385_s17, 1 }
   0x6   : > { %s1467_s22 = scalar_select %p113_p0, %s1381_s16, %s115_s21  }
   0x7   : > { %p1469_p4 = por %p126_p2, %p125_p1  ;;  %p190_p5 = scmp.lt.s32.totalorder %s1385_s17, 3 }
   0x9   : > { %p191_p6 = pnand %p1181_p3, %p190_p5 }
   0xa   : > { %s1477_s26 = sshll.u32 (!%p191_p6), %s1457_s18, 6  ;;  %s225_s6 = sand.u32 (!%p191_p6), 1, %s1377_s15  }
   0xb   : > { %194 = sbr.rel (%p191_p6) target bundleno = 347 (0x15b), region = 36  ;;  %p233_p7 = scmp.lt.s32.totalorder (!%p191_p6), %s1477_s26, 67 }
   0xc   : > { %s1182_s12 = sshll.u32 (!%p191_p6), %s225_s6, 9 }
   0xd   : > { %s1604_s13 = scalar_lea.vmem (!%p191_p6), [#allocation2], %s1182_s12  }
  0x10   : > { %v358_v0 = vld [vmem:[%s2001_s1] sm:$0xf]  ;;  %vm460_vm0 = vcmask 1043456   ;;  %s1481_s27 = scalar_select %p233_p7, %s1477_s26, 67  ;;  %vm363_vm1 = vcmask 64512   ;;  %vm761_vm2 = vcmask 31744  }
  0x11   : > { %v462_v1 = vsel %vm460_vm0, %v358_v0, 0  ;;  %s834_s14 = ssub.s32 (%p1469_p4), 68, %s1477_s26  ;;  %s1236_s15 = sshll.u32 (%p1469_p4), %s1457_s18, 9 }
  0x12   : > { %471 = vmatpush.bf16.msra.mxu0 %v462_v1  ;;  %1239 = vmatpush.bf16.msra.mxu1 %v462_v1  ;;  %s1184_s28 = sshll.u32 %s1481_s27, 3  ;;  %p835_p8 = scmp.lt.s32.totalorder (%p1469_p4), %s834_s14, 64 }
  0x13   : > { %1240 = vmatpush.bf16.msra.mxu2 %v462_v1  ;;  %1241 = vmatpush.bf16.msra.mxu3 %v462_v1  ;;  %s1489_s5 = scalar_lea.vmem %s2000_s0, %s1184_s28  ;;  %s1593_s9 = scalar_lea.vmem %s2003_s3, %s1184_s28 }
  0x14   : > { %v262_v2 = vld [vmem:[%s1489_s5] sm:$0xff]  ;;  %v263_v3 = vld [vmem:[%s1489_s5 + $0x8] sm:$0xff]  ;;  %v264_v14 = vld [vmem:[%s1489_s5 + $0x10] sm:$0xff]  ;;  %s1865_s21 = scalar_lea.vmem (%p1469_p4), %s2004_s4, %s1236_s15  }
  0x15   : > { %v278_v4 = vld [vmem:[%s1489_s5 + $0x80] sm:$0xff]  ;;  %v326_v5 = vpack.c.bf16 %v263_v3, %v262_v2  ;;  %v279_v6 = vld [vmem:[%s1489_s5 + $0x88] sm:$0xff]  ;;  %v265_v15 = vld [vmem:[%s1489_s5 + $0x18] sm:$0xff] }
  0x16   : > { %v294_v7 = vld [vmem:[%s1489_s5 + $0x100] sm:$0xff]  ;;  %v295_v8 = vld [vmem:[%s1489_s5 + $0x108] sm:$0xff]  ;;  %v334_v9 = vpack.c.bf16 %v279_v6, %v278_v4  ;;  %v280_v16 = vld [vmem:[%s1489_s5 + $0x90] sm:$0xff]  ;;  %v327_v22 = vpack.c.bf16 %v265_v15, %v264_v14 }
  0x17   : > { %v342_v10 = vpack.c.bf16 %v295_v8, %v294_v7  ;;  %v310_v11 = vld [vmem:[%s1489_s5 + $0x180] sm:$0xff]  ;;  %v311_v12 = vld [vmem:[%s1489_s5 + $0x188] sm:$0xff]  ;;  %1187 = vmatmul.msk.bf16.vlgmr.msra.gmra.mxu0 %vm363_vm1, %v326_v5  ;;  %v281_v17 = vld [vmem:[%s1489_s5 + $0x98] sm:$0xff] }
  0x18   : > { %v350_v13 = vpack.c.bf16 %v311_v12, %v310_v11  ;;  %1195 = vmatmul.msk.bf16.vlgmr.msra.gmra.mxu1 %vm363_vm1, %v334_v9  ;;  %v296_v18 = vld [vmem:[%s1489_s5 + $0x110] sm:$0xff]  ;;  %v297_v19 = vld [vmem:[%s1489_s5 + $0x118] sm:$0xff]  ;;  %v335_v23 = vpack.c.bf16 %v281_v17, %v280_v16  ;;  %v266_v26 = vld [vmem:[%s1489_s5 + $0x20] sm:$0xff] }
  0x19   : > { %1203 = vmatmul.msk.bf16.vlgmr.msra.gmra.mxu2 %vm363_vm1, %v342_v10  ;;  %v312_v20 = vld [vmem:[%s1489_s5 + $0x190] sm:$0xff]  ;;  %v313_v21 = vld [vmem:[%s1489_s5 + $0x198] sm:$0xff]  ;;  %v343_v24 = vpack.c.bf16 %v297_v19, %v296_v18  ;;  %v267_v27 = vld [vmem:[%s1489_s5 + $0x28] sm:$0xff] }
  0x1a   : > { %1211 = vmatmul.msk.bf16.vlgmr.msra.gmra.mxu3 %vm363_vm1, %v350_v13  ;;  %v351_v25 = vpack.c.bf16 %v313_v21, %v312_v20  ;;  %v282_v28 = vld [vmem:[%s1489_s5 + $0xa0] sm:$0xff]  ;;  %v283_v29 = vld [vmem:[%s1489_s5 + $0xa8] sm:$0xff]  ;;  %v328_v34 = vpack.c.bf16 %v267_v27, %v266_v26  ;;  %v268_v38 = vld [vmem:[%s1489_s5 + $0x30] sm:$0xff] }
  0x1b   : > { %v298_v30 = vld [vmem:[%s1489_s5 + $0x120] sm:$0xff]  ;;  %v299_v31 = vld [vmem:[%s1489_s5 + $0x128] sm:$0xff]  ;;  %v336_v35 = vpack.c.bf16 %v283_v29, %v282_v28  ;;  %v269_v39 = vld [vmem:[%s1489_s5 + $0x38] sm:$0xff] }
  0x1c   : > { %v314_v32 = vld [vmem:[%s1489_s5 + $0x1a0] sm:$0xff]  ;;  %v315_v33 = vld [vmem:[%s1489_s5 + $0x1a8] sm:$0xff]  ;;  %v344_v36 = vpack.c.bf16 %v299_v31, %v298_v30  ;;  %v284_v40 = vld [vmem:[%s1489_s5 + $0xb0] sm:$0xff]  ;;  %v329_v46 = vpack.c.bf16 %v269_v39, %v268_v38 }
  0x1d   : > { %v352_v37 = vpack.c.bf16 %v315_v33, %v314_v32  ;;  %v285_v41 = vld [vmem:[%s1489_s5 + $0xb8] sm:$0xff]  ;;  %v300_v42 = vld [vmem:[%s1489_s5 + $0x130] sm:$0xff]  ;;  %v270_v50 = vld [vmem:[%s1489_s5 + $0x40] sm:$0xff] }
  0x1e   : > { %v301_v43 = vld [vmem:[%s1489_s5 + $0x138] sm:$0xff]  ;;  %v316_v44 = vld [vmem:[%s1489_s5 + $0x1b0] sm:$0xff]  ;;  %v337_v47 = vpack.c.bf16 %v285_v41, %v284_v40  ;;  %v271_v51 = vld [vmem:[%s1489_s5 + $0x48] sm:$0xff] }
  0x1f   : > { %v317_v45 = vld [vmem:[%s1489_s5 + $0x1b8] sm:$0xff]  ;;  %v345_v48 = vpack.c.bf16 %v301_v43, %v300_v42  ;;  %v286_v52 = vld [vmem:[%s1489_s5 + $0xc0] sm:$0xff]  ;;  %v287_v53 = vld [vmem:[%s1489_s5 + $0xc8] sm:$0xff]  ;;  %v330_v58 = vpack.c.bf16 %v271_v51, %v270_v50 }
  0x20   : > { %v353_v49 = vpack.c.bf16 %v317_v45, %v316_v44  ;;  %v302_v54 = vld [vmem:[%s1489_s5 + $0x140] sm:$0xff]  ;;  %v303_v55 = vld [vmem:[%s1489_s5 + $0x148] sm:$0xff]  ;;  %v338_v59 = vpack.c.bf16 %v287_v53, %v286_v52  ;;  %v272_v62 = vld [vmem:[%s1489_s5 + $0x50] sm:$0xff] }
  0x21   : > { %v318_v56 = vld [vmem:[%s1489_s5 + $0x1c0] sm:$0xff]  ;;  %v319_v57 = vld [vmem:[%s1489_s5 + $0x1c8] sm:$0xff]  ;;  %v346_v60 = vpack.c.bf16 %v303_v55, %v302_v54  ;;  %v273_v63 = vld [vmem:[%s1489_s5 + $0x58] sm:$0xff] }
  0x22   : > { %v354_v61 = vpack.c.bf16 %v319_v57, %v318_v56  ;;  %v288_v0 = vld [vmem:[%s1489_s5 + $0xd0] sm:$0xff]  ;;  %v289_v1 = vld [vmem:[%s1489_s5 + $0xd8] sm:$0xff]  ;;  %v331_v6 = vpack.c.bf16 %v273_v63, %v272_v62  ;;  %v274_v10 = vld [vmem:[%s1489_s5 + $0x60] sm:$0xff] }
  0x23   : > { %v304_v2 = vld [vmem:[%s1489_s5 + $0x150] sm:$0xff]  ;;  %v305_v3 = vld [vmem:[%s1489_s5 + $0x158] sm:$0xff]  ;;  %v339_v7 = vpack.c.bf16 %v289_v1, %v288_v0  ;;  %v275_v11 = vld [vmem:[%s1489_s5 + $0x68] sm:$0xff] }
  0x24   : > { %v320_v4 = vld [vmem:[%s1489_s5 + $0x1d0] sm:$0xff]  ;;  %v321_v5 = vld [vmem:[%s1489_s5 + $0x1d8] sm:$0xff]  ;;  %v347_v8 = vpack.c.bf16 %v305_v3, %v304_v2  ;;  %v290_v12 = vld [vmem:[%s1489_s5 + $0xe0] sm:$0xff]  ;;  %v332_v18 = vpack.c.bf16 %v275_v11, %v274_v10 }
  0x25   : > { %v355_v9 = vpack.c.bf16 %v321_v5, %v320_v4  ;;  %v291_v13 = vld [vmem:[%s1489_s5 + $0xe8] sm:$0xff]  ;;  %v306_v14 = vld [vmem:[%s1489_s5 + $0x160] sm:$0xff]  ;;  %v308_v26 = vld [vmem:[%s1489_s5 + $0x170] sm:$0xff] }
  0x26   : > { %v307_v15 = vld [vmem:[%s1489_s5 + $0x168] sm:$0xff]  ;;  %v322_v16 = vld [vmem:[%s1489_s5 + $0x1e0] sm:$0xff]  ;;  %v340_v19 = vpack.c.bf16 %v291_v13, %v290_v12  ;;  %v309_v27 = vld [vmem:[%s1489_s5 + $0x178] sm:$0xff] }
  0x27   : > { %1188 = vmatmul.msk.bf16.gmra.mxu0 %vm363_vm1, %v327_v22  ;;  %v323_v17 = vld [vmem:[%s1489_s5 + $0x1e8] sm:$0xff]  ;;  %v348_v20 = vpack.c.bf16 %v307_v15, %v306_v14  ;;  %v276_v22 = vld [vmem:[%s1489_s5 + $0x70] sm:$0xff]  ;;  %v325_v29 = vld [vmem:[%s1489_s5 + $0x1f8] sm:$0xff]  ;;  %v349_v32 = vpack.c.bf16 %v309_v27, %v308_v26 }
  0x28   : > { %1196 = vmatmul.msk.bf16.gmra.mxu1 %vm363_vm1, %v335_v23  ;;  %v356_v21 = vpack.c.bf16 %v323_v17, %v322_v16  ;;  %v277_v23 = vld [vmem:[%s1489_s5 + $0x78] sm:$0xff]  ;;  %v324_v28 = vld [vmem:[%s1489_s5 + $0x1f0] sm:$0xff]  ;;  %v649_v39 = vld [vmem:[%s1593_s9 + $0x80] sm:$0xff] }
  0x29   : > { %1204 = vmatmul.msk.bf16.gmra.mxu2 %vm363_vm1, %v343_v24  ;;  %v292_v24 = vld [vmem:[%s1489_s5 + $0xf0] sm:$0xff]  ;;  %v333_v30 = vpack.c.bf16 %v277_v23, %v276_v22  ;;  %v357_v33 = vpack.c.bf16 %v325_v29, %v324_v28  ;;  %v665_v44 = vld [vmem:[%s1593_s9 + $0x100] sm:$0xff]  ;;  %v650_v53 = vld [vmem:[%s1593_s9 + $0x88] sm:$0xff] }
  0x2a   : > { %1212 = vmatmul.msk.bf16.gmra.mxu3 %vm363_vm1, %v351_v25  ;;  %v293_v25 = vld [vmem:[%s1489_s5 + $0xf8] sm:$0xff]  ;;  %v682_v63 = vld [vmem:[%s1593_s9 + $0x188] sm:$0xff]  ;;  %v635_v1 = vld [vmem:[%s1593_s9 + $0x10] sm:$0xff] }
  0x2b   : > { %v341_v31 = vpack.c.bf16 %v293_v25, %v292_v24  ;;  %v651_v5 = vld [vmem:[%s1593_s9 + $0x90] sm:$0xff]  ;;  %v636_v17 = vld [vmem:[%s1593_s9 + $0x18] sm:$0xff] }
  0x2c   : > { %v667_v12 = vld [vmem:[%s1593_s9 + $0x110] sm:$0xff]  ;;  %v668_v28 = vld [vmem:[%s1593_s9 + $0x118] sm:$0xff] }
  0x2d   : > { %v683_v15 = vld [vmem:[%s1593_s9 + $0x190] sm:$0xff] }
  0x37   : > { %1189 = vmatmul.msk.bf16.gmra.mxu0 %vm363_vm1, %v328_v34  ;;  %v1598_v34 = vld [vmem:[%s2002_s2] ss:$0 sm:$0xff] }
  0x38   : > { %1197 = vmatmul.msk.bf16.gmra.mxu1 %vm363_vm1, %v336_v35 }
  0x39   : > { %1205 = vmatmul.msk.bf16.gmra.mxu2 %vm363_vm1, %v344_v36  ;;  %v633_v36 = vld [vmem:[%s1593_s9] sm:$0xff] }
  0x3a   : > { %1213 = vmatmul.msk.bf16.gmra.mxu3 %vm363_vm1, %v352_v37 }
  0x47   : > { %1190 = vmatmul.msk.bf16.gmra.mxu0 %vm363_vm1, %v329_v46 }
  0x48   : > { %1198 = vmatmul.msk.bf16.gmra.mxu1 %vm363_vm1, %v337_v47  ;;  %v681_v47 = vld [vmem:[%s1593_s9 + $0x180] sm:$0xff] }
  0x49   : > { %1206 = vmatmul.msk.bf16.gmra.mxu2 %vm363_vm1, %v345_v48 }
  0x4a   : > { %1214 = vmatmul.msk.bf16.gmra.mxu3 %vm363_vm1, %v353_v49  ;;  %v634_v49 = vld [vmem:[%s1593_s9 + $0x8] sm:$0xff] }
  0x57   : > { %1191 = vmatmul.msk.bf16.gmra.mxu0 %vm363_vm1, %v330_v58 }
  0x58   : > { %1199 = vmatmul.msk.bf16.gmra.mxu1 %vm363_vm1, %v338_v59 }
  0x59   : > { %1207 = vmatmul.msk.bf16.gmra.mxu2 %vm363_vm1, %v346_v60  ;;  %v666_v60 = vld [vmem:[%s1593_s9 + $0x108] sm:$0xff] }
  0x5a   : > { %1215 = vmatmul.msk.bf16.gmra.mxu3 %vm363_vm1, %v354_v61 }
  0x67   : > { %1192 = vmatmul.msk.bf16.gmra.mxu0 %vm363_vm1, %v331_v6 }
  0x68   : > { %1200 = vmatmul.msk.bf16.gmra.mxu1 %vm363_vm1, %v339_v7 }
  0x69   : > { %1208 = vmatmul.msk.bf16.gmra.mxu2 %vm363_vm1, %v347_v8 }
  0x6a   : > { %1216 = vmatmul.msk.bf16.gmra.mxu3 %vm363_vm1, %v355_v9 }
  0x77   : > { %1193 = vmatmul.msk.bf16.gmra.mxu0 %vm363_vm1, %v332_v18 }
  0x78   : > { %1201 = vmatmul.msk.bf16.gmra.mxu1 %vm363_vm1, %v340_v19 }
  0x79   : > { %1209 = vmatmul.msk.bf16.gmra.mxu2 %vm363_vm1, %v348_v20 }
  0x7a   : > { %1217 = vmatmul.msk.bf16.gmra.mxu3 %vm363_vm1, %v356_v21  ;;  %v652_v21 = vld [vmem:[%s1593_s9 + $0x98] sm:$0xff] }
  0x87   : > { %1194 = vmatmul.msk.bf16.gmra.mxu0 %vm363_vm1, %v333_v30 }
  0x88   : > { %1202 = vmatmul.msk.bf16.gmra.mxu1 %vm363_vm1, %v341_v31  ;;  %v684_v31 = vld [vmem:[%s1593_s9 + $0x198] sm:$0xff] }
  0x89   : > { %1210 = vmatmul.msk.bf16.gmra.mxu2 %vm363_vm1, %v349_v32 }
  0x8a   : > { %1218 = vmatmul.msk.bf16.gmra.mxu3 %vm363_vm1, %v357_v33  ;;  %v637_v33 = vld [vmem:[%s1593_s9 + $0x20] sm:$0xff] }
  0x94   : > { %v473_v35 = vpop.f32.mrf.mxu0 }
  0x95   : > { %v474_v37 = vadd.f32 %v1598_v34, %v473_v35  ;;  %v513_v38 = vpop.f32.mrf.mxu1 }
  0x96   : > { %v514_v40 = vadd.f32 %v1598_v34, %v513_v38  ;;  %v653_v38 = vld [vmem:[%s1593_s9 + $0xa0] sm:$0xff] }
  0x97   : > { %v697_v41 = vadd.f32 %v633_v36, %v474_v37 }
  0x98   : > { %v713_v42 = vadd.f32 %v649_v39, %v514_v40 }
  0x99   : > { %762 = vst.msk [vmem:[%s1604_s13] sm:$0xff] %vm761_vm2, %v697_v41 }
  0x9a   : > { %778 = vst.msk [vmem:[%s1604_s13 + $0x80] sm:$0xff] %vm761_vm2, %v713_v42 }
  0x9c   : > { %v553_v43 = vpop.f32.mrf.mxu2  ;;  %v475_v48 = vpop.f32.mrf.mxu0 }
  0x9d   : > { %v554_v45 = vadd.f32 %v1598_v34, %v553_v43  ;;  %v593_v46 = vpop.f32.mrf.mxu3  ;;  %v476_v51 = vadd.f32 %v1598_v34, %v475_v48  ;;  %v515_v52 = vpop.f32.mrf.mxu1  ;;  %v685_v48 = vld [vmem:[%s1593_s9 + $0x1a0] sm:$0xff] }
  0x9e   : > { %v594_v50 = vadd.f32 %v1598_v34, %v593_v46  ;;  %v516_v55 = vadd.f32 %v1598_v34, %v515_v52 }
  0x9f   : > { %v729_v54 = vadd.f32 %v665_v44, %v554_v45  ;;  %v698_v57 = vadd.f32 %v634_v49, %v476_v51  ;;  %v669_v45 = vld [vmem:[%s1593_s9 + $0x120] sm:$0xff] }
  0xa0   : > { %v745_v56 = vadd.f32 %v681_v47, %v594_v50  ;;  %v714_v58 = vadd.f32 %v650_v53, %v516_v55  ;;  %v638_v50 = vld [vmem:[%s1593_s9 + $0x28] sm:$0xff] }
  0xa1   : > { %794 = vst.msk [vmem:[%s1604_s13 + $0x100] sm:$0xff] %vm761_vm2, %v729_v54  ;;  %v654_v54 = vld [vmem:[%s1593_s9 + $0xa8] sm:$0xff] }
  0xa2   : > { %810 = vst.msk [vmem:[%s1604_s13 + $0x180] sm:$0xff] %vm761_vm2, %v745_v56 }
  0xa3   : > { %763 = vst.msk [vmem:[%s1604_s13 + $0x8] sm:$0xff] %vm761_vm2, %v698_v57 }
  0xa4   : > { %779 = vst.msk [vmem:[%s1604_s13 + $0x88] sm:$0xff] %vm761_vm2, %v714_v58  ;;  %v555_v59 = vpop.f32.mrf.mxu2  ;;  %v478_v0 = vpop.f32.mrf.mxu0 }
  0xa5   : > { %v556_v61 = vadd.f32 %v1598_v34, %v555_v59  ;;  %v595_v62 = vpop.f32.mrf.mxu3  ;;  %v479_v3 = vadd.f32 %v1598_v34, %v478_v0  ;;  %v518_v4 = vpop.f32.mrf.mxu1  ;;  %v686_v0 = vld [vmem:[%s1593_s9 + $0x1a8] sm:$0xff] }
  0xa6   : > { %v596_v2 = vadd.f32 %v1598_v34, %v595_v62  ;;  %v519_v7 = vadd.f32 %v1598_v34, %v518_v4 }
  0xa7   : > { %v730_v6 = vadd.f32 %v666_v60, %v556_v61  ;;  %v699_v9 = vadd.f32 %v635_v1, %v479_v3  ;;  %v670_v61 = vld [vmem:[%s1593_s9 + $0x128] sm:$0xff] }
  0xa8   : > { %v746_v8 = vadd.f32 %v682_v63, %v596_v2  ;;  %v715_v10 = vadd.f32 %v651_v5, %v519_v7  ;;  %v639_v2 = vld [vmem:[%s1593_s9 + $0x30] sm:$0xff] }
  0xa9   : > { %795 = vst.msk [vmem:[%s1604_s13 + $0x108] sm:$0xff] %vm761_vm2, %v730_v6  ;;  %v655_v6 = vld [vmem:[%s1593_s9 + $0xb0] sm:$0xff] }
  0xaa   : > { %811 = vst.msk [vmem:[%s1604_s13 + $0x188] sm:$0xff] %vm761_vm2, %v746_v8 }
  0xab   : > { %764 = vst.msk [vmem:[%s1604_s13 + $0x10] sm:$0xff] %vm761_vm2, %v699_v9 }
  0xac   : > { %780 = vst.msk [vmem:[%s1604_s13 + $0x90] sm:$0xff] %vm761_vm2, %v715_v10  ;;  %v558_v11 = vpop.f32.mrf.mxu2  ;;  %v480_v16 = vpop.f32.mrf.mxu0 }
  0xad   : > { %v559_v13 = vadd.f32 %v1598_v34, %v558_v11  ;;  %v598_v14 = vpop.f32.mrf.mxu3  ;;  %v481_v19 = vadd.f32 %v1598_v34, %v480_v16  ;;  %v520_v20 = vpop.f32.mrf.mxu1  ;;  %v687_v16 = vld [vmem:[%s1593_s9 + $0x1b0] sm:$0xff] }
  0xae   : > { %v599_v18 = vadd.f32 %v1598_v34, %v598_v14  ;;  %v521_v23 = vadd.f32 %v1598_v34, %v520_v20 }
  0xaf   : > { %v731_v22 = vadd.f32 %v667_v12, %v559_v13  ;;  %v700_v25 = vadd.f32 %v636_v17, %v481_v19  ;;  %v671_v13 = vld [vmem:[%s1593_s9 + $0x130] sm:$0xff] }
  0xb0   : > { %v747_v24 = vadd.f32 %v683_v15, %v599_v18  ;;  %v716_v26 = vadd.f32 %v652_v21, %v521_v23  ;;  %v640_v18 = vld [vmem:[%s1593_s9 + $0x38] sm:$0xff] }
  0xb1   : > { %796 = vst.msk [vmem:[%s1604_s13 + $0x110] sm:$0xff] %vm761_vm2, %v731_v22  ;;  %v656_v22 = vld [vmem:[%s1593_s9 + $0xb8] sm:$0xff] }
  0xb2   : > { %812 = vst.msk [vmem:[%s1604_s13 + $0x190] sm:$0xff] %vm761_vm2, %v747_v24 }
  0xb3   : > { %765 = vst.msk [vmem:[%s1604_s13 + $0x18] sm:$0xff] %vm761_vm2, %v700_v25 }
  0xb4   : > { %781 = vst.msk [vmem:[%s1604_s13 + $0x98] sm:$0xff] %vm761_vm2, %v716_v26  ;;  %v560_v27 = vpop.f32.mrf.mxu2  ;;  %v483_v32 = vpop.f32.mrf.mxu0 }
  0xb5   : > { %v561_v29 = vadd.f32 %v1598_v34, %v560_v27  ;;  %v600_v30 = vpop.f32.mrf.mxu3  ;;  %v484_v36 = vadd.f32 %v1598_v34, %v483_v32  ;;  %v523_v37 = vpop.f32.mrf.mxu1  ;;  %v688_v32 = vld [vmem:[%s1593_s9 + $0x1b8] sm:$0xff] }
  0xb6   : > { %v601_v35 = vadd.f32 %v1598_v34, %v600_v30  ;;  %v524_v40 = vadd.f32 %v1598_v34, %v523_v37 }
  0xb7   : > { %v732_v39 = vadd.f32 %v668_v28, %v561_v29  ;;  %v701_v42 = vadd.f32 %v637_v33, %v484_v36  ;;  %v672_v29 = vld [vmem:[%s1593_s9 + $0x138] sm:$0xff] }
  0xb8   : > { %v748_v41 = vadd.f32 %v684_v31, %v601_v35  ;;  %v717_v43 = vadd.f32 %v653_v38, %v524_v40  ;;  %v641_v35 = vld [vmem:[%s1593_s9 + $0x40] sm:$0xff] }
  0xb9   : > { %797 = vst.msk [vmem:[%s1604_s13 + $0x118] sm:$0xff] %vm761_vm2, %v732_v39  ;;  %v657_v39 = vld [vmem:[%s1593_s9 + $0xc0] sm:$0xff] }
  0xba   : > { %813 = vst.msk [vmem:[%s1604_s13 + $0x198] sm:$0xff] %vm761_vm2, %v748_v41 }
  0xbb   : > { %766 = vst.msk [vmem:[%s1604_s13 + $0x20] sm:$0xff] %vm761_vm2, %v701_v42 }
  0xbc   : > { %782 = vst.msk [vmem:[%s1604_s13 + $0xa0] sm:$0xff] %vm761_vm2, %v717_v43  ;;  %v563_v44 = vpop.f32.mrf.mxu2  ;;  %v485_v49 = vpop.f32.mrf.mxu0 }
  0xbd   : > { %v564_v46 = vadd.f32 %v1598_v34, %v563_v44  ;;  %v603_v47 = vpop.f32.mrf.mxu3  ;;  %v486_v52 = vadd.f32 %v1598_v34, %v485_v49  ;;  %v525_v53 = vpop.f32.mrf.mxu1  ;;  %v689_v49 = vld [vmem:[%s1593_s9 + $0x1c0] sm:$0xff] }
  0xbe   : > { %v604_v51 = vadd.f32 %v1598_v34, %v603_v47  ;;  %v526_v56 = vadd.f32 %v1598_v34, %v525_v53 }
  0xbf   : > { %v733_v55 = vadd.f32 %v669_v45, %v564_v46  ;;  %v702_v58 = vadd.f32 %v638_v50, %v486_v52  ;;  %v673_v46 = vld [vmem:[%s1593_s9 + $0x140] sm:$0xff] }
  0xc0   : > { %v749_v57 = vadd.f32 %v685_v48, %v604_v51  ;;  %v718_v59 = vadd.f32 %v654_v54, %v526_v56  ;;  %v642_v51 = vld [vmem:[%s1593_s9 + $0x48] sm:$0xff] }
  0xc1   : > { %798 = vst.msk [vmem:[%s1604_s13 + $0x120] sm:$0xff] %vm761_vm2, %v733_v55  ;;  %v658_v55 = vld [vmem:[%s1593_s9 + $0xc8] sm:$0xff] }
  0xc2   : > { %814 = vst.msk [vmem:[%s1604_s13 + $0x1a0] sm:$0xff] %vm761_vm2, %v749_v57 }
  0xc3   : > { %767 = vst.msk [vmem:[%s1604_s13 + $0x28] sm:$0xff] %vm761_vm2, %v702_v58 }
  0xc4   : > { %783 = vst.msk [vmem:[%s1604_s13 + $0xa8] sm:$0xff] %vm761_vm2, %v718_v59  ;;  %v565_v60 = vpop.f32.mrf.mxu2  ;;  %v488_v1 = vpop.f32.mrf.mxu0 }
  0xc5   : > { %v566_v62 = vadd.f32 %v1598_v34, %v565_v60  ;;  %v605_v63 = vpop.f32.mrf.mxu3  ;;  %v489_v4 = vadd.f32 %v1598_v34, %v488_v1  ;;  %v528_v5 = vpop.f32.mrf.mxu1  ;;  %v690_v1 = vld [vmem:[%s1593_s9 + $0x1c8] sm:$0xff] }
  0xc6   : > { %v606_v3 = vadd.f32 %v1598_v34, %v605_v63  ;;  %v529_v8 = vadd.f32 %v1598_v34, %v528_v5 }
  0xc7   : > { %v734_v7 = vadd.f32 %v670_v61, %v566_v62  ;;  %v703_v10 = vadd.f32 %v639_v2, %v489_v4  ;;  %v674_v62 = vld [vmem:[%s1593_s9 + $0x148] sm:$0xff] }
  0xc8   : > { %v750_v9 = vadd.f32 %v686_v0, %v606_v3  ;;  %v719_v11 = vadd.f32 %v655_v6, %v529_v8  ;;  %v643_v3 = vld [vmem:[%s1593_s9 + $0x50] sm:$0xff] }
  0xc9   : > { %799 = vst.msk [vmem:[%s1604_s13 + $0x128] sm:$0xff] %vm761_vm2, %v734_v7  ;;  %v659_v7 = vld [vmem:[%s1593_s9 + $0xd0] sm:$0xff] }
  0xca   : > { %815 = vst.msk [vmem:[%s1604_s13 + $0x1a8] sm:$0xff] %vm761_vm2, %v750_v9 }
  0xcb   : > { %768 = vst.msk [vmem:[%s1604_s13 + $0x30] sm:$0xff] %vm761_vm2, %v703_v10 }
  0xcc   : > { %784 = vst.msk [vmem:[%s1604_s13 + $0xb0] sm:$0xff] %vm761_vm2, %v719_v11  ;;  %v568_v12 = vpop.f32.mrf.mxu2  ;;  %v490_v17 = vpop.f32.mrf.mxu0 }
  0xcd   : > { %v569_v14 = vadd.f32 %v1598_v34, %v568_v12  ;;  %v608_v15 = vpop.f32.mrf.mxu3  ;;  %v491_v20 = vadd.f32 %v1598_v34, %v490_v17  ;;  %v530_v21 = vpop.f32.mrf.mxu1  ;;  %v691_v17 = vld [vmem:[%s1593_s9 + $0x1d0] sm:$0xff] }
  0xce   : > { %v609_v19 = vadd.f32 %v1598_v34, %v608_v15  ;;  %v531_v24 = vadd.f32 %v1598_v34, %v530_v21 }
  0xcf   : > { %v735_v23 = vadd.f32 %v671_v13, %v569_v14  ;;  %v704_v26 = vadd.f32 %v640_v18, %v491_v20  ;;  %v675_v14 = vld [vmem:[%s1593_s9 + $0x150] sm:$0xff] }
  0xd0   : > { %v751_v25 = vadd.f32 %v687_v16, %v609_v19  ;;  %v720_v27 = vadd.f32 %v656_v22, %v531_v24  ;;  %v644_v19 = vld [vmem:[%s1593_s9 + $0x58] sm:$0xff] }
  0xd1   : > { %800 = vst.msk [vmem:[%s1604_s13 + $0x130] sm:$0xff] %vm761_vm2, %v735_v23  ;;  %v660_v23 = vld [vmem:[%s1593_s9 + $0xd8] sm:$0xff] }
  0xd2   : > { %816 = vst.msk [vmem:[%s1604_s13 + $0x1b0] sm:$0xff] %vm761_vm2, %v751_v25 }
  0xd3   : > { %769 = vst.msk [vmem:[%s1604_s13 + $0x38] sm:$0xff] %vm761_vm2, %v704_v26 }
  0xd4   : > { %785 = vst.msk [vmem:[%s1604_s13 + $0xb8] sm:$0xff] %vm761_vm2, %v720_v27  ;;  %v570_v28 = vpop.f32.mrf.mxu2  ;;  %v493_v33 = vpop.f32.mrf.mxu0 }
  0xd5   : > { %v571_v30 = vadd.f32 %v1598_v34, %v570_v28  ;;  %v610_v31 = vpop.f32.mrf.mxu3  ;;  %v494_v37 = vadd.f32 %v1598_v34, %v493_v33  ;;  %v533_v38 = vpop.f32.mrf.mxu1  ;;  %v692_v33 = vld [vmem:[%s1593_s9 + $0x1d8] sm:$0xff] }
  0xd6   : > { %v611_v36 = vadd.f32 %v1598_v34, %v610_v31  ;;  %v534_v41 = vadd.f32 %v1598_v34, %v533_v38 }
  0xd7   : > { %v736_v40 = vadd.f32 %v672_v29, %v571_v30  ;;  %v705_v43 = vadd.f32 %v641_v35, %v494_v37  ;;  %v676_v30 = vld [vmem:[%s1593_s9 + $0x158] sm:$0xff] }
  0xd8   : > { %v752_v42 = vadd.f32 %v688_v32, %v611_v36  ;;  %v721_v44 = vadd.f32 %v657_v39, %v534_v41  ;;  %v645_v36 = vld [vmem:[%s1593_s9 + $0x60] sm:$0xff] }
  0xd9   : > { %801 = vst.msk [vmem:[%s1604_s13 + $0x138] sm:$0xff] %vm761_vm2, %v736_v40  ;;  %v661_v40 = vld [vmem:[%s1593_s9 + $0xe0] sm:$0xff] }
  0xda   : > { %817 = vst.msk [vmem:[%s1604_s13 + $0x1b8] sm:$0xff] %vm761_vm2, %v752_v42 }
  0xdb   : > { %770 = vst.msk [vmem:[%s1604_s13 + $0x40] sm:$0xff] %vm761_vm2, %v705_v43 }
  0xdc   : > { %786 = vst.msk [vmem:[%s1604_s13 + $0xc0] sm:$0xff] %vm761_vm2, %v721_v44  ;;  %v573_v45 = vpop.f32.mrf.mxu2  ;;  %v495_v50 = vpop.f32.mrf.mxu0 }
  0xdd   : > { %v574_v47 = vadd.f32 %v1598_v34, %v573_v45  ;;  %v613_v48 = vpop.f32.mrf.mxu3  ;;  %v496_v53 = vadd.f32 %v1598_v34, %v495_v50  ;;  %v535_v54 = vpop.f32.mrf.mxu1  ;;  %v693_v50 = vld [vmem:[%s1593_s9 + $0x1e0] sm:$0xff] }
  0xde   : > { %v614_v52 = vadd.f32 %v1598_v34, %v613_v48  ;;  %v536_v57 = vadd.f32 %v1598_v34, %v535_v54 }
  0xdf   : > { %v737_v56 = vadd.f32 %v673_v46, %v574_v47  ;;  %v706_v59 = vadd.f32 %v642_v51, %v496_v53  ;;  %v677_v47 = vld [vmem:[%s1593_s9 + $0x160] sm:$0xff] }
  0xe0   : > { %v753_v58 = vadd.f32 %v689_v49, %v614_v52  ;;  %v722_v60 = vadd.f32 %v658_v55, %v536_v57  ;;  %v646_v52 = vld [vmem:[%s1593_s9 + $0x68] sm:$0xff] }
  0xe1   : > { %802 = vst.msk [vmem:[%s1604_s13 + $0x140] sm:$0xff] %vm761_vm2, %v737_v56  ;;  %v662_v56 = vld [vmem:[%s1593_s9 + $0xe8] sm:$0xff] }
  0xe2   : > { %818 = vst.msk [vmem:[%s1604_s13 + $0x1c0] sm:$0xff] %vm761_vm2, %v753_v58 }
  0xe3   : > { %771 = vst.msk [vmem:[%s1604_s13 + $0x48] sm:$0xff] %vm761_vm2, %v706_v59 }
  0xe4   : > { %787 = vst.msk [vmem:[%s1604_s13 + $0xc8] sm:$0xff] %vm761_vm2, %v722_v60  ;;  %v575_v61 = vpop.f32.mrf.mxu2  ;;  %v498_v2 = vpop.f32.mrf.mxu0 }
  0xe5   : > { %v576_v63 = vadd.f32 %v1598_v34, %v575_v61  ;;  %v615_v0 = vpop.f32.mrf.mxu3  ;;  %v499_v5 = vadd.f32 %v1598_v34, %v498_v2  ;;  %v538_v6 = vpop.f32.mrf.mxu1  ;;  %v694_v2 = vld [vmem:[%s1593_s9 + $0x1e8] sm:$0xff] }
  0xe6   : > { %v616_v4 = vadd.f32 %v1598_v34, %v615_v0  ;;  %v539_v9 = vadd.f32 %v1598_v34, %v538_v6 }
  0xe7   : > { %v738_v8 = vadd.f32 %v674_v62, %v576_v63  ;;  %v707_v11 = vadd.f32 %v643_v3, %v499_v5  ;;  %v678_v63 = vld [vmem:[%s1593_s9 + $0x168] sm:$0xff] }
  0xe8   : > { %v754_v10 = vadd.f32 %v690_v1, %v616_v4  ;;  %v723_v12 = vadd.f32 %v659_v7, %v539_v9  ;;  %v647_v4 = vld [vmem:[%s1593_s9 + $0x70] sm:$0xff] }
  0xe9   : > { %803 = vst.msk [vmem:[%s1604_s13 + $0x148] sm:$0xff] %vm761_vm2, %v738_v8  ;;  %v663_v8 = vld [vmem:[%s1593_s9 + $0xf0] sm:$0xff] }
  0xea   : > { %819 = vst.msk [vmem:[%s1604_s13 + $0x1c8] sm:$0xff] %vm761_vm2, %v754_v10 }
  0xeb   : > { %772 = vst.msk [vmem:[%s1604_s13 + $0x50] sm:$0xff] %vm761_vm2, %v707_v11 }
  0xec   : > { %788 = vst.msk [vmem:[%s1604_s13 + $0xd0] sm:$0xff] %vm761_vm2, %v723_v12  ;;  %v578_v13 = vpop.f32.mrf.mxu2  ;;  %v500_v18 = vpop.f32.mrf.mxu0 }
  0xed   : > { %v579_v15 = vadd.f32 %v1598_v34, %v578_v13  ;;  %v618_v16 = vpop.f32.mrf.mxu3  ;;  %v501_v21 = vadd.f32 %v1598_v34, %v500_v18  ;;  %v540_v22 = vpop.f32.mrf.mxu1  ;;  %v695_v18 = vld [vmem:[%s1593_s9 + $0x1f0] sm:$0xff] }
  0xee   : > { %v619_v20 = vadd.f32 %v1598_v34, %v618_v16  ;;  %v541_v25 = vadd.f32 %v1598_v34, %v540_v22 }
  0xef   : > { %v739_v24 = vadd.f32 %v675_v14, %v579_v15  ;;  %v708_v27 = vadd.f32 %v644_v19, %v501_v21  ;;  %v679_v15 = vld [vmem:[%s1593_s9 + $0x170] sm:$0xff] }
  0xf0   : > { %v755_v26 = vadd.f32 %v691_v17, %v619_v20  ;;  %v724_v28 = vadd.f32 %v660_v23, %v541_v25  ;;  %v648_v20 = vld [vmem:[%s1593_s9 + $0x78] sm:$0xff] }
  0xf1   : > { %804 = vst.msk [vmem:[%s1604_s13 + $0x150] sm:$0xff] %vm761_vm2, %v739_v24  ;;  %v664_v24 = vld [vmem:[%s1593_s9 + $0xf8] sm:$0xff] }
  0xf2   : > { %820 = vst.msk [vmem:[%s1604_s13 + $0x1d0] sm:$0xff] %vm761_vm2, %v755_v26 }
  0xf3   : > { %773 = vst.msk [vmem:[%s1604_s13 + $0x58] sm:$0xff] %vm761_vm2, %v708_v27 }
  0xf4   : > { %789 = vst.msk [vmem:[%s1604_s13 + $0xd8] sm:$0xff] %vm761_vm2, %v724_v28  ;;  %v580_v29 = vpop.f32.mrf.mxu2  ;;  %v503_v35 = vpop.f32.mrf.mxu0 }
  0xf5   : > { %v581_v31 = vadd.f32 %v1598_v34, %v580_v29  ;;  %v620_v32 = vpop.f32.mrf.mxu3  ;;  %v504_v38 = vadd.f32 %v1598_v34, %v503_v35  ;;  %v543_v39 = vpop.f32.mrf.mxu1  ;;  %v696_v35 = vld [vmem:[%s1593_s9 + $0x1f8] sm:$0xff] }
  0xf6   : > { %v621_v37 = vadd.f32 %v1598_v34, %v620_v32  ;;  %v544_v42 = vadd.f32 %v1598_v34, %v543_v39 }
  0xf7   : > { %v740_v41 = vadd.f32 %v676_v30, %v581_v31  ;;  %v709_v44 = vadd.f32 %v645_v36, %v504_v38  ;;  %v680_v31 = vld [vmem:[%s1593_s9 + $0x178] sm:$0xff] }
  0xf8   : > { %v756_v43 = vadd.f32 %v692_v33, %v621_v37  ;;  %v725_v45 = vadd.f32 %v661_v40, %v544_v42 }
  0xf9   : > { %805 = vst.msk [vmem:[%s1604_s13 + $0x158] sm:$0xff] %vm761_vm2, %v740_v41 }
  0xfa   : > { %821 = vst.msk [vmem:[%s1604_s13 + $0x1d8] sm:$0xff] %vm761_vm2, %v756_v43 }
  0xfb   : > { %774 = vst.msk [vmem:[%s1604_s13 + $0x60] sm:$0xff] %vm761_vm2, %v709_v44 }
  0xfc   : > { %790 = vst.msk [vmem:[%s1604_s13 + $0xe0] sm:$0xff] %vm761_vm2, %v725_v45  ;;  %v583_v46 = vpop.f32.mrf.mxu2  ;;  %v505_v51 = vpop.f32.mrf.mxu0 }
  0xfd   : > { %v584_v48 = vadd.f32 %v1598_v34, %v583_v46  ;;  %v623_v49 = vpop.f32.mrf.mxu3  ;;  %v506_v54 = vadd.f32 %v1598_v34, %v505_v51  ;;  %v545_v55 = vpop.f32.mrf.mxu1 }
  0xfe   : > { %v624_v53 = vadd.f32 %v1598_v34, %v623_v49  ;;  %v546_v58 = vadd.f32 %v1598_v34, %v545_v55 }
  0xff   : > { %v741_v57 = vadd.f32 %v677_v47, %v584_v48  ;;  %v710_v60 = vadd.f32 %v646_v52, %v506_v54 }
 0x100   : > { %v757_v59 = vadd.f32 %v693_v50, %v624_v53  ;;  %v726_v61 = vadd.f32 %v662_v56, %v546_v58 }
 0x101   : > { %806 = vst.msk [vmem:[%s1604_s13 + $0x160] sm:$0xff] %vm761_vm2, %v741_v57 }
 0x102   : > { %822 = vst.msk [vmem:[%s1604_s13 + $0x1e0] sm:$0xff] %vm761_vm2, %v757_v59 }
 0x103   : > { %775 = vst.msk [vmem:[%s1604_s13 + $0x68] sm:$0xff] %vm761_vm2, %v710_v60 }
 0x104   : > { %791 = vst.msk [vmem:[%s1604_s13 + $0xe8] sm:$0xff] %vm761_vm2, %v726_v61  ;;  %v585_v62 = vpop.f32.mrf.mxu2  ;;  %v508_v3 = vpop.f32.mrf.mxu0 }
 0x105   : > { %v586_v0 = vadd.f32 %v1598_v34, %v585_v62  ;;  %v625_v1 = vpop.f32.mrf.mxu3  ;;  %v509_v6 = vadd.f32 %v1598_v34, %v508_v3  ;;  %v548_v7 = vpop.f32.mrf.mxu1 }
 0x106   : > { %v626_v5 = vadd.f32 %v1598_v34, %v625_v1  ;;  %v549_v10 = vadd.f32 %v1598_v34, %v548_v7 }
 0x107   : > { %v742_v9 = vadd.f32 %v678_v63, %v586_v0  ;;  %v711_v12 = vadd.f32 %v647_v4, %v509_v6 }
 0x108   : > { %v758_v11 = vadd.f32 %v694_v2, %v626_v5  ;;  %v727_v13 = vadd.f32 %v663_v8, %v549_v10 }
 0x109   : > { %807 = vst.msk [vmem:[%s1604_s13 + $0x168] sm:$0xff] %vm761_vm2, %v742_v9 }
 0x10a   : > { %823 = vst.msk [vmem:[%s1604_s13 + $0x1e8] sm:$0xff] %vm761_vm2, %v758_v11 }
 0x10b   : > { %776 = vst.msk [vmem:[%s1604_s13 + $0x70] sm:$0xff] %vm761_vm2, %v711_v12 }
 0x10c   : > { %792 = vst.msk [vmem:[%s1604_s13 + $0xf0] sm:$0xff] %vm761_vm2, %v727_v13  ;;  %v588_v14 = vpop.f32.mrf.mxu2  ;;  %v510_v19 = vpop.f32.mrf.mxu0 }
 0x10d   : > { %v589_v16 = vadd.f32 %v1598_v34, %v588_v14  ;;  %v628_v17 = vpop.f32.mrf.mxu3  ;;  %v511_v22 = vadd.f32 %v1598_v34, %v510_v19  ;;  %v550_v23 = vpop.f32.mrf.mxu1 }
 0x10e   : > { %v629_v21 = vadd.f32 %v1598_v34, %v628_v17  ;;  %v551_v26 = vadd.f32 %v1598_v34, %v550_v23 }
 0x10f   : > { %v743_v25 = vadd.f32 %v679_v15, %v589_v16  ;;  %v712_v28 = vadd.f32 %v648_v20, %v511_v22 }
 0x110   : > { %v759_v27 = vadd.f32 %v695_v18, %v629_v21  ;;  %v728_v29 = vadd.f32 %v664_v24, %v551_v26 }
 0x111   : > { %808 = vst.msk [vmem:[%s1604_s13 + $0x170] sm:$0xff] %vm761_vm2, %v743_v25 }
 0x112   : > { %824 = vst.msk [vmem:[%s1604_s13 + $0x1f0] sm:$0xff] %vm761_vm2, %v759_v27 }
 0x113   : > { %777 = vst.msk [vmem:[%s1604_s13 + $0x78] sm:$0xff] %vm761_vm2, %v712_v28 }
 0x114   : > { %793 = vst.msk [vmem:[%s1604_s13 + $0xf8] sm:$0xff] %vm761_vm2, %v728_v29  ;;  %v590_v30 = vpop.f32.mrf.mxu2 }
 0x115   : > { %v591_v32 = vadd.f32 %v1598_v34, %v590_v30  ;;  %v630_v33 = vpop.f32.mrf.mxu3 }
 0x116   : > { %v631_v36 = vadd.f32 %v1598_v34, %v630_v33  ;;  %832 = sbr.rel (!%p1469_p4) target bundleno = 347 (0x15b), region = 40 }
 0x117   : > { %v744_v37 = vadd.f32 %v680_v31, %v591_v32 }
 0x118   : > { %v760_v38 = vadd.f32 %v696_v35, %v631_v36 }
 0x119   : > { %809 = vst.msk [vmem:[%s1604_s13 + $0x178] sm:$0xff] %vm761_vm2, %v744_v37 }
 0x11a   : > { %825 = vst.msk [vmem:[%s1604_s13 + $0x1f8] sm:$0xff] %vm761_vm2, %v760_v38 }
 0x11b   : > { %s2015_s14 = smov (!%p835_p8, %s834_s14), 64 }
 0x11c   : > { %s1221_s24 = sshll.u32 %s2015_s14, 3 }
 0x11d   : > { %p1224_p9 = scmp.eq.s32.totalorder %s1221_s24, 0 }
 0x11e   : > { %s1871_s25 = sshrl.u32 (!%p1224_p9), %s2015_s14, 5 }
 0x11f   : > { %843 = sbr.rel (%p1224_p9) target bundleno = 347 (0x15b), region = 44  ;;  %p1225_p10 = scmp.le.s32.totalorder (!%p1224_p9), %s1871_s25, 0 }
 0x124   : > { %1128 = sbr.rel (%p1225_p10) target bundleno = 330 (0x14a), region = 123  ;;  %s2006_s18 = smov (!%p1225_p10), %s1865_s21 }
 0x125   : > { %s2007_s23 = smov (!%p1225_p10), %s1604_s13  ;;  %s1880_s26 = smov (!%p1225_p10), 0  }
 0x126   : > { %s1882_s27 = smov (!%p1225_p10), 0  }
 0x129 LB: >> { %v968_v34 = vld [vmem:[%s1393_s23] sm:$0xff]  ;;  %v970_v39 = vld [vmem:[%s1393_s23 + $0x8] sm:$0xff]  ;;  %v972_v40 = vld [vmem:[%s1393_s23 + $0x10] sm:$0xff]  ;;  %s1032_s28 = sadd.s32 1, %s1397_s26  ;;  %s962_s27 = sadd.s32 1, %s1401_s27   ;;  %s1401_s27 = sphi %s1882_s27, %s962_s27   ;;  %s1397_s26 = sphi %s1880_s26, %s2010_s26   ;;  %s1393_s23 = sphi %s2007_s23, %s2009_s23   ;;  %s1389_s18 = sphi %s2006_s18, %s2008_s18  }
 0x12a   : >> { %969 = vst [vmem:[%s1389_s18] sm:$0xff] %v968_v34  ;;  %v974_v41 = vld [vmem:[%s1393_s23 + $0x18] sm:$0xff]  ;;  %p1033_p11 = scmp.ge.s32.totalorder %s1032_s28, %s1871_s25  ;;  %v976_v42 = vld [vmem:[%s1393_s23 + $0x20] sm:$0xff]  ;;  %v978_v43 = vld [vmem:[%s1393_s23 + $0x28] sm:$0xff]  ;;  %p961_p12 = scmp.ge.s32.totalorder %s962_s27, %s1871_s25 }
 0x12b   : >> { %971 = vst [vmem:[%s1389_s18 + $0x8] sm:$0xff] %v970_v39  ;;  %v980_v44 = vld [vmem:[%s1393_s23 + $0x30] sm:$0xff]  ;;  %v982_v45 = vld [vmem:[%s1393_s23 + $0x38] sm:$0xff]  ;;  %v984_v46 = vld [vmem:[%s1393_s23 + $0x40] sm:$0xff] }
 0x12c   : >> { %973 = vst [vmem:[%s1389_s18 + $0x10] sm:$0xff] %v972_v40  ;;  %s2017_s28 = smov (%p1033_p11, %s1032_s28), 0  ;;  %v986_v47 = vld [vmem:[%s1393_s23 + $0x48] sm:$0xff]  ;;  %v988_v48 = vld [vmem:[%s1393_s23 + $0x50] sm:$0xff]  ;;  %v990_v49 = vld [vmem:[%s1393_s23 + $0x58] sm:$0xff] }
 0x12d   : >> { %975 = vst [vmem:[%s1389_s18 + $0x18] sm:$0xff] %v974_v41  ;;  %s1226_s29 = sshll.u32 %s2017_s28, 8  ;;  %v992_v50 = vld [vmem:[%s1393_s23 + $0x60] sm:$0xff]  ;;  %v994_v51 = vld [vmem:[%s1393_s23 + $0x68] sm:$0xff]  ;;  %v996_v52 = vld [vmem:[%s1393_s23 + $0x70] sm:$0xff]  ;;  %s2010_s26 = smov %s2017_s28 }
 0x12e   : >> { %977 = vst [vmem:[%s1389_s18 + $0x20] sm:$0xff] %v976_v42  ;;  %s1914_s30 = scalar_lea.vmem %s1604_s13, %s1226_s29 [#allocation2]   ;;  %s1917_s5 = scalar_lea.vmem %s1865_s21, %s1226_s29   ;;  %v998_v53 = vld [vmem:[%s1393_s23 + $0x78] sm:$0xff]  ;;  %v1000_v54 = vld [vmem:[%s1393_s23 + $0x80] sm:$0xff]  ;;  %v1002_v55 = vld [vmem:[%s1393_s23 + $0x88] sm:$0xff] }
 0x12f   : >> { %979 = vst [vmem:[%s1389_s18 + $0x28] sm:$0xff] %v978_v43  ;;  %v1004_v56 = vld [vmem:[%s1393_s23 + $0x90] sm:$0xff]  ;;  %v1006_v57 = vld [vmem:[%s1393_s23 + $0x98] sm:$0xff]  ;;  %v1008_v58 = vld [vmem:[%s1393_s23 + $0xa0] sm:$0xff] }
 0x130   : >> { %981 = vst [vmem:[%s1389_s18 + $0x30] sm:$0xff] %v980_v44  ;;  %v1010_v59 = vld [vmem:[%s1393_s23 + $0xa8] sm:$0xff]  ;;  %v1012_v60 = vld [vmem:[%s1393_s23 + $0xb0] sm:$0xff]  ;;  %v1014_v61 = vld [vmem:[%s1393_s23 + $0xb8] sm:$0xff] }
 0x131   : >> { %983 = vst [vmem:[%s1389_s18 + $0x38] sm:$0xff] %v982_v45  ;;  %v1016_v62 = vld [vmem:[%s1393_s23 + $0xc0] sm:$0xff]  ;;  %v1018_v63 = vld [vmem:[%s1393_s23 + $0xc8] sm:$0xff]  ;;  %v1020_v0 = vld [vmem:[%s1393_s23 + $0xd0] sm:$0xff] }
 0x132   : >> { %985 = vst [vmem:[%s1389_s18 + $0x40] sm:$0xff] %v984_v46  ;;  %v1022_v1 = vld [vmem:[%s1393_s23 + $0xd8] sm:$0xff]  ;;  %v1024_v2 = vld [vmem:[%s1393_s23 + $0xe0] sm:$0xff]  ;;  %v1026_v3 = vld [vmem:[%s1393_s23 + $0xe8] sm:$0xff] }
 0x133   : >> { %987 = vst [vmem:[%s1389_s18 + $0x48] sm:$0xff] %v986_v47  ;;  %v1028_v4 = vld [vmem:[%s1393_s23 + $0xf0] sm:$0xff]  ;;  %v1030_v5 = vld [vmem:[%s1393_s23 + $0xf8] sm:$0xff]  ;;  %s2009_s23 = smov %s1914_s30 }
 0x134   : >> { %989 = vst [vmem:[%s1389_s18 + $0x50] sm:$0xff] %v988_v48 }
 0x135   : >> { %991 = vst [vmem:[%s1389_s18 + $0x58] sm:$0xff] %v990_v49 }
 0x136   : >> { %993 = vst [vmem:[%s1389_s18 + $0x60] sm:$0xff] %v992_v50 }
 0x137   : >> { %995 = vst [vmem:[%s1389_s18 + $0x68] sm:$0xff] %v994_v51 }
 0x138   : >> { %997 = vst [vmem:[%s1389_s18 + $0x70] sm:$0xff] %v996_v52 }
 0x139   : >> { %999 = vst [vmem:[%s1389_s18 + $0x78] sm:$0xff] %v998_v53 }
 0x13a   : >> { %1001 = vst [vmem:[%s1389_s18 + $0x80] sm:$0xff] %v1000_v54 }
 0x13b   : >> { %1003 = vst [vmem:[%s1389_s18 + $0x88] sm:$0xff] %v1002_v55 }
 0x13c   : >> { %1005 = vst [vmem:[%s1389_s18 + $0x90] sm:$0xff] %v1004_v56 }
 0x13d   : >> { %1007 = vst [vmem:[%s1389_s18 + $0x98] sm:$0xff] %v1006_v57 }
 0x13e   : >> { %1009 = vst [vmem:[%s1389_s18 + $0xa0] sm:$0xff] %v1008_v58 }
 0x13f   : >> { %1011 = vst [vmem:[%s1389_s18 + $0xa8] sm:$0xff] %v1010_v59 }
 0x140   : >> { %1013 = vst [vmem:[%s1389_s18 + $0xb0] sm:$0xff] %v1012_v60 }
 0x141   : >> { %1015 = vst [vmem:[%s1389_s18 + $0xb8] sm:$0xff] %v1014_v61 }
 0x142   : >> { %1017 = vst [vmem:[%s1389_s18 + $0xc0] sm:$0xff] %v1016_v62 }
 0x143   : >> { %1019 = vst [vmem:[%s1389_s18 + $0xc8] sm:$0xff] %v1018_v63 }
 0x144   : >> { %1021 = vst [vmem:[%s1389_s18 + $0xd0] sm:$0xff] %v1020_v0 }
 0x145   : >> { %1023 = vst [vmem:[%s1389_s18 + $0xd8] sm:$0xff] %v1022_v1  ;;  %964 = sbr.rel (!%p961_p12) target bundleno = 297 (0x129), region = 129 }
 0x146   : >> { %1025 = vst [vmem:[%s1389_s18 + $0xe0] sm:$0xff] %v1024_v2 }
 0x147   : >> { %1027 = vst [vmem:[%s1389_s18 + $0xe8] sm:$0xff] %v1026_v3 }
 0x148   : >> { %1029 = vst [vmem:[%s1389_s18 + $0xf0] sm:$0xff] %v1028_v4 }
 0x149   : >> { %1031 = vst [vmem:[%s1389_s18 + $0xf8] sm:$0xff] %v1030_v5  ;;  %s2008_s18 = smov %s1917_s5 }
 0x14a PF: > { %s1982_s6 = sand.u32 31, %s2015_s14   ;;  %s1237_s7 = sshll.u32 %s1871_s25, 8 }
 0x14b   : > { %s1043_s8 = scalar_lea.vmem %s1604_s13, %s1237_s7 [#allocation2]   ;;  %s1045_s9 = scalar_lea.vmem %s1865_s21, %s1237_s7  }
 0x14c   : > { %p1231_p13 = scmp.le.s32.totalorder %s1982_s6, 0 }
 0x14d   : > { %s1403_s10 = smov (!%p1231_p13), %s1045_s9   ;;  %s1407_s11 = smov (!%p1231_p13), %s1043_s8  }
 0x14e   : > { %1142 = sbr.rel (%p1231_p13) target bundleno = 347 (0x15b), region = 134  ;;  %s1411_s12 = smov (!%p1231_p13), 0  }
 0x14f   : > { %s1415_s15 = smov (!%p1231_p13), 0  }
 0x153 LB: >> { %v1055_v6 = vld [vmem:[%s1409_s11] sm:$0xff]  ;;  %s1057_s14 = sadd.s32 1, %s1413_s12  ;;  %s1049_s15 = sadd.s32 1, %s1417_s15   ;;  %s1417_s15 = sphi %s1415_s15, %s1049_s15   ;;  %s1413_s12 = sphi %s1411_s12, %s1412_s12   ;;  %s1409_s11 = sphi %s1407_s11, %s1062_s11   ;;  %s1405_s10 = sphi %s1403_s10, %s1063_s10  }
 0x154   : >> { %1056 = vst [vmem:[%s1405_s10] sm:$0xff] %v1055_v6  ;;  %p1058_p0 = scmp.ge.s32.totalorder %s1057_s14, %s1982_s6  ;;  %p1048_p1 = scmp.ge.s32.totalorder %s1049_s15, %s1982_s6 }
 0x156   : >> { %s2019_s14 = smov (%p1058_p0, %s1057_s14), 0  ;;  %1051 = sbr.rel (!%p1048_p1) target bundleno = 339 (0x153), region = 140 }
 0x157   : >> { %s1232_s13 = sshll.u32 %s2019_s14, 3  ;;  %s1412_s12 = smov %s2019_s14  }
 0x158   : >> { %s1062_s11 = scalar_lea.vmem %s1043_s8, %s1232_s13 [#allocation2]   ;;  %s1063_s10 = scalar_lea.vmem %s1045_s9, %s1232_s13  }
 0x15b PF: > { %p11_p2 = scmp.ge.s32.totalorder %s1459_s19, 4   ;;  %s2011_s15 = smov %s1381_s16 }
 0x15c   : > { %s2012_s16 = smov %s1467_s22  ;;  %s2013_s17 = smov %s1459_s19 }
 0x15d   :  { %13 = sbr.rel (!%p11_p2) target bundleno = 2 (0x2), region = 151 }

// kernel: hourglass2d_forward.21
= control target key start
LH: loop header
LB: loop body
LE: loop exit
PB: predicated region body
PF: predicated region fallthrough
CT: control target
= control target key end

     0   :  { %s1045_s27 = smov 0   ;;  %s1047_s28 = smov 0   ;;  %s1149_s0 = inlined_call_operand.vmem [shape: f32[2,18,10,8], index: 0, kind: input, shape index: {}, may-alias: {0,1,2}]   ;;  %s1150_s1 = inlined_call_operand.vmem [shape: f32[2,18,10,8], index: 1, kind: input, shape index: {}, may-alias: {0,1,2}]   ;;  %s1151_s2 = inlined_call_operand.vmem [shape: f32[2,18,10,8], index: 2, kind: input, shape index: {}, may-alias: {0,1,2}]   ;;  %s1152_s3 = inlined_call_operand.vmem [shape: f32[2,18,9,8], index: 3, kind: input, shape index: {}, may-alias: {3,4,5}]   ;;  %s1153_s4 = inlined_call_operand.vmem [shape: f32[2,18,9,8], index: 4, kind: input, shape index: {}, may-alias: {3,4,5}]   ;;  %s1154_s5 = inlined_call_operand.vmem [shape: f32[2,18,9,8], index: 5, kind: input, shape index: {}, may-alias: {3,4,5}]   ;;  %s1155_s6 = inlined_call_operand.vmem [shape: f32[9,8], index: 6, kind: input, shape index: {}]   ;;  %s1156_s7 = inlined_call_operand.vmem [shape: f32[1,8], index: 7, kind: input, shape index: {}]   ;;  %s1157_s8 = inlined_call_operand.vmem [shape: f32[2,8,9,8], index: 8, kind: output, shape index: {}]  }
   0x1   :  { %s1049_s29 = smov 0   ;;  %s1051_s30 = smov 0  }
   0x2   :  { %s1053_s9 = smov 0  }
   0x3 LB: > { %s27_s10 = sadd.s32 1, %s990_s29  ;;  %s30_s11 = sadd.s32 1, %s994_s30  ;;  %s998_s9 = sphi %s1053_s9, %s18_s9   ;;  %s994_s30 = sphi %s1051_s30, %s1161_s30   ;;  %s990_s29 = sphi %s1049_s29, %s1160_s29   ;;  %s986_s28 = sphi %s1047_s28, %s1159_s28   ;;  %s982_s27 = sphi %s1045_s27, %s1158_s27  }
   0x4   : > { %p28_p0 = scmp.ge.s32.totalorder %s27_s10, 8  ;;  %p893_p1 = scmp.ge.s32.totalorder %s998_s9, 1 }
   0x5   : > { %p402_p2 = scmp.lt.s32.totalorder %s998_s9, 17 }
   0x6   : > { %s1163_s10 = smov (%p28_p0, %s27_s10), 0  ;;  %s1165_s11 = smov (!%p28_p0, %s30_s11), %s994_s30 }
   0x7   : > { %p403_p3 = pnand %p893_p1, %p402_p2  ;;  %p32_p4 = scmp.ge.s32.totalorder %s1165_s11, 2 }
   0x8   : > { %s894_s12 = sshll.u32 (!%p403_p3), %s982_s27, 1  ;;  %p500_p5 = scmp.lt.s32.totalorder (!%p403_p3), %s986_s28, 1 }
   0x9   : > { %s1167_s11 = smov (%p32_p4, %s1165_s11), 0  ;;  %406 = sbr.rel (%p403_p3) target bundleno = 49 (0x31), region = 52 }
   0xa   : > { %p502_p6 = scmp.lt.s32.totalorder (!%p403_p3), %s894_s12, 17  ;;  %s511_s13 = sadd.s32 (!%p403_p3), 1, %s894_s12 }
   0xb   : > { %p514_p7 = scmp.lt.s32.totalorder (!%p403_p3), %s511_s13, 17  ;;  %s524_s19 = sadd.s32 (!%p403_p3), 2, %s894_s12 }
   0xc   : > { %p527_p8 = scmp.lt.s32.totalorder (!%p403_p3), %s524_s19, 17  ;;  %p575_p9 = scmp.lt.s32.totalorder (!%p403_p3), %s982_s27, 7 }
   0xe   : > { %s1169_s28 = smov (!%p500_p5, %s986_s28), 1  ;;  %v1083_v0 = vld [vmem:[%s1155_s6] sm:$0xff]  ;;  %s1171_s13 = smov (!%p514_p7, %s511_s13), 17  ;;  %vm611_vm0 = vcmask 1046528   ;;  %v958_v21 = vld [vmem:[%s1155_s6 + $0x8] ss:$0 sm:$0xff] }
   0xf   : > { %s503_s14 = scalar_select %p502_p6, %s894_s12, 17  ;;  %v596_v1 = vperm.slane %v1083_v0, 0  ;;  %v601_v2 = vperm.slane %v1083_v0, 1  ;;  %v606_v3 = vperm.slane %v1083_v0, 2  ;;  %v619_v16 = vperm.slane %v1083_v0, 3 }
  0x10   : > { %s1086_s17 = smul.u32 36, %s1169_s28  ;;  %s1173_s19 = smov (!%p527_p8, %s524_s19), 17  ;;  %v629_v17 = vperm.slane %v1083_v0, 5  ;;  %v624_v20 = vperm.slane %v1083_v0, 4  ;;  %v641_v26 = vperm.slane %v1083_v0, 6  ;;  %v646_v41 = vperm.slane %v1083_v0, 7 }
  0x11   : > { %s895_s18 = sshll.u32 %s503_s14, 1  ;;  %s898_s12 = sshll.u32 %s1171_s13, 1  ;;  %v959_v62 = vld [vmem:[%s1156_s7] ss:$0 sm:$0xff]  ;;  %vm673_vm1 = vcmask 64512   ;;  %vm675_vm2 = vcmask 57344  }
  0x12   : > { %s506_s20 = sadd.s32 %s1086_s17, %s895_s18  ;;  %s518_s14 = sadd.s32 %s1086_s17, %s898_s12 }
  0x13   : > { %s896_s21 = sshll.u32 %s506_s20, 3  ;;  %s901_s16 = sshll.u32 %s1173_s19, 1 }
  0x14   : > { %s508_s24 = scalar_lea.vmem %s1149_s0, %s896_s21  ;;  %s545_s15 = scalar_lea.vmem %s1152_s3, %s896_s21 }
  0x15   : > { %v584_v4 = vld [vmem:[%s508_s24] sm:$0xff]  ;;  %v585_v5 = vld [vmem:[%s508_s24 + $0x8] sm:$0x3]  ;;  %s899_s18 = sshll.u32 %s518_s14, 3  ;;  %s531_s20 = sadd.s32 %s1086_s17, %s901_s16 }
  0x16   : > { %v590_v6 = vld [vmem:[%s545_s15] sm:$0xff]  ;;  %v591_v7 = vld [vmem:[%s545_s15 + $0x8] sm:$0x1]  ;;  %v597_v8 = vmul.f32 %v596_v1, %v584_v4  ;;  %v598_v9 = vmul.f32 %v596_v1, %v585_v5  ;;  %v607_v11 = vmul.f32 %v606_v3, %v584_v4  ;;  %v608_v13 = vmul.f32 %v606_v3, %v585_v5  ;;  %s520_s19 = scalar_lea.vmem %s1150_s1, %s899_s18  ;;  %s902_s24 = sshll.u32 %s531_s20, 3 }
  0x17   : > { %v602_v10 = vmul.f32 %v601_v2, %v590_v6  ;;  %v603_v12 = vmul.f32 %v601_v2, %v591_v7  ;;  %s533_s15 = scalar_lea.vmem %s1151_s2, %s902_s24  ;;  %s557_s17 = scalar_lea.vmem %s1153_s4, %s899_s18  ;;  %v586_v22 = vld [vmem:[%s520_s19] sm:$0xff]  ;;  %v587_v23 = vld [vmem:[%s520_s19 + $0x8] sm:$0x3] }
  0x18   : > { %v612_v15 = vrot.slane %v607_v11, 1  ;;  %v613_v19 = vrot.slane %v608_v13, 1  ;;  %s570_s13 = scalar_lea.vmem %s1154_s5, %s902_s24  ;;  %v588_v27 = vld [vmem:[%s533_s15] sm:$0xff]  ;;  %v589_v28 = vld [vmem:[%s533_s15 + $0x8] sm:$0x3]  ;;  %v620_v31 = vmul.f32 %v619_v16, %v586_v22  ;;  %v621_v32 = vmul.f32 %v619_v16, %v587_v23  ;;  %s1175_s27 = smov (!%p575_p9, %s982_s27), 7 }
  0x19   : > { %v604_v14 = vadd.f32 %v602_v10, %v597_v8  ;;  %v605_v18 = vadd.f32 %v603_v12, %v598_v9  ;;  %v592_v29 = vld [vmem:[%s557_s17] sm:$0xff]  ;;  %v630_v33 = vmul.f32 %v629_v17, %v586_v22  ;;  %v593_v34 = vld [vmem:[%s557_s17 + $0x8] sm:$0x1]  ;;  %v631_v36 = vmul.f32 %v629_v17, %v587_v23  ;;  %s912_s18 = sshll.u32 %s1175_s27, 1  ;;  %s913_s20 = sshll.u32 %s1169_s28, 4 }
  0x1a   : > { %v614_v24 = vsel %vm611_vm0, %v612_v15, %v613_v19  ;;  %v625_v35 = vmul.f32 %v624_v20, %v592_v29  ;;  %v652_v37 = vmul.f32 %v958_v21, %v588_v27  ;;  %v626_v39 = vmul.f32 %v624_v20, %v593_v34  ;;  %v594_v42 = vld [vmem:[%s570_s13] sm:$0xff]  ;;  %v595_v49 = vld [vmem:[%s570_s13 + $0x8] sm:$0x1]  ;;  %s579_s19 = sadd.s32 %s913_s20, %s912_s18 }
  0x1b   : > { %v618_v25 = vadd.f32 %v613_v19, %v605_v18  ;;  %v617_v30 = vadd.f32 %v614_v24, %v604_v14  ;;  %v634_v40 = vrot.slane %v630_v33, 1  ;;  %v635_v43 = vrot.slane %v631_v36, 1  ;;  %s914_s24 = sshll.u32 %s579_s19, 3 }
  0x1c   : > { %v653_v44 = vmul.f32 %v958_v21, %v589_v28  ;;  %v642_v47 = vmul.f32 %v641_v26, %v588_v27  ;;  %v656_v48 = vrot.slane %v652_v37, 1  ;;  %v643_v53 = vmul.f32 %v641_v26, %v589_v28  ;;  %s581_s28 = scalar_lea.vmem %s1157_s8, %s914_s24 }
  0x1d   : > { %v622_v38 = vadd.f32 %v620_v31, %v617_v30  ;;  %v623_v45 = vadd.f32 %v621_v32, %v618_v25  ;;  %v636_v50 = vsel %vm611_vm0, %v634_v40, %v635_v43  ;;  %v647_v55 = vmul.f32 %v646_v41, %v594_v42 }
  0x1e   : > { %v657_v51 = vrot.slane %v653_v44, 1  ;;  %v648_v57 = vmul.f32 %v646_v41, %v595_v49 }
  0x1f   : > { %v627_v46 = vadd.f32 %v625_v35, %v622_v38  ;;  %v628_v52 = vadd.f32 %v626_v39, %v623_v45 }
  0x20   : > { %v658_v59 = vsel %vm611_vm0, %v656_v48, %v657_v51 }
  0x21   : > { %v639_v54 = vadd.f32 %v636_v50, %v627_v46  ;;  %v640_v56 = vadd.f32 %v635_v43, %v628_v52 }
  0x23   : > { %v644_v58 = vadd.f32 %v642_v47, %v639_v54  ;;  %v645_v60 = vadd.f32 %v643_v53, %v640_v56 }
  0x25   : > { %v649_v61 = vadd.f32 %v647_v55, %v644_v58  ;;  %v650_v63 = vadd.f32 %v648_v57, %v645_v60 }
  0x27   : > { %v661_v0 = vadd.f32 %v658_v59, %v649_v61  ;;  %v662_v1 = vadd.f32 %v657_v51, %v650_v63 }
  0x29   : > { %v667_v2 = vadd.f32 %v959_v62, %v661_v0  ;;  %v668_v3 = vadd.f32 %v959_v62, %v662_v1 }
  0x2b   : > { %v669_v4 = vmax.f32 %v667_v2, 0.0  ;;  %v670_v5 = vmax.f32 %v668_v3, 0.0 }
  0x2d   : > { %v671_v6 = vmin.f32 %v669_v4, 6.0  ;;  %v672_v7 = vmin.f32 %v670_v5, 6.0 }
  0x2f   : > { %674 = vst.msk [vmem:[%s581_s28] sm:$0xff] %vm673_vm1, %v671_v6 }
  0x30   : > { %676 = vst.msk [vmem:[%s581_s28 + $0x8] sm:$0x1] %vm675_vm2, %v672_v7 }
  0x31 PF: > { %s18_s9 = sadd.s32 1, %s998_s9   ;;  %s1158_s27 = smov %s990_s29 }
  0x32   : > { %p15_p10 = scmp.ge.s32.totalorder %s18_s9, 18   ;;  %s1159_s28 = smov %s994_s30 }
  0x33   : > { %s1160_s29 = smov %s1163_s10  ;;  %s1161_s30 = smov %s1167_s11 }
  0x34   :  { %17 = sbr.rel (!%p15_p10) target bundleno = 3 (0x3), region = 97 }

// kernel: hourglass2d_forward.22
= control target key start
LH: loop header
LB: loop body
LE: loop exit
PB: predicated region body
PF: predicated region fallthrough
CT: control target
= control target key end

     0   :  { %vm75_vm0 = vcmask 1043456   ;;  %vm47_vm1 = vcmask 64512   ;;  %s329_s1 = inlined_call_operand.vmem [shape: bf16[8,8], index: 1, kind: input, shape index: {}]   ;;  %s330_s0 = inlined_call_operand.vmem [shape: f32[144,8], index: 0, kind: input, shape index: {}]   ;;  %s331_s2 = inlined_call_operand.vmem [shape: f32[1,8], index: 2, kind: input, shape index: {}]   ;;  %s332_s3 = inlined_call_operand.vmem [shape: f32[144,8], index: 3, kind: output, shape index: {}]  }
   0x1   :  { %v42_v0 = vld [vmem:[%s329_s1] sm:$0xf]  ;;  %v17_v1 = vld [vmem:[%s330_s0 + $0x10] sm:$0xff]  ;;  %v18_v2 = vld [vmem:[%s330_s0 + $0x18] sm:$0xff] }
   0x2   :  { %v77_v3 = vsel %vm75_vm0, %v42_v0, 0  ;;  %v34_v4 = vpack.c.bf16 %v18_v2, %v17_v1  ;;  %v23_v5 = vld [vmem:[%s330_s0 + $0x40] sm:$0xff]  ;;  %v24_v6 = vld [vmem:[%s330_s0 + $0x48] sm:$0xff]  ;;  %v29_v7 = vld [vmem:[%s330_s0 + $0x70] sm:$0xff] }
   0x3   :  { %164 = vmatpush.bf16.msra.mxu1 %v77_v3  ;;  %165 = vmatpush.bf16.msra.mxu2 %v77_v3  ;;  %v37_v8 = vpack.c.bf16 %v24_v6, %v23_v5  ;;  %v30_v9 = vld [vmem:[%s330_s0 + $0x78] sm:$0xff]  ;;  %v15_v11 = vld [vmem:[%s330_s0] sm:$0xff]  ;;  %v16_v12 = vld [vmem:[%s330_s0 + $0x8] sm:$0xff] }
   0x4   :  { %166 = vmatpush.bf16.msra.mxu3 %v77_v3  ;;  %v40_v10 = vpack.c.bf16 %v30_v9, %v29_v7  ;;  %86 = vmatpush.bf16.msra.mxu0 %v77_v3  ;;  %v33_v13 = vpack.c.bf16 %v16_v12, %v15_v11  ;;  %v19_v14 = vld [vmem:[%s330_s0 + $0x20] sm:$0xff]  ;;  %v20_v15 = vld [vmem:[%s330_s0 + $0x28] sm:$0xff]  ;;  %v25_v16 = vld [vmem:[%s330_s0 + $0x50] sm:$0xff] }
   0x5   :  { %v26_v17 = vld [vmem:[%s330_s0 + $0x58] sm:$0xff]  ;;  %v31_v18 = vld [vmem:[%s330_s0 + $0x80] sm:$0xff]  ;;  %v32_v19 = vld [vmem:[%s330_s0 + $0x88] sm:$0xff]  ;;  %v35_v20 = vpack.c.bf16 %v20_v15, %v19_v14 }
   0x6   :  { %156 = vmatmul.msk.bf16.vlgmr.msra.gmra.mxu1 %vm47_vm1, %v34_v4  ;;  %159 = vmatmul.msk.bf16.vlgmr.msra.gmra.mxu2 %vm47_vm1, %v37_v8  ;;  %v38_v21 = vpack.c.bf16 %v26_v17, %v25_v16  ;;  %v41_v22 = vpack.c.bf16 %v32_v19, %v31_v18  ;;  %v21_v23 = vld [vmem:[%s330_s0 + $0x30] sm:$0xff]  ;;  %v22_v24 = vld [vmem:[%s330_s0 + $0x38] sm:$0xff]  ;;  %v27_v25 = vld [vmem:[%s330_s0 + $0x60] sm:$0xff] }
   0x7   :  { %162 = vmatmul.msk.bf16.vlgmr.msra.gmra.mxu3 %vm47_vm1, %v40_v10  ;;  %155 = vmatmul.msk.bf16.vlgmr.msra.gmra.mxu0 %vm47_vm1, %v33_v13  ;;  %v28_v26 = vld [vmem:[%s330_s0 + $0x68] sm:$0xff]  ;;  %v36_v27 = vpack.c.bf16 %v22_v24, %v21_v23  ;;  %v167_v29 = vld [vmem:[%s331_s2] ss:$0 sm:$0xff] }
   0x8   :  { %v39_v28 = vpack.c.bf16 %v28_v26, %v27_v25 }
  0x16   :  { %157 = vmatmul.msk.bf16.gmra.mxu1 %vm47_vm1, %v35_v20  ;;  %160 = vmatmul.msk.bf16.gmra.mxu2 %vm47_vm1, %v38_v21 }
  0x17   :  { %163 = vmatmul.msk.bf16.gmra.mxu3 %vm47_vm1, %v41_v22 }
  0x26   :  { %158 = vmatmul.msk.bf16.gmra.mxu1 %vm47_vm1, %v36_v27  ;;  %161 = vmatmul.msk.bf16.gmra.mxu2 %vm47_vm1, %v39_v28 }
  0x83   :  { %v93_v30 = vpop.f32.mrf.mxu1 }
  0x84   :  { %v94_v31 = vadd.f32 %v167_v29, %v93_v30  ;;  %v88_v32 = vpop.f32.mrf.mxu0 }
  0x85   :  { %v89_v33 = vadd.f32 %v167_v29, %v88_v32 }
  0x86   :  { %135 = vst.msk [vmem:[%s332_s3 + $0x10] sm:$0xff] %vm47_vm1, %v94_v31 }
  0x87   :  { %133 = vst.msk [vmem:[%s332_s3] sm:$0xff] %vm47_vm1, %v89_v33 }
  0x89   :  { %v108_v34 = vpop.f32.mrf.mxu2 }
  0x8a   :  { %v109_v35 = vadd.f32 %v167_v29, %v108_v34  ;;  %v123_v36 = vpop.f32.mrf.mxu3 }
  0x8b   :  { %v95_v37 = vpop.f32.mrf.mxu1  ;;  %v124_v38 = vadd.f32 %v167_v29, %v123_v36 }
  0x8c   :  { %141 = vst.msk [vmem:[%s332_s3 + $0x40] sm:$0xff] %vm47_vm1, %v109_v35  ;;  %v96_v39 = vadd.f32 %v167_v29, %v95_v37  ;;  %v90_v40 = vpop.f32.mrf.mxu0 }
  0x8d   :  { %147 = vst.msk [vmem:[%s332_s3 + $0x70] sm:$0xff] %vm47_vm1, %v124_v38  ;;  %v91_v41 = vadd.f32 %v167_v29, %v90_v40 }
  0x8e   :  { %136 = vst.msk [vmem:[%s332_s3 + $0x18] sm:$0xff] %vm47_vm1, %v96_v39 }
  0x8f   :  { %134 = vst.msk [vmem:[%s332_s3 + $0x8] sm:$0xff] %vm47_vm1, %v91_v41 }
  0x91   :  { %v110_v42 = vpop.f32.mrf.mxu2 }
  0x92   :  { %v111_v43 = vadd.f32 %v167_v29, %v110_v42  ;;  %v125_v44 = vpop.f32.mrf.mxu3 }
  0x93   :  { %v98_v45 = vpop.f32.mrf.mxu1  ;;  %v126_v46 = vadd.f32 %v167_v29, %v125_v44 }
  0x94   :  { %142 = vst.msk [vmem:[%s332_s3 + $0x48] sm:$0xff] %vm47_vm1, %v111_v43  ;;  %v99_v47 = vadd.f32 %v167_v29, %v98_v45 }
  0x95   :  { %148 = vst.msk [vmem:[%s332_s3 + $0x78] sm:$0xff] %vm47_vm1, %v126_v46 }
  0x96   :  { %137 = vst.msk [vmem:[%s332_s3 + $0x20] sm:$0xff] %vm47_vm1, %v99_v47 }
  0x99   :  { %v113_v48 = vpop.f32.mrf.mxu2 }
  0x9a   :  { %v114_v49 = vadd.f32 %v167_v29, %v113_v48  ;;  %v128_v50 = vpop.f32.mrf.mxu3 }
  0x9b   :  { %v100_v51 = vpop.f32.mrf.mxu1  ;;  %v129_v52 = vadd.f32 %v167_v29, %v128_v50 }
  0x9c   :  { %143 = vst.msk [vmem:[%s332_s3 + $0x50] sm:$0xff] %vm47_vm1, %v114_v49  ;;  %v101_v53 = vadd.f32 %v167_v29, %v100_v51 }
  0x9d   :  { %149 = vst.msk [vmem:[%s332_s3 + $0x80] sm:$0xff] %vm47_vm1, %v129_v52 }
  0x9e   :  { %138 = vst.msk [vmem:[%s332_s3 + $0x28] sm:$0xff] %vm47_vm1, %v101_v53 }
  0xa1   :  { %v115_v54 = vpop.f32.mrf.mxu2 }
  0xa2   :  { %v116_v55 = vadd.f32 %v167_v29, %v115_v54  ;;  %v130_v56 = vpop.f32.mrf.mxu3 }
  0xa3   :  { %v103_v57 = vpop.f32.mrf.mxu1  ;;  %v131_v58 = vadd.f32 %v167_v29, %v130_v56 }
  0xa4   :  { %144 = vst.msk [vmem:[%s332_s3 + $0x58] sm:$0xff] %vm47_vm1, %v116_v55  ;;  %v104_v59 = vadd.f32 %v167_v29, %v103_v57 }
  0xa5   :  { %150 = vst.msk [vmem:[%s332_s3 + $0x88] sm:$0xff] %vm47_vm1, %v131_v58 }
  0xa6   :  { %139 = vst.msk [vmem:[%s332_s3 + $0x30] sm:$0xff] %vm47_vm1, %v104_v59 }
  0xa9   :  { %v118_v60 = vpop.f32.mrf.mxu2 }
  0xaa   :  { %v119_v61 = vadd.f32 %v167_v29, %v118_v60 }
  0xab   :  { %v105_v62 = vpop.f32.mrf.mxu1 }
  0xac   :  { %145 = vst.msk [vmem:[%s332_s3 + $0x60] sm:$0xff] %vm47_vm1, %v119_v61  ;;  %v106_v63 = vadd.f32 %v167_v29, %v105_v62 }
  0xae   :  { %140 = vst.msk [vmem:[%s332_s3 + $0x38] sm:$0xff] %vm47_vm1, %v106_v63 }
  0xb1   :  { %v120_v0 = vpop.f32.mrf.mxu2 }
  0xb2   :  { %v121_v1 = vadd.f32 %v167_v29, %v120_v0 }
  0xb4   :  { %146 = vst.msk [vmem:[%s332_s3 + $0x68] sm:$0xff] %vm47_vm1, %v121_v1 }

// kernel: hourglass2d_forward.23
= control target key start
LH: loop header
LB: loop body
LE: loop exit
PB: predicated region body
PF: predicated region fallthrough
CT: control target
= control target key end

     0   :  { %vm75_vm0 = vcmask 1043456   ;;  %vm47_vm1 = vcmask 64512   ;;  %vm169_vm2 = vcmask 130048   ;;  %s386_s1 = inlined_call_operand.vmem [shape: bf16[8,16], index: 1, kind: input, shape index: {}]   ;;  %s387_s0 = inlined_call_operand.vmem [shape: f32[144,8], index: 0, kind: input, shape index: {}]   ;;  %s388_s2 = inlined_call_operand.vmem [shape: f32[1,16], index: 2, kind: input, shape index: {}]   ;;  %s389_s3 = inlined_call_operand.vmem [shape: f32[144,16], index: 3, kind: output, shape index: {}]  }
   0x1   :  { %v42_v0 = vld [vmem:[%s386_s1] sm:$0xf]  ;;  %v17_v1 = vld [vmem:[%s387_s0 + $0x10] sm:$0xff]  ;;  %v18_v2 = vld [vmem:[%s387_s0 + $0x18] sm:$0xff] }
   0x2   :  { %v77_v3 = vsel %vm75_vm0, %v42_v0, 0  ;;  %v34_v4 = vpack.c.bf16 %v18_v2, %v17_v1  ;;  %v23_v5 = vld [vmem:[%s387_s0 + $0x40] sm:$0xff]  ;;  %v24_v6 = vld [vmem:[%s387_s0 + $0x48] sm:$0xff]  ;;  %v29_v7 = vld [vmem:[%s387_s0 + $0x70] sm:$0xff] }
   0x3   :  { %201 = vmatpush.bf16.msra.mxu1 %v77_v3  ;;  %202 = vmatpush.bf16.msra.mxu2 %v77_v3  ;;  %v37_v8 = vpack.c.bf16 %v24_v6, %v23_v5  ;;  %v30_v9 = vld [vmem:[%s387_s0 + $0x78] sm:$0xff]  ;;  %v15_v11 = vld [vmem:[%s387_s0] sm:$0xff]  ;;  %v16_v12 = vld [vmem:[%s387_s0 + $0x8] sm:$0xff] }
   0x4   :  { %203 = vmatpush.bf16.msra.mxu3 %v77_v3  ;;  %v40_v10 = vpack.c.bf16 %v30_v9, %v29_v7  ;;  %86 = vmatpush.bf16.msra.mxu0 %v77_v3  ;;  %v33_v13 = vpack.c.bf16 %v16_v12, %v15_v11  ;;  %v19_v14 = vld [vmem:[%s387_s0 + $0x20] sm:$0xff]  ;;  %v20_v15 = vld [vmem:[%s387_s0 + $0x28] sm:$0xff]  ;;  %v25_v16 = vld [vmem:[%s387_s0 + $0x50] sm:$0xff] }
   0x5   :  { %v26_v17 = vld [vmem:[%s387_s0 + $0x58] sm:$0xff]  ;;  %v31_v18 = vld [vmem:[%s387_s0 + $0x80] sm:$0xff]  ;;  %v32_v19 = vld [vmem:[%s387_s0 + $0x88] sm:$0xff]  ;;  %v35_v20 = vpack.c.bf16 %v20_v15, %v19_v14 }
   0x6   :  { %193 = vmatmul.msk.bf16.vlgmr.msra.gmra.mxu1 %vm47_vm1, %v34_v4  ;;  %196 = vmatmul.msk.bf16.vlgmr.msra.gmra.mxu2 %vm47_vm1, %v37_v8  ;;  %v38_v21 = vpack.c.bf16 %v26_v17, %v25_v16  ;;  %v41_v22 = vpack.c.bf16 %v32_v19, %v31_v18  ;;  %v21_v23 = vld [vmem:[%s387_s0 + $0x30] sm:$0xff]  ;;  %v22_v24 = vld [vmem:[%s387_s0 + $0x38] sm:$0xff]  ;;  %v27_v25 = vld [vmem:[%s387_s0 + $0x60] sm:$0xff] }
   0x7   :  { %199 = vmatmul.msk.bf16.vlgmr.msra.gmra.mxu3 %vm47_vm1, %v40_v10  ;;  %192 = vmatmul.msk.bf16.vlgmr.msra.gmra.mxu0 %vm47_vm1, %v33_v13  ;;  %v28_v26 = vld [vmem:[%s387_s0 + $0x68] sm:$0xff]  ;;  %v36_v27 = vpack.c.bf16 %v22_v24, %v21_v23  ;;  %v294_v29 = vld [vmem:[%s388_s2] ss:$0 sm:$0xff] }
   0x8   :  { %v39_v28 = vpack.c.bf16 %v28_v26, %v27_v25 }
  0x16   :  { %194 = vmatmul.msk.bf16.gmra.mxu1 %vm47_vm1, %v35_v20  ;;  %197 = vmatmul.msk.bf16.gmra.mxu2 %vm47_vm1, %v38_v21 }
  0x17   :  { %200 = vmatmul.msk.bf16.gmra.mxu3 %vm47_vm1, %v41_v22 }
  0x26   :  { %195 = vmatmul.msk.bf16.gmra.mxu1 %vm47_vm1, %v36_v27  ;;  %198 = vmatmul.msk.bf16.gmra.mxu2 %vm47_vm1, %v39_v28 }
  0x83   :  { %v93_v30 = vpop.f32.mrf.mxu1 }
  0x84   :  { %v94_v31 = vadd.f32 %v294_v29, %v93_v30  ;;  %v88_v32 = vpop.f32.mrf.mxu0 }
  0x85   :  { %v89_v34 = vadd.f32 %v294_v29, %v88_v32 }
  0x86   :  { %v135_v33 = vmax.f32 %v94_v31, 0.0 }
  0x87   :  { %v133_v36 = vmax.f32 %v89_v34, 0.0 }
  0x88   :  { %v153_v35 = vmin.f32 %v135_v33, 6.0 }
  0x89   :  { %v108_v37 = vpop.f32.mrf.mxu2  ;;  %v151_v40 = vmin.f32 %v133_v36, 6.0 }
  0x8a   :  { %172 = vst.msk [vmem:[%s389_s3 + $0x10] sm:$0xff] %vm169_vm2, %v153_v35  ;;  %v109_v38 = vadd.f32 %v294_v29, %v108_v37  ;;  %v123_v39 = vpop.f32.mrf.mxu3 }
  0x8b   :  { %v95_v41 = vpop.f32.mrf.mxu1  ;;  %v124_v42 = vadd.f32 %v294_v29, %v123_v39  ;;  %170 = vst.msk [vmem:[%s389_s3] sm:$0xff] %vm169_vm2, %v151_v40 }
  0x8c   :  { %v141_v43 = vmax.f32 %v109_v38, 0.0  ;;  %v96_v44 = vadd.f32 %v294_v29, %v95_v41  ;;  %v90_v46 = vpop.f32.mrf.mxu0 }
  0x8d   :  { %v147_v45 = vmax.f32 %v124_v42, 0.0  ;;  %v91_v49 = vadd.f32 %v294_v29, %v90_v46 }
  0x8e   :  { %v159_v47 = vmin.f32 %v141_v43, 6.0  ;;  %v136_v48 = vmax.f32 %v96_v44, 0.0 }
  0x8f   :  { %v165_v50 = vmin.f32 %v147_v45, 6.0  ;;  %v134_v52 = vmax.f32 %v91_v49, 0.0 }
  0x90   :  { %178 = vst.msk [vmem:[%s389_s3 + $0x40] sm:$0xff] %vm169_vm2, %v159_v47  ;;  %v154_v51 = vmin.f32 %v136_v48, 6.0 }
  0x91   :  { %v110_v53 = vpop.f32.mrf.mxu2  ;;  %184 = vst.msk [vmem:[%s389_s3 + $0x70] sm:$0xff] %vm169_vm2, %v165_v50  ;;  %v152_v56 = vmin.f32 %v134_v52, 6.0 }
  0x92   :  { %173 = vst.msk [vmem:[%s389_s3 + $0x18] sm:$0xff] %vm169_vm2, %v154_v51  ;;  %v111_v54 = vadd.f32 %v294_v29, %v110_v53  ;;  %v125_v55 = vpop.f32.mrf.mxu3 }
  0x93   :  { %v98_v57 = vpop.f32.mrf.mxu1  ;;  %v126_v58 = vadd.f32 %v294_v29, %v125_v55  ;;  %171 = vst.msk [vmem:[%s389_s3 + $0x8] sm:$0xff] %vm169_vm2, %v152_v56 }
  0x94   :  { %v142_v59 = vmax.f32 %v111_v54, 0.0  ;;  %v99_v60 = vadd.f32 %v294_v29, %v98_v57 }
  0x95   :  { %v148_v61 = vmax.f32 %v126_v58, 0.0 }
  0x96   :  { %v160_v62 = vmin.f32 %v142_v59, 6.0  ;;  %v137_v63 = vmax.f32 %v99_v60, 0.0 }
  0x97   :  { %v166_v0 = vmin.f32 %v148_v61, 6.0 }
  0x98   :  { %179 = vst.msk [vmem:[%s389_s3 + $0x48] sm:$0xff] %vm169_vm2, %v160_v62  ;;  %v155_v1 = vmin.f32 %v137_v63, 6.0 }
  0x99   :  { %v113_v2 = vpop.f32.mrf.mxu2  ;;  %185 = vst.msk [vmem:[%s389_s3 + $0x78] sm:$0xff] %vm169_vm2, %v166_v0 }
  0x9a   :  { %174 = vst.msk [vmem:[%s389_s3 + $0x20] sm:$0xff] %vm169_vm2, %v155_v1  ;;  %v114_v3 = vadd.f32 %v294_v29, %v113_v2  ;;  %v128_v4 = vpop.f32.mrf.mxu3 }
  0x9b   :  { %v100_v5 = vpop.f32.mrf.mxu1  ;;  %v129_v6 = vadd.f32 %v294_v29, %v128_v4 }
  0x9c   :  { %v143_v7 = vmax.f32 %v114_v3, 0.0  ;;  %v101_v8 = vadd.f32 %v294_v29, %v100_v5 }
  0x9d   :  { %v149_v9 = vmax.f32 %v129_v6, 0.0 }
  0x9e   :  { %v161_v10 = vmin.f32 %v143_v7, 6.0  ;;  %v138_v11 = vmax.f32 %v101_v8, 0.0 }
  0x9f   :  { %v167_v12 = vmin.f32 %v149_v9, 6.0 }
  0xa0   :  { %180 = vst.msk [vmem:[%s389_s3 + $0x50] sm:$0xff] %vm169_vm2, %v161_v10  ;;  %v156_v13 = vmin.f32 %v138_v11, 6.0 }
  0xa1   :  { %v115_v14 = vpop.f32.mrf.mxu2  ;;  %186 = vst.msk [vmem:[%s389_s3 + $0x80] sm:$0xff] %vm169_vm2, %v167_v12 }
  0xa2   :  { %175 = vst.msk [vmem:[%s389_s3 + $0x28] sm:$0xff] %vm169_vm2, %v156_v13  ;;  %v116_v15 = vadd.f32 %v294_v29, %v115_v14  ;;  %v130_v16 = vpop.f32.mrf.mxu3 }
  0xa3   :  { %v103_v17 = vpop.f32.mrf.mxu1  ;;  %v131_v18 = vadd.f32 %v294_v29, %v130_v16 }
  0xa4   :  { %v144_v19 = vmax.f32 %v116_v15, 0.0  ;;  %v104_v20 = vadd.f32 %v294_v29, %v103_v17 }
  0xa5   :  { %v150_v21 = vmax.f32 %v131_v18, 0.0 }
  0xa6   :  { %v162_v22 = vmin.f32 %v144_v19, 6.0  ;;  %v139_v23 = vmax.f32 %v104_v20, 0.0 }
  0xa7   :  { %v168_v24 = vmin.f32 %v150_v21, 6.0 }
  0xa8   :  { %181 = vst.msk [vmem:[%s389_s3 + $0x58] sm:$0xff] %vm169_vm2, %v162_v22  ;;  %v157_v25 = vmin.f32 %v139_v23, 6.0 }
  0xa9   :  { %v118_v26 = vpop.f32.mrf.mxu2  ;;  %187 = vst.msk [vmem:[%s389_s3 + $0x88] sm:$0xff] %vm169_vm2, %v168_v24 }
  0xaa   :  { %176 = vst.msk [vmem:[%s389_s3 + $0x30] sm:$0xff] %vm169_vm2, %v157_v25  ;;  %v119_v27 = vadd.f32 %v294_v29, %v118_v26 }
  0xab   :  { %v105_v28 = vpop.f32.mrf.mxu1 }
  0xac   :  { %v145_v30 = vmax.f32 %v119_v27, 0.0  ;;  %v106_v31 = vadd.f32 %v294_v29, %v105_v28 }
  0xae   :  { %v163_v32 = vmin.f32 %v145_v30, 6.0  ;;  %v140_v33 = vmax.f32 %v106_v31, 0.0 }
  0xb0   :  { %182 = vst.msk [vmem:[%s389_s3 + $0x60] sm:$0xff] %vm169_vm2, %v163_v32  ;;  %v158_v34 = vmin.f32 %v140_v33, 6.0 }
  0xb1   :  { %v120_v35 = vpop.f32.mrf.mxu2 }
  0xb2   :  { %177 = vst.msk [vmem:[%s389_s3 + $0x38] sm:$0xff] %vm169_vm2, %v158_v34  ;;  %v121_v36 = vadd.f32 %v294_v29, %v120_v35 }
  0xb4   :  { %v146_v37 = vmax.f32 %v121_v36, 0.0 }
  0xb6   :  { %v164_v38 = vmin.f32 %v146_v37, 6.0 }
  0xb8   :  { %183 = vst.msk [vmem:[%s389_s3 + $0x68] sm:$0xff] %vm169_vm2, %v164_v38 }

// kernel: hourglass2d_forward.24
= control target key start
LH: loop header
LB: loop body
LE: loop exit
PB: predicated region body
PF: predicated region fallthrough
CT: control target
= control target key end

     0   :  { %s720_s18 = smov 0   ;;  %s722_s19 = smov 0   ;;  %s821_s0 = inlined_call_operand.vmem [shape: f32[2,10,11,16], index: 0, kind: input, shape index: {}, may-alias: {0,1,2}]   ;;  %s822_s1 = inlined_call_operand.vmem [shape: f32[2,10,11,16], index: 1, kind: input, shape index: {}, may-alias: {0,1,2}]   ;;  %s823_s2 = inlined_call_operand.vmem [shape: f32[2,10,11,16], index: 2, kind: input, shape index: {}, may-alias: {0,1,2}]   ;;  %s824_s3 = inlined_call_operand.vmem [shape: f32[9,16], index: 3, kind: input, shape index: {}]   ;;  %s825_s4 = inlined_call_operand.vmem [shape: f32[1,16], index: 4, kind: input, shape index: {}]   ;;  %s826_s5 = inlined_call_operand.vmem [shape: f32[2,8,9,16], index: 5, kind: output, shape index: {}]  }
   0x1   :  { %s724_s20 = smov 0   ;;  %s726_s21 = smov 0  }
   0x2   :  { %s728_s22 = smov 0  }
   0x3 LB: > { %s24_s23 = sadd.s32 1, %s680_s20  ;;  %s27_s24 = sadd.s32 1, %s684_s21  ;;  %s688_s22 = sphi %s728_s22, %s15_s22   ;;  %s684_s21 = sphi %s726_s21, %s830_s21   ;;  %s680_s20 = sphi %s724_s20, %s829_s20   ;;  %s676_s19 = sphi %s722_s19, %s828_s19   ;;  %s672_s18 = sphi %s720_s18, %s827_s18  }
   0x4   : > { %p25_p0 = scmp.ge.s32.totalorder %s24_s23, 8  ;;  %p595_p1 = scmp.ge.s32.totalorder %s688_s22, 1 }
   0x5   : > { %p247_p2 = scmp.lt.s32.totalorder %s688_s22, 17 }
   0x6   : > { %s832_s23 = smov (%p25_p0, %s24_s23), 0  ;;  %s834_s24 = smov (!%p25_p0, %s27_s24), %s684_s21 }
   0x7   : > { %p248_p3 = pnand %p595_p1, %p247_p2  ;;  %p29_p4 = scmp.ge.s32.totalorder %s834_s24, 2 }
   0x8   : > { %p303_p5 = scmp.lt.s32.totalorder (!%p248_p3), %s676_s19, 1  ;;  %p305_p6 = scmp.lt.s32.totalorder (!%p248_p3), %s672_s18, 9 }
   0x9   : > { %s836_s24 = smov (%p29_p4, %s834_s24), 0  ;;  %251 = sbr.rel (%p248_p3) target bundleno = 50 (0x32), region = 40 }
   0xa   : > { %s312_s25 = sadd.s32 (!%p248_p3), 1, %s672_s18  ;;  %s323_s26 = sadd.s32 (!%p248_p3), 2, %s672_s18 }
   0xb   : > { %p315_p7 = scmp.lt.s32.totalorder (!%p248_p3), %s312_s25, 9  ;;  %p326_p8 = scmp.lt.s32.totalorder (!%p248_p3), %s323_s26, 9 }
   0xc   : > { %p336_p9 = scmp.lt.s32.totalorder (!%p248_p3), %s672_s18, 7 }
   0xe   : > { %s838_s19 = smov (!%p303_p5, %s676_s19), 1  ;;  %v761_v0 = vld [vmem:[%s824_s3] sm:$0xff]  ;;  %s840_s25 = smov (!%p315_p7, %s312_s25), 9  ;;  %vm361_vm0 = vcmask 1046528   ;;  %vm374_vm1 = vcmask 1045504   ;;  %vm450_vm2 = vcmask 130048  }
   0xf   : > { %s306_s27 = scalar_select %p305_p6, %s672_s18, 9  ;;  %v351_v1 = vperm.slane %v761_v0, 0  ;;  %v356_v2 = vperm.slane %v761_v0, 1  ;;  %v369_v3 = vperm.slane %v761_v0, 2  ;;  %v382_v14 = vperm.slane %v761_v0, 3 }
  0x10   : > { %s764_s30 = smul.u32 20, %s838_s19  ;;  %s842_s26 = smov (!%p326_p8, %s323_s26), 9  ;;  %v387_v15 = vperm.slane %v761_v0, 4  ;;  %v399_v18 = vperm.slane %v761_v0, 5  ;;  %v416_v21 = vperm.slane %v761_v0, 7  ;;  %v411_v38 = vperm.slane %v761_v0, 6 }
  0x11   : > { %s596_s6 = sshll.u32 %s306_s27, 1  ;;  %s598_s12 = sshll.u32 %s840_s25, 1  ;;  %v648_v32 = vld [vmem:[%s824_s3 + $0x8] ss:$0 sm:$0xff]  ;;  %vm452_vm3 = vcmask 122880  }
  0x12   : > { %s309_s7 = sadd.s32 %s764_s30, %s596_s6  ;;  %s319_s13 = sadd.s32 %s764_s30, %s598_s12 }
  0x13   : > { %s597_s8 = sshll.u32 %s309_s7, 3  ;;  %s600_s14 = sshll.u32 %s842_s26, 1 }
  0x14   : > { %s311_s11 = scalar_lea.vmem %s821_s0, %s597_s8  ;;  %s599_s15 = sshll.u32 %s319_s13, 3 }
  0x15   : > { %v345_v4 = vld [vmem:[%s311_s11] sm:$0xff]  ;;  %v346_v5 = vld [vmem:[%s311_s11 + $0x8] sm:$0x7]  ;;  %s330_s16 = sadd.s32 %s764_s30, %s600_s14  ;;  %s321_s27 = scalar_lea.vmem %s822_s1, %s599_s15 }
  0x16   : > { %v353_v6 = vmul.f32 %v351_v1, %v346_v5  ;;  %v357_v7 = vmul.f32 %v356_v2, %v345_v4  ;;  %v358_v8 = vmul.f32 %v356_v2, %v346_v5  ;;  %v352_v9 = vmul.f32 %v351_v1, %v345_v4  ;;  %s601_s28 = sshll.u32 %s330_s16, 3  ;;  %v347_v22 = vld [vmem:[%s321_s27] sm:$0xff]  ;;  %v348_v23 = vld [vmem:[%s321_s27 + $0x8] sm:$0x7]  ;;  %s844_s18 = smov (!%p336_p9, %s672_s18), 7 }
  0x17   : > { %v370_v10 = vmul.f32 %v369_v3, %v345_v4  ;;  %v371_v11 = vmul.f32 %v369_v3, %v346_v5  ;;  %s332_s6 = scalar_lea.vmem %s823_s2, %s601_s28  ;;  %v383_v29 = vmul.f32 %v382_v14, %v347_v22  ;;  %v384_v30 = vmul.f32 %v382_v14, %v348_v23  ;;  %s602_s8 = sshll.u32 %s844_s18, 1  ;;  %v649_v1 = vld [vmem:[%s825_s4] ss:$0 sm:$0xff] }
  0x18   : > { %v362_v12 = vrot.slane %v357_v7, 1  ;;  %v363_v13 = vrot.slane %v358_v8, 1  ;;  %v349_v26 = vld [vmem:[%s332_s6] sm:$0xff]  ;;  %v350_v27 = vld [vmem:[%s332_s6 + $0x8] sm:$0x7]  ;;  %v388_v31 = vmul.f32 %v387_v15, %v347_v22  ;;  %v389_v34 = vmul.f32 %v387_v15, %v348_v23  ;;  %s603_s9 = sshll.u32 %s838_s19, 4 }
  0x19   : > { %v375_v16 = vrot.slane %v370_v10, 2  ;;  %v376_v17 = vrot.slane %v371_v11, 2  ;;  %v400_v35 = vmul.f32 %v399_v18, %v347_v22  ;;  %v401_v36 = vmul.f32 %v399_v18, %v348_v23  ;;  %s340_s12 = sadd.s32 %s603_s9, %s602_s8 }
  0x1a   : > { %v364_v19 = vsel %vm361_vm0, %v362_v12, %v363_v13  ;;  %v368_v20 = vadd.f32 %v363_v13, %v353_v6  ;;  %v392_v37 = vrot.slane %v388_v31, 1  ;;  %v417_v39 = vmul.f32 %v416_v21, %v349_v26  ;;  %s604_s13 = sshll.u32 %s340_s12, 3 }
  0x1b   : > { %v367_v24 = vadd.f32 %v364_v19, %v352_v9  ;;  %v377_v25 = vsel %vm374_vm1, %v375_v16, %v376_v17  ;;  %v418_v40 = vmul.f32 %v416_v21, %v350_v27  ;;  %v393_v42 = vrot.slane %v389_v34, 1  ;;  %s342_s19 = scalar_lea.vmem %s826_s5, %s604_s13 }
  0x1c   : > { %v381_v28 = vadd.f32 %v376_v17, %v368_v20  ;;  %v404_v43 = vrot.slane %v400_v35, 2  ;;  %v405_v44 = vrot.slane %v401_v36, 2  ;;  %v421_v45 = vrot.slane %v417_v39, 1 }
  0x1d   : > { %v380_v33 = vadd.f32 %v377_v25, %v367_v24  ;;  %v429_v46 = vmul.f32 %v648_v32, %v349_v26  ;;  %v430_v47 = vmul.f32 %v648_v32, %v350_v27  ;;  %v394_v48 = vsel %vm361_vm0, %v392_v37, %v393_v42 }
  0x1e   : > { %v406_v49 = vsel %vm374_vm1, %v404_v43, %v405_v44  ;;  %v422_v50 = vrot.slane %v418_v40, 1  ;;  %v386_v51 = vadd.f32 %v384_v30, %v381_v28  ;;  %v412_v53 = vmul.f32 %v411_v38, %v349_v26 }
  0x1f   : > { %v385_v41 = vadd.f32 %v383_v29, %v380_v33  ;;  %v433_v54 = vrot.slane %v429_v46, 2  ;;  %v434_v55 = vrot.slane %v430_v47, 2  ;;  %v413_v57 = vmul.f32 %v411_v38, %v350_v27 }
  0x20   : > { %v398_v56 = vadd.f32 %v393_v42, %v386_v51  ;;  %v423_v59 = vsel %vm361_vm0, %v421_v45, %v422_v50 }
  0x21   : > { %v397_v52 = vadd.f32 %v394_v48, %v385_v41  ;;  %v435_v62 = vsel %vm374_vm1, %v433_v54, %v434_v55 }
  0x22   : > { %v410_v60 = vadd.f32 %v405_v44, %v398_v56 }
  0x23   : > { %v409_v58 = vadd.f32 %v406_v49, %v397_v52 }
  0x24   : > { %v415_v63 = vadd.f32 %v413_v57, %v410_v60 }
  0x25   : > { %v414_v61 = vadd.f32 %v412_v53, %v409_v58 }
  0x26   : > { %v427_v2 = vadd.f32 %v422_v50, %v415_v63 }
  0x27   : > { %v426_v0 = vadd.f32 %v423_v59, %v414_v61 }
  0x28   : > { %v439_v4 = vadd.f32 %v434_v55, %v427_v2 }
  0x29   : > { %v438_v3 = vadd.f32 %v435_v62, %v426_v0 }
  0x2a   : > { %v445_v6 = vadd.f32 %v649_v1, %v439_v4 }
  0x2b   : > { %v444_v5 = vadd.f32 %v649_v1, %v438_v3 }
  0x2c   : > { %v447_v8 = vmax.f32 %v445_v6, 0.0 }
  0x2d   : > { %v446_v7 = vmax.f32 %v444_v5, 0.0 }
  0x2e   : > { %v449_v10 = vmin.f32 %v447_v8, 6.0 }
  0x2f   : > { %v448_v9 = vmin.f32 %v446_v7, 6.0 }
  0x30   : > { %453 = vst.msk [vmem:[%s342_s19 + $0x8] sm:$0x1] %vm452_vm3, %v449_v10 }
  0x31   : > { %451 = vst.msk [vmem:[%s342_s19] sm:$0xff] %vm450_vm2, %v448_v9 }
  0x32 PF: > { %s15_s22 = sadd.s32 1, %s688_s22   ;;  %s827_s18 = smov %s680_s20 }
  0x33   : > { %p12_p10 = scmp.ge.s32.totalorder %s15_s22, 18   ;;  %s828_s19 = smov %s684_s21 }
  0x34   : > { %s829_s20 = smov %s832_s23  ;;  %s830_s21 = smov %s836_s24 }
  0x35   :  { %14 = sbr.rel (!%p12_p10) target bundleno = 3 (0x3), region = 76 }

// kernel: hourglass2d_forward.25
= control target key start
LH: loop header
LB: loop body
LE: loop exit
PB: predicated region body
PF: predicated region fallthrough
CT: control target
= control target key end

     0   :  { %vm57_vm0 = vcmask 130048   ;;  %vm175_vm1 = vcmask 64512   ;;  %s456_s1 = inlined_call_operand.vmem [shape: bf16[16,8], index: 1, kind: input, shape index: {}]   ;;  %s457_s0 = inlined_call_operand.vmem [shape: f32[144,16], index: 0, kind: input, shape index: {}]   ;;  %s458_s2 = inlined_call_operand.vmem [shape: f32[1,8], index: 2, kind: input, shape index: {}]   ;;  %s459_s3 = inlined_call_operand.vmem [shape: f32[144,8], index: 3, kind: input, shape index: {}]   ;;  %s460_s4 = inlined_call_operand.vmem [shape: f32[144,8], index: 4, kind: output, shape index: {}]  }
   0x1   :  { %v211_v0 = vld [vmem:[%s456_s1] sm:$0xff]  ;;  %v20_v1 = vld [vmem:[%s457_s0 + $0x10] sm:$0xff]  ;;  %v21_v2 = vld [vmem:[%s457_s0 + $0x18] sm:$0xff] }
   0x2   :  { %v37_v3 = vpack.c.bf16 %v21_v2, %v20_v1  ;;  %v26_v4 = vld [vmem:[%s457_s0 + $0x40] sm:$0xff]  ;;  %v27_v5 = vld [vmem:[%s457_s0 + $0x48] sm:$0xff]  ;;  %v32_v6 = vld [vmem:[%s457_s0 + $0x70] sm:$0xff]  ;;  %212 = vmatpush.bf16.msra.mxu1 %v211_v0  ;;  %213 = vmatpush.bf16.msra.mxu2 %v211_v0 }
   0x3   :  { %v40_v7 = vpack.c.bf16 %v27_v5, %v26_v4  ;;  %v33_v8 = vld [vmem:[%s457_s0 + $0x78] sm:$0xff]  ;;  %214 = vmatpush.bf16.msra.mxu3 %v211_v0  ;;  %92 = vmatpush.bf16.msra.mxu0 %v211_v0  ;;  %v18_v10 = vld [vmem:[%s457_s0] sm:$0xff]  ;;  %v19_v11 = vld [vmem:[%s457_s0 + $0x8] sm:$0xff] }
   0x4   :  { %v43_v9 = vpack.c.bf16 %v33_v8, %v32_v6  ;;  %v36_v12 = vpack.c.bf16 %v19_v11, %v18_v10  ;;  %v22_v13 = vld [vmem:[%s457_s0 + $0x20] sm:$0xff]  ;;  %v23_v14 = vld [vmem:[%s457_s0 + $0x28] sm:$0xff]  ;;  %v28_v15 = vld [vmem:[%s457_s0 + $0x50] sm:$0xff] }
   0x5   :  { %203 = vmatmul.msk.bf16.vlgmr.msra.gmra.mxu1 %vm57_vm0, %v37_v3  ;;  %206 = vmatmul.msk.bf16.vlgmr.msra.gmra.mxu2 %vm57_vm0, %v40_v7  ;;  %v29_v16 = vld [vmem:[%s457_s0 + $0x58] sm:$0xff]  ;;  %v34_v17 = vld [vmem:[%s457_s0 + $0x80] sm:$0xff]  ;;  %v35_v18 = vld [vmem:[%s457_s0 + $0x88] sm:$0xff]  ;;  %v38_v19 = vpack.c.bf16 %v23_v14, %v22_v13 }
   0x6   :  { %209 = vmatmul.msk.bf16.vlgmr.msra.gmra.mxu3 %vm57_vm0, %v43_v9  ;;  %202 = vmatmul.msk.bf16.vlgmr.msra.gmra.mxu0 %vm57_vm0, %v36_v12  ;;  %v41_v20 = vpack.c.bf16 %v29_v16, %v28_v15  ;;  %v44_v21 = vpack.c.bf16 %v35_v18, %v34_v17  ;;  %v24_v22 = vld [vmem:[%s457_s0 + $0x30] sm:$0xff]  ;;  %v25_v23 = vld [vmem:[%s457_s0 + $0x38] sm:$0xff]  ;;  %v30_v24 = vld [vmem:[%s457_s0 + $0x60] sm:$0xff] }
   0x7   :  { %v31_v25 = vld [vmem:[%s457_s0 + $0x68] sm:$0xff]  ;;  %v39_v26 = vpack.c.bf16 %v25_v23, %v24_v22  ;;  %v310_v28 = vld [vmem:[%s458_s2] ss:$0 sm:$0xff]  ;;  %v141_v30 = vld [vmem:[%s459_s3 + $0x10] sm:$0xff] }
   0x8   :  { %v42_v27 = vpack.c.bf16 %v31_v25, %v30_v24  ;;  %v139_v33 = vld [vmem:[%s459_s3] sm:$0xff]  ;;  %v153_v41 = vld [vmem:[%s459_s3 + $0x70] sm:$0xff]  ;;  %v142_v43 = vld [vmem:[%s459_s3 + $0x18] sm:$0xff] }
   0x9   :  { %v147_v38 = vld [vmem:[%s459_s3 + $0x40] sm:$0xff]  ;;  %v140_v49 = vld [vmem:[%s459_s3 + $0x8] sm:$0xff]  ;;  %v154_v57 = vld [vmem:[%s459_s3 + $0x78] sm:$0xff] }
   0xa   :  { %v148_v54 = vld [vmem:[%s459_s3 + $0x48] sm:$0xff]  ;;  %v143_v59 = vld [vmem:[%s459_s3 + $0x20] sm:$0xff]  ;;  %v149_v2 = vld [vmem:[%s459_s3 + $0x50] sm:$0xff] }
   0xb   :  { %v155_v5 = vld [vmem:[%s459_s3 + $0x80] sm:$0xff]  ;;  %v144_v7 = vld [vmem:[%s459_s3 + $0x28] sm:$0xff]  ;;  %v150_v14 = vld [vmem:[%s459_s3 + $0x58] sm:$0xff] }
   0xc   :  { %v156_v17 = vld [vmem:[%s459_s3 + $0x88] sm:$0xff] }
  0x15   :  { %204 = vmatmul.msk.bf16.gmra.mxu1 %vm57_vm0, %v38_v19  ;;  %207 = vmatmul.msk.bf16.gmra.mxu2 %vm57_vm0, %v41_v20  ;;  %v145_v19 = vld [vmem:[%s459_s3 + $0x30] sm:$0xff] }
  0x16   :  { %210 = vmatmul.msk.bf16.gmra.mxu3 %vm57_vm0, %v44_v21 }
  0x25   :  { %205 = vmatmul.msk.bf16.gmra.mxu1 %vm57_vm0, %v39_v26  ;;  %208 = vmatmul.msk.bf16.gmra.mxu2 %vm57_vm0, %v42_v27  ;;  %v151_v26 = vld [vmem:[%s459_s3 + $0x60] sm:$0xff] }
  0x82   :  { %v99_v29 = vpop.f32.mrf.mxu1 }
  0x83   :  { %v100_v31 = vadd.f32 %v310_v28, %v99_v29  ;;  %v94_v32 = vpop.f32.mrf.mxu0 }
  0x84   :  { %v95_v35 = vadd.f32 %v310_v28, %v94_v32 }
  0x85   :  { %v159_v34 = vadd.f32 %v141_v30, %v100_v31  ;;  %v146_v30 = vld [vmem:[%s459_s3 + $0x38] sm:$0xff] }
  0x86   :  { %v157_v36 = vadd.f32 %v139_v33, %v95_v35  ;;  %v152_v35 = vld [vmem:[%s459_s3 + $0x68] sm:$0xff] }
  0x87   :  { %178 = vst.msk [vmem:[%s460_s4 + $0x10] sm:$0xff] %vm175_vm1, %v159_v34 }
  0x88   :  { %v114_v37 = vpop.f32.mrf.mxu2  ;;  %176 = vst.msk [vmem:[%s460_s4] sm:$0xff] %vm175_vm1, %v157_v36 }
  0x89   :  { %v115_v39 = vadd.f32 %v310_v28, %v114_v37  ;;  %v129_v40 = vpop.f32.mrf.mxu3 }
  0x8a   :  { %v101_v42 = vpop.f32.mrf.mxu1  ;;  %v130_v44 = vadd.f32 %v310_v28, %v129_v40 }
  0x8b   :  { %v165_v45 = vadd.f32 %v147_v38, %v115_v39  ;;  %v102_v46 = vadd.f32 %v310_v28, %v101_v42  ;;  %v96_v48 = vpop.f32.mrf.mxu0 }
  0x8c   :  { %v171_v47 = vadd.f32 %v153_v41, %v130_v44  ;;  %v97_v51 = vadd.f32 %v310_v28, %v96_v48 }
  0x8d   :  { %184 = vst.msk [vmem:[%s460_s4 + $0x40] sm:$0xff] %vm175_vm1, %v165_v45  ;;  %v160_v50 = vadd.f32 %v142_v43, %v102_v46 }
  0x8e   :  { %190 = vst.msk [vmem:[%s460_s4 + $0x70] sm:$0xff] %vm175_vm1, %v171_v47  ;;  %v158_v52 = vadd.f32 %v140_v49, %v97_v51 }
  0x8f   :  { %179 = vst.msk [vmem:[%s460_s4 + $0x18] sm:$0xff] %vm175_vm1, %v160_v50 }
  0x90   :  { %v116_v53 = vpop.f32.mrf.mxu2  ;;  %177 = vst.msk [vmem:[%s460_s4 + $0x8] sm:$0xff] %vm175_vm1, %v158_v52 }
  0x91   :  { %v117_v55 = vadd.f32 %v310_v28, %v116_v53  ;;  %v131_v56 = vpop.f32.mrf.mxu3 }
  0x92   :  { %v104_v58 = vpop.f32.mrf.mxu1  ;;  %v132_v60 = vadd.f32 %v310_v28, %v131_v56 }
  0x93   :  { %v166_v61 = vadd.f32 %v148_v54, %v117_v55  ;;  %v105_v62 = vadd.f32 %v310_v28, %v104_v58 }
  0x94   :  { %v172_v63 = vadd.f32 %v154_v57, %v132_v60 }
  0x95   :  { %185 = vst.msk [vmem:[%s460_s4 + $0x48] sm:$0xff] %vm175_vm1, %v166_v61  ;;  %v161_v0 = vadd.f32 %v143_v59, %v105_v62 }
  0x96   :  { %191 = vst.msk [vmem:[%s460_s4 + $0x78] sm:$0xff] %vm175_vm1, %v172_v63 }
  0x97   :  { %180 = vst.msk [vmem:[%s460_s4 + $0x20] sm:$0xff] %vm175_vm1, %v161_v0 }
  0x98   :  { %v119_v1 = vpop.f32.mrf.mxu2 }
  0x99   :  { %v120_v3 = vadd.f32 %v310_v28, %v119_v1  ;;  %v134_v4 = vpop.f32.mrf.mxu3 }
  0x9a   :  { %v106_v6 = vpop.f32.mrf.mxu1  ;;  %v135_v8 = vadd.f32 %v310_v28, %v134_v4 }
  0x9b   :  { %v167_v9 = vadd.f32 %v149_v2, %v120_v3  ;;  %v107_v10 = vadd.f32 %v310_v28, %v106_v6 }
  0x9c   :  { %v173_v11 = vadd.f32 %v155_v5, %v135_v8 }
  0x9d   :  { %186 = vst.msk [vmem:[%s460_s4 + $0x50] sm:$0xff] %vm175_vm1, %v167_v9  ;;  %v162_v12 = vadd.f32 %v144_v7, %v107_v10 }
  0x9e   :  { %192 = vst.msk [vmem:[%s460_s4 + $0x80] sm:$0xff] %vm175_vm1, %v173_v11 }
  0x9f   :  { %181 = vst.msk [vmem:[%s460_s4 + $0x28] sm:$0xff] %vm175_vm1, %v162_v12 }
  0xa0   :  { %v121_v13 = vpop.f32.mrf.mxu2 }
  0xa1   :  { %v122_v15 = vadd.f32 %v310_v28, %v121_v13  ;;  %v136_v16 = vpop.f32.mrf.mxu3 }
  0xa2   :  { %v109_v18 = vpop.f32.mrf.mxu1  ;;  %v137_v20 = vadd.f32 %v310_v28, %v136_v16 }
  0xa3   :  { %v168_v21 = vadd.f32 %v150_v14, %v122_v15  ;;  %v110_v22 = vadd.f32 %v310_v28, %v109_v18 }
  0xa4   :  { %v174_v23 = vadd.f32 %v156_v17, %v137_v20 }
  0xa5   :  { %187 = vst.msk [vmem:[%s460_s4 + $0x58] sm:$0xff] %vm175_vm1, %v168_v21  ;;  %v163_v24 = vadd.f32 %v145_v19, %v110_v22 }
  0xa6   :  { %193 = vst.msk [vmem:[%s460_s4 + $0x88] sm:$0xff] %vm175_vm1, %v174_v23 }
  0xa7   :  { %182 = vst.msk [vmem:[%s460_s4 + $0x30] sm:$0xff] %vm175_vm1, %v163_v24 }
  0xa8   :  { %v124_v25 = vpop.f32.mrf.mxu2 }
  0xa9   :  { %v125_v27 = vadd.f32 %v310_v28, %v124_v25 }
  0xaa   :  { %v111_v29 = vpop.f32.mrf.mxu1 }
  0xab   :  { %v169_v31 = vadd.f32 %v151_v26, %v125_v27  ;;  %v112_v32 = vadd.f32 %v310_v28, %v111_v29 }
  0xad   :  { %188 = vst.msk [vmem:[%s460_s4 + $0x60] sm:$0xff] %vm175_vm1, %v169_v31  ;;  %v164_v33 = vadd.f32 %v146_v30, %v112_v32 }
  0xaf   :  { %183 = vst.msk [vmem:[%s460_s4 + $0x38] sm:$0xff] %vm175_vm1, %v164_v33 }
  0xb0   :  { %v126_v34 = vpop.f32.mrf.mxu2 }
  0xb1   :  { %v127_v36 = vadd.f32 %v310_v28, %v126_v34 }
  0xb3   :  { %v170_v37 = vadd.f32 %v152_v35, %v127_v36 }
  0xb5   :  { %189 = vst.msk [vmem:[%s460_s4 + $0x68] sm:$0xff] %vm175_vm1, %v170_v37 }

// kernel: hourglass2d_forward.29
= control target key start
LH: loop header
LB: loop body
LE: loop exit
PB: predicated region body
PF: predicated region fallthrough
CT: control target
= control target key end

     0   :  { %vm35_vm0 = vcmask 130048   ;;  %vm78_vm1 = vcmask 261120   ;;  %s160_s1 = inlined_call_operand.vmem [shape: bf16[16,32], index: 1, kind: input, shape index: {}]   ;;  %s161_s0 = inlined_call_operand.vmem [shape: f32[40,16], index: 0, kind: input, shape index: {}]   ;;  %s162_s2 = inlined_call_operand.vmem [shape: f32[1,32], index: 2, kind: input, shape index: {}]   ;;  %s163_s3 = inlined_call_operand.vmem [shape: f32[40,32], index: 3, kind: output, shape index: {}]  }
   0x1   :  { %v95_v0 = vld [vmem:[%s160_s1] sm:$0xff]  ;;  %v16_v2 = vld [vmem:[%s161_s0 + $0x8] sm:$0xff]  ;;  %v17_v4 = vld [vmem:[%s161_s0 + $0x10] sm:$0xff] }
   0x2   :  { %v15_v1 = vld [vmem:[%s161_s0] sm:$0xff]  ;;  %v18_v5 = vld [vmem:[%s161_s0 + $0x18] sm:$0xff]  ;;  %52 = vmatpush.bf16.msra.mxu0 %v95_v0  ;;  %96 = vmatpush.bf16.msra.mxu1 %v95_v0 }
   0x3   :  { %v20_v3 = vpack.c.bf16 %v16_v2, %v15_v1  ;;  %v19_v6 = vld [vmem:[%s161_s0 + $0x20] sm:$0xff]  ;;  %v21_v7 = vpack.c.bf16 %v18_v5, %v17_v4  ;;  %97 = vmatpush.bf16.msra.mxu2 %v95_v0 }
   0x4   :  { %v22_v8 = vpack.c.bf16 %v19_v6, %v19_v6  ;;  %v98_v9 = vld [vmem:[%s162_s2] ss:$0 sm:$0xff] }
   0x5   :  { %92 = vmatmul.msk.bf16.vlgmr.msra.gmra.mxu0 %vm35_vm0, %v20_v3  ;;  %93 = vmatmul.msk.bf16.vlgmr.msra.gmra.mxu1 %vm35_vm0, %v21_v7 }
   0x6   :  { %94 = vmatmul.msk.bf16.vlgmr.msra.gmra.mxu2 %vm35_vm0, %v22_v8 }
  0x82   :  { %v54_v10 = vpop.f32.mrf.mxu0  ;;  %v59_v11 = vpop.f32.mrf.mxu1 }
  0x83   :  { %v55_v12 = vadd.f32 %v98_v9, %v54_v10  ;;  %v60_v13 = vadd.f32 %v98_v9, %v59_v11 }
  0x85   :  { %v68_v14 = vmax.f32 %v55_v12, 0.0  ;;  %v70_v15 = vmax.f32 %v60_v13, 0.0 }
  0x87   :  { %v73_v16 = vmin.f32 %v68_v14, 6.0  ;;  %v75_v17 = vmin.f32 %v70_v15, 6.0 }
  0x89   :  { %79 = vst.msk [vmem:[%s163_s3] sm:$0xff] %vm78_vm1, %v73_v16  ;;  %v64_v18 = vpop.f32.mrf.mxu2 }
  0x8a   :  { %81 = vst.msk [vmem:[%s163_s3 + $0x10] sm:$0xff] %vm78_vm1, %v75_v17  ;;  %v65_v19 = vadd.f32 %v98_v9, %v64_v18  ;;  %v56_v20 = vpop.f32.mrf.mxu0  ;;  %v61_v21 = vpop.f32.mrf.mxu1 }
  0x8b   :  { %v57_v22 = vadd.f32 %v98_v9, %v56_v20  ;;  %v62_v23 = vadd.f32 %v98_v9, %v61_v21 }
  0x8c   :  { %v72_v24 = vmax.f32 %v65_v19, 0.0 }
  0x8d   :  { %v69_v25 = vmax.f32 %v57_v22, 0.0  ;;  %v71_v26 = vmax.f32 %v62_v23, 0.0 }
  0x8e   :  { %v77_v27 = vmin.f32 %v72_v24, 6.0 }
  0x8f   :  { %v74_v28 = vmin.f32 %v69_v25, 6.0  ;;  %v76_v29 = vmin.f32 %v71_v26, 6.0 }
  0x90   :  { %83 = vst.msk [vmem:[%s163_s3 + $0x20] sm:$0xff] %vm78_vm1, %v77_v27 }
  0x91   :  { %80 = vst.msk [vmem:[%s163_s3 + $0x8] sm:$0xff] %vm78_vm1, %v74_v28  ;;  %v66_v30 = vpop.f32.mrf.mxu2 }
  0x92   :  { %82 = vst.msk [vmem:[%s163_s3 + $0x18] sm:$0xff] %vm78_vm1, %v76_v29 }

// kernel: hourglass2d_forward.28
= control target key start
LH: loop header
LB: loop body
LE: loop exit
PB: predicated region body
PF: predicated region fallthrough
CT: control target
= control target key end

     0   :  { %vm35_vm0 = vcmask 130048   ;;  %s152_s1 = inlined_call_operand.vmem [shape: bf16[16,16], index: 1, kind: input, shape index: {}]   ;;  %s153_s0 = inlined_call_operand.vmem [shape: f32[40,16], index: 0, kind: input, shape index: {}]   ;;  %s154_s2 = inlined_call_operand.vmem [shape: f32[1,16], index: 2, kind: input, shape index: {}]   ;;  %s155_s3 = inlined_call_operand.vmem [shape: f32[40,16], index: 3, kind: output, shape index: {}]  }
   0x1   :  { %v84_v0 = vld [vmem:[%s152_s1] sm:$0xff]  ;;  %v16_v2 = vld [vmem:[%s153_s0 + $0x8] sm:$0xff]  ;;  %v17_v4 = vld [vmem:[%s153_s0 + $0x10] sm:$0xff] }
   0x2   :  { %v15_v1 = vld [vmem:[%s153_s0] sm:$0xff]  ;;  %v18_v5 = vld [vmem:[%s153_s0 + $0x18] sm:$0xff]  ;;  %52 = vmatpush.bf16.msra.mxu0 %v84_v0  ;;  %85 = vmatpush.bf16.msra.mxu1 %v84_v0 }
   0x3   :  { %v20_v3 = vpack.c.bf16 %v16_v2, %v15_v1  ;;  %v19_v6 = vld [vmem:[%s153_s0 + $0x20] sm:$0xff]  ;;  %v21_v7 = vpack.c.bf16 %v18_v5, %v17_v4  ;;  %86 = vmatpush.bf16.msra.mxu2 %v84_v0 }
   0x4   :  { %v22_v8 = vpack.c.bf16 %v19_v6, %v19_v6  ;;  %v87_v9 = vld [vmem:[%s154_s2] ss:$0 sm:$0xff] }
   0x5   :  { %81 = vmatmul.msk.bf16.vlgmr.msra.gmra.mxu0 %vm35_vm0, %v20_v3  ;;  %82 = vmatmul.msk.bf16.vlgmr.msra.gmra.mxu1 %vm35_vm0, %v21_v7 }
   0x6   :  { %83 = vmatmul.msk.bf16.vlgmr.msra.gmra.mxu2 %vm35_vm0, %v22_v8 }
  0x82   :  { %v54_v10 = vpop.f32.mrf.mxu0  ;;  %v59_v11 = vpop.f32.mrf.mxu1 }
  0x83   :  { %v55_v12 = vadd.f32 %v87_v9, %v54_v10  ;;  %v60_v13 = vadd.f32 %v87_v9, %v59_v11 }
  0x85   :  { %68 = vst.msk [vmem:[%s155_s3] sm:$0xff] %vm35_vm0, %v55_v12 }
  0x86   :  { %70 = vst.msk [vmem:[%s155_s3 + $0x10] sm:$0xff] %vm35_vm0, %v60_v13 }
  0x89   :  { %v64_v14 = vpop.f32.mrf.mxu2 }
  0x8a   :  { %v65_v15 = vadd.f32 %v87_v9, %v64_v14  ;;  %v56_v16 = vpop.f32.mrf.mxu0  ;;  %v61_v17 = vpop.f32.mrf.mxu1 }
  0x8b   :  { %v57_v18 = vadd.f32 %v87_v9, %v56_v16  ;;  %v62_v19 = vadd.f32 %v87_v9, %v61_v17 }
  0x8c   :  { %72 = vst.msk [vmem:[%s155_s3 + $0x20] sm:$0xff] %vm35_vm0, %v65_v15 }
  0x8d   :  { %69 = vst.msk [vmem:[%s155_s3 + $0x8] sm:$0xff] %vm35_vm0, %v57_v18 }
  0x8e   :  { %71 = vst.msk [vmem:[%s155_s3 + $0x18] sm:$0xff] %vm35_vm0, %v62_v19 }
  0x91   :  { %v66_v20 = vpop.f32.mrf.mxu2 }

// kernel: hourglass2d_forward.27
= control target key start
LH: loop header
LB: loop body
LE: loop exit
PB: predicated region body
PF: predicated region fallthrough
CT: control target
= control target key end

     0   :  { %s952_s27 = smov 0   ;;  %s954_s28 = smov 0   ;;  %s1036_s0 = inlined_call_operand.vmem [shape: f32[2,10,6,16], index: 0, kind: input, shape index: {}, may-alias: {0,1,2}]   ;;  %s1037_s1 = inlined_call_operand.vmem [shape: f32[2,10,6,16], index: 1, kind: input, shape index: {}, may-alias: {0,1,2}]   ;;  %s1038_s2 = inlined_call_operand.vmem [shape: f32[2,10,6,16], index: 2, kind: input, shape index: {}, may-alias: {0,1,2}]   ;;  %s1039_s3 = inlined_call_operand.vmem [shape: f32[2,10,5,16], index: 3, kind: input, shape index: {}, may-alias: {3,4,5}]   ;;  %s1040_s4 = inlined_call_operand.vmem [shape: f32[2,10,5,16], index: 4, kind: input, shape index: {}, may-alias: {3,4,5}]   ;;  %s1041_s5 = inlined_call_operand.vmem [shape: f32[2,10,5,16], index: 5, kind: input, shape index: {}, may-alias: {3,4,5}]   ;;  %s1042_s6 = inlined_call_operand.vmem [shape: f32[9,16], index: 6, kind: input, shape index: {}]   ;;  %s1043_s7 = inlined_call_operand.vmem [shape: f32[1,16], index: 7, kind: input, shape index: {}]   ;;  %s1044_s8 = inlined_call_operand.vmem [shape: f32[2,4,5,16], index: 8, kind: output, shape index: {}]  }
   0x1   :  { %s956_s29 = smov 0   ;;  %s958_s30 = smov 0  }
   0x2   :  { %s960_s9 = smov 0  }
   0x3 LB: > { %s27_s10 = sadd.s32 1, %s897_s29  ;;  %s30_s11 = sadd.s32 1, %s901_s30  ;;  %s905_s9 = sphi %s960_s9, %s18_s9   ;;  %s901_s30 = sphi %s958_s30, %s1048_s30   ;;  %s897_s29 = sphi %s956_s29, %s1047_s29   ;;  %s893_s28 = sphi %s954_s28, %s1046_s28   ;;  %s889_s27 = sphi %s952_s27, %s1045_s27  }
   0x4   : > { %p28_p0 = scmp.ge.s32.totalorder %s27_s10, 4  ;;  %p807_p1 = scmp.ge.s32.totalorder %s905_s9, 1 }
   0x5   : > { %p396_p2 = scmp.lt.s32.totalorder %s905_s9, 9 }
   0x6   : > { %s1050_s10 = smov (%p28_p0, %s27_s10), 0  ;;  %s1052_s11 = smov (!%p28_p0, %s30_s11), %s901_s30 }
   0x7   : > { %p397_p3 = pnand %p807_p1, %p396_p2  ;;  %p32_p4 = scmp.ge.s32.totalorder %s1052_s11, 2 }
   0x8   : > { %s808_s12 = sshll.u32 (!%p397_p3), %s889_s27, 1  ;;  %p487_p5 = scmp.lt.s32.totalorder (!%p397_p3), %s893_s28, 1 }
   0x9   : > { %s1054_s11 = smov (%p32_p4, %s1052_s11), 0  ;;  %400 = sbr.rel (%p397_p3) target bundleno = 48 (0x30), region = 52 }
   0xa   : > { %p489_p6 = scmp.lt.s32.totalorder (!%p397_p3), %s808_s12, 9  ;;  %s497_s13 = sadd.s32 (!%p397_p3), 1, %s808_s12 }
   0xb   : > { %p500_p7 = scmp.lt.s32.totalorder (!%p397_p3), %s497_s13, 9  ;;  %s509_s18 = sadd.s32 (!%p397_p3), 2, %s808_s12 }
   0xc   : > { %p512_p8 = scmp.lt.s32.totalorder (!%p397_p3), %s509_s18, 9  ;;  %p556_p9 = scmp.lt.s32.totalorder (!%p397_p3), %s889_s27, 3 }
   0xe   : > { %s1056_s28 = smov (!%p487_p5, %s893_s28), 1  ;;  %v562_v0 = vld [vmem:[%s1042_s6] sm:$0xff]  ;;  %s1058_s13 = smov (!%p500_p7, %s497_s13), 9  ;;  %v865_v20 = vld [vmem:[%s1042_s6 + $0x8] ss:$0 sm:$0xff]  ;;  %vm613_vm0 = vcmask 126976  }
   0xf   : > { %s490_s14 = scalar_select %p489_p6, %s808_s12, 9  ;;  %v570_v1 = vperm.slane %v562_v0, 0  ;;  %v573_v2 = vperm.slane %v562_v0, 1  ;;  %v576_v3 = vperm.slane %v562_v0, 2  ;;  %v582_v9 = vperm.slane %v562_v0, 3 }
  0x10   : > { %s824_s17 = smul.u32 10, %s1056_s28  ;;  %s1060_s18 = smov (!%p512_p8, %s509_s18), 9  ;;  %v588_v10 = vperm.slane %v562_v0, 5  ;;  %v585_v13 = vperm.slane %v562_v0, 4  ;;  %v594_v19 = vperm.slane %v562_v0, 6  ;;  %v597_v25 = vperm.slane %v562_v0, 7 }
  0x11   : > { %s1062_s27 = smov (!%p556_p9, %s889_s27), 3  ;;  %v866_v35 = vld [vmem:[%s1043_s7] ss:$0 sm:$0xff] }
  0x12   : > { %s492_s19 = sadd.s32 %s824_s17, %s490_s14  ;;  %s503_s12 = sadd.s32 %s824_s17, %s1058_s13 }
  0x13   : > { %s809_s20 = sshll.u32 %s492_s19, 3  ;;  %s811_s14 = sshll.u32 %s503_s12, 3 }
  0x14   : > { %s494_s23 = scalar_lea.vmem %s1036_s0, %s809_s20  ;;  %s528_s26 = scalar_lea.vmem %s1039_s3, %s809_s20 }
  0x15   : > { %v564_v4 = vld [vmem:[%s494_s23] sm:$0x3f]  ;;  %s515_s15 = sadd.s32 %s824_s17, %s1060_s18  ;;  %s505_s21 = scalar_lea.vmem %s1037_s1, %s811_s14 }
  0x16   : > { %v567_v5 = vld [vmem:[%s528_s26] sm:$0x1f]  ;;  %v571_v6 = vmul.f32 %v570_v1, %v564_v4  ;;  %v577_v8 = vmul.f32 %v576_v3, %v564_v4  ;;  %s813_s20 = sshll.u32 %s515_s15, 3  ;;  %s539_s13 = scalar_lea.vmem %s1040_s4, %s811_s14 }
  0x17   : > { %v574_v7 = vmul.f32 %v573_v2, %v567_v5  ;;  %s517_s24 = scalar_lea.vmem %s1038_s2, %s813_s20  ;;  %v565_v14 = vld [vmem:[%s505_s21] sm:$0x3f]  ;;  %s551_s12 = scalar_lea.vmem %s1041_s5, %s813_s20 }
  0x18   : > { %v579_v12 = vrot.slane %v577_v8, 1  ;;  %v568_v16 = vld [vmem:[%s539_s13] sm:$0x1f]  ;;  %v583_v17 = vmul.f32 %v582_v9, %v565_v14  ;;  %v589_v18 = vmul.f32 %v588_v10, %v565_v14  ;;  %s820_s14 = sshll.u32 %s1056_s28, 2 }
  0x19   : > { %v575_v11 = vadd.f32 %v574_v7, %v571_v6  ;;  %v566_v21 = vld [vmem:[%s517_s24] sm:$0x3f]  ;;  %v586_v22 = vmul.f32 %v585_v13, %v568_v16  ;;  %s559_s20 = sadd.s32 %s820_s14, %s1062_s27 }
  0x1a   : > { %v591_v24 = vrot.slane %v589_v18, 1  ;;  %v569_v26 = vld [vmem:[%s551_s12] sm:$0x1f]  ;;  %v595_v28 = vmul.f32 %v594_v19, %v566_v21  ;;  %v601_v29 = vmul.f32 %v865_v20, %v566_v21  ;;  %s821_s22 = sshll.u32 %s559_s20, 3 }
  0x1b   : > { %v581_v15 = vadd.f32 %v579_v12, %v575_v11  ;;  %v598_v31 = vmul.f32 %v597_v25, %v569_v26  ;;  %s561_s25 = scalar_lea.vmem %s1044_s8, %s821_s22 }
  0x1c   : > { %v603_v33 = vrot.slane %v601_v29, 1 }
  0x1d   : > { %v584_v23 = vadd.f32 %v583_v17, %v581_v15 }
  0x1f   : > { %v587_v27 = vadd.f32 %v586_v22, %v584_v23 }
  0x21   : > { %v593_v30 = vadd.f32 %v591_v24, %v587_v27 }
  0x23   : > { %v596_v32 = vadd.f32 %v595_v28, %v593_v30 }
  0x25   : > { %v599_v34 = vadd.f32 %v598_v31, %v596_v32 }
  0x27   : > { %v605_v36 = vadd.f32 %v603_v33, %v599_v34 }
  0x29   : > { %v610_v37 = vadd.f32 %v866_v35, %v605_v36 }
  0x2b   : > { %v611_v38 = vmax.f32 %v610_v37, 0.0 }
  0x2d   : > { %v612_v39 = vmin.f32 %v611_v38, 6.0 }
  0x2f   : > { %614 = vst.msk [vmem:[%s561_s25] sm:$0x1f] %vm613_vm0, %v612_v39 }
  0x30 PF: > { %s18_s9 = sadd.s32 1, %s905_s9   ;;  %s1045_s27 = smov %s897_s29 }
  0x31   : > { %p15_p10 = scmp.ge.s32.totalorder %s18_s9, 10   ;;  %s1046_s28 = smov %s901_s30 }
  0x32   : > { %s1047_s29 = smov %s1050_s10  ;;  %s1048_s30 = smov %s1054_s11 }
  0x33   :  { %17 = sbr.rel (!%p15_p10) target bundleno = 3 (0x3), region = 97 }

// kernel: hourglass2d_forward.31
= control target key start
LH: loop header
LB: loop body
LE: loop exit
PB: predicated region body
PF: predicated region fallthrough
CT: control target
= control target key end

     0   :  { %vm46_vm0 = vcmask 261120   ;;  %vm89_vm1 = vcmask 130048   ;;  %s201_s1 = inlined_call_operand.vmem [shape: bf16[32,16], index: 1, kind: input, shape index: {}]   ;;  %s202_s0 = inlined_call_operand.vmem [shape: f32[40,32], index: 0, kind: input, shape index: {}]   ;;  %s203_s2 = inlined_call_operand.vmem [shape: f32[1,16], index: 2, kind: input, shape index: {}]   ;;  %s204_s3 = inlined_call_operand.vmem [shape: f32[40,16], index: 3, kind: input, shape index: {}]   ;;  %s205_s4 = inlined_call_operand.vmem [shape: f32[40,16], index: 4, kind: output, shape index: {}]  }
   0x1   :  { %v111_v0 = vld [vmem:[%s201_s1 + $0x8] sm:$0xff]  ;;  %v110_v1 = vld [vmem:[%s201_s1] sm:$0xff]  ;;  %v20_v4 = vld [vmem:[%s202_s0 + $0x10] sm:$0xff] }
   0x2   :  { %v18_v2 = vld [vmem:[%s202_s0] sm:$0xff]  ;;  %v19_v3 = vld [vmem:[%s202_s0 + $0x8] sm:$0xff]  ;;  %62 = vmatpush.bf16.msra.mxu0 %v111_v0  ;;  %112 = vmatpush.bf16.msra.mxu1 %v111_v0  ;;  %v21_v5 = vld [vmem:[%s202_s0 + $0x18] sm:$0xff] }
   0x3   :  { %113 = vmatpush.bf16.msra.mxu2 %v111_v0  ;;  %v22_v6 = vld [vmem:[%s202_s0 + $0x20] sm:$0xff]  ;;  %v23_v7 = vpack.c.bf16 %v19_v3, %v18_v2  ;;  %v24_v8 = vpack.c.bf16 %v21_v5, %v20_v4  ;;  %v81_v14 = vld [vmem:[%s204_s3 + $0x10] sm:$0xff]  ;;  %v80_v23 = vld [vmem:[%s204_s3 + $0x8] sm:$0xff] }
   0x4   :  { %v25_v9 = vpack.c.bf16 %v22_v6, %v22_v6  ;;  %v116_v10 = vld [vmem:[%s203_s2] ss:$0 sm:$0xff]  ;;  %v82_v25 = vld [vmem:[%s204_s3 + $0x18] sm:$0xff] }
   0x5   :  { %v79_v12 = vld [vmem:[%s204_s3] sm:$0xff] }
   0x6   :  { %63 = vmatpush.bf16.msra.mxu0 %v110_v1  ;;  %114 = vmatpush.bf16.msra.mxu1 %v110_v1  ;;  %v83_v20 = vld [vmem:[%s204_s3 + $0x20] sm:$0xff] }
   0x7   :  { %115 = vmatpush.bf16.msra.mxu2 %v110_v1 }
   0x9   :  { %107 = vmatmul.msk.bf16.vlgmr.msra.gmra.mxu0 %vm46_vm0, %v23_v7  ;;  %108 = vmatmul.msk.bf16.vlgmr.msra.gmra.mxu1 %vm46_vm0, %v24_v8 }
   0xa   :  { %109 = vmatmul.msk.bf16.vlgmr.msra.gmra.mxu2 %vm46_vm0, %v25_v9 }
  0x86   :  { %v65_v11 = vpop.f32.mrf.mxu0  ;;  %v70_v13 = vpop.f32.mrf.mxu1 }
  0x87   :  { %v66_v15 = vadd.f32 %v116_v10, %v65_v11  ;;  %v71_v16 = vadd.f32 %v116_v10, %v70_v13 }
  0x89   :  { %v84_v17 = vadd.f32 %v79_v12, %v66_v15  ;;  %v86_v18 = vadd.f32 %v81_v14, %v71_v16 }
  0x8b   :  { %90 = vst.msk [vmem:[%s205_s4] sm:$0xff] %vm89_vm1, %v84_v17 }
  0x8c   :  { %92 = vst.msk [vmem:[%s205_s4 + $0x10] sm:$0xff] %vm89_vm1, %v86_v18 }
  0x8d   :  { %v75_v19 = vpop.f32.mrf.mxu2 }
  0x8e   :  { %v76_v21 = vadd.f32 %v116_v10, %v75_v19  ;;  %v67_v22 = vpop.f32.mrf.mxu0  ;;  %v72_v24 = vpop.f32.mrf.mxu1 }
  0x8f   :  { %v68_v26 = vadd.f32 %v116_v10, %v67_v22  ;;  %v73_v27 = vadd.f32 %v116_v10, %v72_v24 }
  0x90   :  { %v88_v28 = vadd.f32 %v83_v20, %v76_v21 }
  0x91   :  { %v85_v29 = vadd.f32 %v80_v23, %v68_v26  ;;  %v87_v30 = vadd.f32 %v82_v25, %v73_v27 }
  0x92   :  { %94 = vst.msk [vmem:[%s205_s4 + $0x20] sm:$0xff] %vm89_vm1, %v88_v28 }
  0x93   :  { %91 = vst.msk [vmem:[%s205_s4 + $0x8] sm:$0xff] %vm89_vm1, %v85_v29 }
  0x94   :  { %93 = vst.msk [vmem:[%s205_s4 + $0x18] sm:$0xff] %vm89_vm1, %v87_v30 }
  0x95   :  { %v77_v31 = vpop.f32.mrf.mxu2 }

// kernel: hourglass2d_forward.30
= control target key start
LH: loop header
LB: loop body
LE: loop exit
PB: predicated region body
PF: predicated region fallthrough
CT: control target
= control target key end

     0   :  { %s638_s18 = smov 0   ;;  %s640_s19 = smov 0   ;;  %s716_s0 = inlined_call_operand.vmem [shape: f32[2,6,7,32], index: 0, kind: input, shape index: {}, may-alias: {0,1,2}]   ;;  %s717_s1 = inlined_call_operand.vmem [shape: f32[2,6,7,32], index: 1, kind: input, shape index: {}, may-alias: {0,1,2}]   ;;  %s718_s2 = inlined_call_operand.vmem [shape: f32[2,6,7,32], index: 2, kind: input, shape index: {}, may-alias: {0,1,2}]   ;;  %s719_s3 = inlined_call_operand.vmem [shape: f32[9,32], index: 3, kind: input, shape index: {}]   ;;  %s720_s4 = inlined_call_operand.vmem [shape: f32[1,32], index: 4, kind: input, shape index: {}]   ;;  %s721_s5 = inlined_call_operand.vmem [shape: f32[2,4,5,32], index: 5, kind: output, shape index: {}]  }
   0x1   :  { %s642_s20 = smov 0   ;;  %s644_s21 = smov 0  }
   0x2   :  { %s646_s22 = smov 0  }
   0x3 LB: > { %s24_s23 = sadd.s32 1, %s598_s20  ;;  %s27_s24 = sadd.s32 1, %s602_s21  ;;  %s606_s22 = sphi %s646_s22, %s15_s22   ;;  %s602_s21 = sphi %s644_s21, %s725_s21   ;;  %s598_s20 = sphi %s642_s20, %s724_s20   ;;  %s594_s19 = sphi %s640_s19, %s723_s19   ;;  %s590_s18 = sphi %s638_s18, %s722_s18  }
   0x4   : > { %p25_p0 = scmp.ge.s32.totalorder %s24_s23, 4  ;;  %p517_p1 = scmp.ge.s32.totalorder %s606_s22, 1 }
   0x5   : > { %p244_p2 = scmp.lt.s32.totalorder %s606_s22, 9 }
   0x6   : > { %s727_s23 = smov (%p25_p0, %s24_s23), 0  ;;  %s729_s24 = smov (!%p25_p0, %s27_s24), %s602_s21 }
   0x7   : > { %p245_p3 = pnand %p517_p1, %p244_p2  ;;  %p29_p4 = scmp.ge.s32.totalorder %s729_s24, 2 }
   0x8   : > { %p296_p5 = scmp.lt.s32.totalorder (!%p245_p3), %s594_s19, 1  ;;  %p298_p6 = scmp.lt.s32.totalorder (!%p245_p3), %s590_s18, 5 }
   0x9   : > { %s731_s24 = smov (%p29_p4, %s729_s24), 0  ;;  %248 = sbr.rel (%p245_p3) target bundleno = 49 (0x31), region = 40 }
   0xa   : > { %s304_s25 = sadd.s32 (!%p245_p3), 1, %s590_s18  ;;  %s314_s26 = sadd.s32 (!%p245_p3), 2, %s590_s18 }
   0xb   : > { %p307_p7 = scmp.lt.s32.totalorder (!%p245_p3), %s304_s25, 5  ;;  %p317_p8 = scmp.lt.s32.totalorder (!%p245_p3), %s314_s26, 5 }
   0xc   : > { %p326_p9 = scmp.lt.s32.totalorder (!%p245_p3), %s590_s18, 3 }
   0xe   : > { %s733_s19 = smov (!%p296_p5, %s594_s19), 1  ;;  %v332_v0 = vld [vmem:[%s719_s3] sm:$0xff]  ;;  %s735_s25 = smov (!%p307_p7, %s304_s25), 5  ;;  %v566_v22 = vld [vmem:[%s719_s3 + $0x8] ss:$0 sm:$0xff]  ;;  %vm389_vm0 = vcmask 258048  }
   0xf   : > { %s299_s27 = scalar_select %p298_p6, %s590_s18, 5  ;;  %v337_v1 = vperm.slane %v332_v0, 0  ;;  %v340_v2 = vperm.slane %v332_v0, 1  ;;  %v346_v3 = vperm.slane %v332_v0, 2  ;;  %v352_v8 = vperm.slane %v332_v0, 3 }
  0x10   : > { %s525_s30 = smul.u32 6, %s733_s19  ;;  %s737_s26 = smov (!%p317_p8, %s314_s26), 5  ;;  %v355_v9 = vperm.slane %v332_v0, 4  ;;  %v361_v10 = vperm.slane %v332_v0, 5  ;;  %v370_v15 = vperm.slane %v332_v0, 7  ;;  %v367_v21 = vperm.slane %v332_v0, 6 }
  0x11   : > { %s739_s18 = smov (!%p326_p9, %s590_s18), 3  ;;  %v567_v35 = vld [vmem:[%s720_s4] ss:$0 sm:$0xff] }
  0x12   : > { %s301_s6 = sadd.s32 %s525_s30, %s299_s27  ;;  %s310_s11 = sadd.s32 %s525_s30, %s735_s25 }
  0x13   : > { %s518_s7 = sshll.u32 %s301_s6, 3  ;;  %s519_s12 = sshll.u32 %s310_s11, 3 }
  0x14   : > { %s303_s10 = scalar_lea.vmem %s716_s0, %s518_s7  ;;  %s320_s13 = sadd.s32 %s525_s30, %s737_s26 }
  0x15   : > { %v334_v4 = vld [vmem:[%s303_s10] sm:$0x7f]  ;;  %s312_s16 = scalar_lea.vmem %s717_s1, %s519_s12  ;;  %s520_s17 = sshll.u32 %s320_s13, 3 }
  0x16   : > { %v338_v5 = vmul.f32 %v337_v1, %v334_v4  ;;  %v341_v6 = vmul.f32 %v340_v2, %v334_v4  ;;  %v347_v7 = vmul.f32 %v346_v3, %v334_v4  ;;  %s322_s29 = scalar_lea.vmem %s718_s2, %s520_s17  ;;  %v335_v13 = vld [vmem:[%s312_s16] sm:$0x7f]  ;;  %s521_s30 = sshll.u32 %s733_s19, 2 }
  0x17   : > { %v336_v16 = vld [vmem:[%s322_s29] sm:$0x7f]  ;;  %v353_v17 = vmul.f32 %v352_v8, %v335_v13  ;;  %v356_v18 = vmul.f32 %v355_v9, %v335_v13  ;;  %v362_v19 = vmul.f32 %v361_v10, %v335_v13  ;;  %s329_s8 = sadd.s32 %s521_s30, %s739_s18 }
  0x18   : > { %v343_v11 = vrot.slane %v341_v6, 1  ;;  %v349_v12 = vrot.slane %v347_v7, 2  ;;  %v371_v26 = vmul.f32 %v370_v15, %v336_v16  ;;  %v368_v28 = vmul.f32 %v367_v21, %v336_v16  ;;  %s522_s9 = sshll.u32 %s329_s8, 3 }
  0x19   : > { %v358_v23 = vrot.slane %v356_v18, 1  ;;  %v364_v25 = vrot.slane %v362_v19, 2  ;;  %v377_v29 = vmul.f32 %v566_v22, %v336_v16  ;;  %s331_s12 = scalar_lea.vmem %s721_s5, %s522_s9 }
  0x1a   : > { %v345_v14 = vadd.f32 %v343_v11, %v338_v5  ;;  %v373_v31 = vrot.slane %v371_v26, 1 }
  0x1b   : > { %v379_v33 = vrot.slane %v377_v29, 2 }
  0x1c   : > { %v351_v20 = vadd.f32 %v349_v12, %v345_v14 }
  0x1e   : > { %v354_v24 = vadd.f32 %v353_v17, %v351_v20 }
  0x20   : > { %v360_v27 = vadd.f32 %v358_v23, %v354_v24 }
  0x22   : > { %v366_v30 = vadd.f32 %v364_v25, %v360_v27 }
  0x24   : > { %v369_v32 = vadd.f32 %v368_v28, %v366_v30 }
  0x26   : > { %v375_v34 = vadd.f32 %v373_v31, %v369_v32 }
  0x28   : > { %v381_v36 = vadd.f32 %v379_v33, %v375_v34 }
  0x2a   : > { %v386_v37 = vadd.f32 %v567_v35, %v381_v36 }
  0x2c   : > { %v387_v38 = vmax.f32 %v386_v37, 0.0 }
  0x2e   : > { %v388_v39 = vmin.f32 %v387_v38, 6.0 }
  0x30   : > { %390 = vst.msk [vmem:[%s331_s12] sm:$0x1f] %vm389_vm0, %v388_v39 }
  0x31 PF: > { %s15_s22 = sadd.s32 1, %s606_s22   ;;  %s722_s18 = smov %s598_s20 }
  0x32   : > { %p12_p10 = scmp.ge.s32.totalorder %s15_s22, 10   ;;  %s723_s19 = smov %s602_s21 }
  0x33   : > { %s724_s20 = smov %s727_s23  ;;  %s725_s21 = smov %s731_s24 }
  0x34   :  { %14 = sbr.rel (!%p12_p10) target bundleno = 3 (0x3), region = 76 }

// kernel: hourglass2d_forward.35
= control target key start
LH: loop header
LB: loop body
LE: loop exit
PB: predicated region body
PF: predicated region fallthrough
CT: control target
= control target key end

     0   :  { %s1104_s24 = smov 0   ;;  %s1106_s25 = smov 0   ;;  %s1227_s0 = inlined_call_operand.vmem [shape: f32[2,5,6,16], index: 0, kind: input, shape index: {}, may-alias: {0,1}]   ;;  %s1228_s1 = inlined_call_operand.vmem [shape: f32[2,5,6,16], index: 1, kind: input, shape index: {}, may-alias: {0,1}]   ;;  %s1229_s2 = inlined_call_operand.vmem [shape: bf16[3,3,16,8], index: 2, kind: input, shape index: {}]   ;;  %s1230_s3 = inlined_call_operand.vmem [shape: f32[1,8], index: 3, kind: input, shape index: {}]   ;;  %s1231_s4 = inlined_call_operand.vmem [shape: f32[2,4,5,8], index: 4, kind: output, shape index: {0}]   ;;  %s1232_s5 = inlined_call_operand.vmem [shape: f32[2,4,5,8], index: 5, kind: output, shape index: {1}]   ;;  %s1233_s6 = inlined_call_operand.vmem [shape: f32[2,4,5,8], index: 6, kind: output, shape index: {2}]   ;;  %s1234_s7 = inlined_call_operand.vmem [shape: f32[2,4,5,8], index: 7, kind: output, shape index: {3}]  }
   0x1   :  { %s1108_s26 = smov 0   ;;  %s1110_s27 = smov 0  }
   0x2   :  { %s1112_s28 = smov 0  }
   0x3 LB: > { %s27_s29 = sadd.s32 1, %s1054_s26  ;;  %s30_s30 = sadd.s32 1, %s1058_s27  ;;  %s1062_s28 = sphi %s1112_s28, %s18_s28   ;;  %s1058_s27 = sphi %s1110_s27, %s1238_s27   ;;  %s1054_s26 = sphi %s1108_s26, %s1237_s26   ;;  %s1050_s25 = sphi %s1106_s25, %s1236_s25   ;;  %s1046_s24 = sphi %s1104_s24, %s1235_s24  }
   0x4   : > { %p28_p0 = scmp.ge.s32.totalorder %s27_s29, 4  ;;  %p899_p1 = scmp.ge.s32.totalorder %s1062_s28, 1 }
   0x5   : > { %p288_p2 = scmp.lt.s32.totalorder %s1062_s28, 9 }
   0x6   : > { %s1240_s29 = smov (%p28_p0, %s27_s29), 0  ;;  %s1242_s30 = smov (!%p28_p0, %s30_s30), %s1058_s27 }
   0x7   : > { %p289_p3 = pnand %p899_p1, %p288_p2  ;;  %p32_p4 = scmp.ge.s32.totalorder %s1242_s30, 2 }
   0x8   : > { %p359_p5 = scmp.lt.s32.totalorder (!%p289_p3), %s1050_s25, 1  ;;  %p361_p6 = scmp.lt.s32.totalorder (!%p289_p3), %s1046_s24, 4 }
   0x9   : > { %s1244_s30 = smov (%p32_p4, %s1242_s30), 0  ;;  %292 = sbr.rel (%p289_p3) target bundleno = 190 (0xbe), region = 36 }
   0xa   : > { %s367_s16 = sadd.s32 (!%p289_p3), 1, %s1046_s24  ;;  %p379_p8 = scmp.lt.s32.totalorder (!%p289_p3), %s1046_s24, 3 }
   0xb   : > { %p370_p7 = scmp.lt.s32.totalorder (!%p289_p3), %s367_s16, 4 }
   0xe   : > { %v973_v0 = vld [vmem:[%s1229_s2 + $0x20] sm:$0xff]  ;;  %v974_v1 = vld [vmem:[%s1229_s2 + $0x28] sm:$0xff]  ;;  %v976_v3 = vld [vmem:[%s1229_s2 + $0x38] sm:$0xff]  ;;  %s1246_s25 = smov (!%p359_p5, %s1050_s25), 1  ;;  %vm427_vm0 = vcmask 130048   ;;  %s1248_s16 = smov (!%p370_p7, %s367_s16), 4 }
   0xf   : > { %v977_v2 = vld [vmem:[%s1229_s2 + $0x8] sm:$0xff]  ;;  %v975_v4 = vld [vmem:[%s1229_s2 + $0x18] sm:$0xff]  ;;  %v978_v5 = vld [vmem:[%s1229_s2 + $0x40] sm:$0xff]  ;;  %438 = vmatpush.bf16.msra.mxu0 %v973_v0  ;;  %493 = vmatpush.bf16.msra.mxu2 %v974_v1  ;;  %s362_s9 = scalar_select %p361_p6, %s1046_s24, 4  ;;  %vm444_vm1 = vcmask 61440  }
  0x10   : > { %v980_v6 = vld [vmem:[%s1229_s2 + $0x10] sm:$0xff]  ;;  %523 = vmatpush.bf16.msra.mxu3 %v977_v2  ;;  %s982_s10 = smul.u32 5, %s1246_s25  ;;  %474 = vmatpush.bf16.msra.mxu1 %v975_v4  ;;  %v981_v9 = vld [vmem:[%s1229_s2] sm:$0xff]  ;;  %s1250_s24 = smov (!%p379_p8, %s1046_s24), 3 }
  0x11   : > { %v979_v7 = vld [vmem:[%s1229_s2 + $0x30] sm:$0xff]  ;;  %v1023_v21 = vld [vmem:[%s1230_s3] ss:$0 sm:$0xff] }
  0x12   : > { %s364_s11 = sadd.s32 %s982_s10, %s362_s9  ;;  %s373_s19 = sadd.s32 %s982_s10, %s1248_s16 }
  0x13   : > { %542 = vmatpush.bf16.msrb.mxu0 %v976_v3  ;;  %588 = vmatpush.bf16.msrb.mxu2 %v978_v5  ;;  %s900_s12 = sshll.u32 %s364_s11, 3  ;;  %s901_s20 = sshll.u32 %s373_s19, 3 }
  0x14   : > { %610 = vmatpush.bf16.msrb.mxu3 %v980_v6  ;;  %569 = vmatpush.bf16.msrb.mxu1 %v979_v7  ;;  %s366_s15 = scalar_lea.vmem %s1227_s0, %s900_s12  ;;  %s375_s23 = scalar_lea.vmem %s1228_s1, %s901_s20 }
  0x15   : > { %v410_v8 = vld [vmem:[%s366_s15] sm:$0x3f]  ;;  %s902_s16 = sshll.u32 %s1246_s25, 2 }
  0x16   : > { %v412_v10 = vpack.c.bf16 %v410_v8, %v410_v8  ;;  %v411_v13 = vld [vmem:[%s375_s23] sm:$0x3f]  ;;  %s382_s8 = sadd.s32 %s902_s16, %s1250_s24 }
  0x17   : > { %v413_v15 = vpack.c.bf16 %v411_v13, %v411_v13  ;;  %s1187_s9 = sshll.u32 %s382_s8, 3 }
  0x18   : > { %916 = vmatmul.msk.bf16.vlgmr.msra.gmra.mxu0 %vm427_vm0, %v412_v10  ;;  %930 = vmatmul.msk.bf16.vlgmr.msra.gmra.mxu2 %vm427_vm0, %v412_v10  ;;  %v452_v11 = vshrl.u32 %v412_v10, 16  ;;  %v454_v12 = vshll.u32 %v412_v10, 16  ;;  %s384_s14 = scalar_lea.vmem %s1231_s4, %s1187_s9  ;;  %s392_s15 = scalar_lea.vmem %s1232_s5, %s1187_s9 }
  0x19   : > { %641 = vmatpush.bf16.msra.mxu0 %v981_v9  ;;  %939 = vmatmul.msk.bf16.vlgmr.msra.gmra.mxu3 %vm427_vm0, %v413_v15  ;;  %v621_v17 = vshll.u32 %v413_v15, 16  ;;  %v619_v18 = vshrl.u32 %v413_v15, 16  ;;  %s400_s19 = scalar_lea.vmem %s1233_s6, %s1187_s9  ;;  %s408_s22 = scalar_lea.vmem %s1234_s7, %s1187_s9 }
  0x1a   : > { %v456_v14 = vrot.slane %v454_v12, 1 }
  0x1b   : > { %v623_v19 = vrot.slane %v621_v17, 1 }
  0x1c   : > { %v457_v16 = vor.u32 %v456_v14, %v452_v11 }
  0x1d   : > { %v624_v20 = vor.u32 %v623_v19, %v619_v18 }
  0x1e   : > { %925 = vmatmul.msk.bf16.vlgmr.msra.gmra.mxu1 %vm427_vm0, %v457_v16 }
  0x28   : > { %944 = vmatmul.msk.bf16.vlgmr.msrb.gmra.mxu0 %vm427_vm0, %v412_v10  ;;  %958 = vmatmul.msk.bf16.vlgmr.msrb.gmra.mxu2 %vm427_vm0, %v412_v10 }
  0x29   : > { %965 = vmatmul.msk.bf16.vlgmr.msrb.gmra.mxu3 %vm427_vm0, %v413_v15 }
  0x2e   : > { %953 = vmatmul.msk.bf16.vlgmr.msrb.gmra.mxu1 %vm427_vm0, %v457_v16 }
  0x38   : > { %970 = vmatmul.msk.bf16.vlgmr.msra.gmra.mxu0 %vm427_vm0, %v624_v20 }
  0x95   : > { %v440_v22 = vpop.f32.mrf.mxu0 }
  0x96   : > { %v441_v23 = vadd.f32 %v1023_v21, %v440_v22 }
  0x98   : > { %445 = vst.msk [vmem:[%s384_s14] sm:$0x1f] %vm444_vm1, %v441_v23 }
  0x9b   : > { %v476_v24 = vpop.f32.mrf.mxu1  ;;  %v495_v25 = vpop.f32.mrf.mxu2 }
  0x9c   : > { %v496_v26 = vadd.f32 %v495_v25, %v476_v24  ;;  %v525_v29 = vpop.f32.mrf.mxu3 }
  0x9d   : > { %v442_v27 = vpop.f32.mrf.mxu0 }
  0x9e   : > { %v499_v28 = vadd.f32 %v1023_v21, %v496_v26 }
  0xa0   : > { %500 = vst.msk [vmem:[%s392_s15] sm:$0x1f] %vm444_vm1, %v499_v28 }
  0xa3   : > { %v478_v30 = vpop.f32.mrf.mxu1  ;;  %v497_v31 = vpop.f32.mrf.mxu2 }
  0xa4   : > { %v527_v34 = vpop.f32.mrf.mxu3 }
  0xa5   : > { %v544_v32 = vpop.f32.mrf.mxu0 }
  0xa6   : > { %v545_v33 = vadd.f32 %v544_v32, %v525_v29 }
  0xa8   : > { %v548_v35 = vadd.f32 %v1023_v21, %v545_v33 }
  0xaa   : > { %549 = vst.msk [vmem:[%s400_s19] sm:$0x1f] %vm444_vm1, %v548_v35 }
  0xab   : > { %v571_v36 = vpop.f32.mrf.mxu1  ;;  %v590_v37 = vpop.f32.mrf.mxu2 }
  0xac   : > { %v591_v39 = vadd.f32 %v590_v37, %v571_v36  ;;  %v612_v40 = vpop.f32.mrf.mxu3 }
  0xad   : > { %v546_v38 = vpop.f32.mrf.mxu0 }
  0xae   : > { %v616_v41 = vadd.f32 %v612_v40, %v591_v39 }
  0xb3   : > { %v573_v42 = vpop.f32.mrf.mxu1  ;;  %v592_v43 = vpop.f32.mrf.mxu2 }
  0xb4   : > { %v614_v46 = vpop.f32.mrf.mxu3 }
  0xb5   : > { %v643_v44 = vpop.f32.mrf.mxu0 }
  0xb6   : > { %v647_v45 = vadd.f32 %v643_v44, %v616_v41 }
  0xb8   : > { %v648_v47 = vadd.f32 %v1023_v21, %v647_v45 }
  0xba   : > { %649 = vst.msk [vmem:[%s408_s22] sm:$0x1f] %vm444_vm1, %v648_v47 }
  0xbd   : > { %v645_v48 = vpop.f32.mrf.mxu0 }
  0xbe PF: > { %s18_s28 = sadd.s32 1, %s1062_s28   ;;  %s1235_s24 = smov %s1054_s26 }
  0xbf   : > { %p15_p9 = scmp.ge.s32.totalorder %s18_s28, 10   ;;  %s1236_s25 = smov %s1058_s27 }
  0xc0   : > { %s1237_s26 = smov %s1240_s29  ;;  %s1238_s27 = smov %s1244_s30 }
  0xc1   :  { %17 = sbr.rel (!%p15_p9) target bundleno = 3 (0x3), region = 113 }

// kernel: hourglass2d_forward.39
= control target key start
LH: loop header
LB: loop body
LE: loop exit
PB: predicated region body
PF: predicated region fallthrough
CT: control target
= control target key end

     0   :  { %s1087_s24 = smov 0   ;;  %s1089_s25 = smov 0   ;;  %s1229_s0 = inlined_call_operand.vmem [shape: f32[2,9,10,8], index: 0, kind: input, shape index: {}, may-alias: {0,1}]   ;;  %s1230_s1 = inlined_call_operand.vmem [shape: f32[2,9,10,8], index: 1, kind: input, shape index: {}, may-alias: {0,1}]   ;;  %s1231_s2 = inlined_call_operand.vmem [shape: bf16[3,3,8,4], index: 2, kind: input, shape index: {}]   ;;  %s1232_s3 = inlined_call_operand.vmem [shape: f32[1,4], index: 3, kind: input, shape index: {}]   ;;  %s1233_s4 = inlined_call_operand.vmem [shape: f32[2,8,9,4], index: 4, kind: output, shape index: {0}]   ;;  %s1234_s5 = inlined_call_operand.vmem [shape: f32[2,8,9,4], index: 5, kind: output, shape index: {1}]   ;;  %s1235_s6 = inlined_call_operand.vmem [shape: f32[2,8,9,4], index: 6, kind: output, shape index: {2}]   ;;  %s1236_s7 = inlined_call_operand.vmem [shape: f32[2,8,9,4], index: 7, kind: output, shape index: {3}]  }
   0x1   :  { %s1091_s26 = smov 0   ;;  %s1093_s27 = smov 0  }
   0x2   :  { %s1095_s28 = smov 0  }
   0x3 LB: > { %s27_s29 = sadd.s32 1, %s1037_s26  ;;  %s30_s30 = sadd.s32 1, %s1041_s27  ;;  %s1045_s28 = sphi %s1095_s28, %s18_s28   ;;  %s1041_s27 = sphi %s1093_s27, %s1241_s27   ;;  %s1037_s26 = sphi %s1091_s26, %s1240_s26   ;;  %s1033_s25 = sphi %s1089_s25, %s1239_s25   ;;  %s1029_s24 = sphi %s1087_s24, %s1238_s24  }
   0x4   : > { %p28_p0 = scmp.ge.s32.totalorder %s27_s29, 8  ;;  %p929_p1 = scmp.ge.s32.totalorder %s1045_s28, 1 }
   0x5   : > { %p290_p2 = scmp.lt.s32.totalorder %s1045_s28, 17 }
   0x6   : > { %s1243_s29 = smov (%p28_p0, %s27_s29), 0  ;;  %s1245_s30 = smov (!%p28_p0, %s30_s30), %s1041_s27 }
   0x7   : > { %p291_p3 = pnand %p929_p1, %p290_p2  ;;  %p32_p4 = scmp.ge.s32.totalorder %s1245_s30, 2 }
   0x8   : > { %p367_p5 = scmp.lt.s32.totalorder (!%p291_p3), %s1033_s25, 1  ;;  %p369_p6 = scmp.lt.s32.totalorder (!%p291_p3), %s1029_s24, 8 }
   0x9   : > { %s1247_s30 = smov (%p32_p4, %s1245_s30), 0  ;;  %294 = sbr.rel (%p291_p3) target bundleno = 196 (0xc4), region = 36 }
   0xa   : > { %s376_s22 = sadd.s32 (!%p291_p3), 1, %s1029_s24  ;;  %p389_p8 = scmp.lt.s32.totalorder (!%p291_p3), %s1029_s24, 7 }
   0xb   : > { %p1152_p7 = scmp.lt.s32.totalorder (!%p291_p3), %s376_s22, 8 }
   0xe   : > { %v946_v0 = vld [vmem:[%s1231_s2 + $0x10] sm:$0xf]  ;;  %vm440_vm0 = vcmask 1043456   ;;  %v948_v1 = vld [vmem:[%s1231_s2 + $0x14] sm:$0xf]  ;;  %s1249_s25 = smov (!%p367_p5, %s1033_s25), 1 }
   0xf   : > { %v442_v2 = vsel %vm440_vm0, %v946_v0, 0  ;;  %v493_v3 = vsel %vm440_vm0, %v948_v1, 0  ;;  %v953_v4 = vld [vmem:[%s1231_s2 + $0x4] sm:$0xf]  ;;  %v952_v6 = vld [vmem:[%s1231_s2 + $0x1c] sm:$0xf] }
  0x10   : > { %451 = vmatpush.bf16.msra.mxu0 %v442_v2  ;;  %502 = vmatpush.bf16.msra.mxu2 %v493_v3  ;;  %v521_v5 = vsel %vm440_vm0, %v953_v4, 0  ;;  %v949_v7 = vld [vmem:[%s1231_s2 + $0xc] sm:$0xf]  ;;  %s370_s18 = scalar_select %p369_p6, %s1029_s24, 8  ;;  %v538_v8 = vsel %vm440_vm0, %v952_v6, 0  ;;  %vm436_vm1 = vcmask 64512  }
  0x11   : > { %530 = vmatpush.bf16.msra.mxu3 %v521_v5  ;;  %v476_v9 = vsel %vm440_vm0, %v949_v7, 0  ;;  %v956_v10 = vld [vmem:[%s1231_s2 + $0x20] sm:$0xf]  ;;  %s965_s21 = smul.u32 18, %s1249_s25  ;;  %v960_v12 = vld [vmem:[%s1231_s2 + $0x8] sm:$0xf] }
  0x12   : > { %485 = vmatpush.bf16.msra.mxu1 %v476_v9  ;;  %v580_v11 = vsel %vm440_vm0, %v956_v10, 0  ;;  %s930_s9 = sshll.u32 %s370_s18, 1  ;;  %v599_v13 = vsel %vm440_vm0, %v960_v12, 0  ;;  %v957_v14 = vld [vmem:[%s1231_s2 + $0x18] sm:$0xf]  ;;  %s1251_s22 = smov (!%p1152_p7, %s376_s22), 8 }
  0x13   : > { %s373_s13 = sadd.s32 %s965_s21, %s930_s9  ;;  %v563_v15 = vsel %vm440_vm0, %v957_v14, 0  ;;  %v617_v16 = vld [vmem:[%s1231_s2] sm:$0xf]  ;;  %s932_s20 = sshll.u32 %s1251_s22, 1  ;;  %vm458_vm2 = vcmask 31744   ;;  %vm460_vm3 = vcmask 24576  }
  0x14   : > { %547 = vmatpush.bf16.msrb.mxu0 %v538_v8  ;;  %589 = vmatpush.bf16.msrb.mxu2 %v580_v11  ;;  %s931_s14 = sshll.u32 %s373_s13, 3  ;;  %v628_v20 = vsel %vm440_vm0, %v617_v16, 0  ;;  %s383_s23 = sadd.s32 %s965_s21, %s932_s20  ;;  %v1006_v32 = vld [vmem:[%s1232_s3] ss:$0 sm:$0xff] }
  0x15   : > { %608 = vmatpush.bf16.msrb.mxu3 %v599_v13  ;;  %s375_s19 = scalar_lea.vmem %s1229_s0, %s931_s14  ;;  %s933_s8 = sshll.u32 %s383_s23, 3 }
  0x16   : > { %572 = vmatpush.bf16.msrb.mxu1 %v563_v15  ;;  %v424_v17 = vld [vmem:[%s375_s19] sm:$0xff]  ;;  %v425_v18 = vld [vmem:[%s375_s19 + $0x8] sm:$0x3]  ;;  %s385_s12 = scalar_lea.vmem %s1230_s1, %s933_s8  ;;  %s1253_s24 = smov (!%p389_p8, %s1029_s24), 7 }
  0x17   : > { %v428_v19 = vpack.c.bf16 %v425_v18, %v424_v17  ;;  %v426_v24 = vld [vmem:[%s385_s12] sm:$0xff]  ;;  %v427_v25 = vld [vmem:[%s385_s12 + $0x8] sm:$0x3]  ;;  %s934_s21 = sshll.u32 %s1253_s24, 1  ;;  %s935_s22 = sshll.u32 %s1249_s25, 4 }
  0x18   : > { %v429_v26 = vpack.c.bf16 %v427_v25, %v426_v24  ;;  %s393_s10 = sadd.s32 %s935_s22, %s934_s21 }
  0x19   : > { %947 = vmatmul.msk.bf16.vlgmr.msra.gmra.mxu0 %vm436_vm1, %v428_v19  ;;  %951 = vmatmul.msk.bf16.vlgmr.msra.gmra.mxu2 %vm436_vm1, %v428_v19  ;;  %v466_v21 = vshrl.u32 %v428_v19, 16  ;;  %v468_v22 = vshll.u32 %v428_v19, 16  ;;  %s1185_s13 = sshll.u32 %s393_s10, 3 }
  0x1a   : > { %637 = vmatpush.bf16.msra.mxu0 %v628_v20  ;;  %954 = vmatmul.msk.bf16.vlgmr.msra.gmra.mxu3 %vm436_vm1, %v429_v26  ;;  %v620_v28 = vshll.u32 %v429_v26, 16  ;;  %v618_v29 = vshrl.u32 %v429_v26, 16  ;;  %s395_s18 = scalar_lea.vmem %s1233_s4, %s1185_s13  ;;  %s404_s19 = scalar_lea.vmem %s1234_s5, %s1185_s13 }
  0x1b   : > { %v470_v23 = vrot.slane %v468_v22, 1  ;;  %s413_s8 = scalar_lea.vmem %s1235_s6, %s1185_s13  ;;  %s422_s12 = scalar_lea.vmem %s1236_s7, %s1185_s13 }
  0x1c   : > { %v622_v30 = vrot.slane %v620_v28, 1 }
  0x1d   : > { %v471_v27 = vor.u32 %v470_v23, %v466_v21 }
  0x1e   : > { %v623_v31 = vor.u32 %v622_v30, %v618_v29 }
  0x1f   : > { %950 = vmatmul.msk.bf16.vlgmr.msra.gmra.mxu1 %vm436_vm1, %v471_v27 }
  0x29   : > { %955 = vmatmul.msk.bf16.vlgmr.msrb.gmra.mxu0 %vm436_vm1, %v428_v19  ;;  %959 = vmatmul.msk.bf16.vlgmr.msrb.gmra.mxu2 %vm436_vm1, %v428_v19 }
  0x2a   : > { %961 = vmatmul.msk.bf16.vlgmr.msrb.gmra.mxu3 %vm436_vm1, %v429_v26 }
  0x2f   : > { %958 = vmatmul.msk.bf16.vlgmr.msrb.gmra.mxu1 %vm436_vm1, %v471_v27 }
  0x39   : > { %962 = vmatmul.msk.bf16.vlgmr.msra.gmra.mxu0 %vm436_vm1, %v623_v31 }
  0x96   : > { %v453_v33 = vpop.f32.mrf.mxu0 }
  0x97   : > { %v454_v34 = vadd.f32 %v1006_v32, %v453_v33 }
  0x99   : > { %459 = vst.msk [vmem:[%s395_s18] sm:$0xff] %vm458_vm2, %v454_v34 }
  0x9c   : > { %v487_v35 = vpop.f32.mrf.mxu1  ;;  %v504_v36 = vpop.f32.mrf.mxu2 }
  0x9d   : > { %v505_v37 = vadd.f32 %v504_v36, %v487_v35  ;;  %v532_v41 = vpop.f32.mrf.mxu3 }
  0x9e   : > { %v455_v38 = vpop.f32.mrf.mxu0 }
  0x9f   : > { %v509_v39 = vadd.f32 %v1006_v32, %v505_v37  ;;  %v456_v40 = vadd.f32 %v1006_v32, %v455_v38 }
  0xa1   : > { %511 = vst.msk [vmem:[%s404_s19] sm:$0xff] %vm458_vm2, %v509_v39 }
  0xa2   : > { %461 = vst.msk [vmem:[%s395_s18 + $0x8] sm:$0x1] %vm460_vm3, %v456_v40 }
  0xa4   : > { %v489_v42 = vpop.f32.mrf.mxu1  ;;  %v506_v43 = vpop.f32.mrf.mxu2 }
  0xa5   : > { %v507_v44 = vadd.f32 %v506_v43, %v489_v42  ;;  %v534_v49 = vpop.f32.mrf.mxu3 }
  0xa6   : > { %v549_v45 = vpop.f32.mrf.mxu0 }
  0xa7   : > { %v510_v46 = vadd.f32 %v1006_v32, %v507_v44  ;;  %v550_v47 = vadd.f32 %v549_v45, %v532_v41 }
  0xa9   : > { %512 = vst.msk [vmem:[%s404_s19 + $0x8] sm:$0x1] %vm460_vm3, %v510_v46  ;;  %v554_v48 = vadd.f32 %v1006_v32, %v550_v47 }
  0xab   : > { %556 = vst.msk [vmem:[%s413_s8] sm:$0xff] %vm458_vm2, %v554_v48 }
  0xac   : > { %v574_v50 = vpop.f32.mrf.mxu1  ;;  %v591_v51 = vpop.f32.mrf.mxu2 }
  0xad   : > { %v592_v53 = vadd.f32 %v591_v51, %v574_v50  ;;  %v610_v56 = vpop.f32.mrf.mxu3 }
  0xae   : > { %v551_v52 = vpop.f32.mrf.mxu0 }
  0xaf   : > { %v552_v54 = vadd.f32 %v551_v52, %v534_v49  ;;  %v615_v57 = vadd.f32 %v610_v56, %v592_v53 }
  0xb1   : > { %v555_v55 = vadd.f32 %v1006_v32, %v552_v54 }
  0xb3   : > { %557 = vst.msk [vmem:[%s413_s8 + $0x8] sm:$0x1] %vm460_vm3, %v555_v55 }
  0xb4   : > { %v576_v58 = vpop.f32.mrf.mxu1  ;;  %v593_v59 = vpop.f32.mrf.mxu2 }
  0xb5   : > { %v594_v62 = vadd.f32 %v593_v59, %v576_v58  ;;  %v612_v0 = vpop.f32.mrf.mxu3 }
  0xb6   : > { %v639_v60 = vpop.f32.mrf.mxu0 }
  0xb7   : > { %v644_v61 = vadd.f32 %v639_v60, %v615_v57  ;;  %v616_v1 = vadd.f32 %v612_v0, %v594_v62 }
  0xb9   : > { %v646_v63 = vadd.f32 %v1006_v32, %v644_v61 }
  0xbb   : > { %648 = vst.msk [vmem:[%s422_s12] sm:$0xff] %vm458_vm2, %v646_v63 }
  0xbe   : > { %v641_v2 = vpop.f32.mrf.mxu0 }
  0xbf   : > { %v645_v3 = vadd.f32 %v641_v2, %v616_v1 }
  0xc1   : > { %v647_v4 = vadd.f32 %v1006_v32, %v645_v3 }
  0xc3   : > { %649 = vst.msk [vmem:[%s422_s12 + $0x8] sm:$0x1] %vm460_vm3, %v647_v4 }
  0xc4 PF: > { %s18_s28 = sadd.s32 1, %s1045_s28   ;;  %s1238_s24 = smov %s1037_s26 }
  0xc5   : > { %p15_p9 = scmp.ge.s32.totalorder %s18_s28, 18   ;;  %s1239_s25 = smov %s1041_s27 }
  0xc6   : > { %s1240_s26 = smov %s1243_s29  ;;  %s1241_s27 = smov %s1247_s30 }
  0xc7   :  { %17 = sbr.rel (!%p15_p9) target bundleno = 3 (0x3), region = 113 }

</bundles_post_ra>
